<compile_context>
chip_gen: v7x
topology: tpu7x:2x2x1
jax: 0.10.0
libtpu: 0.0.40
codegen_flags: <defaults>
</compile_context>

<pallas_src>
import functools

import jax
import jax.numpy as jnp
from jax.experimental import pallas as pl
from jax.experimental.pallas import tpu as pltpu


# ---------------------------------------------------------------------------
# Fused kernel: one grid step == one batch block of B images (B on lanes).
# ---------------------------------------------------------------------------
def _fused_cnn_kernel(x_ref, cw_ref, cb_ref, fw_ref, fb_ref, o_ref, *,
                      C, K, F, OH, OW, OUT):
    """Refs:
      x_ref : (C, H, W, B)        VMEM  input block, batch on the lane axis
      cw_ref: (F*C*K*K,)          SMEM  conv weights, row-major over (F,C,K,K)
      cb_ref: (F,)                SMEM  conv bias
      fw_ref: (OUT*F, OH, OW, B)  VMEM  fc weights in conv-output layout,
                                        pre-broadcast along the lane axis
      fb_ref: (OUT,)              SMEM  fc bias
      o_ref : (OUT, B)            VMEM  output block (lane-dense)
    """
    B = o_ref.shape[1]

    # Per-output FC accumulators, (1, B) each.
    out_acc = [jnp.zeros((1, B), jnp.float32) for _ in range(OUT)]

    # Filter-major: keep only one conv accumulator + one streaming window
    # live at a time (no spills as C / F scale).
    for f in range(F):
        # ---- conv + bias + ReLU for filter f (shifted-window MACs) --------
        conv_acc = jnp.zeros((OH, OW, B), jnp.float32)
        for c in range(C):
            base = f * C * K * K + c * K * K
            for di in range(K):
                for dj in range(K):
                    w = cw_ref[base + di * K + dj]          # SMEM scalar
                    conv_acc = conv_acc + x_ref[c, di:di + OH, dj:dj + OW, :] * w
        relu_f = jnp.maximum(conv_acc + cb_ref[f], 0.0)     # (OH, OW, B)

        # ---- fold filter f's contribution into the FC accumulators --------
        for o in range(OUT):
            prod = relu_f * fw_ref[o * F + f]               # (OH, OW, B)
            # sum over OH (vreg-row adds) then OW (one sublane reduce)
            contrib = jnp.sum(jnp.sum(prod, axis=0), axis=0)  # (B,)
            out_acc[o] = out_acc[o] + contrib[None, :]

    # ---- bias + sigmoid (EUP tanh) + single lane-dense store ---------------
    rows = [out_acc[o] + fb_ref[o] for o in range(OUT)]
    z = rows[0] if OUT == 1 else jnp.concatenate(rows, axis=0)   # (OUT, B)
    o_ref[...] = 0.5 * (jnp.tanh(0.5 * z) + 1.0)


# ---------------------------------------------------------------------------
# Wrapper: host-side re-layout (one-time) + pallas_call
# ---------------------------------------------------------------------------
def single_layer_cnn_forward(x, conv_w, conv_b, fc_w, fc_b, *, batch_block=128):
    """Forward pass matching the PyTorch module.

    x:      (N, C, H, W)   f32
    conv_w: (F, C, k, k)   f32   conv_b: (F,)
    fc_w:   (out, F*OH*OW) f32   fc_b:   (out,)
    returns (N, out) f32 in [0, 1]
    """
    N, C, H, W = x.shape
    F, C2, K, K2 = conv_w.shape
    assert C == C2 and K == K2
    OH, OW = H - K + 1, W - K + 1
    OUT = fc_w.shape[0]
    assert fc_w.shape[1] == F * OH * OW

    B = batch_block                       # lane width per step
    Npad = ((N + B - 1) // B) * B

    # Batch onto the lane axis: (N, C, H, W) -> (C, H, W, Npad).
    x = x.astype(jnp.float32)
    if Npad != N:
        x = jnp.pad(x, ((0, Npad - N), (0, 0), (0, 0), (0, 0)))
    xt = jnp.transpose(x, (1, 2, 3, 0))                       # (C, H, W, Npad)

    cw_flat = conv_w.reshape(-1).astype(jnp.float32)          # (F*C*K*K,)
    cb = conv_b.astype(jnp.float32)                           # (F,)
    fb = fc_b.astype(jnp.float32)                             # (OUT,)

    # fc_w -> (OUT, F, OH, OW) matches torch's row-major flatten of
    # (N, F, OH, OW); pre-broadcast along the lane (batch) axis so the
    # in-kernel multiply is lane-dense with no per-element lane splats.
    fw = fc_w.reshape(OUT, F, OH, OW).astype(jnp.float32).reshape(OUT * F, OH, OW)
    fw_b = jnp.broadcast_to(fw[..., None], (OUT * F, OH, OW, B))

    kernel = functools.partial(_fused_cnn_kernel,
                               C=C, K=K, F=F, OH=OH, OW=OW, OUT=OUT)

    flops = int(Npad) * (2 * C * K * K * F * OH * OW + 2 * F * OH * OW * OUT)
    bytes_accessed = 4 * (xt.size + cw_flat.size + cb.size
                          + fw_b.size + fb.size + OUT * Npad)

    out = pl.pallas_call(
        kernel,
        out_shape=jax.ShapeDtypeStruct((OUT, Npad), jnp.float32),
        grid=(Npad // B,),
        in_specs=[
            # batch block of B images, lane-dense (no W padding inflation)
            pl.BlockSpec((C, H, W, B), lambda n: (0, 0, 0, n)),
            # small scalar parameters -> SMEM
            pl.BlockSpec(memory_space=pltpu.MemorySpace.SMEM),   # conv_w flat
            pl.BlockSpec(memory_space=pltpu.MemorySpace.SMEM),   # conv_b
            # fc weights: constant block, fetched once, resident across steps
            pl.BlockSpec((OUT * F, OH, OW, B), lambda n: (0, 0, 0, 0)),
            pl.BlockSpec(memory_space=pltpu.MemorySpace.SMEM),   # fc_b
        ],
        out_specs=pl.BlockSpec((OUT, B), lambda n: (0, n)),
        compiler_params=pltpu.CompilerParams(
            dimension_semantics=("parallel",)),
        cost_estimate=pl.CostEstimate(
            flops=int(flops), transcendentals=int(Npad * OUT),
            bytes_accessed=int(bytes_accessed)),
    )(xt, cw_flat, cb, fw_b, fb)

    return out.T[:N]                                           # (N, OUT)


# ---------------------------------------------------------------------------
# Pure-JAX reference (correctness sanity check)
# ---------------------------------------------------------------------------
def reference_forward(x, conv_w, conv_b, fc_w, fc_b):
    y = jax.lax.conv_general_dilated(
        x, conv_w, window_strides=(1, 1), padding="VALID",
        dimension_numbers=("NCHW", "OIHW", "NCHW"))
    y = y + conv_b.reshape(1, -1, 1, 1)
    y = jnp.maximum(y, 0.0)
    y = y.reshape(x.shape[0], -1)
    y = y @ fc_w.T + fc_b
    return jax.nn.sigmoid(y)


if __name__ == "__main__":
    # Small shapes consistent with the module ("classify an X": 1-channel
    # images). N=200 exercises both the multi-step grid (2 batch blocks of
    # 128 -> both v7x TensorCores) and the batch-padding path.
    N, C, H, W = 200, 1, 16, 16
    kernel_size, num_kernels, output_size = 3, 4, 1
    OH, OW = H - kernel_size + 1, W - kernel_size + 1

    key = jax.random.PRNGKey(0)
    kx, kcw, kcb, kfw, kfb = jax.random.split(key, 5)

    x = jax.random.normal(kx, (N, C, H, W), dtype=jnp.float32)

    # Deterministic PyTorch-style uniform init (synthetic weights).
    conv_fan_in = C * kernel_size * kernel_size
    conv_bound = 1.0 / (conv_fan_in ** 0.5)
    conv_w = jax.random.uniform(kcw, (num_kernels, C, kernel_size, kernel_size),
                                minval=-conv_bound, maxval=conv_bound,
                                dtype=jnp.float32)
    conv_b = jax.random.uniform(kcb, (num_kernels,), minval=-conv_bound,
                                maxval=conv_bound, dtype=jnp.float32)

    fc_fan_in = num_kernels * OH * OW
    fc_bound = 1.0 / (fc_fan_in ** 0.5)
    fc_w = jax.random.uniform(kfw, (output_size, fc_fan_in),
                              minval=-fc_bound, maxval=fc_bound,
                              dtype=jnp.float32)
    fc_b = jax.random.uniform(kfb, (output_size,), minval=-fc_bound,
                              maxval=fc_bound, dtype=jnp.float32)

    out = single_layer_cnn_forward(x, conv_w, conv_b, fc_w, fc_b)
    out = jax.block_until_ready(out)

    ref = reference_forward(x, conv_w, conv_b, fc_w, fc_b)
    assert out.shape == (N, output_size), out.shape
    assert jnp.allclose(out, ref, atol=1e-4, rtol=1e-4), (out, ref)

    print("KERNEL_OK")
</pallas_src>

<mosaic_0001>
module attributes {stable_mosaic.version = 11 : i64} {
  func.func @_fused_cnn_kernel(%arg0: i32, %arg1: memref<1x16x16x128xf32, #tpu.memory_space<vmem>>, %arg2: memref<36xf32, #tpu.memory_space<smem>>, %arg3: memref<4xf32, #tpu.memory_space<smem>>, %arg4: memref<4x14x14x128xf32, #tpu.memory_space<vmem>>, %arg5: memref<1xf32, #tpu.memory_space<smem>>, %arg6: memref<1x128xf32, #tpu.memory_space<vmem>>) attributes {dimension_semantics = [#tpu.dimension_semantics<parallel>], iteration_bounds = array<i64: 2>, scalar_prefetch = 0 : i64, scratch_operands = 0 : i64, tpu.core_type = #tpu.core_type<tc>, window_params = [{transform_indices = @transform_0, window_bounds = array<i64: 1, 16, 16, 128>}, {transform_indices = @transform_1, window_bounds = array<i64: 36>}, {transform_indices = @transform_2, window_bounds = array<i64: 4>}, {pipeline_mode = #tpu.pipeline_mode<synchronous>, transform_indices = @transform_3, window_bounds = array<i64: 4, 14, 14, 128>}, {transform_indices = @transform_4, window_bounds = array<i64: 1>}, {transform_indices = @transform_5, window_bounds = array<i64: 1, 128>}]} {
    %cst = arith.constant 0.000000e+00 : f32
    %0 = vector.broadcast %cst : f32 to vector<1x128xf32>
    %cst_0 = arith.constant 0.000000e+00 : f32
    %1 = vector.broadcast %cst_0 : f32 to vector<14x14x128xf32>
    %c0 = arith.constant 0 : index
    %2 = memref.load %arg2[%c0] : memref<36xf32, #tpu.memory_space<smem>>
    %c0_1 = arith.constant 0 : index
    %c0_2 = arith.constant 0 : index
    %c0_3 = arith.constant 0 : index
    %c0_4 = arith.constant 0 : index
    %3 = vector.load %arg1[%c0_1, %c0_2, %c0_3, %c0_4] : memref<1x16x16x128xf32, #tpu.memory_space<vmem>>, vector<1x14x14x128xf32>
    %4 = vector.shape_cast %3 : vector<1x14x14x128xf32> to vector<14x14x128xf32>
    %5 = vector.broadcast %2 : f32 to vector<14x14x128xf32>
    %6 = arith.mulf %4, %5 : vector<14x14x128xf32>
    %7 = arith.addf %1, %6 : vector<14x14x128xf32>
    %c1 = arith.constant 1 : index
    %8 = memref.load %arg2[%c1] : memref<36xf32, #tpu.memory_space<smem>>
    %c0_5 = arith.constant 0 : index
    %c0_6 = arith.constant 0 : index
    %c1_7 = arith.constant 1 : index
    %c0_8 = arith.constant 0 : index
    %9 = vector.load %arg1[%c0_5, %c0_6, %c1_7, %c0_8] : memref<1x16x16x128xf32, #tpu.memory_space<vmem>>, vector<1x14x14x128xf32>
    %10 = vector.shape_cast %9 : vector<1x14x14x128xf32> to vector<14x14x128xf32>
    %11 = vector.broadcast %8 : f32 to vector<14x14x128xf32>
    %12 = arith.mulf %10, %11 : vector<14x14x128xf32>
    %13 = arith.addf %7, %12 : vector<14x14x128xf32>
    %c2 = arith.constant 2 : index
    %14 = memref.load %arg2[%c2] : memref<36xf32, #tpu.memory_space<smem>>
    %c0_9 = arith.constant 0 : index
    %c0_10 = arith.constant 0 : index
    %c2_11 = arith.constant 2 : index
    %c0_12 = arith.constant 0 : index
    %15 = vector.load %arg1[%c0_9, %c0_10, %c2_11, %c0_12] : memref<1x16x16x128xf32, #tpu.memory_space<vmem>>, vector<1x14x14x128xf32>
    %16 = vector.shape_cast %15 : vector<1x14x14x128xf32> to vector<14x14x128xf32>
    %17 = vector.broadcast %14 : f32 to vector<14x14x128xf32>
    %18 = arith.mulf %16, %17 : vector<14x14x128xf32>
    %19 = arith.addf %13, %18 : vector<14x14x128xf32>
    %c3 = arith.constant 3 : index
    %20 = memref.load %arg2[%c3] : memref<36xf32, #tpu.memory_space<smem>>
    %c0_13 = arith.constant 0 : index
    %c1_14 = arith.constant 1 : index
    %c0_15 = arith.constant 0 : index
    %c0_16 = arith.constant 0 : index
    %21 = vector.load %arg1[%c0_13, %c1_14, %c0_15, %c0_16] : memref<1x16x16x128xf32, #tpu.memory_space<vmem>>, vector<1x14x14x128xf32>
    %22 = vector.shape_cast %21 : vector<1x14x14x128xf32> to vector<14x14x128xf32>
    %23 = vector.broadcast %20 : f32 to vector<14x14x128xf32>
    %24 = arith.mulf %22, %23 : vector<14x14x128xf32>
    %25 = arith.addf %19, %24 : vector<14x14x128xf32>
    %c4 = arith.constant 4 : index
    %26 = memref.load %arg2[%c4] : memref<36xf32, #tpu.memory_space<smem>>
    %c0_17 = arith.constant 0 : index
    %c1_18 = arith.constant 1 : index
    %c1_19 = arith.constant 1 : index
    %c0_20 = arith.constant 0 : index
    %27 = vector.load %arg1[%c0_17, %c1_18, %c1_19, %c0_20] : memref<1x16x16x128xf32, #tpu.memory_space<vmem>>, vector<1x14x14x128xf32>
    %28 = vector.shape_cast %27 : vector<1x14x14x128xf32> to vector<14x14x128xf32>
    %29 = vector.broadcast %26 : f32 to vector<14x14x128xf32>
    %30 = arith.mulf %28, %29 : vector<14x14x128xf32>
    %31 = arith.addf %25, %30 : vector<14x14x128xf32>
    %c5 = arith.constant 5 : index
    %32 = memref.load %arg2[%c5] : memref<36xf32, #tpu.memory_space<smem>>
    %c0_21 = arith.constant 0 : index
    %c1_22 = arith.constant 1 : index
    %c2_23 = arith.constant 2 : index
    %c0_24 = arith.constant 0 : index
    %33 = vector.load %arg1[%c0_21, %c1_22, %c2_23, %c0_24] : memref<1x16x16x128xf32, #tpu.memory_space<vmem>>, vector<1x14x14x128xf32>
    %34 = vector.shape_cast %33 : vector<1x14x14x128xf32> to vector<14x14x128xf32>
    %35 = vector.broadcast %32 : f32 to vector<14x14x128xf32>
    %36 = arith.mulf %34, %35 : vector<14x14x128xf32>
    %37 = arith.addf %31, %36 : vector<14x14x128xf32>
    %c6 = arith.constant 6 : index
    %38 = memref.load %arg2[%c6] : memref<36xf32, #tpu.memory_space<smem>>
    %c0_25 = arith.constant 0 : index
    %c2_26 = arith.constant 2 : index
    %c0_27 = arith.constant 0 : index
    %c0_28 = arith.constant 0 : index
    %39 = vector.load %arg1[%c0_25, %c2_26, %c0_27, %c0_28] : memref<1x16x16x128xf32, #tpu.memory_space<vmem>>, vector<1x14x14x128xf32>
    %40 = vector.shape_cast %39 : vector<1x14x14x128xf32> to vector<14x14x128xf32>
    %41 = vector.broadcast %38 : f32 to vector<14x14x128xf32>
    %42 = arith.mulf %40, %41 : vector<14x14x128xf32>
    %43 = arith.addf %37, %42 : vector<14x14x128xf32>
    %c7 = arith.constant 7 : index
    %44 = memref.load %arg2[%c7] : memref<36xf32, #tpu.memory_space<smem>>
    %c0_29 = arith.constant 0 : index
    %c2_30 = arith.constant 2 : index
    %c1_31 = arith.constant 1 : index
    %c0_32 = arith.constant 0 : index
    %45 = vector.load %arg1[%c0_29, %c2_30, %c1_31, %c0_32] : memref<1x16x16x128xf32, #tpu.memory_space<vmem>>, vector<1x14x14x128xf32>
    %46 = vector.shape_cast %45 : vector<1x14x14x128xf32> to vector<14x14x128xf32>
    %47 = vector.broadcast %44 : f32 to vector<14x14x128xf32>
    %48 = arith.mulf %46, %47 : vector<14x14x128xf32>
    %49 = arith.addf %43, %48 : vector<14x14x128xf32>
    %c8 = arith.constant 8 : index
    %50 = memref.load %arg2[%c8] : memref<36xf32, #tpu.memory_space<smem>>
    %c0_33 = arith.constant 0 : index
    %c2_34 = arith.constant 2 : index
    %c2_35 = arith.constant 2 : index
    %c0_36 = arith.constant 0 : index
    %51 = vector.load %arg1[%c0_33, %c2_34, %c2_35, %c0_36] : memref<1x16x16x128xf32, #tpu.memory_space<vmem>>, vector<1x14x14x128xf32>
    %52 = vector.shape_cast %51 : vector<1x14x14x128xf32> to vector<14x14x128xf32>
    %53 = vector.broadcast %50 : f32 to vector<14x14x128xf32>
    %54 = arith.mulf %52, %53 : vector<14x14x128xf32>
    %55 = arith.addf %49, %54 : vector<14x14x128xf32>
    %c0_37 = arith.constant 0 : index
    %56 = memref.load %arg3[%c0_37] : memref<4xf32, #tpu.memory_space<smem>>
    %57 = vector.broadcast %56 : f32 to vector<14x14x128xf32>
    %58 = arith.addf %55, %57 : vector<14x14x128xf32>
    %cst_38 = arith.constant 0.000000e+00 : f32
    %59 = vector.broadcast %cst_38 : f32 to vector<14x14x128xf32>
    %60 = arith.maximumf %58, %59 : vector<14x14x128xf32>
    %c0_39 = arith.constant 0 : index
    %c0_40 = arith.constant 0 : index
    %c0_41 = arith.constant 0 : index
    %c0_42 = arith.constant 0 : index
    %61 = vector.load %arg4[%c0_39, %c0_40, %c0_41, %c0_42] : memref<4x14x14x128xf32, #tpu.memory_space<vmem>>, vector<1x14x14x128xf32>
    %62 = vector.shape_cast %61 : vector<1x14x14x128xf32> to vector<14x14x128xf32>
    %63 = arith.mulf %60, %62 : vector<14x14x128xf32>
    %cst_43 = arith.constant dense<0.000000e+00> : vector<14x128xf32>
    %64 = vector.multi_reduction <add>, %63, %cst_43 [0] : vector<14x14x128xf32> to vector<14x128xf32>
    %cst_44 = arith.constant dense<0.000000e+00> : vector<128xf32>
    %65 = vector.multi_reduction <add>, %64, %cst_44 [0] : vector<14x128xf32> to vector<128xf32>
    %66 = vector.shape_cast %65 : vector<128xf32> to vector<1x128xf32>
    %67 = arith.addf %0, %66 : vector<1x128xf32>
    %cst_45 = arith.constant 0.000000e+00 : f32
    %68 = vector.broadcast %cst_45 : f32 to vector<14x14x128xf32>
    %c9 = arith.constant 9 : index
    %69 = memref.load %arg2[%c9] : memref<36xf32, #tpu.memory_space<smem>>
    %c0_46 = arith.constant 0 : index
    %c0_47 = arith.constant 0 : index
    %c0_48 = arith.constant 0 : index
    %c0_49 = arith.constant 0 : index
    %70 = vector.load %arg1[%c0_46, %c0_47, %c0_48, %c0_49] : memref<1x16x16x128xf32, #tpu.memory_space<vmem>>, vector<1x14x14x128xf32>
    %71 = vector.shape_cast %70 : vector<1x14x14x128xf32> to vector<14x14x128xf32>
    %72 = vector.broadcast %69 : f32 to vector<14x14x128xf32>
    %73 = arith.mulf %71, %72 : vector<14x14x128xf32>
    %74 = arith.addf %68, %73 : vector<14x14x128xf32>
    %c10 = arith.constant 10 : index
    %75 = memref.load %arg2[%c10] : memref<36xf32, #tpu.memory_space<smem>>
    %c0_50 = arith.constant 0 : index
    %c0_51 = arith.constant 0 : index
    %c1_52 = arith.constant 1 : index
    %c0_53 = arith.constant 0 : index
    %76 = vector.load %arg1[%c0_50, %c0_51, %c1_52, %c0_53] : memref<1x16x16x128xf32, #tpu.memory_space<vmem>>, vector<1x14x14x128xf32>
    %77 = vector.shape_cast %76 : vector<1x14x14x128xf32> to vector<14x14x128xf32>
    %78 = vector.broadcast %75 : f32 to vector<14x14x128xf32>
    %79 = arith.mulf %77, %78 : vector<14x14x128xf32>
    %80 = arith.addf %74, %79 : vector<14x14x128xf32>
    %c11 = arith.constant 11 : index
    %81 = memref.load %arg2[%c11] : memref<36xf32, #tpu.memory_space<smem>>
    %c0_54 = arith.constant 0 : index
    %c0_55 = arith.constant 0 : index
    %c2_56 = arith.constant 2 : index
    %c0_57 = arith.constant 0 : index
    %82 = vector.load %arg1[%c0_54, %c0_55, %c2_56, %c0_57] : memref<1x16x16x128xf32, #tpu.memory_space<vmem>>, vector<1x14x14x128xf32>
    %83 = vector.shape_cast %82 : vector<1x14x14x128xf32> to vector<14x14x128xf32>
    %84 = vector.broadcast %81 : f32 to vector<14x14x128xf32>
    %85 = arith.mulf %83, %84 : vector<14x14x128xf32>
    %86 = arith.addf %80, %85 : vector<14x14x128xf32>
    %c12 = arith.constant 12 : index
    %87 = memref.load %arg2[%c12] : memref<36xf32, #tpu.memory_space<smem>>
    %c0_58 = arith.constant 0 : index
    %c1_59 = arith.constant 1 : index
    %c0_60 = arith.constant 0 : index
    %c0_61 = arith.constant 0 : index
    %88 = vector.load %arg1[%c0_58, %c1_59, %c0_60, %c0_61] : memref<1x16x16x128xf32, #tpu.memory_space<vmem>>, vector<1x14x14x128xf32>
    %89 = vector.shape_cast %88 : vector<1x14x14x128xf32> to vector<14x14x128xf32>
    %90 = vector.broadcast %87 : f32 to vector<14x14x128xf32>
    %91 = arith.mulf %89, %90 : vector<14x14x128xf32>
    %92 = arith.addf %86, %91 : vector<14x14x128xf32>
    %c13 = arith.constant 13 : index
    %93 = memref.load %arg2[%c13] : memref<36xf32, #tpu.memory_space<smem>>
    %c0_62 = arith.constant 0 : index
    %c1_63 = arith.constant 1 : index
    %c1_64 = arith.constant 1 : index
    %c0_65 = arith.constant 0 : index
    %94 = vector.load %arg1[%c0_62, %c1_63, %c1_64, %c0_65] : memref<1x16x16x128xf32, #tpu.memory_space<vmem>>, vector<1x14x14x128xf32>
    %95 = vector.shape_cast %94 : vector<1x14x14x128xf32> to vector<14x14x128xf32>
    %96 = vector.broadcast %93 : f32 to vector<14x14x128xf32>
    %97 = arith.mulf %95, %96 : vector<14x14x128xf32>
    %98 = arith.addf %92, %97 : vector<14x14x128xf32>
    %c14 = arith.constant 14 : index
    %99 = memref.load %arg2[%c14] : memref<36xf32, #tpu.memory_space<smem>>
    %c0_66 = arith.constant 0 : index
    %c1_67 = arith.constant 1 : index
    %c2_68 = arith.constant 2 : index
    %c0_69 = arith.constant 0 : index
    %100 = vector.load %arg1[%c0_66, %c1_67, %c2_68, %c0_69] : memref<1x16x16x128xf32, #tpu.memory_space<vmem>>, vector<1x14x14x128xf32>
    %101 = vector.shape_cast %100 : vector<1x14x14x128xf32> to vector<14x14x128xf32>
    %102 = vector.broadcast %99 : f32 to vector<14x14x128xf32>
    %103 = arith.mulf %101, %102 : vector<14x14x128xf32>
    %104 = arith.addf %98, %103 : vector<14x14x128xf32>
    %c15 = arith.constant 15 : index
    %105 = memref.load %arg2[%c15] : memref<36xf32, #tpu.memory_space<smem>>
    %c0_70 = arith.constant 0 : index
    %c2_71 = arith.constant 2 : index
    %c0_72 = arith.constant 0 : index
    %c0_73 = arith.constant 0 : index
    %106 = vector.load %arg1[%c0_70, %c2_71, %c0_72, %c0_73] : memref<1x16x16x128xf32, #tpu.memory_space<vmem>>, vector<1x14x14x128xf32>
    %107 = vector.shape_cast %106 : vector<1x14x14x128xf32> to vector<14x14x128xf32>
    %108 = vector.broadcast %105 : f32 to vector<14x14x128xf32>
    %109 = arith.mulf %107, %108 : vector<14x14x128xf32>
    %110 = arith.addf %104, %109 : vector<14x14x128xf32>
    %c16 = arith.constant 16 : index
    %111 = memref.load %arg2[%c16] : memref<36xf32, #tpu.memory_space<smem>>
    %c0_74 = arith.constant 0 : index
    %c2_75 = arith.constant 2 : index
    %c1_76 = arith.constant 1 : index
    %c0_77 = arith.constant 0 : index
    %112 = vector.load %arg1[%c0_74, %c2_75, %c1_76, %c0_77] : memref<1x16x16x128xf32, #tpu.memory_space<vmem>>, vector<1x14x14x128xf32>
    %113 = vector.shape_cast %112 : vector<1x14x14x128xf32> to vector<14x14x128xf32>
    %114 = vector.broadcast %111 : f32 to vector<14x14x128xf32>
    %115 = arith.mulf %113, %114 : vector<14x14x128xf32>
    %116 = arith.addf %110, %115 : vector<14x14x128xf32>
    %c17 = arith.constant 17 : index
    %117 = memref.load %arg2[%c17] : memref<36xf32, #tpu.memory_space<smem>>
    %c0_78 = arith.constant 0 : index
    %c2_79 = arith.constant 2 : index
    %c2_80 = arith.constant 2 : index
    %c0_81 = arith.constant 0 : index
    %118 = vector.load %arg1[%c0_78, %c2_79, %c2_80, %c0_81] : memref<1x16x16x128xf32, #tpu.memory_space<vmem>>, vector<1x14x14x128xf32>
    %119 = vector.shape_cast %118 : vector<1x14x14x128xf32> to vector<14x14x128xf32>
    %120 = vector.broadcast %117 : f32 to vector<14x14x128xf32>
    %121 = arith.mulf %119, %120 : vector<14x14x128xf32>
    %122 = arith.addf %116, %121 : vector<14x14x128xf32>
    %c1_82 = arith.constant 1 : index
    %123 = memref.load %arg3[%c1_82] : memref<4xf32, #tpu.memory_space<smem>>
    %124 = vector.broadcast %123 : f32 to vector<14x14x128xf32>
    %125 = arith.addf %122, %124 : vector<14x14x128xf32>
    %cst_83 = arith.constant 0.000000e+00 : f32
    %126 = vector.broadcast %cst_83 : f32 to vector<14x14x128xf32>
    %127 = arith.maximumf %125, %126 : vector<14x14x128xf32>
    %c1_84 = arith.constant 1 : index
    %c0_85 = arith.constant 0 : index
    %c0_86 = arith.constant 0 : index
    %c0_87 = arith.constant 0 : index
    %128 = vector.load %arg4[%c1_84, %c0_85, %c0_86, %c0_87] : memref<4x14x14x128xf32, #tpu.memory_space<vmem>>, vector<1x14x14x128xf32>
    %129 = vector.shape_cast %128 : vector<1x14x14x128xf32> to vector<14x14x128xf32>
    %130 = arith.mulf %127, %129 : vector<14x14x128xf32>
    %cst_88 = arith.constant dense<0.000000e+00> : vector<14x128xf32>
    %131 = vector.multi_reduction <add>, %130, %cst_88 [0] : vector<14x14x128xf32> to vector<14x128xf32>
    %cst_89 = arith.constant dense<0.000000e+00> : vector<128xf32>
    %132 = vector.multi_reduction <add>, %131, %cst_89 [0] : vector<14x128xf32> to vector<128xf32>
    %133 = vector.shape_cast %132 : vector<128xf32> to vector<1x128xf32>
    %134 = arith.addf %67, %133 : vector<1x128xf32>
    %cst_90 = arith.constant 0.000000e+00 : f32
    %135 = vector.broadcast %cst_90 : f32 to vector<14x14x128xf32>
    %c18 = arith.constant 18 : index
    %136 = memref.load %arg2[%c18] : memref<36xf32, #tpu.memory_space<smem>>
    %c0_91 = arith.constant 0 : index
    %c0_92 = arith.constant 0 : index
    %c0_93 = arith.constant 0 : index
    %c0_94 = arith.constant 0 : index
    %137 = vector.load %arg1[%c0_91, %c0_92, %c0_93, %c0_94] : memref<1x16x16x128xf32, #tpu.memory_space<vmem>>, vector<1x14x14x128xf32>
    %138 = vector.shape_cast %137 : vector<1x14x14x128xf32> to vector<14x14x128xf32>
    %139 = vector.broadcast %136 : f32 to vector<14x14x128xf32>
    %140 = arith.mulf %138, %139 : vector<14x14x128xf32>
    %141 = arith.addf %135, %140 : vector<14x14x128xf32>
    %c19 = arith.constant 19 : index
    %142 = memref.load %arg2[%c19] : memref<36xf32, #tpu.memory_space<smem>>
    %c0_95 = arith.constant 0 : index
    %c0_96 = arith.constant 0 : index
    %c1_97 = arith.constant 1 : index
    %c0_98 = arith.constant 0 : index
    %143 = vector.load %arg1[%c0_95, %c0_96, %c1_97, %c0_98] : memref<1x16x16x128xf32, #tpu.memory_space<vmem>>, vector<1x14x14x128xf32>
    %144 = vector.shape_cast %143 : vector<1x14x14x128xf32> to vector<14x14x128xf32>
    %145 = vector.broadcast %142 : f32 to vector<14x14x128xf32>
    %146 = arith.mulf %144, %145 : vector<14x14x128xf32>
    %147 = arith.addf %141, %146 : vector<14x14x128xf32>
    %c20 = arith.constant 20 : index
    %148 = memref.load %arg2[%c20] : memref<36xf32, #tpu.memory_space<smem>>
    %c0_99 = arith.constant 0 : index
    %c0_100 = arith.constant 0 : index
    %c2_101 = arith.constant 2 : index
    %c0_102 = arith.constant 0 : index
    %149 = vector.load %arg1[%c0_99, %c0_100, %c2_101, %c0_102] : memref<1x16x16x128xf32, #tpu.memory_space<vmem>>, vector<1x14x14x128xf32>
    %150 = vector.shape_cast %149 : vector<1x14x14x128xf32> to vector<14x14x128xf32>
    %151 = vector.broadcast %148 : f32 to vector<14x14x128xf32>
    %152 = arith.mulf %150, %151 : vector<14x14x128xf32>
    %153 = arith.addf %147, %152 : vector<14x14x128xf32>
    %c21 = arith.constant 21 : index
    %154 = memref.load %arg2[%c21] : memref<36xf32, #tpu.memory_space<smem>>
    %c0_103 = arith.constant 0 : index
    %c1_104 = arith.constant 1 : index
    %c0_105 = arith.constant 0 : index
    %c0_106 = arith.constant 0 : index
    %155 = vector.load %arg1[%c0_103, %c1_104, %c0_105, %c0_106] : memref<1x16x16x128xf32, #tpu.memory_space<vmem>>, vector<1x14x14x128xf32>
    %156 = vector.shape_cast %155 : vector<1x14x14x128xf32> to vector<14x14x128xf32>
    %157 = vector.broadcast %154 : f32 to vector<14x14x128xf32>
    %158 = arith.mulf %156, %157 : vector<14x14x128xf32>
    %159 = arith.addf %153, %158 : vector<14x14x128xf32>
    %c22 = arith.constant 22 : index
    %160 = memref.load %arg2[%c22] : memref<36xf32, #tpu.memory_space<smem>>
    %c0_107 = arith.constant 0 : index
    %c1_108 = arith.constant 1 : index
    %c1_109 = arith.constant 1 : index
    %c0_110 = arith.constant 0 : index
    %161 = vector.load %arg1[%c0_107, %c1_108, %c1_109, %c0_110] : memref<1x16x16x128xf32, #tpu.memory_space<vmem>>, vector<1x14x14x128xf32>
    %162 = vector.shape_cast %161 : vector<1x14x14x128xf32> to vector<14x14x128xf32>
    %163 = vector.broadcast %160 : f32 to vector<14x14x128xf32>
    %164 = arith.mulf %162, %163 : vector<14x14x128xf32>
    %165 = arith.addf %159, %164 : vector<14x14x128xf32>
    %c23 = arith.constant 23 : index
    %166 = memref.load %arg2[%c23] : memref<36xf32, #tpu.memory_space<smem>>
    %c0_111 = arith.constant 0 : index
    %c1_112 = arith.constant 1 : index
    %c2_113 = arith.constant 2 : index
    %c0_114 = arith.constant 0 : index
    %167 = vector.load %arg1[%c0_111, %c1_112, %c2_113, %c0_114] : memref<1x16x16x128xf32, #tpu.memory_space<vmem>>, vector<1x14x14x128xf32>
    %168 = vector.shape_cast %167 : vector<1x14x14x128xf32> to vector<14x14x128xf32>
    %169 = vector.broadcast %166 : f32 to vector<14x14x128xf32>
    %170 = arith.mulf %168, %169 : vector<14x14x128xf32>
    %171 = arith.addf %165, %170 : vector<14x14x128xf32>
    %c24 = arith.constant 24 : index
    %172 = memref.load %arg2[%c24] : memref<36xf32, #tpu.memory_space<smem>>
    %c0_115 = arith.constant 0 : index
    %c2_116 = arith.constant 2 : index
    %c0_117 = arith.constant 0 : index
    %c0_118 = arith.constant 0 : index
    %173 = vector.load %arg1[%c0_115, %c2_116, %c0_117, %c0_118] : memref<1x16x16x128xf32, #tpu.memory_space<vmem>>, vector<1x14x14x128xf32>
    %174 = vector.shape_cast %173 : vector<1x14x14x128xf32> to vector<14x14x128xf32>
    %175 = vector.broadcast %172 : f32 to vector<14x14x128xf32>
    %176 = arith.mulf %174, %175 : vector<14x14x128xf32>
    %177 = arith.addf %171, %176 : vector<14x14x128xf32>
    %c25 = arith.constant 25 : index
    %178 = memref.load %arg2[%c25] : memref<36xf32, #tpu.memory_space<smem>>
    %c0_119 = arith.constant 0 : index
    %c2_120 = arith.constant 2 : index
    %c1_121 = arith.constant 1 : index
    %c0_122 = arith.constant 0 : index
    %179 = vector.load %arg1[%c0_119, %c2_120, %c1_121, %c0_122] : memref<1x16x16x128xf32, #tpu.memory_space<vmem>>, vector<1x14x14x128xf32>
    %180 = vector.shape_cast %179 : vector<1x14x14x128xf32> to vector<14x14x128xf32>
    %181 = vector.broadcast %178 : f32 to vector<14x14x128xf32>
    %182 = arith.mulf %180, %181 : vector<14x14x128xf32>
    %183 = arith.addf %177, %182 : vector<14x14x128xf32>
    %c26 = arith.constant 26 : index
    %184 = memref.load %arg2[%c26] : memref<36xf32, #tpu.memory_space<smem>>
    %c0_123 = arith.constant 0 : index
    %c2_124 = arith.constant 2 : index
    %c2_125 = arith.constant 2 : index
    %c0_126 = arith.constant 0 : index
    %185 = vector.load %arg1[%c0_123, %c2_124, %c2_125, %c0_126] : memref<1x16x16x128xf32, #tpu.memory_space<vmem>>, vector<1x14x14x128xf32>
    %186 = vector.shape_cast %185 : vector<1x14x14x128xf32> to vector<14x14x128xf32>
    %187 = vector.broadcast %184 : f32 to vector<14x14x128xf32>
    %188 = arith.mulf %186, %187 : vector<14x14x128xf32>
    %189 = arith.addf %183, %188 : vector<14x14x128xf32>
    %c2_127 = arith.constant 2 : index
    %190 = memref.load %arg3[%c2_127] : memref<4xf32, #tpu.memory_space<smem>>
    %191 = vector.broadcast %190 : f32 to vector<14x14x128xf32>
    %192 = arith.addf %189, %191 : vector<14x14x128xf32>
    %cst_128 = arith.constant 0.000000e+00 : f32
    %193 = vector.broadcast %cst_128 : f32 to vector<14x14x128xf32>
    %194 = arith.maximumf %192, %193 : vector<14x14x128xf32>
    %c2_129 = arith.constant 2 : index
    %c0_130 = arith.constant 0 : index
    %c0_131 = arith.constant 0 : index
    %c0_132 = arith.constant 0 : index
    %195 = vector.load %arg4[%c2_129, %c0_130, %c0_131, %c0_132] : memref<4x14x14x128xf32, #tpu.memory_space<vmem>>, vector<1x14x14x128xf32>
    %196 = vector.shape_cast %195 : vector<1x14x14x128xf32> to vector<14x14x128xf32>
    %197 = arith.mulf %194, %196 : vector<14x14x128xf32>
    %cst_133 = arith.constant dense<0.000000e+00> : vector<14x128xf32>
    %198 = vector.multi_reduction <add>, %197, %cst_133 [0] : vector<14x14x128xf32> to vector<14x128xf32>
    %cst_134 = arith.constant dense<0.000000e+00> : vector<128xf32>
    %199 = vector.multi_reduction <add>, %198, %cst_134 [0] : vector<14x128xf32> to vector<128xf32>
    %200 = vector.shape_cast %199 : vector<128xf32> to vector<1x128xf32>
    %201 = arith.addf %134, %200 : vector<1x128xf32>
    %cst_135 = arith.constant 0.000000e+00 : f32
    %202 = vector.broadcast %cst_135 : f32 to vector<14x14x128xf32>
    %c27 = arith.constant 27 : index
    %203 = memref.load %arg2[%c27] : memref<36xf32, #tpu.memory_space<smem>>
    %c0_136 = arith.constant 0 : index
    %c0_137 = arith.constant 0 : index
    %c0_138 = arith.constant 0 : index
    %c0_139 = arith.constant 0 : index
    %204 = vector.load %arg1[%c0_136, %c0_137, %c0_138, %c0_139] : memref<1x16x16x128xf32, #tpu.memory_space<vmem>>, vector<1x14x14x128xf32>
    %205 = vector.shape_cast %204 : vector<1x14x14x128xf32> to vector<14x14x128xf32>
    %206 = vector.broadcast %203 : f32 to vector<14x14x128xf32>
    %207 = arith.mulf %205, %206 : vector<14x14x128xf32>
    %208 = arith.addf %202, %207 : vector<14x14x128xf32>
    %c28 = arith.constant 28 : index
    %209 = memref.load %arg2[%c28] : memref<36xf32, #tpu.memory_space<smem>>
    %c0_140 = arith.constant 0 : index
    %c0_141 = arith.constant 0 : index
    %c1_142 = arith.constant 1 : index
    %c0_143 = arith.constant 0 : index
    %210 = vector.load %arg1[%c0_140, %c0_141, %c1_142, %c0_143] : memref<1x16x16x128xf32, #tpu.memory_space<vmem>>, vector<1x14x14x128xf32>
    %211 = vector.shape_cast %210 : vector<1x14x14x128xf32> to vector<14x14x128xf32>
    %212 = vector.broadcast %209 : f32 to vector<14x14x128xf32>
    %213 = arith.mulf %211, %212 : vector<14x14x128xf32>
    %214 = arith.addf %208, %213 : vector<14x14x128xf32>
    %c29 = arith.constant 29 : index
    %215 = memref.load %arg2[%c29] : memref<36xf32, #tpu.memory_space<smem>>
    %c0_144 = arith.constant 0 : index
    %c0_145 = arith.constant 0 : index
    %c2_146 = arith.constant 2 : index
    %c0_147 = arith.constant 0 : index
    %216 = vector.load %arg1[%c0_144, %c0_145, %c2_146, %c0_147] : memref<1x16x16x128xf32, #tpu.memory_space<vmem>>, vector<1x14x14x128xf32>
    %217 = vector.shape_cast %216 : vector<1x14x14x128xf32> to vector<14x14x128xf32>
    %218 = vector.broadcast %215 : f32 to vector<14x14x128xf32>
    %219 = arith.mulf %217, %218 : vector<14x14x128xf32>
    %220 = arith.addf %214, %219 : vector<14x14x128xf32>
    %c30 = arith.constant 30 : index
    %221 = memref.load %arg2[%c30] : memref<36xf32, #tpu.memory_space<smem>>
    %c0_148 = arith.constant 0 : index
    %c1_149 = arith.constant 1 : index
    %c0_150 = arith.constant 0 : index
    %c0_151 = arith.constant 0 : index
    %222 = vector.load %arg1[%c0_148, %c1_149, %c0_150, %c0_151] : memref<1x16x16x128xf32, #tpu.memory_space<vmem>>, vector<1x14x14x128xf32>
    %223 = vector.shape_cast %222 : vector<1x14x14x128xf32> to vector<14x14x128xf32>
    %224 = vector.broadcast %221 : f32 to vector<14x14x128xf32>
    %225 = arith.mulf %223, %224 : vector<14x14x128xf32>
    %226 = arith.addf %220, %225 : vector<14x14x128xf32>
    %c31 = arith.constant 31 : index
    %227 = memref.load %arg2[%c31] : memref<36xf32, #tpu.memory_space<smem>>
    %c0_152 = arith.constant 0 : index
    %c1_153 = arith.constant 1 : index
    %c1_154 = arith.constant 1 : index
    %c0_155 = arith.constant 0 : index
    %228 = vector.load %arg1[%c0_152, %c1_153, %c1_154, %c0_155] : memref<1x16x16x128xf32, #tpu.memory_space<vmem>>, vector<1x14x14x128xf32>
    %229 = vector.shape_cast %228 : vector<1x14x14x128xf32> to vector<14x14x128xf32>
    %230 = vector.broadcast %227 : f32 to vector<14x14x128xf32>
    %231 = arith.mulf %229, %230 : vector<14x14x128xf32>
    %232 = arith.addf %226, %231 : vector<14x14x128xf32>
    %c32 = arith.constant 32 : index
    %233 = memref.load %arg2[%c32] : memref<36xf32, #tpu.memory_space<smem>>
    %c0_156 = arith.constant 0 : index
    %c1_157 = arith.constant 1 : index
    %c2_158 = arith.constant 2 : index
    %c0_159 = arith.constant 0 : index
    %234 = vector.load %arg1[%c0_156, %c1_157, %c2_158, %c0_159] : memref<1x16x16x128xf32, #tpu.memory_space<vmem>>, vector<1x14x14x128xf32>
    %235 = vector.shape_cast %234 : vector<1x14x14x128xf32> to vector<14x14x128xf32>
    %236 = vector.broadcast %233 : f32 to vector<14x14x128xf32>
    %237 = arith.mulf %235, %236 : vector<14x14x128xf32>
    %238 = arith.addf %232, %237 : vector<14x14x128xf32>
    %c33 = arith.constant 33 : index
    %239 = memref.load %arg2[%c33] : memref<36xf32, #tpu.memory_space<smem>>
    %c0_160 = arith.constant 0 : index
    %c2_161 = arith.constant 2 : index
    %c0_162 = arith.constant 0 : index
    %c0_163 = arith.constant 0 : index
    %240 = vector.load %arg1[%c0_160, %c2_161, %c0_162, %c0_163] : memref<1x16x16x128xf32, #tpu.memory_space<vmem>>, vector<1x14x14x128xf32>
    %241 = vector.shape_cast %240 : vector<1x14x14x128xf32> to vector<14x14x128xf32>
    %242 = vector.broadcast %239 : f32 to vector<14x14x128xf32>
    %243 = arith.mulf %241, %242 : vector<14x14x128xf32>
    %244 = arith.addf %238, %243 : vector<14x14x128xf32>
    %c34 = arith.constant 34 : index
    %245 = memref.load %arg2[%c34] : memref<36xf32, #tpu.memory_space<smem>>
    %c0_164 = arith.constant 0 : index
    %c2_165 = arith.constant 2 : index
    %c1_166 = arith.constant 1 : index
    %c0_167 = arith.constant 0 : index
    %246 = vector.load %arg1[%c0_164, %c2_165, %c1_166, %c0_167] : memref<1x16x16x128xf32, #tpu.memory_space<vmem>>, vector<1x14x14x128xf32>
    %247 = vector.shape_cast %246 : vector<1x14x14x128xf32> to vector<14x14x128xf32>
    %248 = vector.broadcast %245 : f32 to vector<14x14x128xf32>
    %249 = arith.mulf %247, %248 : vector<14x14x128xf32>
    %250 = arith.addf %244, %249 : vector<14x14x128xf32>
    %c35 = arith.constant 35 : index
    %251 = memref.load %arg2[%c35] : memref<36xf32, #tpu.memory_space<smem>>
    %c0_168 = arith.constant 0 : index
    %c2_169 = arith.constant 2 : index
    %c2_170 = arith.constant 2 : index
    %c0_171 = arith.constant 0 : index
    %252 = vector.load %arg1[%c0_168, %c2_169, %c2_170, %c0_171] : memref<1x16x16x128xf32, #tpu.memory_space<vmem>>, vector<1x14x14x128xf32>
    %253 = vector.shape_cast %252 : vector<1x14x14x128xf32> to vector<14x14x128xf32>
    %254 = vector.broadcast %251 : f32 to vector<14x14x128xf32>
    %255 = arith.mulf %253, %254 : vector<14x14x128xf32>
    %256 = arith.addf %250, %255 : vector<14x14x128xf32>
    %c3_172 = arith.constant 3 : index
    %257 = memref.load %arg3[%c3_172] : memref<4xf32, #tpu.memory_space<smem>>
    %258 = vector.broadcast %257 : f32 to vector<14x14x128xf32>
    %259 = arith.addf %256, %258 : vector<14x14x128xf32>
    %cst_173 = arith.constant 0.000000e+00 : f32
    %260 = vector.broadcast %cst_173 : f32 to vector<14x14x128xf32>
    %261 = arith.maximumf %259, %260 : vector<14x14x128xf32>
    %c3_174 = arith.constant 3 : index
    %c0_175 = arith.constant 0 : index
    %c0_176 = arith.constant 0 : index
    %c0_177 = arith.constant 0 : index
    %262 = vector.load %arg4[%c3_174, %c0_175, %c0_176, %c0_177] : memref<4x14x14x128xf32, #tpu.memory_space<vmem>>, vector<1x14x14x128xf32>
    %263 = vector.shape_cast %262 : vector<1x14x14x128xf32> to vector<14x14x128xf32>
    %264 = arith.mulf %261, %263 : vector<14x14x128xf32>
    %cst_178 = arith.constant dense<0.000000e+00> : vector<14x128xf32>
    %265 = vector.multi_reduction <add>, %264, %cst_178 [0] : vector<14x14x128xf32> to vector<14x128xf32>
    %cst_179 = arith.constant dense<0.000000e+00> : vector<128xf32>
    %266 = vector.multi_reduction <add>, %265, %cst_179 [0] : vector<14x128xf32> to vector<128xf32>
    %267 = vector.shape_cast %266 : vector<128xf32> to vector<1x128xf32>
    %268 = arith.addf %201, %267 : vector<1x128xf32>
    %c0_180 = arith.constant 0 : index
    %269 = memref.load %arg5[%c0_180] : memref<1xf32, #tpu.memory_space<smem>>
    %270 = vector.broadcast %269 : f32 to vector<1x128xf32>
    %271 = arith.addf %268, %270 : vector<1x128xf32>
    %cst_181 = arith.constant 5.000000e-01 : f32
    %272 = vector.broadcast %cst_181 : f32 to vector<1x128xf32>
    %273 = arith.mulf %272, %271 : vector<1x128xf32>
    %274 = math.tanh %273 : vector<1x128xf32>
    %cst_182 = arith.constant 1.000000e+00 : f32
    %275 = vector.broadcast %cst_182 : f32 to vector<1x128xf32>
    %276 = arith.addf %274, %275 : vector<1x128xf32>
    %cst_183 = arith.constant 5.000000e-01 : f32
    %277 = vector.broadcast %cst_183 : f32 to vector<1x128xf32>
    %278 = arith.mulf %277, %276 : vector<1x128xf32>
    %c0_184 = arith.constant 0 : index
    %c0_185 = arith.constant 0 : index
    %279 = vector.load %arg6[%c0_184, %c0_185] : memref<1x128xf32, #tpu.memory_space<vmem>>, vector<1x128xf32>
    tpu.vector_store %arg6[%c0_184, %c0_185], %278 {strides = array<i32>} : memref<1x128xf32, #tpu.memory_space<vmem>>, vector<1x128xf32>,
    return
  }
  func.func @transform_0(%arg0: i32) -> (i32, i32, i32, i32) {
    %c0_i32 = arith.constant 0 : i32
    %c0_i32_0 = arith.constant 0 : i32
    %c0_i32_1 = arith.constant 0 : i32
    %c0_i32_2 = arith.constant 0 : i32
    return %c0_i32, %c0_i32_0, %c0_i32_1, %arg0 : i32, i32, i32, i32
  }
  func.func @transform_1(%arg0: i32) -> i32 {
    %c0_i32 = arith.constant 0 : i32
    %c0_i32_0 = arith.constant 0 : i32
    return %c0_i32 : i32
  }
  func.func @transform_2(%arg0: i32) -> i32 {
    %c0_i32 = arith.constant 0 : i32
    %c0_i32_0 = arith.constant 0 : i32
    return %c0_i32 : i32
  }
  func.func @transform_3(%arg0: i32) -> (i32, i32, i32, i32) {
    %c0_i32 = arith.constant 0 : i32
    %c0_i32_0 = arith.constant 0 : i32
    %c0_i32_1 = arith.constant 0 : i32
    %c0_i32_2 = arith.constant 0 : i32
    %c0_i32_3 = arith.constant 0 : i32
    return %c0_i32, %c0_i32_0, %c0_i32_1, %c0_i32_2 : i32, i32, i32, i32
  }
  func.func @transform_4(%arg0: i32) -> i32 {
    %c0_i32 = arith.constant 0 : i32
    %c0_i32_0 = arith.constant 0 : i32
    return %c0_i32 : i32
  }
  func.func @transform_5(%arg0: i32) -> (i32, i32) {
    %c0_i32 = arith.constant 0 : i32
    %c0_i32_0 = arith.constant 0 : i32
    return %c0_i32, %arg0 : i32, i32
  }
}

</mosaic_0001>

<bundles_post_ra>
// kernel: tpu_custom_call.1
= control target key start
LH: loop header
LB: loop body
LE: loop exit
PB: predicated region body
PF: predicated region fallthrough
CT: control target
= control target key end

     0   :  { %s10554_s0 = inlined_call_operand.vmem [shape: f32[1,16,16,256], index: 0, kind: input, shape index: {}]   ;;  %s10555_s1 = inlined_call_operand.vmem [shape: f32[36], index: 1, kind: input, shape index: {}]   ;;  %s10556_s2 = inlined_call_operand.vmem [shape: f32[4], index: 2, kind: input, shape index: {}]   ;;  %s10557_s3 = inlined_call_operand.vmem [shape: f32[4,14,14,128], index: 3, kind: input, shape index: {}]   ;;  %s10558_s4 = inlined_call_operand.<no memory space> [shape: f32[1], index: 4, kind: input, shape index: {}]   ;;  %s10559_s5 = inlined_call_operand.hbm [shape: f32[1,256], index: 5, kind: output, shape index: {}]  }
   0x1   :  { %10 = sst [smem:[#allocation2]] %s10558_s4 }
   0x2   :  { %11 = vsyncpa [#allocation6], 0 }
   0x3   :  { %12 = vsyncpa [#allocation8], 0 }
   0x4   :  { %13 = vsyncpa [#allocation5], 0 }
   0x5   :  { %15 = vsyncpa [#allocation5 + $0x1], 0  ;;  %s4536_s20 = smov 0   ;;  %s4538_s21 = smov 0  }
   0x6   :  { %s4540_s22 = smov 0   ;;  %s4542_s23 = smov 0  }
   0x7 LB: > { %s4557_s4 = sadd.s32 4294967295, %s4498_s23   ;;  %s3510_s24 = sadd.s32 4294967294, %s4498_s23   ;;  %s4498_s23 = sphi %s4542_s23, %s11577_s23   ;;  %s4494_s22 = sphi %s4540_s22, %s11576_s22   ;;  %s4490_s21 = sphi %s4538_s21, %s11575_s21   ;;  %s4486_s20 = sphi %s4536_s20, %s11574_s20  }
   0x8   : > { %s4561_s25 = sadd.s32 1, %s4498_s23   ;;  %s28_s26 = sadd.s32 1, %s4494_s22 }
   0x9   : > { %s25_s27 = ssub.s32 %s4498_s23, %s4561_s25  ;;  %p35_p0 = scmp.ne.s32.totalorder %s4494_s22, %s4490_s21 }
   0xa   : > { %p26_p1 = scmp.eq.s32.totalorder %s25_s27, 0  ;;  %p36_p2 = scmp.eq.s32.totalorder %s4498_s23, 0 }
   0xb   : > { %p149_p3 = scmp.eq.s32.totalorder %s4557_s4, 1  ;;  %p154_p4 = scmp.ne.s32.totalorder %s4490_s21, %s4486_s20 }
   0xc   : > { %s4573_s28 = scalar_select %p26_p1, %s4494_s22, %s28_s26  }
   0xd   : > { %p4575_p5 = por %p36_p2, %p35_p0  ;;  %p4579_p6 = por %p149_p3, %p35_p0 }
   0xe   : > { %p155_p7 = scmp.eq.s32.totalorder %s3510_s24, 1  ;;  %p3511_p8 = scmp.ge.s32.totalorder %s4498_s23, 1 }
   0xf   : > { %s10900_s29 = scalar_select %p4575_p5, 1, 0 }
  0x10   : > { %s10901_s30 = scalar_select %p4579_p6, 1, 0 }
  0x11   : > { %p162_p9 = scmp.lt.s32.totalorder %s4498_s23, 3  ;;  %p4585_p10 = por %p155_p7, %p154_p4 }
  0x12   : > { %p10560_p11 = scmp.eq.s32.totalorder %s4557_s4, 0  ;;  %s175_s10 = sshll.u32 %s10555_s1, 4  ;;  %s176_s10 = int_to_ptr.vmem [resolvable:$true] %s175_s10 }
  0x13   : > { %s10902_s6 = scalar_select %p4585_p10, 1, 0 }
  0x14   : > { %p4590_p12 = pnand %p3511_p8, %p162_p9  ;;  %s186_s13 = sshll.u32 %s10556_s2, 4  ;;  %s187_s13 = int_to_ptr.vmem [resolvable:$true] %s186_s13 }
  0x15   : > { %s4398_s15 = scalar_lea.vmem %s176_s10, 16  ;;  %p4406_p7 = scmp.lt.s32.totalorder %s176_s10, %s176_s10 }
  0x16   : > { %s10903_s7 = scalar_select %p4590_p12, 1, 0 }
  0x17   : > { %p3824_p13 = pneg %p4590_p12  ;;  %p4399_p1 = scmp.ne.s32.totalorder %s176_s10, %s4398_s15 }
  0x18   : > { %p4407_p8 = scmp.lt.s32.totalorder %s4398_s15, %s4398_s15 }
  0x19   : > { %p4604_p0 = pnand %p10560_p11, %p3824_p13 }
  0x1a   : > { %p4408_p9 = por %p4407_p8, %p4406_p7 }
  0x1b   : > { %p4400_p2 = pneg %p4604_p0 }
  0x1d   : > { %p4401_p3 = pnand %p4400_p2, %p4399_p1 }
  0x1f   : > { %p4402_p4 = pneg %p4401_p3 }
  0x21   : > { %p4409_p10 = pnand %p4408_p9, %p4402_p4 }
  0x23   : > { %4412 = shalt.err (!%p4409_p10)
}
  0x24   : > { %s4500_s16 = smov [#allocation4]   ;;  %s4413_s17 = scalar_lea.vmem %s187_s13, 16 }
  0x25   : > { %3827 = dma.vmem_to_smem (!%p4604_p0), %s176_s10, 16, %s4500_s16, [#allocation6]  }
  0x26   : > { %p4414_p13 = scmp.ne.s32.totalorder %s187_s13, %s4413_s17  ;;  %p4421_p12 = scmp.lt.s32.totalorder %s187_s13, %s187_s13 }
  0x27   : > { %p4422_p5 = scmp.lt.s32.totalorder %s4413_s17, %s4413_s17 }
  0x28   : > { %p4416_p11 = pnand %p4414_p13, %p4400_p2 }
  0x29   : > { %p4423_p1 = por %p4422_p5, %p4421_p12 }
  0x2a   : > { %p4417_p6 = pneg %p4416_p11 }
  0x2c   : > { %p4424_p3 = pnand %p4423_p1, %p4417_p6 }
  0x2e   : > { %4427 = shalt.err (!%p4424_p3)
}
  0x2f   : > { %s4501_s18 = smov [#allocation7]   ;;  %p3514_p10 = scmp.ge.s32.totalorder %s4498_s23, 2 }
  0x30   : > { %3830 = dma.vmem_to_smem (!%p4604_p0), %s187_s13, 16, %s4501_s18, [#allocation8]  }
  0x31   : > { %199 = sbr.rel (%p3514_p10) target bundleno = 76 (0x4c), region = 32  ;;  %p10905_p4 = scmp.ne.s32.totalorder (!%p3514_p10), %s10900_s29, 0 }
  0x38   : > { %202 = sbr.rel (!%p10905_p4) target bundleno = 76 (0x4c), region = 36  ;;  %s204_s19 = sand.u32 (%p10905_p4), 1, %s4494_s22  }
  0x39   : > { %s3516_s24 = sshll.u32 (%p10905_p4), %s4498_s23, 3  ;;  %s3515_s26 = sshll.u32 (%p10905_p4), %s204_s19, 8 }
  0x3a   : > { %s4624_s9 = scalar_lea.vmem (%p10905_p4), %s10554_s0, %s3516_s24  ;;  %s4629_s29 = scalar_lea.vmem (%p10905_p4), [#allocation3], %s3515_s26 }
  0x3b   : > { %v298_v0 = vld [vmem:[%s4624_s9] sm:$0xff] (%p10905_p4)  ;;  %v300_v1 = vld [vmem:[%s4624_s9 + $0x10] sm:$0xff] (%p10905_p4) }
  0x3c   : > { %v302_v2 = vld [vmem:[%s4624_s9 + $0x20] sm:$0xff] (%p10905_p4)  ;;  %299 = vst [vmem:[%s4629_s29] sm:$0xff] (%p10905_p4), %v298_v0  ;;  %301 = vst [vmem:[%s4629_s29 + $0x8] sm:$0xff] (%p10905_p4), %v300_v1  ;;  %v304_v3 = vld [vmem:[%s4624_s9 + $0x30] sm:$0xff] (%p10905_p4) }
  0x3d   : > { %303 = vst [vmem:[%s4629_s29 + $0x10] sm:$0xff] (%p10905_p4), %v302_v2  ;;  %v306_v4 = vld [vmem:[%s4624_s9 + $0x40] sm:$0xff] (%p10905_p4)  ;;  %v308_v5 = vld [vmem:[%s4624_s9 + $0x50] sm:$0xff] (%p10905_p4)  ;;  %305 = vst [vmem:[%s4629_s29 + $0x18] sm:$0xff] (%p10905_p4), %v304_v3 }
  0x3e   : > { %307 = vst [vmem:[%s4629_s29 + $0x20] sm:$0xff] (%p10905_p4), %v306_v4  ;;  %309 = vst [vmem:[%s4629_s29 + $0x28] sm:$0xff] (%p10905_p4), %v308_v5  ;;  %v310_v6 = vld [vmem:[%s4624_s9 + $0x60] sm:$0xff] (%p10905_p4)  ;;  %v312_v7 = vld [vmem:[%s4624_s9 + $0x70] sm:$0xff] (%p10905_p4) }
  0x3f   : > { %v314_v8 = vld [vmem:[%s4624_s9 + $0x80] sm:$0xff]  ;;  %311 = vst [vmem:[%s4629_s29 + $0x30] sm:$0xff] %v310_v6  ;;  %313 = vst [vmem:[%s4629_s29 + $0x38] sm:$0xff] %v312_v7  ;;  %v316_v9 = vld [vmem:[%s4624_s9 + $0x90] sm:$0xff] }
  0x40   : > { %315 = vst [vmem:[%s4629_s29 + $0x40] sm:$0xff] %v314_v8  ;;  %v318_v10 = vld [vmem:[%s4624_s9 + $0xa0] sm:$0xff]  ;;  %v320_v11 = vld [vmem:[%s4624_s9 + $0xb0] sm:$0xff]  ;;  %317 = vst [vmem:[%s4629_s29 + $0x48] sm:$0xff] %v316_v9 }
  0x41   : > { %319 = vst [vmem:[%s4629_s29 + $0x50] sm:$0xff] %v318_v10  ;;  %321 = vst [vmem:[%s4629_s29 + $0x58] sm:$0xff] %v320_v11  ;;  %v322_v12 = vld [vmem:[%s4624_s9 + $0xc0] sm:$0xff]  ;;  %v324_v13 = vld [vmem:[%s4624_s9 + $0xd0] sm:$0xff] }
  0x42   : > { %v326_v14 = vld [vmem:[%s4624_s9 + $0xe0] sm:$0xff]  ;;  %323 = vst [vmem:[%s4629_s29 + $0x60] sm:$0xff] %v322_v12  ;;  %325 = vst [vmem:[%s4629_s29 + $0x68] sm:$0xff] %v324_v13  ;;  %v328_v15 = vld [vmem:[%s4624_s9 + $0xf0] sm:$0xff] }
  0x43   : > { %327 = vst [vmem:[%s4629_s29 + $0x70] sm:$0xff] %v326_v14  ;;  %v330_v16 = vld [vmem:[%s4624_s9 + $0x100] sm:$0xff]  ;;  %v332_v17 = vld [vmem:[%s4624_s9 + $0x110] sm:$0xff]  ;;  %329 = vst [vmem:[%s4629_s29 + $0x78] sm:$0xff] %v328_v15 }
  0x44   : > { %331 = vst [vmem:[%s4629_s29 + $0x80] sm:$0xff] %v330_v16  ;;  %333 = vst [vmem:[%s4629_s29 + $0x88] sm:$0xff] %v332_v17  ;;  %v334_v18 = vld [vmem:[%s4624_s9 + $0x120] sm:$0xff]  ;;  %v336_v19 = vld [vmem:[%s4624_s9 + $0x130] sm:$0xff] }
  0x45   : > { %v338_v20 = vld [vmem:[%s4624_s9 + $0x140] sm:$0xff]  ;;  %335 = vst [vmem:[%s4629_s29 + $0x90] sm:$0xff] %v334_v18  ;;  %337 = vst [vmem:[%s4629_s29 + $0x98] sm:$0xff] %v336_v19  ;;  %v340_v21 = vld [vmem:[%s4624_s9 + $0x150] sm:$0xff] }
  0x46   : > { %339 = vst [vmem:[%s4629_s29 + $0xa0] sm:$0xff] %v338_v20  ;;  %v342_v22 = vld [vmem:[%s4624_s9 + $0x160] sm:$0xff]  ;;  %v344_v23 = vld [vmem:[%s4624_s9 + $0x170] sm:$0xff]  ;;  %341 = vst [vmem:[%s4629_s29 + $0xa8] sm:$0xff] %v340_v21 }
  0x47   : > { %343 = vst [vmem:[%s4629_s29 + $0xb0] sm:$0xff] %v342_v22  ;;  %345 = vst [vmem:[%s4629_s29 + $0xb8] sm:$0xff] %v344_v23  ;;  %v346_v24 = vld [vmem:[%s4624_s9 + $0x180] sm:$0xff]  ;;  %v348_v25 = vld [vmem:[%s4624_s9 + $0x190] sm:$0xff] }
  0x48   : > { %v350_v26 = vld [vmem:[%s4624_s9 + $0x1a0] sm:$0xff]  ;;  %347 = vst [vmem:[%s4629_s29 + $0xc0] sm:$0xff] %v346_v24  ;;  %349 = vst [vmem:[%s4629_s29 + $0xc8] sm:$0xff] %v348_v25  ;;  %v352_v27 = vld [vmem:[%s4624_s9 + $0x1b0] sm:$0xff] }
  0x49   : > { %351 = vst [vmem:[%s4629_s29 + $0xd0] sm:$0xff] %v350_v26  ;;  %v354_v28 = vld [vmem:[%s4624_s9 + $0x1c0] sm:$0xff]  ;;  %v356_v29 = vld [vmem:[%s4624_s9 + $0x1d0] sm:$0xff]  ;;  %353 = vst [vmem:[%s4629_s29 + $0xd8] sm:$0xff] %v352_v27 }
  0x4a   : > { %355 = vst [vmem:[%s4629_s29 + $0xe0] sm:$0xff] %v354_v28  ;;  %357 = vst [vmem:[%s4629_s29 + $0xe8] sm:$0xff] %v356_v29  ;;  %v358_v30 = vld [vmem:[%s4624_s9 + $0x1e0] sm:$0xff]  ;;  %v360_v31 = vld [vmem:[%s4624_s9 + $0x1f0] sm:$0xff] }
  0x4b   : > { %359 = vst [vmem:[%s4629_s29 + $0xf0] sm:$0xff] %v358_v30  ;;  %361 = vst [vmem:[%s4629_s29 + $0xf8] sm:$0xff] %v360_v31 }
  0x4c PF: > { %p10906_p5 = scmp.ne.s32.totalorder %s10903_s7, 0 }
  0x4e   : > { %370 = sbr.rel (%p10906_p5) target bundleno = 784 (0x310), region = 74 }
  0x55   : > { %s4695_s10 = sand.u32 1, %s4490_s21   ;;  %p10907_p6 = scmp.eq.s32.totalorder %s4557_s4, 0 }
  0x56   : > { %s3518_s11 = sshll.u32 %s4695_s10, 8 }
  0x57   : > { %s4698_s12 = scalar_lea.vmem [#allocation3], %s3518_s11 }
  0x58   : > { %4473 = dma.done.wait (%p10907_p6), [#allocation6], 16   ;;  %p10908_p11 = pmov %p10907_p6 }
  0x59   : > { %p10909_p12 = pmov %p10907_p6 }
  0x5a   : > { %4475 = vsyncadd (%p10908_p11), [#allocation6], 4294967280 }
  0x5b   : > { %4477 = dma.done.wait (%p10909_p12), [#allocation8], 16   ;;  %p10910_p0 = pmov %p10907_p6 }
  0x5d   : > { %4479 = vsyncadd (%p10910_p0), [#allocation8], 4294967280 }
  0x5e   : > { %387 = sfence }
  0x5f   : > { %s408_s7 = sld [smem:[#allocation4]]  ;;  %v409_v32 = vld [vmem:[%s4698_s12] sm:$0xff]  ;;  %v410_v33 = vld [vmem:[%s4698_s12 + $0x8] sm:$0x3f]  ;;  %v4711_v34 = vld [vmem:[%s4698_s12 + $0x10] sm:$0xff]  ;;  %s4721_s13 = sld [smem:[#allocation4 + $0x1]] }
  0x60   : > { %10911 = vst [vmem:[#allocation13_spill] sm:$0xff] %v4711_v34  ;;  %v412_v35 = vld [vmem:[%s4698_s12 + $0x18] sm:$0x3f]  ;;  %v4715_v36 = vld [vmem:[%s4698_s12 + $0x20] sm:$0xff]  ;;  %v414_v37 = vld [vmem:[%s4698_s12 + $0x28] sm:$0x3f] }
  0x61   : > { %10912 = vst [vmem:[#allocation14_spill] sm:$0xff] %v4715_v36  ;;  %v4719_v38 = vld [vmem:[%s4698_s12 + $0x30] sm:$0xff]  ;;  %v416_v39 = vld [vmem:[%s4698_s12 + $0x38] sm:$0x3f]  ;;  %v4725_v40 = vld [vmem:[%s4698_s12 + $0x40] sm:$0xff]  ;;  %s4896_s14 = sld [smem:[#allocation4 + $0x2]] }
  0x62   : > { %10913 = vst [vmem:[#allocation15_spill] sm:$0xff] %v4719_v38  ;;  %10914 = vst [vmem:[#allocation16_spill] sm:$0xff] %v4725_v40  ;;  %v418_v41 = vld [vmem:[%s4698_s12 + $0x48] sm:$0x3f]  ;;  %v4729_v42 = vld [vmem:[%s4698_s12 + $0x50] sm:$0xff]  ;;  %s5043_s15 = sld [smem:[#allocation4 + $0x3]] }
  0x63   : > { %10915 = vst [vmem:[#allocation17_spill] sm:$0xff] %v4729_v42  ;;  %v420_v44 = vld [vmem:[%s4698_s12 + $0x58] sm:$0x3f]  ;;  %v4733_v45 = vld [vmem:[%s4698_s12 + $0x60] sm:$0xff]  ;;  %v422_v46 = vld [vmem:[%s4698_s12 + $0x68] sm:$0x3f] }
  0x64   : > { %10916 = vst [vmem:[#allocation18_spill] sm:$0xff] %v4733_v45  ;;  %v4737_v47 = vld [vmem:[%s4698_s12 + $0x70] sm:$0xff]  ;;  %v424_v48 = vld [vmem:[%s4698_s12 + $0x78] sm:$0x3f]  ;;  %v4741_v49 = vld [vmem:[%s4698_s12 + $0x80] sm:$0xff]  ;;  %s5060_s16 = sld [smem:[#allocation4 + $0x4]] }
  0x65   : > { %v437_v43 = vstv %s408_s7  ;;  %10917 = vst [vmem:[#allocation19_spill] sm:$0xff] %v4737_v47  ;;  %10918 = vst [vmem:[#allocation20_spill] sm:$0xff] %v4741_v49  ;;  %v426_v50 = vld [vmem:[%s4698_s12 + $0x88] sm:$0x3f]  ;;  %v4745_v51 = vld [vmem:[%s4698_s12 + $0x90] sm:$0xff]  ;;  %v523_v23 = vstv %s4721_s13  ;;  %s5062_s17 = sld [smem:[#allocation4 + $0x5]] }
  0x66   : > { %10919 = vst [vmem:[#allocation21_spill] sm:$0xff] %v4745_v51  ;;  %v428_v52 = vld [vmem:[%s4698_s12 + $0x98] sm:$0x3f]  ;;  %v4749_v53 = vld [vmem:[%s4698_s12 + $0xa0] sm:$0xff]  ;;  %v430_v54 = vld [vmem:[%s4698_s12 + $0xa8] sm:$0x3f]  ;;  %v4752_v55 = vmul.f32 %v437_v43, %v409_v32  ;;  %v4754_v56 = vmul.f32 %v437_v43, %v410_v33  ;;  %v4757_v57 = vmul.f32 %v437_v43, %v4711_v34  ;;  %v4767_v62 = vmul.f32 %v437_v43, %v412_v35 }
  0x67   : > { %10920 = vst [vmem:[#allocation22_spill] sm:$0xff] %v4749_v53  ;;  %v4760_v58 = vld [vmem:[%s4698_s12 + $0xb0] sm:$0xff]  ;;  %v432_v59 = vld [vmem:[%s4698_s12 + $0xb8] sm:$0x3f]  ;;  %v4764_v60 = vld [vmem:[%s4698_s12 + $0xc0] sm:$0xff]  ;;  %v4770_v63 = vmul.f32 %v437_v43, %v4715_v36  ;;  %v4772_v0 = vmul.f32 %v437_v43, %v414_v37  ;;  %v4775_v1 = vmul.f32 %v437_v43, %v4719_v38  ;;  %v4781_v4 = vmul.f32 %v437_v43, %v416_v39  ;;  %s5454_s18 = sld [smem:[#allocation4 + $0x6]] }
  0x68   : > { %10921 = vst [vmem:[#allocation23_spill] sm:$0xff] %v4760_v58  ;;  %10922 = vst [vmem:[#allocation24_spill] sm:$0xff] %v4764_v60  ;;  %v434_v61 = vld [vmem:[%s4698_s12 + $0xc8] sm:$0x3f]  ;;  %v4778_v2 = vld [vmem:[%s4698_s12 + $0xd0] sm:$0xff]  ;;  %v4784_v5 = vmul.f32 %v437_v43, %v4725_v40  ;;  %v4786_v6 = vmul.f32 %v437_v43, %v418_v41  ;;  %v4789_v7 = vmul.f32 %v437_v43, %v4729_v42  ;;  %s5468_s19 = sld [smem:[#allocation4 + $0x7]] }
  0x69   : > { %10923 = vst [vmem:[#allocation25_spill] sm:$0xff] %v4778_v2  ;;  %v436_v3 = vld [vmem:[%s4698_s12 + $0xd8] sm:$0x3f]  ;;  %v495_v8 = vld [vmem:[%s4698_s12 + $0x1] sm:$0xff]  ;;  %v496_v9 = vld [vmem:[%s4698_s12 + $0x9] sm:$0x3f]  ;;  %v4793_v10 = vmul.f32 %v437_v43, %v420_v44  ;;  %v4796_v11 = vmul.f32 %v437_v43, %v4733_v45  ;;  %v4798_v12 = vmul.f32 %v437_v43, %v422_v46  ;;  %v4801_v13 = vmul.f32 %v437_v43, %v4737_v47 }
  0x6a   : > { %v4804_v14 = vld [vmem:[%s4698_s12 + $0x11] sm:$0xff]  ;;  %v498_v15 = vld [vmem:[%s4698_s12 + $0x19] sm:$0x3f]  ;;  %v4808_v16 = vld [vmem:[%s4698_s12 + $0x21] sm:$0xff]  ;;  %v4810_v17 = vmul.f32 %v437_v43, %v424_v48  ;;  %v4813_v18 = vmul.f32 %v437_v43, %v4741_v49  ;;  %v4815_v19 = vmul.f32 %v437_v43, %v426_v50  ;;  %v4824_v24 = vmul.f32 %v437_v43, %v4745_v51  ;;  %s5479_s24 = sld [smem:[#allocation4 + $0x8]]  ;;  %s6638_s27 = sld [smem:[#allocation4 + $0xd]] }
  0x6b   : > { %10924 = vst [vmem:[#allocation26_spill] sm:$0xff] %v4804_v14  ;;  %10925 = vst [vmem:[#allocation27_spill] sm:$0xff] %v4808_v16  ;;  %v500_v20 = vld [vmem:[%s4698_s12 + $0x29] sm:$0x3f]  ;;  %v4819_v21 = vld [vmem:[%s4698_s12 + $0x31] sm:$0xff]  ;;  %v4826_v25 = vmul.f32 %v437_v43, %v428_v52  ;;  %v4829_v26 = vmul.f32 %v437_v43, %v4749_v53  ;;  %v4831_v27 = vmul.f32 %v437_v43, %v430_v54  ;;  %s5481_s26 = sld [smem:[#allocation7]] }
  0x6c   : > { %10926 = vst [vmem:[#allocation28_spill] sm:$0xff] %v4819_v21  ;;  %v502_v22 = vld [vmem:[%s4698_s12 + $0x39] sm:$0x3f]  ;;  %v4834_v28 = vld [vmem:[%s4698_s12 + $0x41] sm:$0xff]  ;;  %v504_v29 = vld [vmem:[%s4698_s12 + $0x49] sm:$0x3f]  ;;  %v4841_v31 = vmul.f32 %v437_v43, %v4760_v58  ;;  %v4843_v32 = vmul.f32 %v437_v43, %v432_v59  ;;  %v4846_v33 = vmul.f32 %v437_v43, %v4764_v60  ;;  %v4848_v35 = vmul.f32 %v437_v43, %v434_v61 }
  0x6d   : > { %10927 = vst [vmem:[#allocation29_spill] sm:$0xff] %v4834_v28  ;;  %v4838_v30 = vld [vmem:[%s4698_s12 + $0x51] sm:$0xff]  ;;  %v506_v37 = vld [vmem:[%s4698_s12 + $0x59] sm:$0x3f]  ;;  %v4852_v39 = vld [vmem:[%s4698_s12 + $0x61] sm:$0xff]  ;;  %v4856_v44 = vmul.f32 %v437_v43, %v4778_v2  ;;  %v4858_v46 = vmul.f32 %v437_v43, %v436_v3  ;;  %v524_v54 = vmul.f32 %v523_v23, %v495_v8  ;;  %v525_v59 = vmul.f32 %v523_v23, %v496_v9  ;;  %s6651_s8 = sld [smem:[#allocation4 + $0xe]] }
  0x6e   : > { %10928 = vst [vmem:[#allocation30_spill] sm:$0xff] %v4838_v30  ;;  %10929 = vst [vmem:[#allocation31_spill] sm:$0xff] %v4843_v32  ;;  %v508_v41 = vld [vmem:[%s4698_s12 + $0x69] sm:$0x3f]  ;;  %v4861_v48 = vld [vmem:[%s4698_s12 + $0x71] sm:$0xff]  ;;  %v526_v2 = vmul.f32 %v523_v23, %v4804_v14  ;;  %v527_v53 = vmul.f32 %v523_v23, %v498_v15  ;;  %v528_v43 = vmul.f32 %v523_v23, %v4808_v16  ;;  %vm1311_vm0 = vcmask 1045504  }
  0x6f   : > { %10930 = vst [vmem:[#allocation32_spill] sm:$0xff] %v4846_v33  ;;  %10931 = vst [vmem:[#allocation33_spill] sm:$0xff] %v4848_v35  ;;  %v510_v50 = vld [vmem:[%s4698_s12 + $0x79] sm:$0x3f]  ;;  %v4865_v52 = vld [vmem:[%s4698_s12 + $0x81] sm:$0xff]  ;;  %v529_v3 = vmul.f32 %v523_v23, %v500_v20  ;;  %v530_v9 = vmul.f32 %v523_v23, %v4819_v21  ;;  %v531_v47 = vmul.f32 %v523_v23, %v502_v22  ;;  %s6653_s9 = sld [smem:[#allocation4 + $0xf]] }
  0x70   : > { %10932 = vst [vmem:[#allocation34_spill] sm:$0xff] %v4852_v39  ;;  %10933 = vst [vmem:[#allocation35_spill] sm:$0xff] %v4856_v44  ;;  %v512_v61 = vld [vmem:[%s4698_s12 + $0x89] sm:$0x3f]  ;;  %v4869_v60 = vld [vmem:[%s4698_s12 + $0x91] sm:$0xff]  ;;  %v532_v45 = vmul.f32 %v523_v23, %v4834_v28  ;;  %v533_v42 = vmul.f32 %v523_v23, %v504_v29  ;;  %v534_v16 = vmul.f32 %v523_v23, %v4838_v30  ;;  %s6665_s29 = sld [smem:[#allocation4 + $0x10]] }
  0x71   : > { %10934 = vst [vmem:[#allocation36_spill] sm:$0xff] %v4858_v46  ;;  %10935 = vst [vmem:[#allocation37_spill] sm:$0xff] %v4861_v48  ;;  %v514_v58 = vld [vmem:[%s4698_s12 + $0x99] sm:$0x3f]  ;;  %v4875_v51 = vld [vmem:[%s4698_s12 + $0xa1] sm:$0xff]  ;;  %v535_v14 = vmul.f32 %v523_v23, %v506_v37  ;;  %v536_v20 = vmul.f32 %v523_v23, %v4852_v39  ;;  %v537_v36 = vmul.f32 %v523_v23, %v508_v41  ;;  %s7188_s11 = sld [smem:[#allocation4 + $0x11]] }
  0x72   : > { %10936 = vst [vmem:[#allocation38_spill] sm:$0xff] %v4865_v52  ;;  %10937 = vst [vmem:[#allocation39_spill] sm:$0xff] %v4869_v60  ;;  %v516_v49 = vld [vmem:[%s4698_s12 + $0xa9] sm:$0x3f]  ;;  %v4879_v8 = vld [vmem:[%s4698_s12 + $0xb1] sm:$0xff]  ;;  %v538_v44 = vmul.f32 %v523_v23, %v4861_v48  ;;  %v539_v21 = vmul.f32 %v523_v23, %v510_v50  ;;  %v540_v22 = vmul.f32 %v523_v23, %v4865_v52  ;;  %s7206_s7 = sld [smem:[#allocation7 + $0x1]] }
  0x73   : > { %10938 = vst [vmem:[#allocation40_spill] sm:$0xff] %v4875_v51  ;;  %10939 = vst [vmem:[#allocation41_spill] sm:$0xff] %v4879_v8  ;;  %v518_v40 = vld [vmem:[%s4698_s12 + $0xb9] sm:$0x3f]  ;;  %v4885_v38 = vld [vmem:[%s4698_s12 + $0xc1] sm:$0xff]  ;;  %v541_v28 = vmul.f32 %v523_v23, %v512_v61  ;;  %v542_v29 = vmul.f32 %v523_v23, %v4869_v60  ;;  %v543_v35 = vmul.f32 %v523_v23, %v514_v58  ;;  %s7974_s13 = sld [smem:[#allocation4 + $0x16]] }
  0x74   : > { %10940 = vst [vmem:[#allocation42_spill] sm:$0xff] %v4885_v38  ;;  %v520_v15 = vld [vmem:[%s4698_s12 + $0xc9] sm:$0x3f]  ;;  %v4891_v34 = vld [vmem:[%s4698_s12 + $0xd1] sm:$0xff]  ;;  %v522_v46 = vld [vmem:[%s4698_s12 + $0xd9] sm:$0x3f]  ;;  %v544_v30 = vmul.f32 %v523_v23, %v4875_v51  ;;  %v545_v37 = vmul.f32 %v523_v23, %v516_v49  ;;  %v546_v39 = vmul.f32 %v523_v23, %v4879_v8  ;;  %v547_v41 = vmul.f32 %v523_v23, %v518_v40 }
  0x75   : > { %10941 = vst [vmem:[#allocation43_spill] sm:$0xff] %v4891_v34  ;;  %v548_v33 = vmul.f32 %v523_v23, %v4885_v38  ;;  %v549_v32 = vmul.f32 %v523_v23, %v520_v15  ;;  %v550_v50 = vmul.f32 %v523_v23, %v4891_v34  ;;  %v551_v48 = vmul.f32 %v523_v23, %v522_v46  ;;  %v5002_v46 = vld [vmem:[%s4698_s12 + $0x62] sm:$0xff]  ;;  %v5035_v38 = vld [vmem:[%s4698_s12 + $0xb2] sm:$0xff]  ;;  %v606_v60 = vld [vmem:[%s4698_s12 + $0xca] sm:$0x3f]  ;;  %p11572_p7 = scmp.ne.s32.totalorder %s10901_s30, 0 }
  0x76   : > { %v4904_v61 = vadd.f32 %v524_v54, %v4752_v55  ;;  %v4907_v58 = vadd.f32 %v525_v59, %v4754_v56  ;;  %v4910_v49 = vadd.f32 %v526_v2, %v4757_v57  ;;  %v4913_v40 = vadd.f32 %v527_v53, %v4767_v62  ;;  %v581_v62 = vld [vmem:[%s4698_s12 + $0x2] sm:$0xff]  ;;  %v584_v2 = vld [vmem:[%s4698_s12 + $0x1a] sm:$0x3f]  ;;  %10953 = vst [vmem:[#allocation51_spill] sm:$0xff] %v5002_v46 }
  0x77   : > { %v4916_v15 = vadd.f32 %v528_v43, %v4770_v63  ;;  %v4919_v23 = vadd.f32 %v529_v3, %v4772_v0  ;;  %v4922_v55 = vadd.f32 %v530_v9, %v4775_v1  ;;  %v4925_v56 = vadd.f32 %v531_v47, %v4781_v4  ;;  %v10954_v54 = vld [vmem:[#allocation33_spill] sm:$0xff]  ;;  %v10956_v59 = vld [vmem:[#allocation35_spill] sm:$0xff]  ;;  %v594_v3 = vld [vmem:[%s4698_s12 + $0x6a] sm:$0x3f]  ;;  %10964 = vst [vmem:[#allocation56_spill] sm:$0xff] %v5035_v38 }
  0x78   : > { %v4928_v57 = vadd.f32 %v532_v45, %v4784_v5  ;;  %v4931_v53 = vadd.f32 %v533_v42, %v4786_v6  ;;  %v4935_v63 = vadd.f32 %v534_v16, %v4789_v7  ;;  %v4938_v0 = vadd.f32 %v535_v14, %v4793_v10  ;;  %v582_v45 = vld [vmem:[%s4698_s12 + $0xa] sm:$0x3f]  ;;  %v4948_v42 = vld [vmem:[%s4698_s12 + $0x12] sm:$0xff]  ;;  %v588_v16 = vld [vmem:[%s4698_s12 + $0x3a] sm:$0x3f] }
  0x79   : > { %v4941_v1 = vadd.f32 %v536_v20, %v4796_v11  ;;  %v4944_v47 = vadd.f32 %v537_v36, %v4798_v12  ;;  %10942 = vst [vmem:[#allocation44_spill] sm:$0xff] %v4948_v42  ;;  %v4952_v4 = vadd.f32 %v538_v44, %v4801_v13  ;;  %v4955_v5 = vadd.f32 %v539_v21, %v4810_v17  ;;  %v4964_v36 = vld [vmem:[%s4698_s12 + $0x22] sm:$0xff]  ;;  %v586_v10 = vld [vmem:[%s4698_s12 + $0x2a] sm:$0x3f]  ;;  %v4968_v11 = vld [vmem:[%s4698_s12 + $0x32] sm:$0xff] }
  0x7a   : > { %v4958_v6 = vadd.f32 %v540_v22, %v4813_v18  ;;  %v4961_v7 = vadd.f32 %v541_v28, %v4815_v19  ;;  %10943 = vst [vmem:[#allocation45_spill] sm:$0xff] %v4964_v36  ;;  %10944 = vst [vmem:[#allocation46_spill] sm:$0xff] %v4968_v11  ;;  %v4971_v12 = vadd.f32 %v542_v29, %v4824_v24  ;;  %v4981_v17 = vld [vmem:[%s4698_s12 + $0x42] sm:$0xff]  ;;  %v590_v18 = vld [vmem:[%s4698_s12 + $0x4a] sm:$0x3f]  ;;  %v609_v19 = vstv %s4896_s14  ;;  %s8226_s14 = sld [smem:[#allocation4 + $0x17]] }
  0x7b   : > { %v4974_v13 = vadd.f32 %v543_v35, %v4826_v25  ;;  %v4977_v14 = vadd.f32 %v544_v30, %v4829_v26  ;;  %10945 = vst [vmem:[#allocation47_spill] sm:$0xff] %v4981_v17  ;;  %v4986_v21 = vadd.f32 %v545_v37, %v4831_v27  ;;  %v4989_v24 = vadd.f32 %v546_v39, %v4841_v31  ;;  %v10948_v25 = vld [vmem:[#allocation31_spill] sm:$0xff]  ;;  %v10950_v26 = vld [vmem:[#allocation32_spill] sm:$0xff]  ;;  %v5019_v22 = vld [vmem:[%s4698_s12 + $0x82] sm:$0xff] }
  0x7c   : > { %v4992_v28 = vadd.f32 %v547_v41, %v10948_v25  ;;  %v4995_v30 = vadd.f32 %v548_v33, %v10950_v26  ;;  %v4998_v35 = vld [vmem:[%s4698_s12 + $0x52] sm:$0xff]  ;;  %v592_v44 = vld [vmem:[%s4698_s12 + $0x5a] sm:$0x3f]  ;;  %v5005_v27 = vadd.f32 %v549_v32, %v10954_v54  ;;  %v5008_v31 = vadd.f32 %v550_v50, %v10956_v59  ;;  %10961 = vst [vmem:[#allocation53_spill] sm:$0xff] %v5019_v22  ;;  %v598_v29 = vld [vmem:[%s4698_s12 + $0x8a] sm:$0x3f] }
  0x7d   : > { %10946 = vst [vmem:[#allocation48_spill] sm:$0xff] %v4986_v21  ;;  %10947 = vst [vmem:[#allocation49_spill] sm:$0xff] %v4989_v24  ;;  %v10958_v39 = vld [vmem:[#allocation36_spill] sm:$0xff]  ;;  %v5015_v33 = vld [vmem:[%s4698_s12 + $0x72] sm:$0xff]  ;;  %v610_v20 = vmul.f32 %v609_v19, %v581_v62  ;;  %v611_v37 = vmul.f32 %v609_v19, %v582_v45  ;;  %v612_v41 = vmul.f32 %v609_v19, %v4948_v42 }
  0x7e   : > { %10949 = vst [vmem:[#allocation31_spill] sm:$0xff] %v4992_v28  ;;  %10951 = vst [vmem:[#allocation32_spill] sm:$0xff] %v4995_v30  ;;  %v5011_v43 = vadd.f32 %v551_v48, %v10958_v39  ;;  %v596_v9 = vld [vmem:[%s4698_s12 + $0x7a] sm:$0x3f]  ;;  %v5023_v32 = vld [vmem:[%s4698_s12 + $0x92] sm:$0xff]  ;;  %v613_v50 = vmul.f32 %v609_v19, %v584_v2  ;;  %v614_v48 = vmul.f32 %v609_v19, %v4964_v36 }
  0x7f   : > { %10952 = vst [vmem:[#allocation50_spill] sm:$0xff] %v4998_v35  ;;  %10955 = vst [vmem:[#allocation33_spill] sm:$0xff] %v5005_v27  ;;  %v600_v25 = vld [vmem:[%s4698_s12 + $0x9a] sm:$0x3f]  ;;  %v5029_v26 = vld [vmem:[%s4698_s12 + $0xa2] sm:$0xff]  ;;  %v615_v54 = vmul.f32 %v609_v19, %v586_v10  ;;  %v616_v59 = vmul.f32 %v609_v19, %v4968_v11  ;;  %v617_v39 = vmul.f32 %v609_v19, %v588_v16 }
  0x80   : > { %10957 = vst [vmem:[#allocation35_spill] sm:$0xff] %v5008_v31  ;;  %10959 = vst [vmem:[#allocation36_spill] sm:$0xff] %v5011_v43  ;;  %v602_v62 = vld [vmem:[%s4698_s12 + $0xaa] sm:$0x3f]  ;;  %v618_v34 = vmul.f32 %v609_v19, %v4981_v17  ;;  %v604_v45 = vld [vmem:[%s4698_s12 + $0xba] sm:$0x3f]  ;;  %v619_v2 = vmul.f32 %v609_v19, %v590_v18  ;;  %v620_v36 = vmul.f32 %v609_v19, %v4998_v35 }
  0x81   : > { %10960 = vst [vmem:[#allocation52_spill] sm:$0xff] %v5015_v33  ;;  %10962 = vst [vmem:[#allocation54_spill] sm:$0xff] %v5023_v32  ;;  %v5039_v42 = vld [vmem:[%s4698_s12 + $0xc2] sm:$0xff]  ;;  %v621_v8 = vmul.f32 %v609_v19, %v592_v44  ;;  %v622_v51 = vmul.f32 %v609_v19, %v5002_v46  ;;  %v5047_v10 = vld [vmem:[%s4698_s12 + $0xd2] sm:$0xff]  ;;  %v623_v16 = vmul.f32 %v609_v19, %v594_v3 }
  0x82   : > { %10963 = vst [vmem:[#allocation55_spill] sm:$0xff] %v5029_v26  ;;  %10965 = vst [vmem:[#allocation57_spill] sm:$0xff] %v5039_v42  ;;  %v608_v11 = vld [vmem:[%s4698_s12 + $0xda] sm:$0x3f]  ;;  %v624_v17 = vmul.f32 %v609_v19, %v5015_v33  ;;  %v625_v52 = vmul.f32 %v609_v19, %v596_v9  ;;  %v626_v43 = vmul.f32 %v609_v19, %v5019_v22 }
  0x83   : > { %10966 = vst [vmem:[#allocation58_spill] sm:$0xff] %v5047_v10  ;;  %v627_v31 = vmul.f32 %v609_v19, %v598_v29  ;;  %v628_v18 = vmul.f32 %v609_v19, %v5023_v32  ;;  %v629_v27 = vmul.f32 %v609_v19, %v600_v25  ;;  %v630_v44 = vmul.f32 %v609_v19, %v5029_v26  ;;  %v5173_v32 = vld [vmem:[%s4698_s12 + $0xe0] sm:$0xff] }
  0x84   : > { %v631_v35 = vmul.f32 %v609_v19, %v602_v62  ;;  %v632_v46 = vmul.f32 %v609_v19, %v5035_v38  ;;  %v633_v30 = vmul.f32 %v609_v19, %v604_v45  ;;  %v634_v28 = vmul.f32 %v609_v19, %v5039_v42  ;;  %v10984_v45 = vld [vmem:[#allocation14_spill] sm:$0xff]  ;;  %10990 = vst [vmem:[#allocation60_spill] sm:$0xff] %v5173_v32 }
  0x85   : > { %v635_v24 = vmul.f32 %v609_v19, %v606_v60  ;;  %v636_v3 = vmul.f32 %v609_v19, %v5047_v10  ;;  %v637_v21 = vmul.f32 %v609_v19, %v608_v11  ;;  %v5058_v9 = vadd.f32 %v610_v20, %v4904_v61  ;;  %v3531_v20 = vld [vmem:[%s4698_s12 + $0x48] sm:$0x3f] }
  0x86   : > { %v5065_v29 = vadd.f32 %v611_v37, %v4907_v58  ;;  %v5068_v25 = vadd.f32 %v612_v41, %v4910_v49  ;;  %v5071_v62 = vadd.f32 %v613_v50, %v4913_v40  ;;  %v5074_v60 = vadd.f32 %v614_v48, %v4916_v15  ;;  %v3535_v37 = vld [vmem:[%s4698_s12 + $0x68] sm:$0x3f]  ;;  %v3537_v41 = vld [vmem:[%s4698_s12 + $0x78] sm:$0x3f] }
  0x87   : > { %v5077_v61 = vadd.f32 %v615_v54, %v4919_v23  ;;  %v5080_v11 = vadd.f32 %v616_v59, %v4922_v55  ;;  %v5083_v58 = vadd.f32 %v617_v39, %v4925_v56  ;;  %v5086_v49 = vadd.f32 %v618_v34, %v4928_v57  ;;  %v10981_v50 = vld [vmem:[#allocation13_spill] sm:$0xff]  ;;  %v3541_v39 = vld [vmem:[%s4698_s12 + $0x98] sm:$0x3f]  ;;  %v10988_v10 = vld [vmem:[#allocation18_spill] sm:$0xff] }
  0x88   : > { %v5089_v40 = vadd.f32 %v619_v2, %v4931_v53  ;;  %v5092_v15 = vadd.f32 %v620_v36, %v4935_v63  ;;  %v5095_v23 = vadd.f32 %v621_v8, %v4938_v0  ;;  %v5098_v55 = vadd.f32 %v622_v51, %v4941_v1  ;;  %v3525_v0 = vld [vmem:[%s4698_s12 + $0x18] sm:$0x3f]  ;;  %v3539_v59 = vld [vmem:[%s4698_s12 + $0x88] sm:$0x3f] }
  0x89   : > { %v5101_v56 = vadd.f32 %v623_v16, %v4944_v47  ;;  %v5104_v34 = vadd.f32 %v624_v17, %v4952_v4  ;;  %v5107_v57 = vadd.f32 %v625_v52, %v4955_v5  ;;  %v5110_v53 = vadd.f32 %v626_v43, %v4958_v6  ;;  %v10967_v47 = vld [vmem:[#allocation48_spill] sm:$0xff]  ;;  %v10969_v5 = vld [vmem:[#allocation49_spill] sm:$0xff]  ;;  %v10985_v16 = vld [vmem:[#allocation15_spill] sm:$0xff] }
  0x8a   : > { %v5113_v8 = vadd.f32 %v627_v31, %v4961_v7  ;;  %v5116_v51 = vadd.f32 %v628_v18, %v4971_v12  ;;  %v5119_v63 = vadd.f32 %v629_v27, %v4974_v13  ;;  %v696_v1 = vstv %s5043_s15  ;;  %v10971_v7 = vld [vmem:[#allocation31_spill] sm:$0xff]  ;;  %v3527_v12 = vld [vmem:[%s4698_s12 + $0x28] sm:$0x3f]  ;;  %v10973_v17 = vld [vmem:[#allocation32_spill] sm:$0xff]  ;;  %s6035_s15 = sld [smem:[#allocation4 + $0x9]] }
  0x8b   : > { %v5124_v52 = vadd.f32 %v630_v44, %v4977_v14  ;;  %v5127_v4 = vadd.f32 %v631_v35, %v10967_v47  ;;  %v5130_v6 = vadd.f32 %v632_v46, %v10969_v5  ;;  %v5133_v36 = vadd.f32 %v633_v30, %v10971_v7  ;;  %v3529_v13 = vld [vmem:[%s4698_s12 + $0x38] sm:$0x3f]  ;;  %v10975_v14 = vld [vmem:[#allocation33_spill] sm:$0xff] }
  0x8c   : > { %v5138_v19 = vadd.f32 %v634_v28, %v10973_v17  ;;  %v5141_v27 = vadd.f32 %v635_v24, %v10975_v14  ;;  %v10977_v31 = vld [vmem:[#allocation35_spill] sm:$0xff]  ;;  %v10979_v43 = vld [vmem:[#allocation36_spill] sm:$0xff]  ;;  %v697_v48 = vmul.f32 %v696_v1, %v10981_v50  ;;  %v698_v28 = vmul.f32 %v3525_v0, %v696_v1  ;;  %v10987_v17 = vld [vmem:[#allocation17_spill] sm:$0xff] }
  0x8d   : > { %10968 = vst [vmem:[#allocation48_spill] sm:$0xff] %v5127_v4  ;;  %10970 = vst [vmem:[#allocation49_spill] sm:$0xff] %v5130_v6  ;;  %v5144_v35 = vadd.f32 %v636_v3, %v10977_v31  ;;  %v5147_v46 = vadd.f32 %v637_v21, %v10979_v43  ;;  %v3533_v30 = vld [vmem:[%s4698_s12 + $0x58] sm:$0x3f]  ;;  %v5155_v54 = vstv %s5060_s16  ;;  %v5158_v24 = vstv %s5062_s17  ;;  %v3543_v3 = vld [vmem:[%s4698_s12 + $0xa8] sm:$0x3f] }
  0x8e   : > { %10972 = vst [vmem:[#allocation31_spill] sm:$0xff] %v5133_v36  ;;  %10974 = vst [vmem:[#allocation32_spill] sm:$0xff] %v5138_v19  ;;  %v699_v2 = vmul.f32 %v696_v1, %v10984_v45  ;;  %v700_v21 = vmul.f32 %v3527_v12, %v696_v1  ;;  %v701_v18 = vmul.f32 %v696_v1, %v10985_v16  ;;  %v3545_v47 = vld [vmem:[%s4698_s12 + $0xb8] sm:$0x3f]  ;;  %v3547_v43 = vld [vmem:[%s4698_s12 + $0xc8] sm:$0x3f] }
  0x8f   : > { %10976 = vst [vmem:[#allocation33_spill] sm:$0xff] %v5141_v27  ;;  %10978 = vst [vmem:[#allocation35_spill] sm:$0xff] %v5144_v35  ;;  %v702_v44 = vmul.f32 %v3529_v13, %v696_v1  ;;  %v10986_v5 = vld [vmem:[#allocation16_spill] sm:$0xff]  ;;  %v704_v0 = vmul.f32 %v3531_v20, %v696_v1  ;;  %v705_v14 = vmul.f32 %v696_v1, %v10987_v17  ;;  %v10989_v45 = vld [vmem:[#allocation19_spill] sm:$0xff]  ;;  %s8236_s16 = sld [smem:[#allocation4 + $0x18]]  ;;  %s8249_s17 = sld [smem:[#allocation4 + $0x19]] }
  0x90   : > { %10980 = vst [vmem:[#allocation36_spill] sm:$0xff] %v5147_v46  ;;  %10982 = vst [vmem:[#allocation13_spill] sm:$0xff] %v5155_v54  ;;  %v703_v7 = vmul.f32 %v696_v1, %v10986_v5  ;;  %v706_v31 = vmul.f32 %v3533_v30, %v696_v1  ;;  %v3549_v50 = vld [vmem:[%s4698_s12 + $0xd8] sm:$0x3f]  ;;  %v707_v42 = vmul.f32 %v696_v1, %v10988_v10  ;;  %v3551_v16 = vld [vmem:[%s4698_s12 + $0xe8] sm:$0x3f] }
  0x91   : > { %10983 = vst [vmem:[#allocation59_spill] sm:$0xff] %v5158_v24  ;;  %v708_v38 = vmul.f32 %v3535_v37, %v696_v1  ;;  %v709_v26 = vmul.f32 %v696_v1, %v10989_v45  ;;  %v710_v12 = vmul.f32 %v3537_v41, %v696_v1  ;;  %v10991_v13 = vld [vmem:[#allocation20_spill] sm:$0xff]  ;;  %v712_v33 = vmul.f32 %v3539_v59, %v696_v1  ;;  %v10992_v24 = vld [vmem:[#allocation21_spill] sm:$0xff]  ;;  %v10993_v54 = vld [vmem:[#allocation22_spill] sm:$0xff] }
  0x92   : > { %v711_v22 = vmul.f32 %v696_v1, %v10991_v13  ;;  %v713_v5 = vmul.f32 %v696_v1, %v10992_v24  ;;  %v714_v20 = vmul.f32 %v3541_v39, %v696_v1  ;;  %v715_v17 = vmul.f32 %v696_v1, %v10993_v54  ;;  %v10994_v46 = vld [vmem:[#allocation23_spill] sm:$0xff]  ;;  %v10995_v10 = vld [vmem:[#allocation24_spill] sm:$0xff]  ;;  %v10996_v45 = vld [vmem:[#allocation25_spill] sm:$0xff] }
  0x93   : > { %v716_v30 = vmul.f32 %v3543_v3, %v696_v1  ;;  %v717_v35 = vmul.f32 %v696_v1, %v10994_v46  ;;  %v718_v27 = vmul.f32 %v3545_v47, %v696_v1  ;;  %v719_v37 = vmul.f32 %v696_v1, %v10995_v10  ;;  %v11017_v46 = vld [vmem:[#allocation40_spill] sm:$0xff]  ;;  %v11018_v54 = vld [vmem:[#allocation41_spill] sm:$0xff]  ;;  %v11019_v13 = vld [vmem:[#allocation42_spill] sm:$0xff] }
  0x94   : > { %v720_v19 = vmul.f32 %v3547_v43, %v696_v1  ;;  %v721_v41 = vmul.f32 %v696_v1, %v10996_v45  ;;  %v722_v36 = vmul.f32 %v3549_v50, %v696_v1  ;;  %v723_v6 = vmul.f32 %v5173_v32, %v696_v1  ;;  %v11015_v32 = vld [vmem:[#allocation38_spill] sm:$0xff]  ;;  %v11016_v45 = vld [vmem:[#allocation39_spill] sm:$0xff] }
  0x95   : > { %v724_v4 = vmul.f32 %v3551_v16, %v696_v1  ;;  %v5184_v59 = vadd.f32 %v697_v48, %v5058_v9  ;;  %v5187_v39 = vadd.f32 %v698_v28, %v5065_v29  ;;  %v5190_v3 = vadd.f32 %v699_v2, %v5068_v25 }
  0x96   : > { %v5193_v47 = vadd.f32 %v700_v21, %v5071_v62  ;;  %v5196_v43 = vadd.f32 %v701_v18, %v5074_v60  ;;  %v5199_v50 = vadd.f32 %v702_v44, %v5077_v61  ;;  %v5202_v1 = vadd.f32 %v703_v7, %v5080_v11  ;;  %v11002_v28 = vld [vmem:[#allocation35_spill] sm:$0xff]  ;;  %v3564_v18 = vld [vmem:[%s4698_s12 + $0x69] sm:$0x3f] }
  0x97   : > { %v5205_v9 = vadd.f32 %v704_v0, %v5083_v58  ;;  %v5208_v29 = vadd.f32 %v705_v14, %v5086_v49  ;;  %v5211_v25 = vadd.f32 %v706_v31, %v5089_v40  ;;  %v5214_v62 = vadd.f32 %v707_v42, %v5092_v15  ;;  %v11004_v21 = vld [vmem:[#allocation36_spill] sm:$0xff]  ;;  %v11006_v44 = vld [vmem:[#allocation26_spill] sm:$0xff]  ;;  %v11008_v14 = vld [vmem:[#allocation27_spill] sm:$0xff] }
  0x98   : > { %v5217_v60 = vadd.f32 %v708_v38, %v5095_v23  ;;  %v5220_v61 = vadd.f32 %v709_v26, %v5098_v55  ;;  %v5223_v11 = vadd.f32 %v710_v12, %v5101_v56  ;;  %v5226_v58 = vadd.f32 %v711_v22, %v5104_v34  ;;  %v3554_v26 = vld [vmem:[%s4698_s12 + $0x19] sm:$0x3f]  ;;  %v3556_v55 = vld [vmem:[%s4698_s12 + $0x29] sm:$0x3f] }
  0x99   : > { %v5229_v49 = vadd.f32 %v712_v33, %v5107_v57  ;;  %v5232_v42 = vadd.f32 %v713_v5, %v5110_v53  ;;  %v5235_v38 = vadd.f32 %v714_v20, %v5113_v8  ;;  %v5239_v40 = vadd.f32 %v715_v17, %v5116_v51  ;;  %v10997_v33 = vld [vmem:[#allocation48_spill] sm:$0xff]  ;;  %v10998_v34 = vld [vmem:[#allocation49_spill] sm:$0xff]  ;;  %v10999_v53 = vld [vmem:[#allocation31_spill] sm:$0xff] }
  0x9a   : > { %v5242_v15 = vadd.f32 %v716_v30, %v5119_v63  ;;  %v5245_v22 = vadd.f32 %v717_v35, %v5124_v52  ;;  %v5248_v23 = vadd.f32 %v718_v27, %v10997_v33  ;;  %v3558_v56 = vld [vmem:[%s4698_s12 + $0x39] sm:$0x3f]  ;;  %v5253_v57 = vadd.f32 %v719_v37, %v10998_v34  ;;  %v11001_v63 = vld [vmem:[#allocation33_spill] sm:$0xff]  ;;  %v11011_v34 = vld [vmem:[#allocation30_spill] sm:$0xff] }
  0x9b   : > { %v5256_v8 = vadd.f32 %v720_v19, %v10999_v53  ;;  %v11000_v51 = vld [vmem:[#allocation32_spill] sm:$0xff]  ;;  %v5262_v52 = vadd.f32 %v722_v36, %v11001_v63  ;;  %v3560_v35 = vld [vmem:[%s4698_s12 + $0x49] sm:$0x3f]  ;;  %v5267_v2 = vadd.f32 %v723_v6, %v11002_v28  ;;  %v5270_v16 = vadd.f32 %v724_v4, %v11004_v21 }
  0x9c   : > { %v5259_v48 = vadd.f32 %v721_v41, %v11000_v51  ;;  %v3562_v27 = vld [vmem:[%s4698_s12 + $0x59] sm:$0x3f]  ;;  %v11007_v5 = vld [vmem:[#allocation13_spill] sm:$0xff]  ;;  %v11012_v28 = vld [vmem:[#allocation34_spill] sm:$0xff] }
  0x9d   : > { %11003 = vst [vmem:[#allocation48_spill] sm:$0xff] %v5267_v2  ;;  %11005 = vst [vmem:[#allocation49_spill] sm:$0xff] %v5270_v16  ;;  %v3566_v19 = vld [vmem:[%s4698_s12 + $0x79] sm:$0x3f]  ;;  %v783_v7 = vmul.f32 %v11007_v5, %v11006_v44  ;;  %v784_v0 = vmul.f32 %v3554_v26, %v11007_v5  ;;  %v3568_v36 = vld [vmem:[%s4698_s12 + $0x89] sm:$0x3f]  ;;  %v785_v31 = vmul.f32 %v11007_v5, %v11008_v14 }
  0x9e   : > { %v3570_v17 = vld [vmem:[%s4698_s12 + $0x99] sm:$0x3f]  ;;  %v786_v6 = vmul.f32 %v3556_v55, %v11007_v5  ;;  %v788_v20 = vmul.f32 %v3558_v56, %v11007_v5  ;;  %v3572_v30 = vld [vmem:[%s4698_s12 + $0xa9] sm:$0x3f]  ;;  %v790_v26 = vmul.f32 %v3560_v35, %v11007_v5  ;;  %v791_v53 = vmul.f32 %v11007_v5, %v11011_v34 }
  0x9f   : > { %v11009_v12 = vld [vmem:[#allocation28_spill] sm:$0xff]  ;;  %v11010_v41 = vld [vmem:[#allocation29_spill] sm:$0xff]  ;;  %v792_v51 = vmul.f32 %v3562_v27, %v11007_v5  ;;  %v793_v21 = vmul.f32 %v11007_v5, %v11012_v28  ;;  %v794_v44 = vmul.f32 %v3564_v18, %v11007_v5  ;;  %v796_v14 = vmul.f32 %v3566_v19, %v11007_v5  ;;  %v11020_v16 = vld [vmem:[#allocation43_spill] sm:$0xff] }
  0xa0   : > { %v787_v4 = vmul.f32 %v11007_v5, %v11009_v12  ;;  %v3574_v37 = vld [vmem:[%s4698_s12 + $0xb9] sm:$0x3f]  ;;  %v789_v33 = vmul.f32 %v11007_v5, %v11010_v41  ;;  %v3576_v63 = vld [vmem:[%s4698_s12 + $0xc9] sm:$0x3f]  ;;  %v5302_v41 = vld [vmem:[%s4698_s12 + $0xe1] sm:$0xff]  ;;  %v797_v34 = vmul.f32 %v11007_v5, %v11015_v32  ;;  %v798_v27 = vmul.f32 %v3568_v36, %v11007_v5 }
  0xa1   : > { %v3578_v55 = vld [vmem:[%s4698_s12 + $0xd9] sm:$0x3f]  ;;  %v11013_v56 = vld [vmem:[#allocation37_spill] sm:$0xff]  ;;  %11014 = vst [vmem:[#allocation31_spill] sm:$0xff] %v5302_v41  ;;  %v799_v10 = vmul.f32 %v11007_v5, %v11016_v45  ;;  %v800_v28 = vmul.f32 %v3570_v17, %v11007_v5  ;;  %v801_v18 = vmul.f32 %v11007_v5, %v11017_v46  ;;  %v803_v19 = vmul.f32 %v11007_v5, %v11018_v54 }
  0xa2   : > { %v795_v12 = vmul.f32 %v11007_v5, %v11013_v56  ;;  %v3580_v35 = vld [vmem:[%s4698_s12 + $0xe9] sm:$0x3f]  ;;  %v802_v56 = vmul.f32 %v3572_v30, %v11007_v5  ;;  %v804_v24 = vmul.f32 %v3574_v37, %v11007_v5  ;;  %v805_v32 = vmul.f32 %v11007_v5, %v11019_v13 }
  0xa3   : > { %v806_v36 = vmul.f32 %v3576_v63, %v11007_v5  ;;  %v807_v45 = vmul.f32 %v11007_v5, %v11020_v16  ;;  %v808_v17 = vmul.f32 %v3578_v55, %v11007_v5  ;;  %v809_v46 = vmul.f32 %v5302_v41, %v11007_v5 }
  0xa4   : > { %v810_v30 = vmul.f32 %v3580_v35, %v11007_v5  ;;  %v5327_v2 = vadd.f32 %v783_v7, %v5184_v59  ;;  %v5330_v37 = vadd.f32 %v784_v0, %v5187_v39  ;;  %v5333_v13 = vadd.f32 %v785_v31, %v5190_v3 }
  0xa5   : > { %v5336_v63 = vadd.f32 %v786_v6, %v5193_v47  ;;  %v5339_v55 = vadd.f32 %v787_v4, %v5196_v43  ;;  %v5342_v41 = vadd.f32 %v788_v20, %v5199_v50  ;;  %v5345_v5 = vadd.f32 %v789_v33, %v5202_v1  ;;  %v11025_v6 = vld [vmem:[#allocation59_spill] sm:$0xff]  ;;  %v11026_v4 = vld [vmem:[#allocation45_spill] sm:$0xff]  ;;  %v11027_v33 = vld [vmem:[#allocation46_spill] sm:$0xff] }
  0xa6   : > { %v5348_v59 = vadd.f32 %v790_v26, %v5205_v9  ;;  %v5351_v39 = vadd.f32 %v791_v53, %v5208_v29  ;;  %v5354_v3 = vadd.f32 %v792_v51, %v5211_v25  ;;  %v5357_v47 = vadd.f32 %v793_v21, %v5214_v62  ;;  %v3601_v53 = vld [vmem:[%s4698_s12 + $0xaa] sm:$0x3f]  ;;  %v3603_v51 = vld [vmem:[%s4698_s12 + $0xba] sm:$0x3f] }
  0xa7   : > { %v5360_v43 = vadd.f32 %v794_v44, %v5217_v60  ;;  %v5363_v50 = vadd.f32 %v795_v12, %v5220_v61  ;;  %v5366_v1 = vadd.f32 %v796_v14, %v5223_v11  ;;  %v5369_v9 = vadd.f32 %v797_v34, %v5226_v58  ;;  %v3583_v60 = vld [vmem:[%s4698_s12 + $0x1a] sm:$0x3f]  ;;  %v11022_v14 = vld [vmem:[#allocation49_spill] sm:$0xff] }
  0xa8   : > { %v5372_v29 = vadd.f32 %v798_v27, %v5229_v49  ;;  %v5375_v25 = vadd.f32 %v799_v10, %v5232_v42  ;;  %v5378_v62 = vadd.f32 %v800_v28, %v5235_v38  ;;  %v5382_v61 = vadd.f32 %v801_v18, %v5239_v40  ;;  %v3585_v10 = vld [vmem:[%s4698_s12 + $0x2a] sm:$0x3f]  ;;  %v3587_v42 = vld [vmem:[%s4698_s12 + $0x3a] sm:$0x3f]  ;;  %v11028_v28 = vld [vmem:[#allocation47_spill] sm:$0xff] }
  0xa9   : > { %v5385_v11 = vadd.f32 %v802_v56, %v5242_v15  ;;  %v5388_v58 = vadd.f32 %v803_v19, %v5245_v22  ;;  %v5391_v49 = vadd.f32 %v804_v24, %v5248_v23  ;;  %v5396_v38 = vadd.f32 %v805_v32, %v5253_v57  ;;  %v3589_v22 = vld [vmem:[%s4698_s12 + $0x4a] sm:$0x3f]  ;;  %v3591_v24 = vld [vmem:[%s4698_s12 + $0x5a] sm:$0x3f] }
  0xaa   : > { %v5399_v7 = vadd.f32 %v806_v36, %v5256_v8  ;;  %v5402_v40 = vadd.f32 %v807_v45, %v5259_v48  ;;  %v5405_v15 = vadd.f32 %v808_v17, %v5262_v52  ;;  %v11021_v23 = vld [vmem:[#allocation48_spill] sm:$0xff]  ;;  %v5413_v31 = vadd.f32 %v810_v30, %v11022_v14  ;;  %v3593_v32 = vld [vmem:[%s4698_s12 + $0x6a] sm:$0x3f]  ;;  %v11030_v36 = vld [vmem:[#allocation51_spill] sm:$0xff] }
  0xab   : > { %v5410_v0 = vadd.f32 %v809_v46, %v11021_v23  ;;  %v3595_v57 = vld [vmem:[%s4698_s12 + $0x7a] sm:$0x3f]  ;;  %v870_v48 = vmul.f32 %v3583_v60, %v11025_v6  ;;  %v3597_v52 = vld [vmem:[%s4698_s12 + $0x8a] sm:$0x3f]  ;;  %v871_v20 = vmul.f32 %v11025_v6, %v11026_v4  ;;  %v872_v46 = vmul.f32 %v3585_v10, %v11025_v6  ;;  %v5445_v23 = vld [vmem:[%s4698_s12 + $0xe2] sm:$0xff] }
  0xac   : > { %11023 = vst [vmem:[#allocation32_spill] sm:$0xff] %v5413_v31  ;;  %v11024_v8 = vld [vmem:[#allocation44_spill] sm:$0xff]  ;;  %v873_v26 = vmul.f32 %v11025_v6, %v11027_v33  ;;  %v874_v34 = vmul.f32 %v3587_v42, %v11025_v6  ;;  %v875_v21 = vmul.f32 %v11025_v6, %v11028_v28  ;;  %v876_v44 = vmul.f32 %v3589_v22, %v11025_v6  ;;  %v11029_v56 = vld [vmem:[#allocation50_spill] sm:$0xff]  ;;  %v11033_v14 = vld [vmem:[#allocation53_spill] sm:$0xff] }
  0xad   : > { %v869_v45 = vmul.f32 %v11025_v6, %v11024_v8  ;;  %v3599_v12 = vld [vmem:[%s4698_s12 + $0x9a] sm:$0x3f]  ;;  %v877_v35 = vmul.f32 %v11025_v6, %v11029_v56  ;;  %v878_v27 = vmul.f32 %v3591_v24, %v11025_v6  ;;  %v3605_v18 = vld [vmem:[%s4698_s12 + $0xca] sm:$0x3f]  ;;  %v879_v17 = vmul.f32 %v11025_v6, %v11030_v36  ;;  %11032 = vst [vmem:[#allocation33_spill] sm:$0xff] %v5445_v23 }
  0xae   : > { %v3607_v19 = vld [vmem:[%s4698_s12 + $0xda] sm:$0x3f]  ;;  %v880_v30 = vmul.f32 %v3593_v32, %v11025_v6  ;;  %v882_v42 = vmul.f32 %v3595_v57, %v11025_v6  ;;  %v3609_v22 = vld [vmem:[%s4698_s12 + $0xea] sm:$0x3f]  ;;  %v883_v8 = vmul.f32 %v11025_v6, %v11033_v14  ;;  %v884_v24 = vmul.f32 %v3597_v52, %v11025_v6  ;;  %v11035_v32 = vld [vmem:[#allocation55_spill] sm:$0xff] }
  0xaf   : > { %v11031_v60 = vld [vmem:[#allocation52_spill] sm:$0xff]  ;;  %v11034_v56 = vld [vmem:[#allocation54_spill] sm:$0xff]  ;;  %v886_v36 = vmul.f32 %v3599_v12, %v11025_v6  ;;  %v888_v57 = vmul.f32 %v3601_v53, %v11025_v6  ;;  %v890_v16 = vmul.f32 %v3603_v51, %v11025_v6  ;;  %v11037_v14 = vld [vmem:[#allocation57_spill] sm:$0xff]  ;;  %v892_v54 = vmul.f32 %v3605_v18, %v11025_v6 }
  0xb0   : > { %v881_v10 = vmul.f32 %v11025_v6, %v11031_v60  ;;  %v885_v28 = vmul.f32 %v11025_v6, %v11034_v56  ;;  %v887_v60 = vmul.f32 %v11025_v6, %v11035_v32  ;;  %v11036_v33 = vld [vmem:[#allocation56_spill] sm:$0xff]  ;;  %v891_v52 = vmul.f32 %v11025_v6, %v11037_v14  ;;  %v11038_v56 = vld [vmem:[#allocation58_spill] sm:$0xff] }
  0xb1   : > { %v889_v4 = vmul.f32 %v11025_v6, %v11036_v33  ;;  %v893_v12 = vmul.f32 %v11025_v6, %v11038_v56  ;;  %v894_v31 = vmul.f32 %v3607_v19, %v11025_v6  ;;  %v895_v53 = vmul.f32 %v5445_v23, %v11025_v6  ;;  %v3638_v56 = vld [vmem:[%s4698_s12 + $0xf8] sm:$0x3f] }
  0xb2   : > { %v896_v32 = vmul.f32 %v3609_v22, %v11025_v6  ;;  %v5474_v33 = vadd.f32 %v869_v45, %v5327_v2  ;;  %v5477_v51 = vadd.f32 %v870_v48, %v5330_v37  ;;  %v5484_v18 = vadd.f32 %v871_v20, %v5333_v13  ;;  %v3616_v48 = vld [vmem:[%s4698_s12 + $0x48] sm:$0x3f]  ;;  %v3618_v20 = vld [vmem:[%s4698_s12 + $0x58] sm:$0x3f] }
  0xb3   : > { %v5487_v19 = vadd.f32 %v872_v46, %v5336_v63  ;;  %v5490_v23 = vadd.f32 %v873_v26, %v5339_v55  ;;  %v5493_v6 = vadd.f32 %v874_v34, %v5342_v41  ;;  %v5496_v2 = vadd.f32 %v875_v21, %v5345_v5  ;;  %v3624_v46 = vld [vmem:[%s4698_s12 + $0x88] sm:$0x3f] }
  0xb4   : > { %v5499_v37 = vadd.f32 %v876_v44, %v5348_v59  ;;  %v5502_v13 = vadd.f32 %v877_v35, %v5351_v39  ;;  %v5505_v63 = vadd.f32 %v878_v27, %v5354_v3  ;;  %v5508_v55 = vadd.f32 %v879_v17, %v5357_v47  ;;  %v11048_v26 = vld [vmem:[#allocation14_spill] sm:$0xff]  ;;  %v11051_v44 = vld [vmem:[#allocation15_spill] sm:$0xff] }
  0xb5   : > { %v5511_v41 = vadd.f32 %v880_v30, %v5360_v43  ;;  %v5514_v5 = vadd.f32 %v881_v10, %v5363_v50  ;;  %v5517_v59 = vadd.f32 %v882_v42, %v5366_v1  ;;  %v5520_v39 = vadd.f32 %v883_v8, %v5369_v9  ;;  %v3628_v21 = vld [vmem:[%s4698_s12 + $0xa8] sm:$0x3f] }
  0xb6   : > { %v5523_v3 = vadd.f32 %v884_v24, %v5372_v29  ;;  %v5526_v47 = vadd.f32 %v885_v28, %v5375_v25  ;;  %v5529_v43 = vadd.f32 %v886_v36, %v5378_v62  ;;  %v5532_v50 = vadd.f32 %v887_v60, %v5382_v61  ;;  %v3612_v29 = vld [vmem:[%s4698_s12 + $0x28] sm:$0x3f]  ;;  %v11052_v36 = vld [vmem:[#allocation16_spill] sm:$0xff] }
  0xb7   : > { %v5535_v1 = vadd.f32 %v888_v57, %v5385_v11  ;;  %v5538_v9 = vadd.f32 %v889_v4, %v5388_v58  ;;  %v955_v25 = vstv %s5454_s18  ;;  %v5543_v45 = vadd.f32 %v890_v16, %v5391_v49  ;;  %v3614_v58 = vld [vmem:[%s4698_s12 + $0x38] sm:$0x3f]  ;;  %v3632_v10 = vld [vmem:[%s4698_s12 + $0xc8] sm:$0x3f]  ;;  %s8251_s18 = sld [smem:[#allocation4 + $0x1a]] }
  0xb8   : > { %v5546_v62 = vadd.f32 %v891_v52, %v5396_v38  ;;  %v5549_v61 = vadd.f32 %v892_v54, %v5399_v7  ;;  %v5552_v11 = vadd.f32 %v893_v12, %v5402_v40  ;;  %v5557_v4 = vadd.f32 %v894_v31, %v5405_v15  ;;  %v11045_v49 = vld [vmem:[#allocation32_spill] sm:$0xff]  ;;  %v3620_v54 = vld [vmem:[%s4698_s12 + $0x68] sm:$0x3f] }
  0xb9   : > { %11039 = vst [vmem:[#allocation35_spill] sm:$0xff] %v5543_v45  ;;  %v5560_v16 = vadd.f32 %v895_v53, %v5410_v0  ;;  %v5563_v38 = vadd.f32 %v896_v32, %v11045_v49  ;;  %v5568_v7 = vstv %s5468_s19  ;;  %v3622_v40 = vld [vmem:[%s4698_s12 + $0x78] sm:$0x3f]  ;;  %v956_v34 = vmul.f32 %v955_v25, %v11048_v26  ;;  %v11053_v42 = vld [vmem:[#allocation17_spill] sm:$0xff]  ;;  %v11054_v24 = vld [vmem:[#allocation18_spill] sm:$0xff]  ;;  %s8766_s19 = sld [smem:[#allocation7 + $0x2]] }
  0xba   : > { %11040 = vst [vmem:[#allocation36_spill] sm:$0xff] %v5546_v62  ;;  %11041 = vst [vmem:[#allocation26_spill] sm:$0xff] %v5549_v61  ;;  %v957_v28 = vmul.f32 %v3612_v29, %v955_v25  ;;  %v5574_v15 = vstv %s5479_s24  ;;  %v5577_v0 = vstv %s5481_s26  ;;  %v3626_v31 = vld [vmem:[%s4698_s12 + $0x98] sm:$0x3f]  ;;  %v958_v35 = vmul.f32 %v955_v25, %v11051_v44  ;;  %v3636_v12 = vld [vmem:[%s4698_s12 + $0xe8] sm:$0x3f] }
  0xbb   : > { %11042 = vst [vmem:[#allocation13_spill] sm:$0xff] %v5552_v11  ;;  %11043 = vst [vmem:[#allocation48_spill] sm:$0xff] %v5557_v4  ;;  %v959_v27 = vmul.f32 %v3614_v58, %v955_v25  ;;  %v960_v17 = vmul.f32 %v955_v25, %v11052_v36  ;;  %v961_v30 = vmul.f32 %v3616_v48, %v955_v25  ;;  %v3630_v60 = vld [vmem:[%s4698_s12 + $0xb8] sm:$0x3f]  ;;  %v11057_v36 = vld [vmem:[#allocation21_spill] sm:$0xff]  ;;  %s6080_s24 = sld [smem:[#allocation4 + $0xa]] }
  0xbc   : > { %11044 = vst [vmem:[#allocation49_spill] sm:$0xff] %v5560_v16  ;;  %11046 = vst [vmem:[#allocation44_spill] sm:$0xff] %v5563_v38  ;;  %v962_v22 = vmul.f32 %v955_v25, %v11053_v42  ;;  %v963_v8 = vmul.f32 %v3618_v20, %v955_v25  ;;  %v964_v32 = vmul.f32 %v955_v25, %v11054_v24  ;;  %v3634_v52 = vld [vmem:[%s4698_s12 + $0xd8] sm:$0x3f]  ;;  %v11061_v11 = vld [vmem:[#allocation25_spill] sm:$0xff]  ;;  %s6490_s26 = sld [smem:[#allocation4 + $0xc]] }
  0xbd   : > { %11047 = vst [vmem:[#allocation59_spill] sm:$0xff] %v5568_v7  ;;  %11049 = vst [vmem:[#allocation32_spill] sm:$0xff] %v5574_v15  ;;  %v965_v57 = vmul.f32 %v3620_v54, %v955_v25  ;;  %v11055_v53 = vld [vmem:[#allocation19_spill] sm:$0xff]  ;;  %v967_v49 = vmul.f32 %v3622_v40, %v955_v25  ;;  %v11056_v26 = vld [vmem:[#allocation20_spill] sm:$0xff]  ;;  %v969_v58 = vmul.f32 %v3624_v46, %v955_v25 }
  0xbe   : > { %11050 = vst [vmem:[#allocation14_spill] sm:$0xff] %v5577_v0  ;;  %v966_v29 = vmul.f32 %v955_v25, %v11055_v53  ;;  %v968_v44 = vmul.f32 %v955_v25, %v11056_v26  ;;  %v3637_v0 = vld [vmem:[%s4698_s12 + $0xf0] sm:$0xff]  ;;  %v970_v48 = vmul.f32 %v955_v25, %v11057_v36  ;;  %v971_v14 = vmul.f32 %v3626_v31, %v955_v25  ;;  %v11060_v54 = vld [vmem:[#allocation24_spill] sm:$0xff] }
  0xbf   : > { %v11058_v15 = vld [vmem:[#allocation22_spill] sm:$0xff]  ;;  %v973_v42 = vmul.f32 %v3628_v21, %v955_v25  ;;  %v11059_v20 = vld [vmem:[#allocation23_spill] sm:$0xff]  ;;  %v975_v24 = vmul.f32 %v3630_v60, %v955_v25  ;;  %v976_v16 = vmul.f32 %v955_v25, %v11060_v54  ;;  %v977_v4 = vmul.f32 %v3632_v10, %v955_v25  ;;  %v11062_v61 = vld [vmem:[#allocation60_spill] sm:$0xff] }
  0xc0   : > { %v972_v7 = vmul.f32 %v955_v25, %v11058_v15  ;;  %v974_v38 = vmul.f32 %v955_v25, %v11059_v20  ;;  %v978_v53 = vmul.f32 %v955_v25, %v11061_v11  ;;  %v979_v40 = vmul.f32 %v3634_v52, %v955_v25  ;;  %v3653_v60 = vld [vmem:[%s4698_s12 + $0x89] sm:$0x3f]  ;;  %v11072_v10 = vld [vmem:[#allocation27_spill] sm:$0xff] }
  0xc1   : > { %v980_v26 = vmul.f32 %v11062_v61, %v955_v25  ;;  %v981_v46 = vmul.f32 %v3636_v12, %v955_v25  ;;  %v982_v62 = vmul.f32 %v3637_v0, %v955_v25  ;;  %v983_v45 = vmul.f32 %v3638_v56, %v955_v25  ;;  %v11064_v25 = vld [vmem:[#allocation36_spill] sm:$0xff]  ;;  %v3657_v52 = vld [vmem:[%s4698_s12 + $0xa9] sm:$0x3f] }
  0xc2   : > { %v5600_v36 = vadd.f32 %v956_v34, %v5474_v33  ;;  %v5603_v15 = vadd.f32 %v957_v28, %v5477_v51  ;;  %v5606_v31 = vadd.f32 %v958_v35, %v5484_v18  ;;  %v5609_v21 = vadd.f32 %v959_v27, %v5487_v19  ;;  %v11065_v34 = vld [vmem:[#allocation26_spill] sm:$0xff]  ;;  %v11074_v12 = vld [vmem:[#allocation28_spill] sm:$0xff] }
  0xc3   : > { %v5612_v11 = vadd.f32 %v960_v17, %v5490_v23  ;;  %v5615_v61 = vadd.f32 %v961_v30, %v5493_v6  ;;  %v5618_v56 = vadd.f32 %v962_v22, %v5496_v2  ;;  %v5621_v33 = vadd.f32 %v963_v8, %v5499_v37  ;;  %v11068_v0 = vld [vmem:[#allocation49_spill] sm:$0xff]  ;;  %v11070_v27 = vld [vmem:[#allocation44_spill] sm:$0xff]  ;;  %v11077_v54 = vld [vmem:[#allocation34_spill] sm:$0xff] }
  0xc4   : > { %v5624_v51 = vadd.f32 %v964_v32, %v5502_v13  ;;  %v5627_v18 = vadd.f32 %v965_v57, %v5505_v63  ;;  %v5630_v23 = vadd.f32 %v966_v29, %v5508_v55  ;;  %v5633_v19 = vadd.f32 %v967_v49, %v5511_v41  ;;  %v3641_v41 = vld [vmem:[%s4698_s12 + $0x29] sm:$0x3f]  ;;  %v3651_v30 = vld [vmem:[%s4698_s12 + $0x79] sm:$0x3f] }
  0xc5   : > { %v5636_v6 = vadd.f32 %v968_v44, %v5514_v5  ;;  %v5639_v2 = vadd.f32 %v969_v58, %v5517_v59  ;;  %v5642_v37 = vadd.f32 %v970_v48, %v5520_v39  ;;  %v5645_v13 = vadd.f32 %v971_v14, %v5523_v3  ;;  %v11063_v14 = vld [vmem:[#allocation35_spill] sm:$0xff]  ;;  %v11075_v49 = vld [vmem:[#allocation29_spill] sm:$0xff] }
  0xc6   : > { %v5648_v63 = vadd.f32 %v972_v7, %v5526_v47  ;;  %v5651_v55 = vadd.f32 %v973_v42, %v5529_v43  ;;  %v5655_v5 = vadd.f32 %v974_v38, %v5532_v50  ;;  %v5658_v59 = vadd.f32 %v975_v24, %v5535_v1  ;;  %v3643_v47 = vld [vmem:[%s4698_s12 + $0x39] sm:$0x3f]  ;;  %v3645_v43 = vld [vmem:[%s4698_s12 + $0x49] sm:$0x3f] }
  0xc7   : > { %v5661_v39 = vadd.f32 %v976_v16, %v5538_v9  ;;  %v5664_v3 = vadd.f32 %v977_v4, %v11063_v14  ;;  %v5669_v7 = vadd.f32 %v978_v53, %v11064_v25  ;;  %v5672_v28 = vadd.f32 %v979_v40, %v11065_v34  ;;  %v11066_v50 = vld [vmem:[#allocation13_spill] sm:$0xff]  ;;  %v11067_v1 = vld [vmem:[#allocation48_spill] sm:$0xff]  ;;  %v11073_v22 = vld [vmem:[#allocation59_spill] sm:$0xff] }
  0xc8   : > { %v5675_v38 = vadd.f32 %v980_v26, %v11066_v50  ;;  %v5678_v9 = vadd.f32 %v981_v46, %v11067_v1  ;;  %v3647_v16 = vld [vmem:[%s4698_s12 + $0x59] sm:$0x3f]  ;;  %v3649_v4 = vld [vmem:[%s4698_s12 + $0x69] sm:$0x3f]  ;;  %v5683_v35 = vadd.f32 %v982_v62, %v11068_v0  ;;  %v5686_v17 = vadd.f32 %v983_v45, %v11070_v27  ;;  %v3666_v50 = vld [vmem:[%s4698_s12 + $0xf1] sm:$0xff] }
  0xc9   : > { %v1042_v8 = vmul.f32 %v11073_v22, %v11072_v10  ;;  %v1043_v32 = vmul.f32 %v3641_v41, %v11073_v22  ;;  %v3655_v57 = vld [vmem:[%s4698_s12 + $0x99] sm:$0x3f]  ;;  %v1044_v29 = vmul.f32 %v11073_v22, %v11074_v12  ;;  %v1045_v62 = vmul.f32 %v3643_v47, %v11073_v22  ;;  %v3661_v48 = vld [vmem:[%s4698_s12 + $0xc9] sm:$0x3f] }
  0xca   : > { %11069 = vst [vmem:[#allocation15_spill] sm:$0xff] %v5683_v35  ;;  %11071 = vst [vmem:[#allocation16_spill] sm:$0xff] %v5686_v17  ;;  %v1046_v45 = vmul.f32 %v11073_v22, %v11075_v49  ;;  %v1047_v44 = vmul.f32 %v3645_v43, %v11073_v22  ;;  %v3659_v58 = vld [vmem:[%s4698_s12 + $0xb9] sm:$0x3f]  ;;  %v11076_v42 = vld [vmem:[#allocation30_spill] sm:$0xff]  ;;  %v1049_v24 = vmul.f32 %v3647_v16, %v11073_v22 }
  0xcb   : > { %v1048_v20 = vmul.f32 %v11073_v22, %v11076_v42  ;;  %v1050_v53 = vmul.f32 %v11073_v22, %v11077_v54  ;;  %v1051_v40 = vmul.f32 %v3649_v4, %v11073_v22  ;;  %v3663_v26 = vld [vmem:[%s4698_s12 + $0xd9] sm:$0x3f]  ;;  %v3665_v46 = vld [vmem:[%s4698_s12 + $0xe9] sm:$0x3f]  ;;  %v1053_v47 = vmul.f32 %v3651_v30, %v11073_v22 }
  0xcc   : > { %v11078_v41 = vld [vmem:[#allocation37_spill] sm:$0xff]  ;;  %v11079_v43 = vld [vmem:[#allocation38_spill] sm:$0xff]  ;;  %v1055_v34 = vmul.f32 %v3653_v60, %v11073_v22  ;;  %v3667_v1 = vld [vmem:[%s4698_s12 + $0xf9] sm:$0x3f]  ;;  %v1057_v27 = vmul.f32 %v3655_v57, %v11073_v22  ;;  %v1059_v12 = vmul.f32 %v3657_v52, %v11073_v22  ;;  %v1061_v42 = vmul.f32 %v3659_v58, %v11073_v22 }
  0xcd   : > { %v1052_v14 = vmul.f32 %v11073_v22, %v11078_v41  ;;  %v1054_v25 = vmul.f32 %v11073_v22, %v11079_v43  ;;  %v11080_v16 = vld [vmem:[#allocation39_spill] sm:$0xff]  ;;  %v11081_v4 = vld [vmem:[#allocation40_spill] sm:$0xff]  ;;  %v11082_v49 = vld [vmem:[#allocation41_spill] sm:$0xff]  ;;  %v1063_v41 = vmul.f32 %v3661_v48, %v11073_v22  ;;  %v1065_v57 = vmul.f32 %v3663_v26, %v11073_v22 }
  0xce   : > { %v1056_v0 = vmul.f32 %v11073_v22, %v11080_v16  ;;  %v1058_v10 = vmul.f32 %v11073_v22, %v11081_v4  ;;  %v1060_v30 = vmul.f32 %v11073_v22, %v11082_v49  ;;  %v11083_v54 = vld [vmem:[#allocation42_spill] sm:$0xff]  ;;  %v11084_v43 = vld [vmem:[#allocation43_spill] sm:$0xff]  ;;  %v1067_v52 = vmul.f32 %v3665_v46, %v11073_v22 }
  0xcf   : > { %v1062_v60 = vmul.f32 %v11073_v22, %v11083_v54  ;;  %v1064_v16 = vmul.f32 %v11073_v22, %v11084_v43  ;;  %v11085_v17 = vld [vmem:[#allocation31_spill] sm:$0xff]  ;;  %v1068_v35 = vmul.f32 %v3666_v50, %v11073_v22  ;;  %v1069_v49 = vmul.f32 %v3667_v1, %v11073_v22  ;;  %v3688_v1 = vld [vmem:[%s4698_s12 + $0xba] sm:$0x3f]  ;;  %v3694_v43 = vld [vmem:[%s4698_s12 + $0xea] sm:$0x3f] }
  0xd0   : > { %v1066_v4 = vmul.f32 %v11085_v17, %v11073_v22  ;;  %v5740_v58 = vadd.f32 %v1042_v8, %v5600_v36  ;;  %v5743_v54 = vadd.f32 %v1043_v32, %v5603_v15  ;;  %v5746_v48 = vadd.f32 %v1044_v29, %v5606_v31 }
  0xd1   : > { %v5749_v26 = vadd.f32 %v1045_v62, %v5609_v21  ;;  %v5752_v17 = vadd.f32 %v1046_v45, %v5612_v11  ;;  %v5755_v46 = vadd.f32 %v1047_v44, %v5615_v61  ;;  %v5758_v22 = vadd.f32 %v1048_v20, %v5618_v56  ;;  %v11087_v29 = vld [vmem:[#allocation15_spill] sm:$0xff]  ;;  %v11089_v45 = vld [vmem:[#allocation16_spill] sm:$0xff]  ;;  %v11091_v20 = vld [vmem:[#allocation45_spill] sm:$0xff] }
  0xd2   : > { %v5761_v36 = vadd.f32 %v1049_v24, %v5621_v33  ;;  %v5764_v15 = vadd.f32 %v1050_v53, %v5624_v51  ;;  %v5767_v31 = vadd.f32 %v1051_v40, %v5627_v18  ;;  %v5770_v21 = vadd.f32 %v1052_v14, %v5630_v23  ;;  %v11092_v24 = vld [vmem:[#allocation32_spill] sm:$0xff]  ;;  %v3686_v40 = vld [vmem:[%s4698_s12 + $0xaa] sm:$0x3f] }
  0xd3   : > { %v5773_v11 = vadd.f32 %v1053_v47, %v5633_v19  ;;  %v5776_v61 = vadd.f32 %v1054_v25, %v5636_v6  ;;  %v5779_v56 = vadd.f32 %v1055_v34, %v5639_v2  ;;  %v5782_v33 = vadd.f32 %v1056_v0, %v5642_v37  ;;  %v3670_v19 = vld [vmem:[%s4698_s12 + $0x2a] sm:$0x3f]  ;;  %v11094_v25 = vld [vmem:[#allocation47_spill] sm:$0xff] }
  0xd4   : > { %v5785_v51 = vadd.f32 %v1057_v27, %v5645_v13  ;;  %v5788_v18 = vadd.f32 %v1058_v10, %v5648_v63  ;;  %v5791_v23 = vadd.f32 %v1059_v12, %v5651_v55  ;;  %v5795_v6 = vadd.f32 %v1060_v30, %v5655_v5  ;;  %v3672_v63 = vld [vmem:[%s4698_s12 + $0x3a] sm:$0x3f]  ;;  %v3674_v55 = vld [vmem:[%s4698_s12 + $0x4a] sm:$0x3f]  ;;  %v11096_v30 = vld [vmem:[#allocation51_spill] sm:$0xff] }
  0xd5   : > { %v5798_v2 = vadd.f32 %v1061_v42, %v5658_v59  ;;  %v5801_v37 = vadd.f32 %v1062_v60, %v5661_v39  ;;  %v5804_v13 = vadd.f32 %v1063_v41, %v5664_v3  ;;  %v5809_v8 = vadd.f32 %v1064_v16, %v5669_v7  ;;  %v3676_v39 = vld [vmem:[%s4698_s12 + $0x5a] sm:$0x3f]  ;;  %v3678_v3 = vld [vmem:[%s4698_s12 + $0x6a] sm:$0x3f] }
  0xd6   : > { %v5812_v32 = vadd.f32 %v1065_v57, %v5672_v28  ;;  %v5815_v5 = vadd.f32 %v1066_v4, %v5675_v38  ;;  %v5818_v59 = vadd.f32 %v1067_v52, %v5678_v9  ;;  %v5823_v62 = vadd.f32 %v1068_v35, %v11087_v29  ;;  %v3680_v7 = vld [vmem:[%s4698_s12 + $0x7a] sm:$0x3f]  ;;  %v3682_v28 = vld [vmem:[%s4698_s12 + $0x8a] sm:$0x3f]  ;;  %v11098_v52 = vld [vmem:[#allocation53_spill] sm:$0xff] }
  0xd7   : > { %v5826_v44 = vadd.f32 %v1069_v49, %v11089_v45  ;;  %v1128_v38 = vmul.f32 %v11092_v24, %v11091_v20  ;;  %v1129_v53 = vmul.f32 %v3670_v19, %v11092_v24  ;;  %v3684_v9 = vld [vmem:[%s4698_s12 + $0x9a] sm:$0x3f]  ;;  %v11093_v14 = vld [vmem:[#allocation46_spill] sm:$0xff]  ;;  %v1131_v35 = vmul.f32 %v3672_v63, %v11092_v24  ;;  %v3695_v63 = vld [vmem:[%s4698_s12 + $0xf2] sm:$0xff] }
  0xd8   : > { %11086 = vst [vmem:[#allocation17_spill] sm:$0xff] %v5818_v59  ;;  %11088 = vst [vmem:[#allocation18_spill] sm:$0xff] %v5823_v62  ;;  %v1130_v47 = vmul.f32 %v11092_v24, %v11093_v14  ;;  %v1132_v34 = vmul.f32 %v11092_v24, %v11094_v25  ;;  %v1133_v50 = vmul.f32 %v3674_v55, %v11092_v24  ;;  %v3690_v0 = vld [vmem:[%s4698_s12 + $0xca] sm:$0x3f]  ;;  %v3692_v41 = vld [vmem:[%s4698_s12 + $0xda] sm:$0x3f] }
  0xd9   : > { %11090 = vst [vmem:[#allocation19_spill] sm:$0xff] %v5826_v44  ;;  %v11095_v27 = vld [vmem:[#allocation50_spill] sm:$0xff]  ;;  %v1135_v12 = vmul.f32 %v3676_v39, %v11092_v24  ;;  %v1136_v42 = vmul.f32 %v11092_v24, %v11096_v30  ;;  %v1137_v60 = vmul.f32 %v3678_v3, %v11092_v24  ;;  %v11097_v16 = vld [vmem:[#allocation52_spill] sm:$0xff]  ;;  %v1139_v4 = vmul.f32 %v3680_v7, %v11092_v24  ;;  %v11100_v3 = vld [vmem:[#allocation55_spill] sm:$0xff] }
  0xda   : > { %v1134_v10 = vmul.f32 %v11092_v24, %v11095_v27  ;;  %v1138_v57 = vmul.f32 %v11092_v24, %v11097_v16  ;;  %v1140_v49 = vmul.f32 %v11092_v24, %v11098_v52  ;;  %v1141_v19 = vmul.f32 %v3682_v28, %v11092_v24  ;;  %v3696_v55 = vld [vmem:[%s4698_s12 + $0xfa] sm:$0x3f]  ;;  %v11099_v39 = vld [vmem:[#allocation54_spill] sm:$0xff]  ;;  %v11102_v30 = vld [vmem:[#allocation57_spill] sm:$0xff] }
  0xdb   : > { %v1142_v29 = vmul.f32 %v11092_v24, %v11099_v39  ;;  %v1143_v45 = vmul.f32 %v3684_v9, %v11092_v24  ;;  %v1144_v20 = vmul.f32 %v11092_v24, %v11100_v3  ;;  %v1145_v14 = vmul.f32 %v3686_v40, %v11092_v24  ;;  %v11101_v25 = vld [vmem:[#allocation56_spill] sm:$0xff]  ;;  %v11103_v52 = vld [vmem:[#allocation58_spill] sm:$0xff]  ;;  %v11104_v44 = vld [vmem:[#allocation33_spill] sm:$0xff] }
  0xdc   : > { %v1146_v7 = vmul.f32 %v11092_v24, %v11101_v25  ;;  %v1147_v27 = vmul.f32 %v3688_v1, %v11092_v24  ;;  %v1148_v28 = vmul.f32 %v11092_v24, %v11102_v30  ;;  %v1149_v16 = vmul.f32 %v3690_v0, %v11092_v24 }
  0xdd   : > { %v1150_v39 = vmul.f32 %v11092_v24, %v11103_v52  ;;  %v1151_v9 = vmul.f32 %v3692_v41, %v11092_v24  ;;  %v1152_v3 = vmul.f32 %v11104_v44, %v11092_v24  ;;  %v1153_v40 = vmul.f32 %v3694_v43, %v11092_v24 }
  0xde   : > { %v1154_v62 = vmul.f32 %v3695_v63, %v11092_v24  ;;  %v5879_v25 = vmul.f32 %v3696_v55, %v11092_v24  ;;  %v1156_v1 = vadd.f32 %v1128_v38, %v5740_v58  ;;  %v1157_v30 = vadd.f32 %v1129_v53, %v5743_v54 }
  0xdf   : > { %v1158_v0 = vadd.f32 %v1130_v47, %v5746_v48  ;;  %v1159_v52 = vadd.f32 %v1131_v35, %v5749_v26  ;;  %v1160_v41 = vadd.f32 %v1132_v34, %v5752_v17  ;;  %v1161_v59 = vadd.f32 %v1133_v50, %v5755_v46 }
  0xe0   : > { %v1162_v44 = vadd.f32 %v1134_v10, %v5758_v22  ;;  %v1163_v43 = vadd.f32 %v1135_v12, %v5761_v36  ;;  %v1164_v63 = vadd.f32 %v1136_v42, %v5764_v15  ;;  %v1165_v24 = vadd.f32 %v1137_v60, %v5767_v31  ;;  %v11105_v36 = vld [vmem:[#allocation14_spill] sm:$0xff]  ;;  %v11106_v12 = vld [vmem:[#allocation17_spill] sm:$0xff] }
  0xe1   : > { %v1166_v58 = vadd.f32 %v1138_v57, %v5770_v21  ;;  %v1167_v54 = vadd.f32 %v1139_v4, %v5773_v11  ;;  %v1168_v48 = vadd.f32 %v1140_v49, %v5776_v61  ;;  %v1169_v26 = vadd.f32 %v1141_v19, %v5779_v56  ;;  %v1243_v10 = vld [vmem:[%s10557_s3 + $0x8] sm:$0x3f]  ;;  %v1244_v49 = vld [vmem:[%s10557_s3 + $0x10] sm:$0xff]  ;;  %v1245_v19 = vld [vmem:[%s10557_s3 + $0x18] sm:$0x3f] }
  0xe2   : > { %v1170_v17 = vadd.f32 %v1142_v29, %v5782_v33  ;;  %v1171_v46 = vadd.f32 %v1143_v45, %v5785_v51  ;;  %v5898_v22 = vadd.f32 %v1144_v20, %v5788_v18  ;;  %v1186_v38 = vadd.f32 %v11105_v36, %v1156_v1  ;;  %v11107_v60 = vld [vmem:[#allocation18_spill] sm:$0xff] }
  0xe3   : > { %v1187_v15 = vadd.f32 %v11105_v36, %v1157_v30  ;;  %v1188_v31 = vadd.f32 %v11105_v36, %v1158_v0  ;;  %v1189_v21 = vadd.f32 %v11105_v36, %v1159_v52  ;;  %v1191_v11 = vadd.f32 %v11105_v36, %v1161_v59  ;;  %v11108_v0 = vld [vmem:[#allocation19_spill] sm:$0xff] }
  0xe4   : > { %v1173_v61 = vadd.f32 %v1145_v14, %v5791_v23  ;;  %v5907_v56 = vadd.f32 %v1146_v7, %v5795_v6  ;;  %v5910_v33 = vadd.f32 %v1147_v27, %v5798_v2  ;;  %v5913_v51 = vadd.f32 %v1148_v28, %v5801_v37  ;;  %v1246_v27 = vld [vmem:[%s10557_s3 + $0x20] sm:$0xff]  ;;  %v1249_v28 = vld [vmem:[%s10557_s3 + $0x38] sm:$0x3f] }
  0xe5   : > { %v5916_v18 = vadd.f32 %v1149_v16, %v5804_v13  ;;  %v5919_v53 = vadd.f32 %v1150_v39, %v5809_v8  ;;  %v1190_v59 = vadd.f32 %v11105_v36, %v1160_v41  ;;  %v1193_v23 = vadd.f32 %v11105_v36, %v1163_v43  ;;  %v1242_v13 = vld [vmem:[%s10557_s3] sm:$0xff]  ;;  %v1248_v39 = vld [vmem:[%s10557_s3 + $0x30] sm:$0xff] }
  0xe6   : > { %v5924_v6 = vadd.f32 %v1151_v9, %v5812_v32  ;;  %v1192_v2 = vadd.f32 %v11105_v36, %v1162_v44  ;;  %v1195_v47 = vadd.f32 %v11105_v36, %v1165_v24  ;;  %v1214_v37 = vmax.f32 %v1186_v38, 0.0  ;;  %v1251_v9 = vld [vmem:[%s10557_s3 + $0x48] sm:$0x3f] }
  0xe7   : > { %v1215_v35 = vmax.f32 %v1187_v15, 0.0  ;;  %v1216_v34 = vmax.f32 %v1188_v31, 0.0  ;;  %v1217_v8 = vmax.f32 %v1189_v21, 0.0  ;;  %v1219_v50 = vmax.f32 %v1191_v11, 0.0  ;;  %v1250_v15 = vld [vmem:[%s10557_s3 + $0x40] sm:$0xff] }
  0xe8   : > { %v5935_v32 = vadd.f32 %v1152_v3, %v5815_v5  ;;  %v5938_v42 = vadd.f32 %v1153_v40, %v11106_v12  ;;  %v5941_v57 = vadd.f32 %v1154_v62, %v11107_v60  ;;  %v1194_v4 = vadd.f32 %v11105_v36, %v1164_v63  ;;  %v1247_v5 = vld [vmem:[%s10557_s3 + $0x28] sm:$0x3f]  ;;  %v1254_v60 = vld [vmem:[%s10557_s3 + $0x60] sm:$0xff] }
  0xe9   : > { %v1196_v55 = vadd.f32 %v11105_v36, %v1166_v58  ;;  %v1197_v29 = vadd.f32 %v11105_v36, %v1167_v54  ;;  %v1218_v62 = vmax.f32 %v1190_v59, 0.0  ;;  %v1221_v45 = vmax.f32 %v1193_v23, 0.0 }
  0xea   : > { %v1199_v20 = vadd.f32 %v11105_v36, %v1169_v26  ;;  %v1220_v14 = vmax.f32 %v1192_v2, 0.0  ;;  %v1223_v7 = vmax.f32 %v1195_v47, 0.0  ;;  %v1270_v16 = vmul.f32 %v1242_v13, %v1214_v37  ;;  %v1252_v47 = vld [vmem:[%s10557_s3 + $0x50] sm:$0xff]  ;;  %v1255_v37 = vld [vmem:[%s10557_s3 + $0x68] sm:$0x3f] }
  0xeb   : > { %v1271_v3 = vmul.f32 %v1243_v10, %v1215_v35  ;;  %v1272_v40 = vmul.f32 %v1244_v49, %v1216_v34  ;;  %v1273_v1 = vmul.f32 %v1245_v19, %v1217_v8  ;;  %v1275_v30 = vmul.f32 %v1247_v5, %v1219_v50 }
  0xec   : > { %v1183_v52 = vadd.f32 %v5879_v25, %v11108_v0  ;;  %v1198_v41 = vadd.f32 %v11105_v36, %v1168_v48  ;;  %v1200_v44 = vadd.f32 %v11105_v36, %v1170_v17  ;;  %v1201_v43 = vadd.f32 %v11105_v36, %v1171_v46  ;;  %v1253_v25 = vld [vmem:[%s10557_s3 + $0x58] sm:$0x3f] }
  0xed   : > { %v1222_v63 = vmax.f32 %v1194_v4, 0.0  ;;  %v1225_v24 = vmax.f32 %v1197_v29, 0.0  ;;  %v1274_v58 = vmul.f32 %v1246_v27, %v1218_v62  ;;  %v1277_v54 = vmul.f32 %v1249_v28, %v1221_v45  ;;  %v1257_v4 = vld [vmem:[%s10557_s3 + $0x78] sm:$0x3f]  ;;  %v1256_v45 = vld [vmem:[%s10557_s3 + $0x70] sm:$0xff] }
  0xee   : > { %v1224_v26 = vmax.f32 %v1196_v55, 0.0  ;;  %v1227_v38 = vmax.f32 %v1199_v20, 0.0  ;;  %v1276_v31 = vmul.f32 %v1248_v39, %v1220_v14  ;;  %v1279_v48 = vmul.f32 %v1251_v9, %v1223_v7  ;;  %v1259_v20 = vld [vmem:[%s10557_s3 + $0x88] sm:$0x3f] }
  0xef   : > { %v1298_v21 = vadd.f32 %v1272_v40, %v1270_v16  ;;  %v1312_v17 = vsel %vm1311_vm0, %v1271_v3, 0.0  ;;  %v1313_v46 = vsel %vm1311_vm0, %v1273_v1, 0.0  ;;  %v1315_v11 = vsel %vm1311_vm0, %v1275_v30, 0.0 }
  0xf0   : > { %v1203_v59 = vadd.f32 %v11105_v36, %v1173_v61  ;;  %v1226_v23 = vmax.f32 %v1198_v41, 0.0  ;;  %v1229_v2 = vmax.f32 %v1201_v43, 0.0  ;;  %v1314_v13 = vadd.f32 %v1313_v46, %v1312_v17  ;;  %v1258_v41 = vld [vmem:[%s10557_s3 + $0x80] sm:$0xff] }
  0xf1   : > { %v1278_v35 = vmul.f32 %v1250_v15, %v1222_v63  ;;  %v1281_v34 = vmul.f32 %v1253_v25, %v1225_v24  ;;  %v1299_v8 = vadd.f32 %v1298_v21, %v1274_v58  ;;  %v1317_v50 = vsel %vm1311_vm0, %v1277_v54, 0.0 }
  0xf2   : > { %v1202_v10 = vadd.f32 %v11105_v36, %v5898_v22  ;;  %v5994_v61 = vadd.f32 %v11105_v36, %v5907_v56  ;;  %v1205_v12 = vadd.f32 %v11105_v36, %v5910_v33  ;;  %v1316_v49 = vadd.f32 %v1315_v11, %v1314_v13  ;;  %v1262_v13 = vld [vmem:[%s10557_s3 + $0xa0] sm:$0xff] }
  0xf3   : > { %v1280_v19 = vmul.f32 %v1252_v47, %v1224_v26  ;;  %v1283_v5 = vmul.f32 %v1255_v37, %v1227_v38  ;;  %v1300_v55 = vadd.f32 %v1299_v8, %v1276_v31  ;;  %v1319_v22 = vsel %vm1311_vm0, %v1279_v48, 0.0  ;;  %v1265_v31 = vld [vmem:[%s10557_s3 + $0xb8] sm:$0x3f]  ;;  %v1266_v8 = vld [vmem:[%s10557_s3 + $0xc0] sm:$0xff] }
  0xf4   : > { %v6007_v56 = vadd.f32 %v11105_v36, %v5913_v51  ;;  %v1228_v29 = vmax.f32 %v1200_v44, 0.0  ;;  %v1231_v33 = vmax.f32 %v1203_v59, 0.0  ;;  %v1318_v62 = vadd.f32 %v1317_v50, %v1316_v49  ;;  %v1268_v50 = vld [vmem:[%s10557_s3 + $0xd0] sm:$0xff] }
  0xf5   : > { %v1282_v14 = vmul.f32 %v1254_v60, %v1226_v23  ;;  %v1285_v7 = vmul.f32 %v1257_v4, %v1229_v2  ;;  %v1301_v27 = vadd.f32 %v1300_v55, %v1278_v35  ;;  %v1321_v28 = vsel %vm1311_vm0, %v1281_v34, 0.0  ;;  %v1260_v23 = vld [vmem:[%s10557_s3 + $0x90] sm:$0xff] }
  0xf6   : > { %v1207_v51 = vadd.f32 %v11105_v36, %v5916_v18  ;;  %v1209_v16 = vadd.f32 %v11105_v36, %v5924_v6  ;;  %v1211_v39 = vadd.f32 %v11105_v36, %v5938_v42  ;;  %v1320_v9 = vadd.f32 %v1319_v22, %v1318_v62  ;;  %v1264_v34 = vld [vmem:[%s10557_s3 + $0xb0] sm:$0xff] }
  0xf7   : > { %v1213_v3 = vadd.f32 %v11105_v36, %v1183_v52  ;;  %v1230_v40 = vmax.f32 %v1202_v10, 0.0  ;;  %v1302_v1 = vadd.f32 %v1301_v27, %v1280_v19  ;;  %v1323_v30 = vsel %vm1311_vm0, %v1283_v5, 0.0  ;;  %v1261_v52 = vld [vmem:[%s10557_s3 + $0x98] sm:$0x3f]  ;;  %v3876_v27 = vld [vmem:[%s4698_s12] sm:$0xff] }
  0xf8   : > { %v1233_v0 = vmax.f32 %v1205_v12, 0.0  ;;  %v1284_v44 = vmul.f32 %v1256_v45, %v1228_v29  ;;  %v1287_v18 = vmul.f32 %v1259_v20, %v1231_v33  ;;  %v1322_v43 = vadd.f32 %v1321_v28, %v1320_v9 }
  0xf9   : > { %v1208_v6 = vadd.f32 %v11105_v36, %v5919_v53  ;;  %v1210_v42 = vadd.f32 %v11105_v36, %v5935_v32  ;;  %v1303_v63 = vadd.f32 %v1302_v1, %v1282_v14  ;;  %v1325_v24 = vsel %vm1311_vm0, %v1285_v7, 0.0  ;;  %v1263_v53 = vld [vmem:[%s10557_s3 + $0xa8] sm:$0x3f]  ;;  %v6111_v1 = vld [vmem:[%s4698_s12 + $0x20] sm:$0xff] }
  0xfa   : > { %v1212_v58 = vadd.f32 %v11105_v36, %v5941_v57  ;;  %v1232_v54 = vmax.f32 %v5994_v61, 0.0  ;;  %v1235_v26 = vmax.f32 %v1207_v51, 0.0  ;;  %v1324_v32 = vadd.f32 %v1323_v30, %v1322_v43  ;;  %v1267_v36 = vld [vmem:[%s10557_s3 + $0xc8] sm:$0x3f]  ;;  %v1269_v57 = vld [vmem:[%s10557_s3 + $0xd8] sm:$0x3f] }
  0xfb   : > { %v1237_v38 = vmax.f32 %v1209_v16, 0.0  ;;  %v1239_v15 = vmax.f32 %v1211_v39, 0.0  ;;  %v1241_v25 = vmax.f32 %v1213_v3, 0.0  ;;  %v1286_v48 = vmul.f32 %v1258_v41, %v1230_v40  ;;  %v3877_v51 = vld [vmem:[%s4698_s12 + $0x8] sm:$0x3f]  ;;  %v6098_v39 = vld [vmem:[%s4698_s12 + $0x10] sm:$0xff] }
  0xfc   : > { %v1289_v21 = vmul.f32 %v1261_v52, %v1233_v0  ;;  %v1304_v17 = vadd.f32 %v1303_v63, %v1284_v44  ;;  %v1326_v46 = vadd.f32 %v1325_v24, %v1324_v32  ;;  %v1327_v11 = vsel %vm1311_vm0, %v1287_v18, 0.0  ;;  %11109 = vst [vmem:[#allocation20_spill] sm:$0xff] %v6098_v39  ;;  %v3879_v3 = vld [vmem:[%s4698_s12 + $0x18] sm:$0x3f]  ;;  %11110 = vst [vmem:[#allocation21_spill] sm:$0xff] %v6111_v1  ;;  %v6122_v44 = vld [vmem:[%s4698_s12 + $0x30] sm:$0xff] }
  0xfd   : > { %v1234_v59 = vmax.f32 %v6007_v56, 0.0  ;;  %v1236_v2 = vmax.f32 %v1208_v6, 0.0  ;;  %v1238_v47 = vmax.f32 %v1210_v42, 0.0  ;;  %v1240_v37 = vmax.f32 %v1212_v58, 0.0  ;;  %v3881_v0 = vld [vmem:[%s4698_s12 + $0x28] sm:$0x3f] }
  0xfe   : > { %v1291_v35 = vmul.f32 %v1263_v53, %v1235_v26  ;;  %v1293_v10 = vmul.f32 %v1265_v31, %v1237_v38  ;;  %v1295_v61 = vmul.f32 %v1267_v36, %v1239_v15  ;;  %v1297_v12 = vmul.f32 %v1269_v57, %v1241_v25  ;;  %11111 = vst [vmem:[#allocation22_spill] sm:$0xff] %v6122_v44  ;;  %v3883_v43 = vld [vmem:[%s4698_s12 + $0x38] sm:$0x3f]  ;;  %v6133_v42 = vld [vmem:[%s4698_s12 + $0x40] sm:$0xff]  ;;  %v3885_v63 = vld [vmem:[%s4698_s12 + $0x48] sm:$0x3f] }
  0xff   : > { %v1328_v60 = vadd.f32 %v1327_v11, %v1326_v46  ;;  %v1288_v4 = vmul.f32 %v1260_v23, %v1232_v54  ;;  %v1305_v49 = vadd.f32 %v1304_v17, %v1286_v48  ;;  %v1329_v19 = vsel %vm1311_vm0, %v1289_v21, 0.0  ;;  %11112 = vst [vmem:[#allocation23_spill] sm:$0xff] %v6133_v42  ;;  %v6144_v58 = vld [vmem:[%s4698_s12 + $0x50] sm:$0xff]  ;;  %v3887_v53 = vld [vmem:[%s4698_s12 + $0x58] sm:$0x3f]  ;;  %v6155_v38 = vld [vmem:[%s4698_s12 + $0x60] sm:$0xff] }
 0x100   : > { %v1290_v5 = vmul.f32 %v1262_v13, %v1234_v59  ;;  %v6071_v55 = vstv %s6035_s15  ;;  %v6073_v22 = vmul.f32 %v1264_v34, %v1236_v2  ;;  %v6075_v56 = vmul.f32 %v1266_v8, %v1238_v47  ;;  %s6104_s15 = sld [smem:[#allocation4 + $0xb]]  ;;  %11113 = vst [vmem:[#allocation24_spill] sm:$0xff] %v6144_v58  ;;  %11114 = vst [vmem:[#allocation25_spill] sm:$0xff] %v6155_v38  ;;  %v3889_v25 = vld [vmem:[%s4698_s12 + $0x68] sm:$0x3f]  ;;  %v6166_v36 = vld [vmem:[%s4698_s12 + $0x70] sm:$0xff] }
 0x101   : > { %v6077_v29 = vmul.f32 %v1268_v50, %v1240_v37  ;;  %v1331_v33 = vsel %vm1311_vm0, %v1291_v35, 0.0  ;;  %v1330_v62 = vadd.f32 %v1329_v19, %v1328_v60  ;;  %v1333_v45 = vsel %vm1311_vm0, %v1293_v10, 0.0  ;;  %11115 = vst [vmem:[#allocation60_spill] sm:$0xff] %v6166_v36  ;;  %v3891_v21 = vld [vmem:[%s4698_s12 + $0x78] sm:$0x3f]  ;;  %v6177_v46 = vld [vmem:[%s4698_s12 + $0x80] sm:$0xff] }
 0x102   : > { %v6084_v20 = vsel %vm1311_vm0, %v1295_v61, 0.0  ;;  %v6087_v14 = vsel %vm1311_vm0, %v1297_v12, 0.0  ;;  %v1306_v7 = vadd.f32 %v1305_v49, %v1288_v4  ;;  %v6091_v28 = vmul.f32 %v3876_v27, %v6071_v55  ;;  %11116 = vst [vmem:[#allocation35_spill] sm:$0xff] %v6177_v46  ;;  %v3893_v59 = vld [vmem:[%s4698_s12 + $0x88] sm:$0x3f]  ;;  %v6188_v2 = vld [vmem:[%s4698_s12 + $0x90] sm:$0xff] }
 0x103   : > { %v6095_v16 = vmul.f32 %v3877_v51, %v6071_v55  ;;  %v6102_v9 = vmul.f32 %v6098_v39, %v6071_v55  ;;  %v6108_v40 = vmul.f32 %v3879_v3, %v6071_v55  ;;  %v6115_v30 = vmul.f32 %v6111_v1, %v6071_v55  ;;  %11117 = vst [vmem:[#allocation36_spill] sm:$0xff] %v6188_v2  ;;  %v3895_v37 = vld [vmem:[%s4698_s12 + $0x98] sm:$0x3f]  ;;  %v6199_v35 = vld [vmem:[%s4698_s12 + $0xa0] sm:$0xff]  ;;  %v3897_v8 = vld [vmem:[%s4698_s12 + $0xa8] sm:$0x3f] }
 0x104   : > { %v6119_v41 = vmul.f32 %v3881_v0, %v6071_v55  ;;  %v6126_v18 = vmul.f32 %v6122_v44, %v6071_v55  ;;  %v6130_v6 = vmul.f32 %v3883_v43, %v6071_v55  ;;  %v6137_v52 = vmul.f32 %v6133_v42, %v6071_v55  ;;  %11118 = vst [vmem:[#allocation26_spill] sm:$0xff] %v6199_v35  ;;  %v6210_v10 = vld [vmem:[%s4698_s12 + $0xb0] sm:$0xff]  ;;  %v3899_v12 = vld [vmem:[%s4698_s12 + $0xb8] sm:$0x3f]  ;;  %v6224_v19 = vld [vmem:[%s4698_s12 + $0xc0] sm:$0xff] }
 0x105   : > { %v6141_v24 = vmul.f32 %v3885_v63, %v6071_v55  ;;  %v6148_v54 = vmul.f32 %v6144_v58, %v6071_v55  ;;  %v1332_v26 = vadd.f32 %v1331_v33, %v1330_v62  ;;  %v6152_v32 = vmul.f32 %v3887_v53, %v6071_v55  ;;  %11119 = vst [vmem:[#allocation13_spill] sm:$0xff] %v6210_v10  ;;  %v3901_v33 = vld [vmem:[%s4698_s12 + $0xc8] sm:$0x3f]  ;;  %v3903_v51 = vld [vmem:[%s4698_s12 + $0xd8] sm:$0x3f] }
 0x106   : > { %v6159_v15 = vmul.f32 %v6155_v38, %v6071_v55  ;;  %v6163_v31 = vmul.f32 %v3889_v25, %v6071_v55  ;;  %v1307_v48 = vadd.f32 %v1306_v7, %v1290_v5  ;;  %v6170_v57 = vmul.f32 %v6166_v36, %v6071_v55  ;;  %11120 = vst [vmem:[#allocation48_spill] sm:$0xff] %v6224_v19  ;;  %v6235_v7 = vld [vmem:[%s4698_s12 + $0xd0] sm:$0xff]  ;;  %v3904_v0 = vld [vmem:[%s4698_s12 + $0x1] sm:$0xff]  ;;  %v3925_v58 = vld [vmem:[%s4698_s12 + $0xa9] sm:$0x3f] }
 0x107   : > { %v6174_v17 = vmul.f32 %v3891_v21, %v6071_v55  ;;  %v6181_v11 = vmul.f32 %v6177_v46, %v6071_v55  ;;  %v6185_v23 = vmul.f32 %v3893_v59, %v6071_v55  ;;  %v6192_v47 = vmul.f32 %v6188_v2, %v6071_v55  ;;  %11122 = vst [vmem:[#allocation44_spill] sm:$0xff] %v6235_v7  ;;  %v6254_v25 = vld [vmem:[%s4698_s12 + $0x11] sm:$0xff]  ;;  %v6261_v21 = vld [vmem:[%s4698_s12 + $0x21] sm:$0xff]  ;;  %v3927_v1 = vld [vmem:[%s4698_s12 + $0xb9] sm:$0x3f] }
 0x108   : > { %v6196_v13 = vmul.f32 %v3895_v37, %v6071_v55  ;;  %v6203_v34 = vmul.f32 %v6199_v35, %v6071_v55  ;;  %v6207_v50 = vmul.f32 %v3897_v8, %v6071_v55  ;;  %v6214_v61 = vmul.f32 %v6210_v10, %v6071_v55  ;;  %11126 = vst [vmem:[#allocation29_spill] sm:$0xff] %v6254_v25  ;;  %v3909_v37 = vld [vmem:[%s4698_s12 + $0x29] sm:$0x3f]  ;;  %v6298_v35 = vld [vmem:[%s4698_s12 + $0x71] sm:$0xff]  ;;  %v6319_v38 = vld [vmem:[%s4698_s12 + $0xa1] sm:$0xff] }
 0x109   : > { %v6218_v60 = vmul.f32 %v3899_v12, %v6071_v55  ;;  %v6221_v4 = vstv %s6080_s24  ;;  %v1334_v49 = vadd.f32 %v1333_v45, %v1332_v26  ;;  %v6228_v5 = vmul.f32 %v6224_v19, %v6071_v55  ;;  %v3905_v26 = vld [vmem:[%s4698_s12 + $0x9] sm:$0x3f]  ;;  %11127 = vst [vmem:[#allocation30_spill] sm:$0xff] %v6261_v21  ;;  %v6268_v12 = vld [vmem:[%s4698_s12 + $0x31] sm:$0xff]  ;;  %11132 = vst [vmem:[#allocation40_spill] sm:$0xff] %v6298_v35 }
 0x10a   : > { %v6232_v62 = vmul.f32 %v3901_v33, %v6071_v55  ;;  %v6239_v27 = vmul.f32 %v6235_v7, %v6071_v55  ;;  %v1308_v45 = vadd.f32 %v1307_v48, %v6073_v22  ;;  %v6244_v3 = vmul.f32 %v3903_v51, %v6071_v55  ;;  %v3907_v48 = vld [vmem:[%s4698_s12 + $0x19] sm:$0x3f]  ;;  %11128 = vst [vmem:[#allocation34_spill] sm:$0xff] %v6268_v12  ;;  %v6283_v7 = vld [vmem:[%s4698_s12 + $0x51] sm:$0xff] }
 0x10b   : > { %v1408_v43 = vmul.f32 %v3904_v0, %v6221_v4  ;;  %v6249_v63 = vstv %s6104_s15  ;;  %v1409_v53 = vmul.f32 %v3905_v26, %v6221_v4  ;;  %v1410_v22 = vmul.f32 %v6254_v25, %v6221_v4  ;;  %v3911_v51 = vld [vmem:[%s4698_s12 + $0x39] sm:$0x3f]  ;;  %v6275_v26 = vld [vmem:[%s4698_s12 + $0x41] sm:$0xff]  ;;  %11130 = vst [vmem:[#allocation38_spill] sm:$0xff] %v6283_v7  ;;  %11135 = vst [vmem:[#allocation43_spill] sm:$0xff] %v6319_v38  ;;  %s3406_s15 = sld [smem:[#allocation2]] }
 0x10c   : > { %11121 = vst [vmem:[#allocation49_spill] sm:$0xff] %v6232_v62  ;;  %11123 = vst [vmem:[#allocation27_spill] sm:$0xff] %v6239_v27  ;;  %v1411_v55 = vmul.f32 %v3907_v48, %v6221_v4  ;;  %v1412_v59 = vmul.f32 %v6261_v21, %v6221_v4  ;;  %v1413_v8 = vmul.f32 %v3909_v37, %v6221_v4  ;;  %v3913_v37 = vld [vmem:[%s4698_s12 + $0x49] sm:$0x3f]  ;;  %v6344_v27 = vld [vmem:[%s4698_s12 + $0xd1] sm:$0xff] }
 0x10d   : > { %11124 = vst [vmem:[#allocation59_spill] sm:$0xff] %v6244_v3  ;;  %11125 = vst [vmem:[#allocation28_spill] sm:$0xff] %v6249_v63  ;;  %v1414_v33 = vmul.f32 %v6268_v12, %v6221_v4  ;;  %v1415_v0 = vmul.f32 %v3911_v51, %v6221_v4  ;;  %v1416_v48 = vmul.f32 %v6275_v26, %v6221_v4  ;;  %v3915_v51 = vld [vmem:[%s4698_s12 + $0x59] sm:$0x3f]  ;;  %v3929_v3 = vld [vmem:[%s4698_s12 + $0xc9] sm:$0x3f] }
 0x10e   : > { %11129 = vst [vmem:[#allocation37_spill] sm:$0xff] %v6275_v26  ;;  %v1336_v21 = vadd.f32 %v6084_v20, %v1334_v49  ;;  %v1417_v25 = vmul.f32 %v3913_v37, %v6221_v4  ;;  %v1418_v12 = vmul.f32 %v6283_v7, %v6221_v4  ;;  %v1419_v19 = vmul.f32 %v3915_v51, %v6221_v4  ;;  %v6291_v26 = vld [vmem:[%s4698_s12 + $0x61] sm:$0xff]  ;;  %v3917_v49 = vld [vmem:[%s4698_s12 + $0x69] sm:$0x3f]  ;;  %v3919_v51 = vld [vmem:[%s4698_s12 + $0x79] sm:$0x3f] }
 0x10f   : > { %v1309_v10 = vadd.f32 %v1308_v45, %v6075_v56  ;;  %11131 = vst [vmem:[#allocation39_spill] sm:$0xff] %v6291_v26  ;;  %v1420_v20 = vmul.f32 %v6291_v26, %v6221_v4  ;;  %v1421_v37 = vmul.f32 %v3917_v49, %v6221_v4  ;;  %v1422_v7 = vmul.f32 %v6298_v35, %v6221_v4  ;;  %v6305_v56 = vld [vmem:[%s4698_s12 + $0x81] sm:$0xff]  ;;  %v3921_v26 = vld [vmem:[%s4698_s12 + $0x89] sm:$0x3f]  ;;  %v6312_v49 = vld [vmem:[%s4698_s12 + $0x91] sm:$0xff] }
 0x110   : > { %v1423_v2 = vmul.f32 %v3919_v51, %v6221_v4  ;;  %11133 = vst [vmem:[#allocation41_spill] sm:$0xff] %v6305_v56  ;;  %v1424_v45 = vmul.f32 %v6305_v56, %v6221_v4  ;;  %v1425_v46 = vmul.f32 %v3921_v26, %v6221_v4  ;;  %11134 = vst [vmem:[#allocation42_spill] sm:$0xff] %v6312_v49  ;;  %v3923_v35 = vld [vmem:[%s4698_s12 + $0x99] sm:$0x3f]  ;;  %v6326_v26 = vld [vmem:[%s4698_s12 + $0xb1] sm:$0xff] }
 0x111   : > { %v1426_v36 = vmul.f32 %v6312_v49, %v6221_v4  ;;  %v1427_v51 = vmul.f32 %v3923_v35, %v6221_v4  ;;  %v1428_v56 = vmul.f32 %v6319_v38, %v6221_v4  ;;  %v1429_v42 = vmul.f32 %v3925_v58, %v6221_v4  ;;  %11136 = vst [vmem:[#allocation31_spill] sm:$0xff] %v6326_v26  ;;  %v6334_v35 = vld [vmem:[%s4698_s12 + $0xc1] sm:$0xff] }
 0x112   : > { %v1430_v44 = vmul.f32 %v6326_v26, %v6221_v4  ;;  %v1338_v49 = vadd.f32 %v6087_v14, %v1336_v21  ;;  %v1431_v39 = vmul.f32 %v3927_v1, %v6221_v4  ;;  %11137 = vst [vmem:[#allocation15_spill] sm:$0xff] %v6334_v35  ;;  %v1432_v63 = vmul.f32 %v6334_v35, %v6221_v4  ;;  %v3931_v14 = vld [vmem:[%s4698_s12 + $0xd9] sm:$0x3f] }
 0x113   : > { %v1433_v38 = vmul.f32 %v3929_v3, %v6221_v4  ;;  %v6341_v58 = vadd.f32 %v1309_v10, %v6077_v29  ;;  %11139 = vst [vmem:[#allocation45_spill] sm:$0xff] %v6344_v27  ;;  %v1434_v26 = vmul.f32 %v6344_v27, %v6221_v4  ;;  %v1435_v21 = vmul.f32 %v3931_v14, %v6221_v4 }
 0x114   : > { %v6351_v1 = vadd.f32 %v1408_v43, %v6091_v28  ;;  %v6354_v62 = vadd.f32 %v1409_v53, %v6095_v16  ;;  %v6357_v35 = vadd.f32 %v1410_v22, %v6102_v9  ;;  %v6360_v29 = vadd.f32 %v1411_v55, %v6108_v40  ;;  %v6449_v43 = vld [vmem:[%s4698_s12 + $0x22] sm:$0xff]  ;;  %v3937_v53 = vld [vmem:[%s4698_s12 + $0x2a] sm:$0x3f]  ;;  %v6456_v22 = vld [vmem:[%s4698_s12 + $0x32] sm:$0xff] }
 0x115   : > { %11138 = vst [vmem:[#allocation16_spill] sm:$0xff] %v6341_v58  ;;  %v6363_v10 = vadd.f32 %v1412_v59, %v6115_v30  ;;  %v6366_v3 = vadd.f32 %v1413_v8, %v6119_v41  ;;  %v6369_v4 = vadd.f32 %v1414_v33, %v6126_v18  ;;  %v6372_v28 = vadd.f32 %v1415_v0, %v6130_v6  ;;  %v3939_v59 = vld [vmem:[%s4698_s12 + $0x3a] sm:$0x3f]  ;;  %v3941_v0 = vld [vmem:[%s4698_s12 + $0x4a] sm:$0x3f] }
 0x116   : > { %v6375_v16 = vadd.f32 %v1416_v48, %v6137_v52  ;;  %v6378_v9 = vsel %vm1311_vm0, %v1338_v49, 0.0  ;;  %v6381_v40 = vadd.f32 %v1417_v25, %v6141_v24  ;;  %v6384_v30 = vadd.f32 %v1418_v12, %v6148_v54  ;;  %11146 = vst [vmem:[#allocation47_spill] sm:$0xff] %v6449_v43  ;;  %11147 = vst [vmem:[#allocation50_spill] sm:$0xff] %v6456_v22  ;;  %v6463_v12 = vld [vmem:[%s4698_s12 + $0x42] sm:$0xff]  ;;  %v3953_v58 = vld [vmem:[%s4698_s12 + $0xaa] sm:$0x3f] }
 0x117   : > { %11140 = vst [vmem:[#allocation32_spill] sm:$0xff] %v6378_v9  ;;  %v6387_v41 = vadd.f32 %v1419_v19, %v6152_v32  ;;  %v6390_v18 = vadd.f32 %v1420_v20, %v6159_v15  ;;  %v6393_v6 = vadd.f32 %v1421_v37, %v6163_v31  ;;  %v6396_v52 = vadd.f32 %v1422_v7, %v6170_v57  ;;  %v6442_v19 = vld [vmem:[%s4698_s12 + $0x12] sm:$0xff]  ;;  %v6477_v49 = vld [vmem:[%s4698_s12 + $0x62] sm:$0xff] }
 0x118   : > { %v6399_v24 = vadd.f32 %v1423_v2, %v6174_v17  ;;  %v6402_v54 = vadd.f32 %v1424_v45, %v6181_v11  ;;  %v6405_v32 = vadd.f32 %v1425_v46, %v6185_v23  ;;  %v6408_v15 = vadd.f32 %v1426_v36, %v6192_v47  ;;  %v11141_v23 = vld [vmem:[#allocation49_spill] sm:$0xff]  ;;  %v11142_v47 = vld [vmem:[#allocation27_spill] sm:$0xff]  ;;  %11145 = vst [vmem:[#allocation46_spill] sm:$0xff] %v6442_v19 }
 0x119   : > { %v6411_v31 = vadd.f32 %v1427_v51, %v6196_v13  ;;  %v6414_v57 = vadd.f32 %v1428_v56, %v6203_v34  ;;  %v6417_v17 = vadd.f32 %v1429_v42, %v6207_v50  ;;  %v6420_v11 = vadd.f32 %v1430_v44, %v6214_v61  ;;  %v11143_v34 = vld [vmem:[#allocation59_spill] sm:$0xff]  ;;  %v3932_v44 = vld [vmem:[%s4698_s12 + $0x2] sm:$0xff]  ;;  %v11144_v50 = vld [vmem:[#allocation28_spill] sm:$0xff]  ;;  %11148 = vst [vmem:[#allocation51_spill] sm:$0xff] %v6463_v12 }
 0x11a   : > { %v6423_v46 = vadd.f32 %v1431_v39, %v6218_v60  ;;  %v6426_v36 = vadd.f32 %v1432_v63, %v6228_v5  ;;  %v6429_v2 = vadd.f32 %v1433_v38, %v11141_v23  ;;  %v6432_v13 = vadd.f32 %v1434_v26, %v11142_v47  ;;  %v3933_v39 = vld [vmem:[%s4698_s12 + $0xa] sm:$0x3f]  ;;  %v3935_v5 = vld [vmem:[%s4698_s12 + $0x1a] sm:$0x3f]  ;;  %v6470_v20 = vld [vmem:[%s4698_s12 + $0x52] sm:$0xff]  ;;  %11150 = vst [vmem:[#allocation53_spill] sm:$0xff] %v6477_v49 }
 0x11b   : > { %v6435_v42 = vadd.f32 %v1435_v21, %v11143_v34  ;;  %v1466_v61 = vmul.f32 %v3932_v44, %v11144_v50  ;;  %v1467_v60 = vmul.f32 %v3933_v39, %v11144_v50  ;;  %v1468_v38 = vmul.f32 %v6442_v19, %v11144_v50  ;;  %11149 = vst [vmem:[#allocation52_spill] sm:$0xff] %v6470_v20  ;;  %v3943_v56 = vld [vmem:[%s4698_s12 + $0x5a] sm:$0x3f]  ;;  %v3945_v26 = vld [vmem:[%s4698_s12 + $0x6a] sm:$0x3f]  ;;  %v6484_v21 = vld [vmem:[%s4698_s12 + $0x72] sm:$0xff] }
 0x11c   : > { %v1469_v7 = vmul.f32 %v3935_v5, %v11144_v50  ;;  %v1470_v63 = vmul.f32 %v6449_v43, %v11144_v50  ;;  %v1471_v25 = vmul.f32 %v3937_v53, %v11144_v50  ;;  %v1472_v55 = vmul.f32 %v6456_v22, %v11144_v50  ;;  %11151 = vst [vmem:[#allocation54_spill] sm:$0xff] %v6484_v21  ;;  %v3947_v47 = vld [vmem:[%s4698_s12 + $0x7a] sm:$0x3f]  ;;  %v6493_v44 = vld [vmem:[%s4698_s12 + $0x82] sm:$0xff]  ;;  %v3949_v5 = vld [vmem:[%s4698_s12 + $0x8a] sm:$0x3f] }
 0x11d   : > { %v1473_v8 = vmul.f32 %v3939_v59, %v11144_v50  ;;  %v1474_v33 = vmul.f32 %v6463_v12, %v11144_v50  ;;  %v1475_v48 = vmul.f32 %v3941_v0, %v11144_v50  ;;  %v1476_v37 = vmul.f32 %v6470_v20, %v11144_v50  ;;  %11152 = vst [vmem:[#allocation55_spill] sm:$0xff] %v6493_v44  ;;  %v6500_v59 = vld [vmem:[%s4698_s12 + $0x92] sm:$0xff]  ;;  %v6521_v20 = vld [vmem:[%s4698_s12 + $0xc2] sm:$0xff]  ;;  %v3957_v12 = vld [vmem:[%s4698_s12 + $0xca] sm:$0x3f] }
 0x11e   : > { %v1477_v45 = vmul.f32 %v3943_v56, %v11144_v50  ;;  %v1478_v51 = vmul.f32 %v6477_v49, %v11144_v50  ;;  %v1479_v14 = vmul.f32 %v3945_v26, %v11144_v50  ;;  %v1480_v23 = vmul.f32 %v6484_v21, %v11144_v50  ;;  %11153 = vst [vmem:[#allocation56_spill] sm:$0xff] %v6500_v59  ;;  %v3951_v56 = vld [vmem:[%s4698_s12 + $0x9a] sm:$0x3f]  ;;  %v6514_v21 = vld [vmem:[%s4698_s12 + $0xb2] sm:$0xff] }
 0x11f   : > { %v1481_v34 = vmul.f32 %v3947_v47, %v11144_v50  ;;  %v1482_v39 = vmul.f32 %v6493_v44, %v11144_v50  ;;  %v1483_v53 = vmul.f32 %v3949_v5, %v11144_v50  ;;  %v1484_v0 = vmul.f32 %v6500_v59, %v11144_v50  ;;  %v6507_v47 = vld [vmem:[%s4698_s12 + $0xa2] sm:$0xff]  ;;  %11155 = vst [vmem:[#allocation58_spill] sm:$0xff] %v6514_v21  ;;  %v3955_v49 = vld [vmem:[%s4698_s12 + $0xba] sm:$0x3f] }
 0x120   : > { %v1485_v26 = vmul.f32 %v3951_v56, %v11144_v50  ;;  %11154 = vst [vmem:[#allocation57_spill] sm:$0xff] %v6507_v47  ;;  %v1486_v9 = vmul.f32 %v6507_v47, %v11144_v50  ;;  %v1487_v44 = vmul.f32 %v3953_v58, %v11144_v50  ;;  %v1488_v5 = vmul.f32 %v6514_v21, %v11144_v50  ;;  %v6528_v47 = vld [vmem:[%s4698_s12 + $0xd2] sm:$0xff]  ;;  %v3959_v43 = vld [vmem:[%s4698_s12 + $0xda] sm:$0x3f] }
 0x121   : > { %v1489_v59 = vmul.f32 %v3955_v49, %v11144_v50  ;;  %11156 = vst [vmem:[#allocation33_spill] sm:$0xff] %v6521_v20  ;;  %v1490_v56 = vmul.f32 %v6521_v20, %v11144_v50  ;;  %v1491_v22 = vmul.f32 %v3957_v12, %v11144_v50  ;;  %11157 = vst [vmem:[#allocation14_spill] sm:$0xff] %v6528_v47 }
 0x122   : > { %v1492_v58 = vmul.f32 %v6528_v47, %v11144_v50  ;;  %v1493_v19 = vmul.f32 %v3959_v43, %v11144_v50  ;;  %v6535_v21 = vadd.f32 %v1466_v61, %v6351_v1  ;;  %v6538_v49 = vadd.f32 %v1467_v60, %v6354_v62  ;;  %v3960_v61 = vld [vmem:[%s4698_s12 + $0x18] sm:$0x3f]  ;;  %v11160_v43 = vld [vmem:[#allocation22_spill] sm:$0xff] }
 0x123   : > { %v6541_v27 = vadd.f32 %v1468_v38, %v6357_v35  ;;  %v6544_v20 = vadd.f32 %v1469_v7, %v6360_v29  ;;  %v6547_v12 = vadd.f32 %v1470_v63, %v6363_v10  ;;  %v6550_v47 = vadd.f32 %v1471_v25, %v6366_v3  ;;  %v3962_v63 = vld [vmem:[%s4698_s12 + $0x38] sm:$0x3f] }
 0x124   : > { %v6553_v50 = vadd.f32 %v1472_v55, %v6369_v4  ;;  %v6556_v1 = vadd.f32 %v1473_v8, %v6372_v28  ;;  %v6559_v62 = vadd.f32 %v1474_v33, %v6375_v16  ;;  %v6562_v35 = vadd.f32 %v1475_v48, %v6381_v40  ;;  %v11162_v55 = vld [vmem:[#allocation24_spill] sm:$0xff] }
 0x125   : > { %v6565_v29 = vadd.f32 %v1476_v37, %v6384_v30  ;;  %v6568_v10 = vadd.f32 %v1477_v45, %v6387_v41  ;;  %v6571_v3 = vadd.f32 %v1478_v51, %v6390_v18  ;;  %v6574_v4 = vadd.f32 %v1479_v14, %v6393_v6  ;;  %v3964_v33 = vld [vmem:[%s4698_s12 + $0x58] sm:$0x3f]  ;;  %v11163_v37 = vld [vmem:[#allocation25_spill] sm:$0xff] }
 0x126   : > { %v6577_v28 = vadd.f32 %v1480_v23, %v6396_v52  ;;  %v6580_v16 = vadd.f32 %v1481_v34, %v6399_v24  ;;  %v6583_v40 = vadd.f32 %v1482_v39, %v6402_v54  ;;  %v6586_v30 = vadd.f32 %v1483_v53, %v6405_v32  ;;  %v3965_v51 = vld [vmem:[%s4698_s12 + $0x68] sm:$0x3f]  ;;  %v11164_v23 = vld [vmem:[#allocation60_spill] sm:$0xff]  ;;  %v11165_v53 = vld [vmem:[#allocation35_spill] sm:$0xff] }
 0x127   : > { %v6589_v41 = vadd.f32 %v1484_v0, %v6408_v15  ;;  %v1523_v18 = vstv %s6490_s26  ;;  %v6593_v6 = vadd.f32 %v1485_v26, %v6411_v31  ;;  %v6596_v52 = vadd.f32 %v1486_v9, %v6414_v57  ;;  %v3967_v0 = vld [vmem:[%s4698_s12 + $0x88] sm:$0x3f]  ;;  %s7484_s26 = sld [smem:[#allocation4 + $0x12]] }
 0x128   : > { %v6599_v24 = vadd.f32 %v1487_v44, %v6417_v17  ;;  %v6602_v54 = vadd.f32 %v1488_v5, %v6420_v11  ;;  %v6605_v32 = vadd.f32 %v1489_v59, %v6423_v46  ;;  %v6608_v15 = vadd.f32 %v1490_v56, %v6426_v36  ;;  %v11158_v17 = vld [vmem:[#allocation20_spill] sm:$0xff]  ;;  %v11159_v46 = vld [vmem:[#allocation21_spill] sm:$0xff] }
 0x129   : > { %v6611_v31 = vadd.f32 %v1491_v22, %v6429_v2  ;;  %v6614_v9 = vadd.f32 %v1492_v58, %v6432_v13  ;;  %v6617_v57 = vadd.f32 %v1493_v19, %v6435_v42  ;;  %v1524_v11 = vmul.f32 %v11158_v17, %v1523_v18  ;;  %v3961_v36 = vld [vmem:[%s4698_s12 + $0x28] sm:$0x3f]  ;;  %v11161_v13 = vld [vmem:[#allocation23_spill] sm:$0xff]  ;;  %v11166_v5 = vld [vmem:[#allocation36_spill] sm:$0xff] }
 0x12a   : > { %v1525_v60 = vmul.f32 %v3960_v61, %v1523_v18  ;;  %v1526_v38 = vmul.f32 %v11159_v46, %v1523_v18  ;;  %v1527_v7 = vmul.f32 %v3961_v36, %v1523_v18  ;;  %v1528_v2 = vmul.f32 %v11160_v43, %v1523_v18  ;;  %v3963_v42 = vld [vmem:[%s4698_s12 + $0x48] sm:$0x3f]  ;;  %v3966_v44 = vld [vmem:[%s4698_s12 + $0x78] sm:$0x3f] }
 0x12b   : > { %v1529_v25 = vmul.f32 %v3962_v63, %v1523_v18  ;;  %v1530_v22 = vmul.f32 %v11161_v13, %v1523_v18  ;;  %v1531_v19 = vmul.f32 %v3963_v42, %v1523_v18  ;;  %v1532_v8 = vmul.f32 %v11162_v55, %v1523_v18  ;;  %v3968_v58 = vld [vmem:[%s4698_s12 + $0x98] sm:$0x3f]  ;;  %v11167_v61 = vld [vmem:[#allocation26_spill] sm:$0xff] }
 0x12c   : > { %v1533_v48 = vmul.f32 %v3964_v33, %v1523_v18  ;;  %v1534_v45 = vmul.f32 %v11163_v37, %v1523_v18  ;;  %v1535_v14 = vmul.f32 %v3965_v51, %v1523_v18  ;;  %v1536_v34 = vmul.f32 %v11164_v23, %v1523_v18  ;;  %v3969_v63 = vld [vmem:[%s4698_s12 + $0xa8] sm:$0x3f]  ;;  %v11170_v13 = vld [vmem:[#allocation44_spill] sm:$0xff] }
 0x12d   : > { %v1537_v39 = vmul.f32 %v3966_v44, %v1523_v18  ;;  %v1538_v59 = vmul.f32 %v11165_v53, %v1523_v18  ;;  %v1539_v26 = vmul.f32 %v3967_v0, %v1523_v18  ;;  %v1540_v56 = vmul.f32 %v11166_v5, %v1523_v18  ;;  %v11168_v33 = vld [vmem:[#allocation13_spill] sm:$0xff]  ;;  %v3970_v44 = vld [vmem:[%s4698_s12 + $0xb8] sm:$0x3f] }
 0x12e   : > { %v1541_v17 = vmul.f32 %v3968_v58, %v1523_v18  ;;  %v1542_v36 = vmul.f32 %v11167_v61, %v1523_v18  ;;  %v1543_v42 = vmul.f32 %v3969_v63, %v1523_v18  ;;  %v1544_v51 = vmul.f32 %v11168_v33, %v1523_v18  ;;  %v11169_v53 = vld [vmem:[#allocation48_spill] sm:$0xff]  ;;  %v3971_v55 = vld [vmem:[%s4698_s12 + $0xc8] sm:$0x3f] }
 0x12f   : > { %v1545_v23 = vmul.f32 %v3970_v44, %v1523_v18  ;;  %v1546_v37 = vmul.f32 %v11169_v53, %v1523_v18  ;;  %v1547_v0 = vmul.f32 %v3971_v55, %v1523_v18  ;;  %v1548_v5 = vmul.f32 %v11170_v13, %v1523_v18  ;;  %v3972_v43 = vld [vmem:[%s4698_s12 + $0xd8] sm:$0x3f]  ;;  %v6648_v58 = vld [vmem:[%s4698_s12 + $0xe0] sm:$0xff]  ;;  %v3974_v63 = vld [vmem:[%s4698_s12 + $0xe8] sm:$0x3f] }
 0x130   : > { %v1549_v46 = vmul.f32 %v3972_v43, %v1523_v18  ;;  %11171 = vst [vmem:[#allocation17_spill] sm:$0xff] %v6648_v58  ;;  %v1550_v61 = vmul.f32 %v6648_v58, %v1523_v18  ;;  %v1551_v33 = vmul.f32 %v3974_v63, %v1523_v18  ;;  %v6657_v44 = vadd.f32 %v1524_v11, %v6535_v21 }
 0x131   : > { %v6660_v53 = vadd.f32 %v1525_v60, %v6538_v49  ;;  %v6663_v55 = vadd.f32 %v1526_v38, %v6541_v27  ;;  %v6668_v43 = vadd.f32 %v1527_v7, %v6544_v20  ;;  %v6671_v58 = vadd.f32 %v1528_v2, %v6547_v12  ;;  %v3975_v38 = vld [vmem:[%s4698_s12 + $0x19] sm:$0x3f]  ;;  %v11177_v7 = vld [vmem:[#allocation30_spill] sm:$0xff] }
 0x132   : > { %v6674_v13 = vadd.f32 %v1529_v25, %v6550_v47  ;;  %v6677_v21 = vadd.f32 %v1530_v22, %v6553_v50  ;;  %v6680_v49 = vadd.f32 %v1531_v19, %v6556_v1  ;;  %v6683_v27 = vadd.f32 %v1532_v8, %v6559_v62  ;;  %v11179_v25 = vld [vmem:[#allocation34_spill] sm:$0xff]  ;;  %v3977_v22 = vld [vmem:[%s4698_s12 + $0x39] sm:$0x3f]  ;;  %v11180_v8 = vld [vmem:[#allocation37_spill] sm:$0xff] }
 0x133   : > { %v6686_v18 = vadd.f32 %v1533_v48, %v6562_v35  ;;  %v6689_v20 = vadd.f32 %v1534_v45, %v6565_v29  ;;  %v6692_v12 = vadd.f32 %v1535_v14, %v6568_v10  ;;  %v6695_v47 = vadd.f32 %v1536_v34, %v6571_v3  ;;  %v11181_v14 = vld [vmem:[#allocation38_spill] sm:$0xff]  ;;  %v3979_v34 = vld [vmem:[%s4698_s12 + $0x59] sm:$0x3f] }
 0x134   : > { %v6698_v50 = vadd.f32 %v1537_v39, %v6574_v4  ;;  %v6701_v1 = vadd.f32 %v1538_v59, %v6577_v28  ;;  %v6704_v62 = vadd.f32 %v1539_v26, %v6580_v16  ;;  %v6707_v35 = vadd.f32 %v1540_v56, %v6583_v40  ;;  %v11182_v59 = vld [vmem:[#allocation39_spill] sm:$0xff] }
 0x135   : > { %v6710_v29 = vadd.f32 %v1541_v17, %v6586_v30  ;;  %v6713_v10 = vadd.f32 %v1542_v36, %v6589_v41  ;;  %v6716_v3 = vadd.f32 %v1543_v42, %v6593_v6  ;;  %v6719_v4 = vadd.f32 %v1544_v51, %v6596_v52  ;;  %v11183_v17 = vld [vmem:[#allocation40_spill] sm:$0xff] }
 0x136   : > { %v6722_v28 = vadd.f32 %v1545_v23, %v6599_v24  ;;  %v1581_v16 = vstv %s6638_s27  ;;  %v6726_v40 = vadd.f32 %v1546_v37, %v6602_v54  ;;  %v6729_v30 = vadd.f32 %v1547_v0, %v6605_v32  ;;  %v11176_v32 = vld [vmem:[#allocation29_spill] sm:$0xff]  ;;  %v3981_v36 = vld [vmem:[%s4698_s12 + $0x79] sm:$0x3f]  ;;  %s7486_s27 = sld [smem:[#allocation4 + $0x13]] }
 0x137   : > { %v6732_v41 = vadd.f32 %v1548_v5, %v6608_v15  ;;  %v6735_v6 = vadd.f32 %v1549_v46, %v6611_v31  ;;  %v6738_v52 = vadd.f32 %v1550_v61, %v6614_v9  ;;  %v6741_v24 = vadd.f32 %v1551_v33, %v6617_v57  ;;  %v3976_v9 = vld [vmem:[%s4698_s12 + $0x29] sm:$0x3f] }
 0x138   : > { %v6744_v11 = vstv %s6651_s8  ;;  %v6747_v54 = vstv %s6653_s9  ;;  %v1582_v60 = vmul.f32 %v11176_v32, %v1581_v16  ;;  %v1583_v15 = vmul.f32 %v3975_v38, %v1581_v16  ;;  %v3978_v37 = vld [vmem:[%s4698_s12 + $0x49] sm:$0x3f]  ;;  %s9864_s8 = sld [smem:[#allocation4 + $0x21]]  ;;  %s9874_s9 = sld [smem:[#allocation4 + $0x22]] }
 0x139   : > { %11172 = vst [vmem:[#allocation18_spill] sm:$0xff] %v6738_v52  ;;  %11173 = vst [vmem:[#allocation19_spill] sm:$0xff] %v6741_v24  ;;  %v1584_v31 = vmul.f32 %v11177_v7, %v1581_v16  ;;  %v6753_v46 = vstv %s6665_s29  ;;  %v1585_v2 = vmul.f32 %v3976_v9, %v1581_v16  ;;  %v1586_v57 = vmul.f32 %v11179_v25, %v1581_v16  ;;  %v3980_v5 = vld [vmem:[%s4698_s12 + $0x69] sm:$0x3f]  ;;  %v3983_v9 = vld [vmem:[%s4698_s12 + $0x99] sm:$0x3f] }
 0x13a   : > { %11174 = vst [vmem:[#allocation49_spill] sm:$0xff] %v6744_v11  ;;  %11175 = vst [vmem:[#allocation27_spill] sm:$0xff] %v6747_v54  ;;  %v1587_v19 = vmul.f32 %v3977_v22, %v1581_v16  ;;  %v1588_v48 = vmul.f32 %v11180_v8, %v1581_v16  ;;  %v1589_v45 = vmul.f32 %v3978_v37, %v1581_v16  ;;  %v11184_v33 = vld [vmem:[#allocation41_spill] sm:$0xff]  ;;  %v11185_v32 = vld [vmem:[#allocation42_spill] sm:$0xff]  ;;  %s9887_s29 = sld [smem:[#allocation4 + $0x23]] }
 0x13b   : > { %11178 = vst [vmem:[#allocation59_spill] sm:$0xff] %v6753_v46  ;;  %v1590_v23 = vmul.f32 %v11181_v14, %v1581_v16  ;;  %v1591_v39 = vmul.f32 %v3979_v34, %v1581_v16  ;;  %v1592_v26 = vmul.f32 %v11182_v59, %v1581_v16  ;;  %v1593_v56 = vmul.f32 %v3980_v5, %v1581_v16  ;;  %v3982_v0 = vld [vmem:[%s4698_s12 + $0x89] sm:$0x3f]  ;;  %v11186_v37 = vld [vmem:[#allocation43_spill] sm:$0xff] }
 0x13c   : > { %v1594_v61 = vmul.f32 %v11183_v17, %v1581_v16  ;;  %v1595_v42 = vmul.f32 %v3981_v36, %v1581_v16  ;;  %v1596_v51 = vmul.f32 %v11184_v33, %v1581_v16  ;;  %v1597_v63 = vmul.f32 %v3982_v0, %v1581_v16  ;;  %v3984_v59 = vld [vmem:[%s4698_s12 + $0xa9] sm:$0x3f]  ;;  %v11187_v14 = vld [vmem:[#allocation31_spill] sm:$0xff] }
 0x13d   : > { %v1598_v38 = vmul.f32 %v11185_v32, %v1581_v16  ;;  %v1599_v22 = vmul.f32 %v3983_v9, %v1581_v16  ;;  %v1600_v34 = vmul.f32 %v11186_v37, %v1581_v16  ;;  %v1601_v5 = vmul.f32 %v3984_v59, %v1581_v16  ;;  %v3985_v8 = vld [vmem:[%s4698_s12 + $0xb9] sm:$0x3f]  ;;  %v3986_v33 = vld [vmem:[%s4698_s12 + $0xc9] sm:$0x3f]  ;;  %v6779_v32 = vld [vmem:[%s4698_s12 + $0xe1] sm:$0xff] }
 0x13e   : > { %v1602_v17 = vmul.f32 %v11187_v14, %v1581_v16  ;;  %v1603_v25 = vmul.f32 %v3985_v8, %v1581_v16  ;;  %v11188_v36 = vld [vmem:[#allocation15_spill] sm:$0xff]  ;;  %v1605_v46 = vmul.f32 %v3986_v33, %v1581_v16  ;;  %v11189_v54 = vld [vmem:[#allocation45_spill] sm:$0xff]  ;;  %11190 = vst [vmem:[#allocation28_spill] sm:$0xff] %v6779_v32  ;;  %v1608_v9 = vmul.f32 %v6779_v32, %v1581_v16 }
 0x13f   : > { %v1604_v7 = vmul.f32 %v11188_v36, %v1581_v16  ;;  %v1606_v0 = vmul.f32 %v11189_v54, %v1581_v16  ;;  %v3987_v11 = vld [vmem:[%s4698_s12 + $0xd9] sm:$0x3f]  ;;  %v3989_v52 = vld [vmem:[%s4698_s12 + $0xe9] sm:$0x3f]  ;;  %v6784_v59 = vadd.f32 %v1582_v60, %v6657_v44  ;;  %v6787_v14 = vadd.f32 %v1583_v15, %v6660_v53 }
 0x140   : > { %v1607_v24 = vmul.f32 %v3987_v11, %v1581_v16  ;;  %v1609_v37 = vmul.f32 %v3989_v52, %v1581_v16  ;;  %v6790_v8 = vadd.f32 %v1584_v31, %v6663_v55  ;;  %v6793_v33 = vadd.f32 %v1585_v2, %v6668_v43  ;;  %v11192_v52 = vld [vmem:[#allocation19_spill] sm:$0xff]  ;;  %v6920_v32 = vld [vmem:[%s4698_s12 + $0xe2] sm:$0xff] }
 0x141   : > { %v6796_v11 = vadd.f32 %v1586_v57, %v6671_v58  ;;  %v6799_v54 = vadd.f32 %v1587_v19, %v6674_v13  ;;  %v6802_v16 = vadd.f32 %v1588_v48, %v6677_v21  ;;  %v6805_v44 = vadd.f32 %v1589_v45, %v6680_v49  ;;  %v11193_v60 = vld [vmem:[#allocation49_spill] sm:$0xff]  ;;  %v11197_v19 = vld [vmem:[#allocation51_spill] sm:$0xff]  ;;  %v3993_v45 = vld [vmem:[%s4698_s12 + $0x4a] sm:$0x3f]  ;;  %11207 = vst [vmem:[#allocation20_spill] sm:$0xff] %v6920_v32 }
 0x142   : > { %v6808_v53 = vadd.f32 %v1590_v23, %v6683_v27  ;;  %v6811_v55 = vadd.f32 %v1591_v39, %v6686_v18  ;;  %v6814_v43 = vadd.f32 %v1592_v26, %v6689_v20  ;;  %v6817_v58 = vadd.f32 %v1593_v56, %v6692_v12  ;;  %v11198_v39 = vld [vmem:[#allocation52_spill] sm:$0xff] }
 0x143   : > { %v6820_v13 = vadd.f32 %v1594_v61, %v6695_v47  ;;  %v6823_v21 = vadd.f32 %v1595_v42, %v6698_v50  ;;  %v6826_v49 = vadd.f32 %v1596_v51, %v6701_v1  ;;  %v6829_v27 = vadd.f32 %v1597_v63, %v6704_v62  ;;  %v3994_v56 = vld [vmem:[%s4698_s12 + $0x5a] sm:$0x3f]  ;;  %v11199_v61 = vld [vmem:[#allocation53_spill] sm:$0xff]  ;;  %v3995_v51 = vld [vmem:[%s4698_s12 + $0x6a] sm:$0x3f] }
 0x144   : > { %v6832_v18 = vadd.f32 %v1598_v38, %v6707_v35  ;;  %v6835_v20 = vadd.f32 %v1599_v22, %v6710_v29  ;;  %v6838_v12 = vadd.f32 %v1600_v34, %v6713_v10  ;;  %v6841_v47 = vadd.f32 %v1601_v5, %v6716_v3  ;;  %v11191_v3 = vld [vmem:[#allocation18_spill] sm:$0xff]  ;;  %v11201_v5 = vld [vmem:[#allocation55_spill] sm:$0xff] }
 0x145   : > { %v6844_v50 = vadd.f32 %v1602_v17, %v6719_v4  ;;  %v6847_v1 = vadd.f32 %v1603_v25, %v6722_v28  ;;  %v6850_v62 = vadd.f32 %v1604_v7, %v6726_v40  ;;  %v6853_v35 = vadd.f32 %v1605_v46, %v6729_v30  ;;  %v11194_v40 = vld [vmem:[#allocation46_spill] sm:$0xff]  ;;  %v3990_v7 = vld [vmem:[%s4698_s12 + $0x1a] sm:$0x3f] }
 0x146   : > { %v6856_v29 = vadd.f32 %v1606_v0, %v6732_v41  ;;  %v6859_v10 = vadd.f32 %v1607_v24, %v6735_v6  ;;  %v6862_v4 = vadd.f32 %v1608_v9, %v11191_v3  ;;  %v6865_v28 = vadd.f32 %v1609_v37, %v11192_v52  ;;  %v11195_v41 = vld [vmem:[#allocation47_spill] sm:$0xff]  ;;  %v3991_v6 = vld [vmem:[%s4698_s12 + $0x2a] sm:$0x3f]  ;;  %v3992_v25 = vld [vmem:[%s4698_s12 + $0x3a] sm:$0x3f] }
 0x147   : > { %v1640_v15 = vmul.f32 %v11194_v40, %v11193_v60  ;;  %v1641_v30 = vmul.f32 %v3990_v7, %v11193_v60  ;;  %v1642_v31 = vmul.f32 %v11195_v41, %v11193_v60  ;;  %v1643_v24 = vmul.f32 %v3991_v6, %v11193_v60  ;;  %v11196_v46 = vld [vmem:[#allocation50_spill] sm:$0xff]  ;;  %v3996_v37 = vld [vmem:[%s4698_s12 + $0x7a] sm:$0x3f] }
 0x148   : > { %v1644_v2 = vmul.f32 %v11196_v46, %v11193_v60  ;;  %v1645_v57 = vmul.f32 %v3992_v25, %v11193_v60  ;;  %v1646_v48 = vmul.f32 %v11197_v19, %v11193_v60  ;;  %v1647_v23 = vmul.f32 %v3993_v45, %v11193_v60  ;;  %v11200_v38 = vld [vmem:[#allocation54_spill] sm:$0xff]  ;;  %v11202_v52 = vld [vmem:[#allocation56_spill] sm:$0xff]  ;;  %v11203_v25 = vld [vmem:[#allocation57_spill] sm:$0xff] }
 0x149   : > { %v1648_v26 = vmul.f32 %v11198_v39, %v11193_v60  ;;  %v1649_v17 = vmul.f32 %v3994_v56, %v11193_v60  ;;  %v1650_v42 = vmul.f32 %v11199_v61, %v11193_v60  ;;  %v1651_v63 = vmul.f32 %v3995_v51, %v11193_v60  ;;  %v3997_v9 = vld [vmem:[%s4698_s12 + $0x8a] sm:$0x3f]  ;;  %v3998_v7 = vld [vmem:[%s4698_s12 + $0x9a] sm:$0x3f]  ;;  %v11205_v61 = vld [vmem:[#allocation33_spill] sm:$0xff] }
 0x14a   : > { %v1652_v22 = vmul.f32 %v11200_v38, %v11193_v60  ;;  %v1653_v34 = vmul.f32 %v3996_v37, %v11193_v60  ;;  %v1654_v0 = vmul.f32 %v11201_v5, %v11193_v60  ;;  %v1655_v3 = vmul.f32 %v3997_v9, %v11193_v60  ;;  %v3999_v56 = vld [vmem:[%s4698_s12 + $0xaa] sm:$0x3f]  ;;  %v4000_v38 = vld [vmem:[%s4698_s12 + $0xba] sm:$0x3f] }
 0x14b   : > { %v1656_v40 = vmul.f32 %v11202_v52, %v11193_v60  ;;  %v1657_v6 = vmul.f32 %v3998_v7, %v11193_v60  ;;  %v1658_v45 = vmul.f32 %v11203_v25, %v11193_v60  ;;  %v1659_v51 = vmul.f32 %v3999_v56, %v11193_v60  ;;  %v11204_v37 = vld [vmem:[#allocation58_spill] sm:$0xff]  ;;  %v4002_v41 = vld [vmem:[%s4698_s12 + $0xda] sm:$0x3f] }
 0x14c   : > { %v1660_v5 = vmul.f32 %v11204_v37, %v11193_v60  ;;  %v1661_v9 = vmul.f32 %v4000_v38, %v11193_v60  ;;  %v1662_v39 = vmul.f32 %v11205_v61, %v11193_v60  ;;  %v4001_v52 = vld [vmem:[%s4698_s12 + $0xca] sm:$0x3f]  ;;  %v1665_v25 = vmul.f32 %v4002_v41, %v11193_v60 }
 0x14d   : > { %v1663_v19 = vmul.f32 %v4001_v52, %v11193_v60  ;;  %v11206_v7 = vld [vmem:[#allocation14_spill] sm:$0xff]  ;;  %v1666_v56 = vmul.f32 %v6920_v32, %v11193_v60  ;;  %v6927_v36 = vadd.f32 %v1640_v15, %v6784_v59  ;;  %v6930_v61 = vadd.f32 %v1641_v30, %v6787_v14 }
 0x14e   : > { %v1664_v46 = vmul.f32 %v11206_v7, %v11193_v60  ;;  %v4004_v37 = vld [vmem:[%s4698_s12 + $0xea] sm:$0x3f]  ;;  %v6933_v52 = vadd.f32 %v1642_v31, %v6790_v8  ;;  %v6936_v7 = vadd.f32 %v1643_v24, %v6793_v33  ;;  %v6939_v41 = vadd.f32 %v1644_v2, %v6796_v11 }
 0x14f   : > { %v1667_v38 = vmul.f32 %v4004_v37, %v11193_v60  ;;  %v6942_v32 = vadd.f32 %v1645_v57, %v6799_v54  ;;  %v6945_v60 = vadd.f32 %v1646_v48, %v6802_v16  ;;  %v6948_v59 = vadd.f32 %v1647_v23, %v6805_v44  ;;  %v4005_v30 = vld [vmem:[%s4698_s12 + $0x28] sm:$0x3f]  ;;  %v11212_v57 = vld [vmem:[#allocation24_spill] sm:$0xff] }
 0x150   : > { %v6951_v14 = vadd.f32 %v1648_v26, %v6808_v53  ;;  %v6954_v8 = vadd.f32 %v1649_v17, %v6811_v55  ;;  %v6957_v33 = vadd.f32 %v1650_v42, %v6814_v43  ;;  %v6960_v11 = vadd.f32 %v1651_v63, %v6817_v58  ;;  %v4008_v48 = vld [vmem:[%s4698_s12 + $0x58] sm:$0x3f]  ;;  %v4009_v17 = vld [vmem:[%s4698_s12 + $0x68] sm:$0x3f] }
 0x151   : > { %v6963_v54 = vadd.f32 %v1652_v22, %v6820_v13  ;;  %v6966_v16 = vadd.f32 %v1653_v34, %v6823_v21  ;;  %v6969_v44 = vadd.f32 %v1654_v0, %v6826_v49  ;;  %v6972_v53 = vadd.f32 %v1655_v3, %v6829_v27  ;;  %v11214_v63 = vld [vmem:[#allocation60_spill] sm:$0xff]  ;;  %v11215_v0 = vld [vmem:[#allocation35_spill] sm:$0xff] }
 0x152   : > { %v6975_v55 = vadd.f32 %v1656_v40, %v6832_v18  ;;  %v6978_v43 = vadd.f32 %v1657_v6, %v6835_v20  ;;  %v6981_v58 = vadd.f32 %v1658_v45, %v6838_v12  ;;  %v6984_v13 = vadd.f32 %v1659_v51, %v6841_v47  ;;  %v4010_v34 = vld [vmem:[%s4698_s12 + $0x78] sm:$0x3f]  ;;  %v4011_v40 = vld [vmem:[%s4698_s12 + $0x88] sm:$0x3f] }
 0x153   : > { %v6987_v21 = vadd.f32 %v1660_v5, %v6844_v50  ;;  %v6990_v49 = vadd.f32 %v1661_v9, %v6847_v1  ;;  %v6993_v27 = vadd.f32 %v1662_v39, %v6850_v62  ;;  %v6996_v18 = vadd.f32 %v1663_v19, %v6853_v35  ;;  %v11208_v1 = vld [vmem:[#allocation27_spill] sm:$0xff]  ;;  %v11209_v62 = vld [vmem:[#allocation21_spill] sm:$0xff]  ;;  %v11217_v9 = vld [vmem:[#allocation26_spill] sm:$0xff] }
 0x154   : > { %v6999_v20 = vadd.f32 %v1664_v46, %v6856_v29  ;;  %v7002_v12 = vadd.f32 %v1665_v25, %v6859_v10  ;;  %v7005_v47 = vadd.f32 %v1666_v56, %v6862_v4  ;;  %v7008_v50 = vadd.f32 %v1667_v38, %v6865_v28  ;;  %v11210_v29 = vld [vmem:[#allocation22_spill] sm:$0xff]  ;;  %v4006_v10 = vld [vmem:[%s4698_s12 + $0x38] sm:$0x3f]  ;;  %v11213_v39 = vld [vmem:[#allocation25_spill] sm:$0xff] }
 0x155   : > { %v1698_v15 = vmul.f32 %v11209_v62, %v11208_v1  ;;  %v1699_v35 = vmul.f32 %v4005_v30, %v11208_v1  ;;  %v1700_v31 = vmul.f32 %v11210_v29, %v11208_v1  ;;  %v1701_v24 = vmul.f32 %v4006_v10, %v11208_v1  ;;  %v11211_v4 = vld [vmem:[#allocation23_spill] sm:$0xff]  ;;  %v4007_v28 = vld [vmem:[%s4698_s12 + $0x48] sm:$0x3f]  ;;  %v11216_v25 = vld [vmem:[#allocation36_spill] sm:$0xff] }
 0x156   : > { %v1702_v46 = vmul.f32 %v11211_v4, %v11208_v1  ;;  %v1703_v2 = vmul.f32 %v4007_v28, %v11208_v1  ;;  %v1704_v19 = vmul.f32 %v11212_v57, %v11208_v1  ;;  %v1705_v23 = vmul.f32 %v4008_v48, %v11208_v1  ;;  %v4012_v51 = vld [vmem:[%s4698_s12 + $0x98] sm:$0x3f]  ;;  %v4013_v38 = vld [vmem:[%s4698_s12 + $0xa8] sm:$0x3f] }
 0x157   : > { %v1706_v26 = vmul.f32 %v11213_v39, %v11208_v1  ;;  %v1707_v42 = vmul.f32 %v4009_v17, %v11208_v1  ;;  %v1708_v22 = vmul.f32 %v11214_v63, %v11208_v1  ;;  %v1709_v5 = vmul.f32 %v4010_v34, %v11208_v1  ;;  %v11218_v30 = vld [vmem:[#allocation13_spill] sm:$0xff]  ;;  %v4014_v10 = vld [vmem:[%s4698_s12 + $0xb8] sm:$0x3f] }
 0x158   : > { %v1710_v3 = vmul.f32 %v11215_v0, %v11208_v1  ;;  %v1711_v6 = vmul.f32 %v4011_v40, %v11208_v1  ;;  %v1712_v45 = vmul.f32 %v11216_v25, %v11208_v1  ;;  %v1713_v37 = vmul.f32 %v4012_v51, %v11208_v1  ;;  %v11219_v28 = vld [vmem:[#allocation48_spill] sm:$0xff]  ;;  %v4015_v48 = vld [vmem:[%s4698_s12 + $0xc8] sm:$0x3f] }
 0x159   : > { %v1714_v56 = vmul.f32 %v11217_v9, %v11208_v1  ;;  %v1715_v62 = vmul.f32 %v4013_v38, %v11208_v1  ;;  %v1716_v29 = vmul.f32 %v11218_v30, %v11208_v1  ;;  %v1717_v4 = vmul.f32 %v4014_v10, %v11208_v1  ;;  %v11220_v17 = vld [vmem:[#allocation44_spill] sm:$0xff]  ;;  %v11221_v40 = vld [vmem:[#allocation17_spill] sm:$0xff]  ;;  %v4018_v38 = vld [vmem:[%s4698_s12 + $0xf0] sm:$0xff] }
 0x15a   : > { %v1718_v57 = vmul.f32 %v11219_v28, %v11208_v1  ;;  %v1719_v39 = vmul.f32 %v4015_v48, %v11208_v1  ;;  %v1720_v63 = vmul.f32 %v11220_v17, %v11208_v1  ;;  %v4016_v34 = vld [vmem:[%s4698_s12 + $0xd8] sm:$0x3f]  ;;  %v1722_v25 = vmul.f32 %v11221_v40, %v11208_v1  ;;  %v4017_v51 = vld [vmem:[%s4698_s12 + $0xe8] sm:$0x3f] }
 0x15b   : > { %v1721_v0 = vmul.f32 %v4016_v34, %v11208_v1  ;;  %v1723_v9 = vmul.f32 %v4017_v51, %v11208_v1  ;;  %v1724_v30 = vmul.f32 %v4018_v38, %v11208_v1  ;;  %v4019_v10 = vld [vmem:[%s4698_s12 + $0xf8] sm:$0x3f]  ;;  %v7067_v48 = vadd.f32 %v1698_v15, %v6927_v36 }
 0x15c   : > { %v1725_v28 = vmul.f32 %v4019_v10, %v11208_v1  ;;  %v7070_v17 = vadd.f32 %v1699_v35, %v6930_v61  ;;  %v7073_v34 = vadd.f32 %v1700_v31, %v6933_v52  ;;  %v7076_v40 = vadd.f32 %v1701_v24, %v6936_v7  ;;  %v4020_v35 = vld [vmem:[%s4698_s12 + $0x29] sm:$0x3f] }
 0x15d   : > { %v7079_v51 = vadd.f32 %v1702_v46, %v6939_v41  ;;  %v7082_v38 = vadd.f32 %v1703_v2, %v6942_v32  ;;  %v7085_v1 = vadd.f32 %v1704_v19, %v6945_v60  ;;  %v7088_v36 = vadd.f32 %v1705_v23, %v6948_v59  ;;  %v11226_v19 = vld [vmem:[#allocation38_spill] sm:$0xff] }
 0x15e   : > { %v7091_v61 = vadd.f32 %v1706_v26, %v6951_v14  ;;  %v7094_v52 = vadd.f32 %v1707_v42, %v6954_v8  ;;  %v7097_v7 = vadd.f32 %v1708_v22, %v6957_v33  ;;  %v7100_v41 = vadd.f32 %v1709_v5, %v6960_v11  ;;  %v4023_v26 = vld [vmem:[%s4698_s12 + $0x59] sm:$0x3f] }
 0x15f   : > { %v7103_v32 = vadd.f32 %v1710_v3, %v6963_v54  ;;  %v7106_v60 = vadd.f32 %v1711_v6, %v6966_v16  ;;  %v7109_v59 = vadd.f32 %v1712_v45, %v6969_v44  ;;  %v7112_v14 = vadd.f32 %v1713_v37, %v6972_v53  ;;  %v11227_v22 = vld [vmem:[#allocation39_spill] sm:$0xff]  ;;  %v4024_v3 = vld [vmem:[%s4698_s12 + $0x69] sm:$0x3f]  ;;  %v11228_v45 = vld [vmem:[#allocation40_spill] sm:$0xff] }
 0x160   : > { %v7115_v8 = vadd.f32 %v1714_v56, %v6975_v55  ;;  %v7118_v33 = vadd.f32 %v1715_v62, %v6978_v43  ;;  %v7121_v11 = vadd.f32 %v1716_v29, %v6981_v58  ;;  %v7124_v54 = vadd.f32 %v1717_v4, %v6984_v13  ;;  %v4025_v56 = vld [vmem:[%s4698_s12 + $0x79] sm:$0x3f]  ;;  %v11229_v29 = vld [vmem:[#allocation41_spill] sm:$0xff] }
 0x161   : > { %v7127_v16 = vadd.f32 %v1718_v57, %v6987_v21  ;;  %v7130_v44 = vadd.f32 %v1719_v39, %v6990_v49  ;;  %v7133_v53 = vadd.f32 %v1720_v63, %v6993_v27  ;;  %v7136_v55 = vadd.f32 %v1721_v0, %v6996_v18  ;;  %v11222_v49 = vld [vmem:[#allocation59_spill] sm:$0xff]  ;;  %v11223_v27 = vld [vmem:[#allocation30_spill] sm:$0xff] }
 0x162   : > { %v7139_v43 = vadd.f32 %v1722_v25, %v6999_v20  ;;  %v7142_v58 = vadd.f32 %v1723_v9, %v7002_v12  ;;  %v7145_v13 = vadd.f32 %v1724_v30, %v7005_v47  ;;  %v7148_v21 = vadd.f32 %v1725_v28, %v7008_v50  ;;  %v11224_v20 = vld [vmem:[#allocation34_spill] sm:$0xff]  ;;  %v4021_v12 = vld [vmem:[%s4698_s12 + $0x39] sm:$0x3f]  ;;  %v11225_v47 = vld [vmem:[#allocation37_spill] sm:$0xff] }
 0x163   : > { %v1756_v15 = vmul.f32 %v11223_v27, %v11222_v49  ;;  %v1757_v18 = vmul.f32 %v4020_v35, %v11222_v49  ;;  %v1758_v31 = vmul.f32 %v11224_v20, %v11222_v49  ;;  %v1759_v24 = vmul.f32 %v4021_v12, %v11222_v49  ;;  %v4022_v50 = vld [vmem:[%s4698_s12 + $0x49] sm:$0x3f]  ;;  %v4027_v25 = vld [vmem:[%s4698_s12 + $0x99] sm:$0x3f] }
 0x164   : > { %v1760_v46 = vmul.f32 %v11225_v47, %v11222_v49  ;;  %v1761_v2 = vmul.f32 %v4022_v50, %v11222_v49  ;;  %v1762_v23 = vmul.f32 %v11226_v19, %v11222_v49  ;;  %v1763_v42 = vmul.f32 %v4023_v26, %v11222_v49  ;;  %v4026_v57 = vld [vmem:[%s4698_s12 + $0x89] sm:$0x3f]  ;;  %v11231_v30 = vld [vmem:[#allocation43_spill] sm:$0xff] }
 0x165   : > { %v1764_v5 = vmul.f32 %v11227_v22, %v11222_v49  ;;  %v1765_v6 = vmul.f32 %v4024_v3, %v11222_v49  ;;  %v1766_v37 = vmul.f32 %v11228_v45, %v11222_v49  ;;  %v1767_v62 = vmul.f32 %v4025_v56, %v11222_v49  ;;  %v11230_v63 = vld [vmem:[#allocation42_spill] sm:$0xff]  ;;  %v11232_v35 = vld [vmem:[#allocation31_spill] sm:$0xff]  ;;  %v11234_v3 = vld [vmem:[#allocation45_spill] sm:$0xff] }
 0x166   : > { %v1768_v4 = vmul.f32 %v11229_v29, %v11222_v49  ;;  %v1769_v39 = vmul.f32 %v4026_v57, %v11222_v49  ;;  %v1770_v0 = vmul.f32 %v11230_v63, %v11222_v49  ;;  %v1771_v9 = vmul.f32 %v4027_v25, %v11222_v49  ;;  %v4028_v28 = vld [vmem:[%s4698_s12 + $0xa9] sm:$0x3f]  ;;  %v4029_v12 = vld [vmem:[%s4698_s12 + $0xb9] sm:$0x3f] }
 0x167   : > { %v1772_v10 = vmul.f32 %v11231_v30, %v11222_v49  ;;  %v1773_v27 = vmul.f32 %v4028_v28, %v11222_v49  ;;  %v1774_v20 = vmul.f32 %v11232_v35, %v11222_v49  ;;  %v1775_v47 = vmul.f32 %v4029_v12, %v11222_v49  ;;  %v11233_v50 = vld [vmem:[#allocation15_spill] sm:$0xff]  ;;  %v4030_v26 = vld [vmem:[%s4698_s12 + $0xc9] sm:$0x3f]  ;;  %v11235_v57 = vld [vmem:[#allocation28_spill] sm:$0xff] }
 0x168   : > { %v1776_v19 = vmul.f32 %v11233_v50, %v11222_v49  ;;  %v1777_v22 = vmul.f32 %v4030_v26, %v11222_v49  ;;  %v1778_v45 = vmul.f32 %v11234_v3, %v11222_v49  ;;  %v4031_v56 = vld [vmem:[%s4698_s12 + $0xd9] sm:$0x3f]  ;;  %v1780_v63 = vmul.f32 %v11235_v57, %v11222_v49  ;;  %v4032_v25 = vld [vmem:[%s4698_s12 + $0xe9] sm:$0x3f]  ;;  %v4033_v28 = vld [vmem:[%s4698_s12 + $0xf1] sm:$0xff] }
 0x169   : > { %v1779_v29 = vmul.f32 %v4031_v56, %v11222_v49  ;;  %v1781_v30 = vmul.f32 %v4032_v25, %v11222_v49  ;;  %v1782_v35 = vmul.f32 %v4033_v28, %v11222_v49  ;;  %v4034_v12 = vld [vmem:[%s4698_s12 + $0xf9] sm:$0x3f]  ;;  %v7211_v26 = vadd.f32 %v1756_v15, %v7067_v48 }
 0x16a   : > { %v1783_v50 = vmul.f32 %v4034_v12, %v11222_v49  ;;  %v7214_v3 = vadd.f32 %v1757_v18, %v7070_v17  ;;  %v7217_v56 = vadd.f32 %v1758_v31, %v7073_v34  ;;  %v7220_v57 = vadd.f32 %v1759_v24, %v7076_v40  ;;  %v11240_v15 = vld [vmem:[#allocation47_spill] sm:$0xff]  ;;  %v11241_v24 = vld [vmem:[#allocation50_spill] sm:$0xff]  ;;  %v11248_v12 = vld [vmem:[#allocation57_spill] sm:$0xff] }
 0x16b   : > { %v7223_v25 = vadd.f32 %v1760_v46, %v7079_v51  ;;  %v7226_v28 = vadd.f32 %v1761_v2, %v7082_v38  ;;  %v7229_v49 = vadd.f32 %v1762_v23, %v7085_v1  ;;  %v7232_v48 = vadd.f32 %v1763_v42, %v7088_v36  ;;  %v4036_v46 = vld [vmem:[%s4698_s12 + $0x3a] sm:$0x3f]  ;;  %v11242_v2 = vld [vmem:[#allocation51_spill] sm:$0xff] }
 0x16c   : > { %v7235_v17 = vadd.f32 %v1764_v5, %v7091_v61  ;;  %v7238_v34 = vadd.f32 %v1765_v6, %v7094_v52  ;;  %v7241_v40 = vadd.f32 %v1766_v37, %v7097_v7  ;;  %v7244_v51 = vadd.f32 %v1767_v62, %v7100_v41  ;;  %v11243_v5 = vld [vmem:[#allocation52_spill] sm:$0xff]  ;;  %v11244_v62 = vld [vmem:[#allocation53_spill] sm:$0xff] }
 0x16d   : > { %v7247_v38 = vadd.f32 %v1768_v4, %v7103_v32  ;;  %v7250_v1 = vadd.f32 %v1769_v39, %v7106_v60  ;;  %v7253_v36 = vadd.f32 %v1770_v0, %v7109_v59  ;;  %v7256_v61 = vadd.f32 %v1771_v9, %v7112_v14  ;;  %v4038_v6 = vld [vmem:[%s4698_s12 + $0x5a] sm:$0x3f]  ;;  %v4039_v39 = vld [vmem:[%s4698_s12 + $0x6a] sm:$0x3f] }
 0x16e   : > { %v7259_v52 = vadd.f32 %v1772_v10, %v7115_v8  ;;  %v7262_v7 = vadd.f32 %v1773_v27, %v7118_v33  ;;  %v7265_v41 = vadd.f32 %v1774_v20, %v7121_v11  ;;  %v7268_v32 = vadd.f32 %v1775_v47, %v7124_v54  ;;  %v11245_v9 = vld [vmem:[#allocation54_spill] sm:$0xff]  ;;  %v4040_v27 = vld [vmem:[%s4698_s12 + $0x7a] sm:$0x3f]  ;;  %v11246_v47 = vld [vmem:[#allocation55_spill] sm:$0xff] }
 0x16f   : > { %v7271_v60 = vadd.f32 %v1776_v19, %v7127_v16  ;;  %v7274_v59 = vadd.f32 %v1777_v22, %v7130_v44  ;;  %v1813_v14 = vstv %s7188_s11  ;;  %v7278_v8 = vadd.f32 %v1778_v45, %v7133_v53  ;;  %v4041_v22 = vld [vmem:[%s4698_s12 + $0x8a] sm:$0x3f]  ;;  %s9889_s11 = sld [smem:[#allocation7 + $0x3]] }
 0x170   : > { %v7281_v33 = vadd.f32 %v1779_v29, %v7136_v55  ;;  %v7284_v11 = vadd.f32 %v1780_v63, %v7139_v43  ;;  %v7287_v54 = vadd.f32 %v1781_v30, %v7142_v58  ;;  %v7290_v16 = vadd.f32 %v1782_v35, %v7145_v13  ;;  %v4035_v55 = vld [vmem:[%s4698_s12 + $0x2a] sm:$0x3f]  ;;  %v11247_v29 = vld [vmem:[#allocation56_spill] sm:$0xff] }
 0x171   : > { %v7293_v44 = vadd.f32 %v1783_v50, %v7148_v21  ;;  %v1814_v53 = vmul.f32 %v11240_v15, %v1813_v14  ;;  %v7297_v18 = vstv %s7206_s7  ;;  %v1815_v31 = vmul.f32 %v4035_v55, %v1813_v14  ;;  %v4037_v13 = vld [vmem:[%s4698_s12 + $0x4a] sm:$0x3f]  ;;  %v4042_v30 = vld [vmem:[%s4698_s12 + $0x9a] sm:$0x3f] }
 0x172   : > { %11236 = vst [vmem:[#allocation29_spill] sm:$0xff] %v7284_v11  ;;  %11237 = vst [vmem:[#allocation18_spill] sm:$0xff] %v7287_v54  ;;  %v1816_v43 = vmul.f32 %v11241_v24, %v1813_v14  ;;  %v1817_v58 = vmul.f32 %v4036_v46, %v1813_v14  ;;  %v1818_v23 = vmul.f32 %v11242_v2, %v1813_v14  ;;  %v4043_v15 = vld [vmem:[%s4698_s12 + $0xaa] sm:$0x3f]  ;;  %v4044_v2 = vld [vmem:[%s4698_s12 + $0xba] sm:$0x3f] }
 0x173   : > { %11238 = vst [vmem:[#allocation19_spill] sm:$0xff] %v7290_v16  ;;  %11239 = vst [vmem:[#allocation49_spill] sm:$0xff] %v7293_v44  ;;  %v1819_v42 = vmul.f32 %v4037_v13, %v1813_v14  ;;  %v1820_v21 = vmul.f32 %v11243_v5, %v1813_v14  ;;  %v1821_v37 = vmul.f32 %v4038_v6, %v1813_v14  ;;  %v11249_v24 = vld [vmem:[#allocation58_spill] sm:$0xff]  ;;  %v11250_v5 = vld [vmem:[#allocation33_spill] sm:$0xff] }
 0x174   : > { %v1822_v4 = vmul.f32 %v11244_v62, %v1813_v14  ;;  %v1823_v0 = vmul.f32 %v4039_v39, %v1813_v14  ;;  %v1824_v10 = vmul.f32 %v11245_v9, %v1813_v14  ;;  %v1825_v20 = vmul.f32 %v4040_v27, %v1813_v14  ;;  %v4045_v62 = vld [vmem:[%s4698_s12 + $0xca] sm:$0x3f]  ;;  %v4049_v11 = vld [vmem:[%s4698_s12 + $0xfa] sm:$0x3f] }
 0x175   : > { %v1826_v19 = vmul.f32 %v11246_v47, %v1813_v14  ;;  %v1827_v45 = vmul.f32 %v4041_v22, %v1813_v14  ;;  %v1828_v63 = vmul.f32 %v11247_v29, %v1813_v14  ;;  %v1829_v35 = vmul.f32 %v4042_v30, %v1813_v14  ;;  %v11251_v9 = vld [vmem:[#allocation14_spill] sm:$0xff]  ;;  %v4046_v47 = vld [vmem:[%s4698_s12 + $0xda] sm:$0x3f] }
 0x176   : > { %v1830_v50 = vmul.f32 %v11248_v12, %v1813_v14  ;;  %v1831_v55 = vmul.f32 %v4043_v15, %v1813_v14  ;;  %v1832_v46 = vmul.f32 %v11249_v24, %v1813_v14  ;;  %v1833_v13 = vmul.f32 %v4044_v2, %v1813_v14  ;;  %v11252_v29 = vld [vmem:[#allocation20_spill] sm:$0xff]  ;;  %v4047_v44 = vld [vmem:[%s4698_s12 + $0xea] sm:$0x3f]  ;;  %v4048_v12 = vld [vmem:[%s4698_s12 + $0xf2] sm:$0xff] }
 0x177   : > { %v1834_v6 = vmul.f32 %v11250_v5, %v1813_v14  ;;  %v1835_v39 = vmul.f32 %v4045_v62, %v1813_v14  ;;  %v1836_v27 = vmul.f32 %v11251_v9, %v1813_v14  ;;  %v1837_v22 = vmul.f32 %v4046_v47, %v1813_v14 }
 0x178   : > { %v1838_v30 = vmul.f32 %v11252_v29, %v1813_v14  ;;  %v1839_v16 = vmul.f32 %v4047_v44, %v1813_v14  ;;  %v1840_v54 = vmul.f32 %v4048_v12, %v1813_v14  ;;  %v1841_v15 = vmul.f32 %v4049_v11, %v1813_v14 }
 0x179   : > { %v1842_v24 = vadd.f32 %v1814_v53, %v7211_v26  ;;  %v1843_v2 = vadd.f32 %v1815_v31, %v7214_v3  ;;  %v1844_v5 = vadd.f32 %v1816_v43, %v7217_v56  ;;  %v1845_v62 = vadd.f32 %v1817_v58, %v7220_v57  ;;  %v11254_v53 = vld [vmem:[#allocation18_spill] sm:$0xff] }
 0x17a   : > { %v1846_v9 = vadd.f32 %v1818_v23, %v7223_v25  ;;  %v1847_v47 = vadd.f32 %v1819_v42, %v7226_v28  ;;  %v1848_v29 = vadd.f32 %v1820_v21, %v7229_v49  ;;  %v1849_v44 = vadd.f32 %v1821_v37, %v7232_v48  ;;  %v11255_v58 = vld [vmem:[#allocation19_spill] sm:$0xff] }
 0x17b   : > { %v1850_v12 = vadd.f32 %v1822_v4, %v7235_v17  ;;  %v1851_v14 = vadd.f32 %v1823_v0, %v7238_v34  ;;  %v1852_v26 = vadd.f32 %v1824_v10, %v7241_v40  ;;  %v1853_v3 = vadd.f32 %v1825_v20, %v7244_v51  ;;  %v3707_v0 = vld [vmem:[%s10557_s3 + $0xe0] sm:$0xff] }
 0x17c   : > { %v1854_v56 = vadd.f32 %v1826_v19, %v7247_v38  ;;  %v1855_v57 = vadd.f32 %v1827_v45, %v7250_v1  ;;  %v1856_v25 = vadd.f32 %v1828_v63, %v7253_v36  ;;  %v1857_v28 = vadd.f32 %v1829_v35, %v7256_v61  ;;  %v11256_v10 = vld [vmem:[#allocation49_spill] sm:$0xff]  ;;  %v3709_v63 = vld [vmem:[%s10557_s3 + $0xf0] sm:$0xff]  ;;  %v3710_v35 = vld [vmem:[%s10557_s3 + $0xf8] sm:$0x3f] }
 0x17d   : > { %v1858_v49 = vadd.f32 %v1830_v50, %v7259_v52  ;;  %v1859_v48 = vadd.f32 %v1831_v55, %v7262_v7  ;;  %v1860_v17 = vadd.f32 %v1832_v46, %v7265_v41  ;;  %v7346_v34 = vadd.f32 %v1833_v13, %v7268_v32  ;;  %v11253_v32 = vld [vmem:[#allocation29_spill] sm:$0xff] }
 0x17e   : > { %v1872_v40 = vadd.f32 %v7297_v18, %v1842_v24  ;;  %v1873_v51 = vadd.f32 %v7297_v18, %v1843_v2  ;;  %v1874_v38 = vadd.f32 %v7297_v18, %v1844_v5  ;;  %v1875_v1 = vadd.f32 %v7297_v18, %v1845_v62  ;;  %v3712_v50 = vld [vmem:[%s10557_s3 + $0x108] sm:$0x3f]  ;;  %v3713_v2 = vld [vmem:[%s10557_s3 + $0x110] sm:$0xff] }
 0x17f   : > { %v1877_v36 = vadd.f32 %v7297_v18, %v1847_v47  ;;  %v7354_v61 = vadd.f32 %v1834_v6, %v7271_v60  ;;  %v7357_v52 = vadd.f32 %v1835_v39, %v7274_v59  ;;  %v7360_v7 = vadd.f32 %v1836_v27, %v7278_v8  ;;  %v3716_v5 = vld [vmem:[%s10557_s3 + $0x128] sm:$0x3f] }
 0x180   : > { %v7363_v41 = vadd.f32 %v1837_v22, %v7281_v33  ;;  %v7366_v11 = vadd.f32 %v1838_v30, %v11253_v32  ;;  %v7369_v31 = vadd.f32 %v1839_v16, %v11254_v53  ;;  %v1876_v43 = vadd.f32 %v7297_v18, %v1846_v9  ;;  %v3708_v33 = vld [vmem:[%s10557_s3 + $0xe8] sm:$0x3f]  ;;  %v3711_v30 = vld [vmem:[%s10557_s3 + $0x100] sm:$0xff] }
 0x181   : > { %v1879_v60 = vadd.f32 %v7297_v18, %v1849_v44  ;;  %v7374_v23 = vadd.f32 %v1840_v54, %v11255_v58  ;;  %v1878_v59 = vadd.f32 %v7297_v18, %v1848_v29  ;;  %v1881_v8 = vadd.f32 %v7297_v18, %v1851_v14  ;;  %v3717_v58 = vld [vmem:[%s10557_s3 + $0x130] sm:$0xff] }
 0x182   : > { %v1900_v42 = vmax.f32 %v1872_v40, 0.0  ;;  %v1901_v21 = vmax.f32 %v1873_v51, 0.0  ;;  %v1902_v37 = vmax.f32 %v1874_v38, 0.0  ;;  %v1903_v16 = vmax.f32 %v1875_v1, 0.0  ;;  %v3715_v38 = vld [vmem:[%s10557_s3 + $0x120] sm:$0xff] }
 0x183   : > { %v1905_v4 = vmax.f32 %v1877_v36, 0.0  ;;  %v7385_v54 = vadd.f32 %v1841_v15, %v11256_v10  ;;  %v1880_v20 = vadd.f32 %v7297_v18, %v1850_v12  ;;  %v1882_v19 = vadd.f32 %v7297_v18, %v1852_v26  ;;  %v3714_v15 = vld [vmem:[%s10557_s3 + $0x118] sm:$0x3f] }
 0x184   : > { %v1883_v45 = vadd.f32 %v7297_v18, %v1853_v3  ;;  %v1884_v55 = vadd.f32 %v7297_v18, %v1854_v56  ;;  %v1885_v46 = vadd.f32 %v7297_v18, %v1855_v57  ;;  %v1904_v13 = vmax.f32 %v1876_v43, 0.0  ;;  %v3722_v10 = vld [vmem:[%s10557_s3 + $0x158] sm:$0x3f] }
 0x185   : > { %v1907_v6 = vmax.f32 %v1879_v60, 0.0  ;;  %v7402_v39 = vadd.f32 %v7297_v18, %v1856_v25  ;;  %v1906_v27 = vmax.f32 %v1878_v59, 0.0  ;;  %v1909_v22 = vmax.f32 %v1881_v8, 0.0  ;;  %v3720_v59 = vld [vmem:[%s10557_s3 + $0x148] sm:$0x3f] }
 0x186   : > { %v1957_v24 = vmul.f32 %v3707_v0, %v1900_v42  ;;  %v1958_v62 = vmul.f32 %v3708_v33, %v1901_v21  ;;  %v1959_v9 = vmul.f32 %v3709_v63, %v1902_v37  ;;  %v1960_v47 = vmul.f32 %v3710_v35, %v1903_v16  ;;  %v3719_v0 = vld [vmem:[%s10557_s3 + $0x140] sm:$0xff] }
 0x187   : > { %v1962_v29 = vmul.f32 %v3712_v50, %v1905_v4  ;;  %v1887_v44 = vadd.f32 %v7297_v18, %v1857_v28  ;;  %v7418_v12 = vadd.f32 %v7297_v18, %v1858_v49  ;;  %v1889_v14 = vadd.f32 %v7297_v18, %v1859_v48  ;;  %v3718_v28 = vld [vmem:[%s10557_s3 + $0x138] sm:$0x3f] }
 0x188   : > { %v7422_v26 = vadd.f32 %v7297_v18, %v1860_v17  ;;  %v1908_v3 = vmax.f32 %v1880_v20, 0.0  ;;  %v1911_v56 = vmax.f32 %v1883_v45, 0.0  ;;  %v1961_v57 = vmul.f32 %v3711_v30, %v1904_v13  ;;  %v3724_v13 = vld [vmem:[%s10557_s3 + $0x168] sm:$0x3f] }
 0x189   : > { %v1964_v25 = vmul.f32 %v3714_v15, %v1907_v6  ;;  %v1910_v40 = vmax.f32 %v1882_v19, 0.0  ;;  %v1913_v51 = vmax.f32 %v1885_v46, 0.0  ;;  %v1963_v49 = vmul.f32 %v3713_v2, %v1906_v27  ;;  %v3721_v46 = vld [vmem:[%s10557_s3 + $0x150] sm:$0xff] }
 0x18a   : > { %v1966_v1 = vmul.f32 %v3716_v5, %v1909_v22  ;;  %v1985_v48 = vadd.f32 %v1959_v9, %v1957_v24  ;;  %v1998_v17 = vsel %vm1311_vm0, %v1958_v62, 0.0  ;;  %v1999_v36 = vsel %vm1311_vm0, %v1960_v47, 0.0  ;;  %v3726_v24 = vld [vmem:[%s10557_s3 + $0x178] sm:$0x3f] }
 0x18b   : > { %v2001_v32 = vsel %vm1311_vm0, %v1962_v29, 0.0  ;;  %v1891_v53 = vadd.f32 %v7297_v18, %v7346_v34  ;;  %v1912_v43 = vmax.f32 %v1884_v55, 0.0  ;;  %v1915_v60 = vmax.f32 %v1887_v44, 0.0  ;;  %v3723_v44 = vld [vmem:[%s10557_s3 + $0x160] sm:$0xff] }
 0x18c   : > { %v2000_v8 = vadd.f32 %v1999_v36, %v1998_v17  ;;  %v1965_v42 = vmul.f32 %v3715_v38, %v1908_v3  ;;  %v1968_v33 = vmul.f32 %v3718_v28, %v1911_v56  ;;  %v1986_v21 = vadd.f32 %v1985_v48, %v1961_v57  ;;  %v11258_v48 = vld [vmem:[#allocation32_spill] sm:$0xff]  ;;  %v3732_v36 = vld [vmem:[%s10557_s3 + $0x1a8] sm:$0x3f] }
 0x18d   : > { %v2003_v37 = vsel %vm1311_vm0, %v1964_v25, 0.0  ;;  %v7444_v16 = vadd.f32 %v7297_v18, %v7354_v61  ;;  %v1914_v34 = vmax.f32 %v7402_v39, 0.0  ;;  %v1917_v4 = vmax.f32 %v1889_v14, 0.0 }
 0x18e   : > { %v2002_v20 = vadd.f32 %v2001_v32, %v2000_v8  ;;  %v1967_v19 = vmul.f32 %v3717_v58, %v1910_v40  ;;  %v1970_v45 = vmul.f32 %v3720_v59, %v1913_v51  ;;  %v1987_v63 = vadd.f32 %v1986_v21, %v1963_v49  ;;  %v3730_v51 = vld [vmem:[%s10557_s3 + $0x198] sm:$0x3f] }
 0x18f   : > { %v2005_v35 = vsel %vm1311_vm0, %v1966_v1, 0.0  ;;  %v1893_v61 = vadd.f32 %v7297_v18, %v7357_v52  ;;  %v1895_v50 = vadd.f32 %v7297_v18, %v7363_v41  ;;  %v1919_v55 = vmax.f32 %v1891_v53, 0.0  ;;  %v11257_v1 = vld [vmem:[#allocation16_spill] sm:$0xff] }
 0x190   : > { %v2004_v6 = vadd.f32 %v2003_v37, %v2002_v20  ;;  %v1969_v39 = vmul.f32 %v3719_v0, %v1912_v43  ;;  %v1972_v27 = vmul.f32 %v3722_v10, %v1915_v60  ;;  %v1988_v22 = vadd.f32 %v1987_v63, %v1965_v42  ;;  %v3734_v32 = vld [vmem:[%s10557_s3 + $0x1b8] sm:$0x3f] }
 0x191   : > { %v2007_v30 = vsel %vm1311_vm0, %v1968_v33, 0.0  ;;  %v1897_v52 = vadd.f32 %v7297_v18, %v7369_v31  ;;  %v1899_v41 = vadd.f32 %v7297_v18, %v7385_v54  ;;  %v1916_v15 = vmax.f32 %v7418_v12, 0.0  ;;  %v3727_v33 = vld [vmem:[%s10557_s3 + $0x180] sm:$0xff] }
 0x192   : > { %v2006_v2 = vadd.f32 %v2005_v35, %v2004_v6  ;;  %v1971_v5 = vmul.f32 %v3721_v46, %v1914_v34  ;;  %v1974_v62 = vmul.f32 %v3724_v13, %v1917_v4  ;;  %v1989_v9 = vadd.f32 %v1988_v22, %v1967_v19  ;;  %v3729_v34 = vld [vmem:[%s10557_s3 + $0x190] sm:$0xff] }
 0x193   : > { %v2009_v47 = vsel %vm1311_vm0, %v1970_v45, 0.0  ;;  %v1894_v29 = vadd.f32 %v7297_v18, %v7360_v7  ;;  %v1896_v31 = vadd.f32 %v7297_v18, %v7366_v11  ;;  %v1898_v54 = vadd.f32 %v7297_v18, %v7374_v23  ;;  %v3728_v18 = vld [vmem:[%s10557_s3 + $0x188] sm:$0x3f]  ;;  %v3733_v4 = vld [vmem:[%s10557_s3 + $0x1b0] sm:$0xff] }
 0x194   : > { %v2008_v12 = vadd.f32 %v2007_v30, %v2006_v2  ;;  %v1921_v14 = vmax.f32 %v1893_v61, 0.0  ;;  %v1976_v3 = vmul.f32 %v3726_v24, %v1919_v55  ;;  %v1990_v56 = vadd.f32 %v1989_v9, %v1969_v39  ;;  %v4051_v24 = vld [vmem:[%s4698_s12 + $0x8] sm:$0x3f]  ;;  %v4053_v9 = vld [vmem:[%s4698_s12 + $0x18] sm:$0x3f] }
 0x195   : > { %v2011_v57 = vsel %vm1311_vm0, %v1972_v27, 0.0  ;;  %v1918_v7 = vmax.f32 %v7422_v26, 0.0  ;;  %v1923_v11 = vmax.f32 %v1895_v50, 0.0  ;;  %v1925_v25 = vmax.f32 %v1897_v52, 0.0  ;;  %v3725_v26 = vld [vmem:[%s10557_s3 + $0x170] sm:$0xff]  ;;  %v4050_v52 = vld [vmem:[%s4698_s12] sm:$0xff] }
 0x196   : > { %v2010_v23 = vadd.f32 %v2009_v47, %v2008_v12  ;;  %v1927_v40 = vmax.f32 %v1899_v41, 0.0  ;;  %v1973_v38 = vmul.f32 %v3723_v44, %v1916_v15  ;;  %v1991_v28 = vadd.f32 %v1990_v56, %v1971_v5  ;;  %v7551_v5 = vld [vmem:[%s4698_s12 + $0x10] sm:$0xff]  ;;  %v4087_v45 = vld [vmem:[%s4698_s12 + $0x49] sm:$0x3f] }
 0x197   : > { %v2013_v49 = vsel %vm1311_vm0, %v1974_v62, 0.0  ;;  %v7498_v17 = vadd.f32 %v11258_v48, %v11257_v1  ;;  %v1920_v43 = vmax.f32 %v7444_v16, 0.0  ;;  %v1922_v60 = vmax.f32 %v1894_v29, 0.0  ;;  %v3731_v16 = vld [vmem:[%s10557_s3 + $0x1a0] sm:$0xff]  ;;  %11260 = vst [vmem:[#allocation27_spill] sm:$0xff] %v7551_v5  ;;  %v7573_v12 = vld [vmem:[%s4698_s12 + $0x30] sm:$0xff] }
 0x198   : > { %v2012_v53 = vadd.f32 %v2011_v57, %v2010_v23  ;;  %v1978_v58 = vmul.f32 %v3728_v18, %v1921_v14  ;;  %v2015_v59 = vsel %vm1311_vm0, %v1976_v3, 0.0  ;;  %v1924_v8 = vmax.f32 %v1896_v31, 0.0  ;;  %v7562_v29 = vld [vmem:[%s4698_s12 + $0x20] sm:$0xff]  ;;  %11262 = vst [vmem:[#allocation22_spill] sm:$0xff] %v7573_v12  ;;  %v4057_v3 = vld [vmem:[%s4698_s12 + $0x38] sm:$0x3f] }
 0x199   : > { %11259 = vst [vmem:[#allocation46_spill] sm:$0xff] %v7498_v17  ;;  %v1926_v42 = vmax.f32 %v1898_v54, 0.0  ;;  %v1980_v21 = vmul.f32 %v3730_v51, %v1923_v11  ;;  %v1975_v0 = vmul.f32 %v3725_v26, %v1918_v7  ;;  %v1982_v10 = vmul.f32 %v3732_v36, %v1925_v25  ;;  %11261 = vst [vmem:[#allocation21_spill] sm:$0xff] %v7562_v29  ;;  %v4055_v54 = vld [vmem:[%s4698_s12 + $0x28] sm:$0x3f]  ;;  %v7584_v57 = vld [vmem:[%s4698_s12 + $0x40] sm:$0xff] }
 0x19a   : > { %v2014_v37 = vadd.f32 %v2013_v49, %v2012_v53  ;;  %v1984_v20 = vmul.f32 %v3734_v32, %v1927_v40  ;;  %v1992_v19 = vadd.f32 %v1991_v28, %v1973_v38  ;;  %v1977_v35 = vmul.f32 %v3727_v33, %v1920_v43  ;;  %11263 = vst [vmem:[#allocation23_spill] sm:$0xff] %v7584_v57  ;;  %v4059_v11 = vld [vmem:[%s4698_s12 + $0x48] sm:$0x3f]  ;;  %v7595_v18 = vld [vmem:[%s4698_s12 + $0x50] sm:$0xff]  ;;  %v4061_v40 = vld [vmem:[%s4698_s12 + $0x58] sm:$0x3f] }
 0x19b   : > { %v2017_v61 = vsel %vm1311_vm0, %v1978_v58, 0.0  ;;  %v7526_v50 = vstv %s7484_s26  ;;  %v7529_v55 = vstv %s7486_s27  ;;  %v1979_v46 = vmul.f32 %v3729_v34, %v1922_v60  ;;  %11264 = vst [vmem:[#allocation24_spill] sm:$0xff] %v7595_v18  ;;  %v7606_v28 = vld [vmem:[%s4698_s12 + $0x60] sm:$0xff]  ;;  %v4063_v1 = vld [vmem:[%s4698_s12 + $0x68] sm:$0x3f]  ;;  %s7756_s26 = sld [smem:[#allocation4 + $0x14]] }
 0x19c   : > { %v2016_v63 = vadd.f32 %v2015_v59, %v2014_v37  ;;  %v7531_v13 = vmul.f32 %v3731_v16, %v1924_v8  ;;  %v7533_v6 = vmul.f32 %v3733_v4, %v1926_v42  ;;  %v2019_v39 = vsel %vm1311_vm0, %v1980_v21, 0.0  ;;  %11265 = vst [vmem:[#allocation25_spill] sm:$0xff] %v7606_v28  ;;  %v7617_v26 = vld [vmem:[%s4698_s12 + $0x70] sm:$0xff]  ;;  %v4065_v53 = vld [vmem:[%s4698_s12 + $0x78] sm:$0x3f]  ;;  %v7628_v60 = vld [vmem:[%s4698_s12 + $0x80] sm:$0xff] }
 0x19d   : > { %v1993_v27 = vadd.f32 %v1992_v19, %v1975_v0  ;;  %v7537_v22 = vsel %vm1311_vm0, %v1982_v10, 0.0  ;;  %v7540_v30 = vsel %vm1311_vm0, %v1984_v20, 0.0  ;;  %v7544_v41 = vmul.f32 %v4050_v52, %v7526_v50  ;;  %11266 = vst [vmem:[#allocation60_spill] sm:$0xff] %v7617_v26  ;;  %11267 = vst [vmem:[#allocation35_spill] sm:$0xff] %v7628_v60  ;;  %v4067_v59 = vld [vmem:[%s4698_s12 + $0x88] sm:$0x3f] }
 0x19e   : > { %v2018_v15 = vadd.f32 %v2017_v61, %v2016_v63  ;;  %v7548_v2 = vmul.f32 %v4051_v24, %v7526_v50  ;;  %v7555_v62 = vmul.f32 %v7551_v5, %v7526_v50  ;;  %v7559_v47 = vmul.f32 %v4053_v9, %v7526_v50  ;;  %v7639_v42 = vld [vmem:[%s4698_s12 + $0x90] sm:$0xff]  ;;  %v4069_v21 = vld [vmem:[%s4698_s12 + $0x98] sm:$0x3f]  ;;  %v7650_v34 = vld [vmem:[%s4698_s12 + $0xa0] sm:$0xff]  ;;  %s7944_s27 = sld [smem:[#allocation4 + $0x15]] }
 0x19f   : > { %v7566_v31 = vmul.f32 %v7562_v29, %v7526_v50  ;;  %v7570_v44 = vmul.f32 %v4055_v54, %v7526_v50  ;;  %v7577_v14 = vmul.f32 %v7573_v12, %v7526_v50  ;;  %v7581_v56 = vmul.f32 %v4057_v3, %v7526_v50  ;;  %11268 = vst [vmem:[#allocation36_spill] sm:$0xff] %v7639_v42  ;;  %v4071_v4 = vld [vmem:[%s4698_s12 + $0xa8] sm:$0x3f]  ;;  %v7661_v10 = vld [vmem:[%s4698_s12 + $0xb0] sm:$0xff]  ;;  %v4073_v19 = vld [vmem:[%s4698_s12 + $0xb8] sm:$0x3f] }
 0x1a0   : > { %v7588_v7 = vmul.f32 %v7584_v57, %v7526_v50  ;;  %v7592_v25 = vmul.f32 %v4059_v11, %v7526_v50  ;;  %v7599_v23 = vmul.f32 %v7595_v18, %v7526_v50  ;;  %v7603_v51 = vmul.f32 %v4061_v40, %v7526_v50  ;;  %11269 = vst [vmem:[#allocation26_spill] sm:$0xff] %v7650_v34  ;;  %v4077_v9 = vld [vmem:[%s4698_s12 + $0xd8] sm:$0x3f]  ;;  %v4078_v3 = vld [vmem:[%s4698_s12 + $0x1] sm:$0xff]  ;;  %v4103_v29 = vld [vmem:[%s4698_s12 + $0xc9] sm:$0x3f] }
 0x1a1   : > { %v1994_v38 = vadd.f32 %v1993_v27, %v1977_v35  ;;  %v7610_v49 = vmul.f32 %v7606_v28, %v7526_v50  ;;  %v7614_v48 = vmul.f32 %v4063_v1, %v7526_v50  ;;  %v7621_v36 = vmul.f32 %v7617_v26, %v7526_v50  ;;  %11270 = vst [vmem:[#allocation13_spill] sm:$0xff] %v7661_v10  ;;  %v7672_v35 = vld [vmem:[%s4698_s12 + $0xc0] sm:$0xff]  ;;  %v7699_v1 = vld [vmem:[%s4698_s12 + $0x11] sm:$0xff]  ;;  %v4099_v26 = vld [vmem:[%s4698_s12 + $0xa9] sm:$0x3f] }
 0x1a2   : > { %v2020_v32 = vadd.f32 %v2019_v39, %v2018_v15  ;;  %v7625_v43 = vmul.f32 %v4065_v53, %v7526_v50  ;;  %v7632_v58 = vmul.f32 %v7628_v60, %v7526_v50  ;;  %v7636_v8 = vmul.f32 %v4067_v59, %v7526_v50  ;;  %11271 = vst [vmem:[#allocation48_spill] sm:$0xff] %v7672_v35  ;;  %v4075_v39 = vld [vmem:[%s4698_s12 + $0xc8] sm:$0x3f]  ;;  %v7683_v15 = vld [vmem:[%s4698_s12 + $0xd0] sm:$0xff]  ;;  %v4081_v59 = vld [vmem:[%s4698_s12 + $0x19] sm:$0x3f] }
 0x1a3   : > { %v7643_v33 = vmul.f32 %v7639_v42, %v7526_v50  ;;  %v7647_v37 = vmul.f32 %v4069_v21, %v7526_v50  ;;  %v7654_v16 = vmul.f32 %v7650_v34, %v7526_v50  ;;  %v7658_v0 = vmul.f32 %v4071_v4, %v7526_v50  ;;  %11273 = vst [vmem:[#allocation17_spill] sm:$0xff] %v7683_v15  ;;  %v7706_v21 = vld [vmem:[%s4698_s12 + $0x21] sm:$0xff]  ;;  %v7727_v17 = vld [vmem:[%s4698_s12 + $0x51] sm:$0xff]  ;;  %v4101_v57 = vld [vmem:[%s4698_s12 + $0xb9] sm:$0x3f] }
 0x1a4   : > { %v7665_v20 = vmul.f32 %v7661_v10, %v7526_v50  ;;  %v7669_v63 = vmul.f32 %v4073_v19, %v7526_v50  ;;  %v7676_v61 = vmul.f32 %v7672_v35, %v7526_v50  ;;  %v7680_v27 = vmul.f32 %v4075_v39, %v7526_v50  ;;  %11276 = vst [vmem:[#allocation34_spill] sm:$0xff] %v7699_v1  ;;  %v7713_v19 = vld [vmem:[%s4698_s12 + $0x31] sm:$0xff]  ;;  %v4091_v35 = vld [vmem:[%s4698_s12 + $0x69] sm:$0x3f]  ;;  %v7750_v34 = vld [vmem:[%s4698_s12 + $0x81] sm:$0xff] }
 0x1a5   : > { %v1995_v52 = vadd.f32 %v1994_v38, %v1979_v46  ;;  %v7687_v24 = vmul.f32 %v7683_v15, %v7526_v50  ;;  %v7691_v54 = vmul.f32 %v4077_v9, %v7526_v50  ;;  %v2094_v11 = vmul.f32 %v4078_v3, %v7529_v55  ;;  %v4079_v46 = vld [vmem:[%s4698_s12 + $0x9] sm:$0x3f]  ;;  %11277 = vst [vmem:[#allocation37_spill] sm:$0xff] %v7706_v21  ;;  %v4085_v9 = vld [vmem:[%s4698_s12 + $0x39] sm:$0x3f]  ;;  %v7735_v15 = vld [vmem:[%s4698_s12 + $0x61] sm:$0xff] }
 0x1a6   : > { %11272 = vst [vmem:[#allocation44_spill] sm:$0xff] %v7680_v27  ;;  %v2022_v40 = vadd.f32 %v7537_v22, %v2020_v32  ;;  %v2095_v38 = vmul.f32 %v4079_v46, %v7529_v55  ;;  %v2096_v53 = vmul.f32 %v7699_v1, %v7529_v55  ;;  %v2097_v50 = vmul.f32 %v4081_v59, %v7529_v55  ;;  %v4083_v22 = vld [vmem:[%s4698_s12 + $0x29] sm:$0x3f]  ;;  %v7720_v46 = vld [vmem:[%s4698_s12 + $0x41] sm:$0xff]  ;;  %v7742_v10 = vld [vmem:[%s4698_s12 + $0x71] sm:$0xff] }
 0x1a7   : > { %11274 = vst [vmem:[#allocation59_spill] sm:$0xff] %v7687_v24  ;;  %11275 = vst [vmem:[#allocation30_spill] sm:$0xff] %v7691_v54  ;;  %v2098_v4 = vmul.f32 %v7706_v21, %v7529_v55  ;;  %v2099_v32 = vmul.f32 %v4083_v22, %v7529_v55  ;;  %v2100_v39 = vmul.f32 %v7713_v19, %v7529_v55  ;;  %v4089_v21 = vld [vmem:[%s4698_s12 + $0x59] sm:$0x3f]  ;;  %v7766_v60 = vld [vmem:[%s4698_s12 + $0xa1] sm:$0xff] }
 0x1a8   : > { %11278 = vst [vmem:[#allocation38_spill] sm:$0xff] %v7713_v19  ;;  %v2101_v3 = vmul.f32 %v4085_v9, %v7529_v55  ;;  %11279 = vst [vmem:[#allocation39_spill] sm:$0xff] %v7720_v46  ;;  %v2102_v59 = vmul.f32 %v7720_v46, %v7529_v55  ;;  %v2103_v22 = vmul.f32 %v4087_v45, %v7529_v55  ;;  %v7773_v28 = vld [vmem:[%s4698_s12 + $0xb1] sm:$0xff]  ;;  %v7780_v12 = vld [vmem:[%s4698_s12 + $0xc1] sm:$0xff] }
 0x1a9   : > { %11280 = vst [vmem:[#allocation40_spill] sm:$0xff] %v7727_v17  ;;  %v2104_v19 = vmul.f32 %v7727_v17, %v7529_v55  ;;  %v2105_v1 = vmul.f32 %v4089_v21, %v7529_v55  ;;  %v1996_v9 = vadd.f32 %v1995_v52, %v7531_v13  ;;  %11281 = vst [vmem:[#allocation41_spill] sm:$0xff] %v7735_v15  ;;  %v4093_v13 = vld [vmem:[%s4698_s12 + $0x79] sm:$0x3f]  ;;  %v7788_v54 = vld [vmem:[%s4698_s12 + $0xd1] sm:$0xff] }
 0x1aa   : > { %v2106_v46 = vmul.f32 %v7735_v15, %v7529_v55  ;;  %v2107_v45 = vmul.f32 %v4091_v35, %v7529_v55  ;;  %11282 = vst [vmem:[#allocation42_spill] sm:$0xff] %v7742_v10  ;;  %v2108_v17 = vmul.f32 %v7742_v10, %v7529_v55  ;;  %v2024_v21 = vadd.f32 %v7540_v30, %v2022_v40  ;;  %v4095_v35 = vld [vmem:[%s4698_s12 + $0x89] sm:$0x3f]  ;;  %v7759_v10 = vld [vmem:[%s4698_s12 + $0x91] sm:$0xff]  ;;  %v4097_v40 = vld [vmem:[%s4698_s12 + $0x99] sm:$0x3f] }
 0x1ab   : > { %v2109_v52 = vmul.f32 %v4093_v13, %v7529_v55  ;;  %11283 = vst [vmem:[#allocation43_spill] sm:$0xff] %v7750_v34  ;;  %v2110_v15 = vmul.f32 %v7750_v34, %v7529_v55  ;;  %v2111_v42 = vmul.f32 %v4095_v35, %v7529_v55  ;;  %11284 = vst [vmem:[#allocation31_spill] sm:$0xff] %v7759_v10  ;;  %v4105_v24 = vld [vmem:[%s4698_s12 + $0xd9] sm:$0x3f] }
 0x1ac   : > { %v2112_v30 = vmul.f32 %v7759_v10, %v7529_v55  ;;  %v2113_v13 = vmul.f32 %v4097_v40, %v7529_v55  ;;  %11285 = vst [vmem:[#allocation15_spill] sm:$0xff] %v7766_v60  ;;  %v2114_v34 = vmul.f32 %v7766_v60, %v7529_v55  ;;  %v2115_v35 = vmul.f32 %v4099_v26, %v7529_v55 }
 0x1ad   : > { %11286 = vst [vmem:[#allocation45_spill] sm:$0xff] %v7773_v28  ;;  %v2116_v18 = vmul.f32 %v7773_v28, %v7529_v55  ;;  %v2117_v10 = vmul.f32 %v4101_v57, %v7529_v55  ;;  %11287 = vst [vmem:[#allocation28_spill] sm:$0xff] %v7780_v12  ;;  %v2118_v40 = vmul.f32 %v7780_v12, %v7529_v55  ;;  %v2025_v27 = vsel %vm1311_vm0, %v2024_v21, 0.0 }
 0x1ae   : > { %v2119_v5 = vmul.f32 %v4103_v29, %v7529_v55  ;;  %v1997_v60 = vadd.f32 %v1996_v9, %v7533_v6  ;;  %11288 = vst [vmem:[#allocation47_spill] sm:$0xff] %v7788_v54  ;;  %v2120_v26 = vmul.f32 %v7788_v54, %v7529_v55  ;;  %v2121_v28 = vmul.f32 %v4105_v24, %v7529_v55 }
 0x1af   : > { %v7795_v57 = vadd.f32 %v2094_v11, %v7544_v41  ;;  %v7799_v12 = vadd.f32 %v2095_v38, %v7548_v2  ;;  %v7802_v29 = vadd.f32 %v2096_v53, %v7555_v62  ;;  %v7805_v6 = vadd.f32 %v2097_v50, %v7559_v47  ;;  %v4111_v38 = vld [vmem:[%s4698_s12 + $0x2a] sm:$0x3f]  ;;  %v7903_v53 = vld [vmem:[%s4698_s12 + $0x32] sm:$0xff] }
 0x1b0   : > { %v7808_v9 = vadd.f32 %v2098_v4, %v7566_v31  ;;  %v7811_v55 = vadd.f32 %v2099_v32, %v7570_v44  ;;  %v7814_v41 = vadd.f32 %v2100_v39, %v7577_v14  ;;  %v7817_v24 = vadd.f32 %v2101_v3, %v7581_v56  ;;  %11295 = vst [vmem:[#allocation53_spill] sm:$0xff] %v7903_v53  ;;  %v4113_v4 = vld [vmem:[%s4698_s12 + $0x3a] sm:$0x3f]  ;;  %v4115_v3 = vld [vmem:[%s4698_s12 + $0x4a] sm:$0x3f] }
 0x1b1   : > { %v7820_v2 = vadd.f32 %v2102_v59, %v7588_v7  ;;  %v7823_v62 = vadd.f32 %v2103_v22, %v7592_v25  ;;  %v7826_v47 = vadd.f32 %v2104_v19, %v7599_v23  ;;  %v7829_v31 = vadd.f32 %v2105_v1, %v7603_v51  ;;  %v7910_v19 = vld [vmem:[%s4698_s12 + $0x42] sm:$0xff]  ;;  %v7917_v59 = vld [vmem:[%s4698_s12 + $0x52] sm:$0xff] }
 0x1b2   : > { %v7831_v44 = vadd.f32 %v2025_v27, %v1997_v60  ;;  %v7834_v14 = vadd.f32 %v2106_v46, %v7610_v49  ;;  %v7837_v56 = vadd.f32 %v2107_v45, %v7614_v48  ;;  %v7840_v7 = vadd.f32 %v2108_v17, %v7621_v36  ;;  %v4109_v27 = vld [vmem:[%s4698_s12 + $0x1a] sm:$0x3f]  ;;  %11296 = vst [vmem:[#allocation54_spill] sm:$0xff] %v7910_v19 }
 0x1b3   : > { %v7843_v25 = vadd.f32 %v2109_v52, %v7625_v43  ;;  %v7846_v23 = vadd.f32 %v2110_v15, %v7632_v58  ;;  %v7849_v51 = vadd.f32 %v2111_v42, %v7636_v8  ;;  %v7852_v49 = vstv %s7756_s26  ;;  %v11290_v42 = vld [vmem:[#allocation44_spill] sm:$0xff]  ;;  %11297 = vst [vmem:[#allocation55_spill] sm:$0xff] %v7917_v59  ;;  %v7924_v52 = vld [vmem:[%s4698_s12 + $0x62] sm:$0xff] }
 0x1b4   : > { %11289 = vst [vmem:[#allocation50_spill] sm:$0xff] %v7831_v44  ;;  %v7855_v48 = vadd.f32 %v2112_v30, %v7643_v33  ;;  %v7858_v17 = vadd.f32 %v2113_v13, %v7647_v37  ;;  %v7861_v36 = vadd.f32 %v2114_v34, %v7654_v16  ;;  %v7864_v43 = vadd.f32 %v2115_v35, %v7658_v0  ;;  %v11291_v37 = vld [vmem:[#allocation59_spill] sm:$0xff]  ;;  %v11292_v16 = vld [vmem:[#allocation30_spill] sm:$0xff]  ;;  %v4117_v45 = vld [vmem:[%s4698_s12 + $0x5a] sm:$0x3f] }
 0x1b5   : > { %v7867_v60 = vadd.f32 %v2116_v18, %v7665_v20  ;;  %v7870_v58 = vadd.f32 %v2117_v10, %v7669_v63  ;;  %v7873_v8 = vadd.f32 %v2118_v40, %v7676_v61  ;;  %v7876_v33 = vadd.f32 %v2119_v5, %v11290_v42  ;;  %v4106_v18 = vld [vmem:[%s4698_s12 + $0x2] sm:$0xff]  ;;  %v4107_v10 = vld [vmem:[%s4698_s12 + $0xa] sm:$0x3f]  ;;  %v7889_v61 = vld [vmem:[%s4698_s12 + $0x12] sm:$0xff]  ;;  %11298 = vst [vmem:[#allocation56_spill] sm:$0xff] %v7924_v52 }
 0x1b6   : > { %v7879_v34 = vadd.f32 %v2120_v26, %v11291_v37  ;;  %v7882_v0 = vadd.f32 %v2121_v28, %v11292_v16  ;;  %v2152_v20 = vmul.f32 %v4106_v18, %v7852_v49  ;;  %v2153_v63 = vmul.f32 %v4107_v10, %v7852_v49  ;;  %11293 = vst [vmem:[#allocation51_spill] sm:$0xff] %v7889_v61  ;;  %v7896_v28 = vld [vmem:[%s4698_s12 + $0x22] sm:$0xff]  ;;  %v4119_v13 = vld [vmem:[%s4698_s12 + $0x6a] sm:$0x3f]  ;;  %v7931_v40 = vld [vmem:[%s4698_s12 + $0x72] sm:$0xff] }
 0x1b7   : > { %v2154_v5 = vmul.f32 %v7889_v61, %v7852_v49  ;;  %v2155_v15 = vmul.f32 %v4109_v27, %v7852_v49  ;;  %11294 = vst [vmem:[#allocation52_spill] sm:$0xff] %v7896_v28  ;;  %v2156_v11 = vmul.f32 %v7896_v28, %v7852_v49  ;;  %v2157_v1 = vmul.f32 %v4111_v38, %v7852_v49  ;;  %v4121_v42 = vld [vmem:[%s4698_s12 + $0x7a] sm:$0x3f]  ;;  %v7938_v16 = vld [vmem:[%s4698_s12 + $0x82] sm:$0xff]  ;;  %v4123_v10 = vld [vmem:[%s4698_s12 + $0x8a] sm:$0x3f] }
 0x1b8   : > { %v2158_v50 = vmul.f32 %v7903_v53, %v7852_v49  ;;  %v2159_v32 = vmul.f32 %v4113_v4, %v7852_v49  ;;  %v2160_v39 = vmul.f32 %v7910_v19, %v7852_v49  ;;  %v2161_v46 = vmul.f32 %v4115_v3, %v7852_v49  ;;  %11299 = vst [vmem:[#allocation57_spill] sm:$0xff] %v7931_v40  ;;  %v7947_v38 = vld [vmem:[%s4698_s12 + $0x92] sm:$0xff]  ;;  %v4125_v3 = vld [vmem:[%s4698_s12 + $0x9a] sm:$0x3f]  ;;  %v4127_v44 = vld [vmem:[%s4698_s12 + $0xaa] sm:$0x3f] }
 0x1b9   : > { %v2162_v22 = vmul.f32 %v7917_v59, %v7852_v49  ;;  %v2163_v21 = vmul.f32 %v4117_v45, %v7852_v49  ;;  %v2164_v30 = vmul.f32 %v7924_v52, %v7852_v49  ;;  %v2165_v35 = vmul.f32 %v4119_v13, %v7852_v49  ;;  %11300 = vst [vmem:[#allocation58_spill] sm:$0xff] %v7938_v16  ;;  %v7954_v13 = vld [vmem:[%s4698_s12 + $0xa2] sm:$0xff]  ;;  %v4129_v52 = vld [vmem:[%s4698_s12 + $0xba] sm:$0x3f]  ;;  %v4131_v19 = vld [vmem:[%s4698_s12 + $0xca] sm:$0x3f] }
 0x1ba   : > { %v2166_v26 = vmul.f32 %v7931_v40, %v7852_v49  ;;  %v2167_v37 = vmul.f32 %v4121_v42, %v7852_v49  ;;  %v2168_v18 = vmul.f32 %v7938_v16, %v7852_v49  ;;  %v2169_v27 = vmul.f32 %v4123_v10, %v7852_v49  ;;  %11301 = vst [vmem:[#allocation33_spill] sm:$0xff] %v7947_v38  ;;  %v7961_v16 = vld [vmem:[%s4698_s12 + $0xb2] sm:$0xff]  ;;  %v7968_v59 = vld [vmem:[%s4698_s12 + $0xc2] sm:$0xff]  ;;  %v4133_v28 = vld [vmem:[%s4698_s12 + $0xda] sm:$0x3f] }
 0x1bb   : > { %v2170_v4 = vmul.f32 %v7947_v38, %v7852_v49  ;;  %v2171_v45 = vmul.f32 %v4125_v3, %v7852_v49  ;;  %11302 = vst [vmem:[#allocation14_spill] sm:$0xff] %v7954_v13  ;;  %v2172_v42 = vmul.f32 %v7954_v13, %v7852_v49  ;;  %v2173_v10 = vmul.f32 %v4127_v44, %v7852_v49  ;;  %v7977_v13 = vld [vmem:[%s4698_s12 + $0xd2] sm:$0xff] }
 0x1bc   : > { %11303 = vst [vmem:[#allocation20_spill] sm:$0xff] %v7961_v16  ;;  %v2174_v40 = vmul.f32 %v7961_v16, %v7852_v49  ;;  %v2175_v38 = vmul.f32 %v4129_v52, %v7852_v49  ;;  %11304 = vst [vmem:[#allocation29_spill] sm:$0xff] %v7968_v59  ;;  %v2176_v3 = vmul.f32 %v7968_v59, %v7852_v49 }
 0x1bd   : > { %v2177_v53 = vmul.f32 %v4131_v19, %v7852_v49  ;;  %11305 = vst [vmem:[#allocation18_spill] sm:$0xff] %v7977_v13  ;;  %v2178_v44 = vmul.f32 %v7977_v13, %v7852_v49  ;;  %v2179_v16 = vmul.f32 %v4133_v28, %v7852_v49  ;;  %v7984_v52 = vadd.f32 %v2152_v20, %v7795_v57  ;;  %v4135_v28 = vld [vmem:[%s4698_s12 + $0x28] sm:$0x3f] }
 0x1be   : > { %v7987_v61 = vadd.f32 %v2153_v63, %v7799_v12  ;;  %v7990_v59 = vadd.f32 %v2154_v5, %v7802_v29  ;;  %v7993_v19 = vadd.f32 %v2155_v15, %v7805_v6  ;;  %v7996_v54 = vadd.f32 %v2156_v11, %v7808_v9  ;;  %v11310_v15 = vld [vmem:[#allocation21_spill] sm:$0xff]  ;;  %v11311_v11 = vld [vmem:[#allocation22_spill] sm:$0xff] }
 0x1bf   : > { %v7999_v13 = vadd.f32 %v2157_v1, %v7811_v55  ;;  %v8002_v49 = vadd.f32 %v2158_v50, %v7814_v41  ;;  %v8005_v57 = vadd.f32 %v2159_v32, %v7817_v24  ;;  %v8008_v12 = vadd.f32 %v2160_v39, %v7820_v2  ;;  %v11312_v50 = vld [vmem:[#allocation23_spill] sm:$0xff]  ;;  %v4137_v32 = vld [vmem:[%s4698_s12 + $0x48] sm:$0x3f] }
 0x1c0   : > { %v8011_v29 = vadd.f32 %v2161_v46, %v7823_v62  ;;  %v8014_v6 = vadd.f32 %v2162_v22, %v7826_v47  ;;  %v8017_v9 = vadd.f32 %v2163_v21, %v7829_v31  ;;  %v8020_v55 = vadd.f32 %v2164_v30, %v7834_v14  ;;  %v11313_v46 = vld [vmem:[#allocation24_spill] sm:$0xff] }
 0x1c1   : > { %v8023_v41 = vadd.f32 %v2165_v35, %v7837_v56  ;;  %v8026_v24 = vadd.f32 %v2166_v26, %v7840_v7  ;;  %v8029_v2 = vadd.f32 %v2167_v37, %v7843_v25  ;;  %v8032_v62 = vadd.f32 %v2168_v18, %v7846_v23  ;;  %v4138_v21 = vld [vmem:[%s4698_s12 + $0x58] sm:$0x3f]  ;;  %v11314_v35 = vld [vmem:[#allocation25_spill] sm:$0xff] }
 0x1c2   : > { %v8035_v47 = vadd.f32 %v2169_v27, %v7849_v51  ;;  %v8038_v31 = vadd.f32 %v2170_v4, %v7855_v48  ;;  %v8041_v14 = vadd.f32 %v2171_v45, %v7858_v17  ;;  %v8044_v56 = vadd.f32 %v2172_v42, %v7861_v36  ;;  %v4139_v26 = vld [vmem:[%s4698_s12 + $0x68] sm:$0x3f]  ;;  %v4140_v27 = vld [vmem:[%s4698_s12 + $0x78] sm:$0x3f] }
 0x1c3   : > { %v2209_v7 = vstv %s7944_s27  ;;  %v8048_v25 = vadd.f32 %v2173_v10, %v7864_v43  ;;  %v8051_v23 = vadd.f32 %v2174_v40, %v7867_v60  ;;  %v8054_v51 = vadd.f32 %v2175_v38, %v7870_v58  ;;  %v11309_v60 = vld [vmem:[#allocation27_spill] sm:$0xff]  ;;  %v4141_v42 = vld [vmem:[%s4698_s12 + $0x88] sm:$0x3f]  ;;  %s8964_s27 = sld [smem:[#allocation4 + $0x1b]] }
 0x1c4   : > { %v8057_v48 = vadd.f32 %v2176_v3, %v7873_v8  ;;  %v8060_v17 = vadd.f32 %v2177_v53, %v7876_v33  ;;  %v8063_v36 = vadd.f32 %v2178_v44, %v7879_v34  ;;  %v8066_v43 = vadd.f32 %v2179_v16, %v7882_v0  ;;  %v4134_v58 = vld [vmem:[%s4698_s12 + $0x18] sm:$0x3f] }
 0x1c5   : > { %v8069_v20 = vstv %s7974_s13  ;;  %v2210_v63 = vmul.f32 %v11309_v60, %v2209_v7  ;;  %v2211_v5 = vmul.f32 %v4134_v58, %v2209_v7  ;;  %v2212_v8 = vmul.f32 %v11310_v15, %v2209_v7  ;;  %v4136_v34 = vld [vmem:[%s4698_s12 + $0x38] sm:$0x3f]  ;;  %v11321_v15 = vld [vmem:[#allocation17_spill] sm:$0xff]  ;;  %s8966_s13 = sld [smem:[#allocation4 + $0x1c]] }
 0x1c6   : > { %11306 = vst [vmem:[#allocation19_spill] sm:$0xff] %v8063_v36  ;;  %11307 = vst [vmem:[#allocation49_spill] sm:$0xff] %v8066_v43  ;;  %v2213_v33 = vmul.f32 %v4135_v28, %v2209_v7  ;;  %v2214_v1 = vmul.f32 %v11311_v11, %v2209_v7  ;;  %v2215_v53 = vmul.f32 %v4136_v34, %v2209_v7  ;;  %v11315_v16 = vld [vmem:[#allocation60_spill] sm:$0xff]  ;;  %v11316_v4 = vld [vmem:[#allocation35_spill] sm:$0xff] }
 0x1c7   : > { %11308 = vst [vmem:[#allocation16_spill] sm:$0xff] %v8069_v20  ;;  %v2216_v0 = vmul.f32 %v11312_v50, %v2209_v7  ;;  %v2217_v39 = vmul.f32 %v4137_v32, %v2209_v7  ;;  %v2218_v22 = vmul.f32 %v11313_v46, %v2209_v7  ;;  %v2219_v30 = vmul.f32 %v4138_v21, %v2209_v7  ;;  %v11317_v3 = vld [vmem:[#allocation36_spill] sm:$0xff]  ;;  %v11318_v28 = vld [vmem:[#allocation26_spill] sm:$0xff] }
 0x1c8   : > { %v2220_v40 = vmul.f32 %v11314_v35, %v2209_v7  ;;  %v2221_v37 = vmul.f32 %v4139_v26, %v2209_v7  ;;  %v2222_v18 = vmul.f32 %v11315_v16, %v2209_v7  ;;  %v2223_v38 = vmul.f32 %v4140_v27, %v2209_v7  ;;  %v4142_v60 = vld [vmem:[%s4698_s12 + $0x98] sm:$0x3f]  ;;  %v4143_v32 = vld [vmem:[%s4698_s12 + $0xa8] sm:$0x3f] }
 0x1c9   : > { %v2224_v45 = vmul.f32 %v11316_v4, %v2209_v7  ;;  %v2225_v10 = vmul.f32 %v4141_v42, %v2209_v7  ;;  %v2226_v44 = vmul.f32 %v11317_v3, %v2209_v7  ;;  %v2227_v58 = vmul.f32 %v4142_v60, %v2209_v7  ;;  %v11319_v26 = vld [vmem:[#allocation13_spill] sm:$0xff]  ;;  %v4144_v35 = vld [vmem:[%s4698_s12 + $0xb8] sm:$0x3f] }
 0x1ca   : > { %v2228_v34 = vmul.f32 %v11318_v28, %v2209_v7  ;;  %v2229_v21 = vmul.f32 %v4143_v32, %v2209_v7  ;;  %v2230_v16 = vmul.f32 %v11319_v26, %v2209_v7  ;;  %v2231_v46 = vmul.f32 %v4144_v35, %v2209_v7  ;;  %v11320_v27 = vld [vmem:[#allocation48_spill] sm:$0xff]  ;;  %v4145_v4 = vld [vmem:[%s4698_s12 + $0xc8] sm:$0x3f] }
 0x1cb   : > { %v2232_v50 = vmul.f32 %v11320_v27, %v2209_v7  ;;  %v2233_v11 = vmul.f32 %v4145_v4, %v2209_v7  ;;  %v2234_v42 = vmul.f32 %v11321_v15, %v2209_v7  ;;  %v4146_v20 = vld [vmem:[%s4698_s12 + $0xd8] sm:$0x3f]  ;;  %v8098_v3 = vld [vmem:[%s4698_s12 + $0xe0] sm:$0xff]  ;;  %v4148_v36 = vld [vmem:[%s4698_s12 + $0xe8] sm:$0x3f]  ;;  %v8103_v32 = vadd.f32 %v2210_v63, %v7984_v52 }
 0x1cc   : > { %v2235_v43 = vmul.f32 %v4146_v20, %v2209_v7  ;;  %11322 = vst [vmem:[#allocation32_spill] sm:$0xff] %v8098_v3  ;;  %v2236_v60 = vmul.f32 %v8098_v3, %v2209_v7  ;;  %v2237_v28 = vmul.f32 %v4148_v36, %v2209_v7  ;;  %v8106_v26 = vadd.f32 %v2211_v5, %v7987_v61  ;;  %v11357_v27 = vld [vmem:[#allocation18_spill] sm:$0xff] }
 0x1cd   : > { %v8109_v35 = vadd.f32 %v2212_v8, %v7990_v59  ;;  %v8112_v4 = vadd.f32 %v2213_v33, %v7993_v19  ;;  %v8115_v20 = vadd.f32 %v2214_v1, %v7996_v54  ;;  %v8118_v15 = vadd.f32 %v2215_v53, %v7999_v13  ;;  %v11324_v36 = vld [vmem:[#allocation49_spill] sm:$0xff]  ;;  %v4149_v8 = vld [vmem:[%s4698_s12 + $0x19] sm:$0x3f] }
 0x1ce   : > { %v8121_v7 = vadd.f32 %v2216_v0, %v8002_v49  ;;  %v8124_v52 = vadd.f32 %v2217_v39, %v8005_v57  ;;  %v8127_v61 = vadd.f32 %v2218_v22, %v8008_v12  ;;  %v8130_v59 = vadd.f32 %v2219_v30, %v8011_v29  ;;  %v11325_v63 = vld [vmem:[#allocation16_spill] sm:$0xff]  ;;  %v11329_v0 = vld [vmem:[#allocation39_spill] sm:$0xff] }
 0x1cf   : > { %v8133_v19 = vadd.f32 %v2220_v40, %v8014_v6  ;;  %v8136_v54 = vadd.f32 %v2221_v37, %v8017_v9  ;;  %v8139_v13 = vadd.f32 %v2222_v18, %v8020_v55  ;;  %v8142_v49 = vadd.f32 %v2223_v38, %v8023_v41  ;;  %v4151_v53 = vld [vmem:[%s4698_s12 + $0x39] sm:$0x3f]  ;;  %v11331_v18 = vld [vmem:[#allocation41_spill] sm:$0xff] }
 0x1d0   : > { %v8145_v57 = vadd.f32 %v2224_v45, %v8026_v24  ;;  %v8148_v12 = vadd.f32 %v2225_v10, %v8029_v2  ;;  %v8151_v29 = vadd.f32 %v2226_v44, %v8032_v62  ;;  %v8154_v6 = vadd.f32 %v2227_v58, %v8035_v47  ;;  %v11330_v30 = vld [vmem:[#allocation40_spill] sm:$0xff]  ;;  %v4154_v45 = vld [vmem:[%s4698_s12 + $0x69] sm:$0x3f] }
 0x1d1   : > { %v8157_v9 = vadd.f32 %v2228_v34, %v8038_v31  ;;  %v8160_v55 = vadd.f32 %v2229_v21, %v8041_v14  ;;  %v8163_v41 = vadd.f32 %v2230_v16, %v8044_v56  ;;  %v8166_v24 = vadd.f32 %v2231_v46, %v8048_v25  ;;  %v11323_v14 = vld [vmem:[#allocation19_spill] sm:$0xff]  ;;  %v4152_v46 = vld [vmem:[%s4698_s12 + $0x49] sm:$0x3f] }
 0x1d2   : > { %v8169_v2 = vadd.f32 %v2232_v50, %v8051_v23  ;;  %v8172_v62 = vadd.f32 %v2233_v11, %v8054_v51  ;;  %v8175_v47 = vadd.f32 %v2234_v42, %v8057_v48  ;;  %v8178_v31 = vadd.f32 %v2235_v43, %v8060_v17  ;;  %v11326_v23 = vld [vmem:[#allocation34_spill] sm:$0xff]  ;;  %v11327_v48 = vld [vmem:[#allocation37_spill] sm:$0xff]  ;;  %v4153_v37 = vld [vmem:[%s4698_s12 + $0x59] sm:$0x3f] }
 0x1d3   : > { %v8181_v56 = vadd.f32 %v2236_v60, %v11323_v14  ;;  %v8184_v25 = vadd.f32 %v2237_v28, %v11324_v36  ;;  %v2268_v5 = vmul.f32 %v11326_v23, %v11325_v63  ;;  %v2269_v51 = vmul.f32 %v4149_v8, %v11325_v63  ;;  %v4150_v17 = vld [vmem:[%s4698_s12 + $0x29] sm:$0x3f]  ;;  %v4155_v28 = vld [vmem:[%s4698_s12 + $0x79] sm:$0x3f] }
 0x1d4   : > { %v2270_v33 = vmul.f32 %v11327_v48, %v11325_v63  ;;  %v2271_v43 = vmul.f32 %v4150_v17, %v11325_v63  ;;  %v11328_v11 = vld [vmem:[#allocation38_spill] sm:$0xff]  ;;  %v2273_v50 = vmul.f32 %v4151_v53, %v11325_v63  ;;  %v2274_v39 = vmul.f32 %v11329_v0, %v11325_v63  ;;  %v11333_v21 = vld [vmem:[#allocation43_spill] sm:$0xff]  ;;  %v8243_v48 = vld [vmem:[%s4698_s12 + $0xe1] sm:$0xff] }
 0x1d5   : > { %v2272_v1 = vmul.f32 %v11328_v11, %v11325_v63  ;;  %v2275_v22 = vmul.f32 %v4152_v46, %v11325_v63  ;;  %v2276_v40 = vmul.f32 %v11330_v30, %v11325_v63  ;;  %v2277_v16 = vmul.f32 %v4153_v37, %v11325_v63  ;;  %v11332_v44 = vld [vmem:[#allocation42_spill] sm:$0xff]  ;;  %v11334_v36 = vld [vmem:[#allocation31_spill] sm:$0xff]  ;;  %11339 = vst [vmem:[#allocation44_spill] sm:$0xff] %v8243_v48 }
 0x1d6   : > { %v2278_v38 = vmul.f32 %v11331_v18, %v11325_v63  ;;  %v2279_v10 = vmul.f32 %v4154_v45, %v11325_v63  ;;  %v2280_v58 = vmul.f32 %v11332_v44, %v11325_v63  ;;  %v2281_v34 = vmul.f32 %v4155_v28, %v11325_v63  ;;  %v4156_v60 = vld [vmem:[%s4698_s12 + $0x89] sm:$0x3f]  ;;  %v4157_v8 = vld [vmem:[%s4698_s12 + $0x99] sm:$0x3f] }
 0x1d7   : > { %v2282_v42 = vmul.f32 %v11333_v21, %v11325_v63  ;;  %v2283_v14 = vmul.f32 %v4156_v60, %v11325_v63  ;;  %v2284_v23 = vmul.f32 %v11334_v36, %v11325_v63  ;;  %v2285_v17 = vmul.f32 %v4157_v8, %v11325_v63  ;;  %v11335_v53 = vld [vmem:[#allocation15_spill] sm:$0xff]  ;;  %v4158_v37 = vld [vmem:[%s4698_s12 + $0xa9] sm:$0x3f]  ;;  %v11337_v36 = vld [vmem:[#allocation28_spill] sm:$0xff] }
 0x1d8   : > { %v2286_v46 = vmul.f32 %v11335_v53, %v11325_v63  ;;  %v2287_v45 = vmul.f32 %v4158_v37, %v11325_v63  ;;  %v11336_v28 = vld [vmem:[#allocation45_spill] sm:$0xff]  ;;  %v4159_v21 = vld [vmem:[%s4698_s12 + $0xb9] sm:$0x3f]  ;;  %v2290_v18 = vmul.f32 %v11337_v36, %v11325_v63  ;;  %v8263_v36 = vadd.f32 %v2271_v43, %v8112_v4 }
 0x1d9   : > { %v2288_v60 = vmul.f32 %v11336_v28, %v11325_v63  ;;  %v2289_v44 = vmul.f32 %v4159_v21, %v11325_v63  ;;  %v4160_v30 = vld [vmem:[%s4698_s12 + $0xc9] sm:$0x3f]  ;;  %v11338_v53 = vld [vmem:[#allocation47_spill] sm:$0xff]  ;;  %v2294_v28 = vmul.f32 %v8243_v48, %v11325_v63  ;;  %v8266_v48 = vadd.f32 %v2272_v1, %v8115_v20  ;;  %v11346_v43 = vld [vmem:[#allocation52_spill] sm:$0xff] }
 0x1da   : > { %v2291_v8 = vmul.f32 %v4160_v30, %v11325_v63  ;;  %v2292_v0 = vmul.f32 %v11338_v53, %v11325_v63  ;;  %v4161_v37 = vld [vmem:[%s4698_s12 + $0xd9] sm:$0x3f]  ;;  %v4163_v21 = vld [vmem:[%s4698_s12 + $0xe9] sm:$0x3f]  ;;  %v8254_v30 = vadd.f32 %v2268_v5, %v8103_v32  ;;  %v8257_v53 = vadd.f32 %v2269_v51, %v8106_v26 }
 0x1db   : > { %v2293_v11 = vmul.f32 %v4161_v37, %v11325_v63  ;;  %v2295_v3 = vmul.f32 %v4163_v21, %v11325_v63  ;;  %v8260_v37 = vadd.f32 %v2270_v33, %v8109_v35  ;;  %v8269_v63 = vadd.f32 %v2273_v50, %v8118_v15  ;;  %v11345_v51 = vld [vmem:[#allocation51_spill] sm:$0xff]  ;;  %v4164_v33 = vld [vmem:[%s4698_s12 + $0x1a] sm:$0x3f]  ;;  %v11347_v50 = vld [vmem:[#allocation53_spill] sm:$0xff] }
 0x1dc   : > { %v8272_v21 = vadd.f32 %v2274_v39, %v8121_v7  ;;  %v8275_v32 = vadd.f32 %v2275_v22, %v8124_v52  ;;  %v8278_v26 = vadd.f32 %v2276_v40, %v8127_v61  ;;  %v8281_v35 = vadd.f32 %v2277_v16, %v8130_v59  ;;  %v11348_v39 = vld [vmem:[#allocation54_spill] sm:$0xff] }
 0x1dd   : > { %v8284_v4 = vadd.f32 %v2278_v38, %v8133_v19  ;;  %v8287_v20 = vadd.f32 %v2279_v10, %v8136_v54  ;;  %v8290_v15 = vadd.f32 %v2280_v58, %v8139_v13  ;;  %v8293_v7 = vadd.f32 %v2281_v34, %v8142_v49  ;;  %v4167_v40 = vld [vmem:[%s4698_s12 + $0x4a] sm:$0x3f]  ;;  %v4168_v10 = vld [vmem:[%s4698_s12 + $0x5a] sm:$0x3f] }
 0x1de   : > { %v8296_v52 = vadd.f32 %v2282_v42, %v8145_v57  ;;  %v8299_v61 = vadd.f32 %v2283_v14, %v8148_v12  ;;  %v8302_v59 = vadd.f32 %v2284_v23, %v8151_v29  ;;  %v8305_v19 = vadd.f32 %v2285_v17, %v8154_v6  ;;  %v11350_v58 = vld [vmem:[#allocation56_spill] sm:$0xff]  ;;  %v4169_v42 = vld [vmem:[%s4698_s12 + $0x6a] sm:$0x3f]  ;;  %v11351_v23 = vld [vmem:[#allocation57_spill] sm:$0xff] }
 0x1df   : > { %v8308_v54 = vadd.f32 %v2286_v46, %v8157_v9  ;;  %v8311_v13 = vadd.f32 %v2287_v45, %v8160_v55  ;;  %v8314_v49 = vadd.f32 %v2288_v60, %v8163_v41  ;;  %v8317_v57 = vadd.f32 %v2289_v44, %v8166_v24  ;;  %v4170_v46 = vld [vmem:[%s4698_s12 + $0x7a] sm:$0x3f] }
 0x1e0   : > { %v8320_v12 = vadd.f32 %v2290_v18, %v8169_v2  ;;  %v2325_v29 = vstv %s8226_s14  ;;  %v8324_v6 = vadd.f32 %v2291_v8, %v8172_v62  ;;  %v8327_v9 = vadd.f32 %v2292_v0, %v8175_v47  ;;  %v11349_v18 = vld [vmem:[#allocation55_spill] sm:$0xff]  ;;  %v4171_v8 = vld [vmem:[%s4698_s12 + $0x8a] sm:$0x3f]  ;;  %s8972_s14 = sld [smem:[#allocation4 + $0x1d]] }
 0x1e1   : > { %v8330_v55 = vadd.f32 %v2293_v11, %v8178_v31  ;;  %v8333_v41 = vadd.f32 %v2294_v28, %v8181_v56  ;;  %v8336_v24 = vadd.f32 %v2295_v3, %v8184_v25  ;;  %v8339_v2 = vstv %s8236_s16  ;;  %v4165_v56 = vld [vmem:[%s4698_s12 + $0x2a] sm:$0x3f]  ;;  %v4166_v25 = vld [vmem:[%s4698_s12 + $0x3a] sm:$0x3f] }
 0x1e2   : > { %11342 = vst [vmem:[#allocation27_spill] sm:$0xff] %v8339_v2  ;;  %v8342_v5 = vstv %s8249_s17  ;;  %v8345_v62 = vstv %s8251_s18  ;;  %v2326_v47 = vmul.f32 %v11345_v51, %v2325_v29  ;;  %v2327_v31 = vmul.f32 %v4164_v33, %v2325_v29  ;;  %v11352_v28 = vld [vmem:[#allocation58_spill] sm:$0xff]  ;;  %v11353_v33 = vld [vmem:[#allocation33_spill] sm:$0xff]  ;;  %v4176_v2 = vld [vmem:[%s4698_s12 + $0xda] sm:$0x3f] }
 0x1e3   : > { %11340 = vst [vmem:[#allocation59_spill] sm:$0xff] %v8333_v41  ;;  %11341 = vst [vmem:[#allocation30_spill] sm:$0xff] %v8336_v24  ;;  %v2328_v11 = vmul.f32 %v11346_v43, %v2325_v29  ;;  %v2329_v1 = vmul.f32 %v4165_v56, %v2325_v29  ;;  %v2330_v3 = vmul.f32 %v11347_v50, %v2325_v29  ;;  %v4174_v50 = vld [vmem:[%s4698_s12 + $0xba] sm:$0x3f]  ;;  %v4178_v41 = vld [vmem:[%s4698_s12 + $0xea] sm:$0x3f] }
 0x1e4   : > { %11343 = vst [vmem:[#allocation19_spill] sm:$0xff] %v8342_v5  ;;  %11344 = vst [vmem:[#allocation49_spill] sm:$0xff] %v8345_v62  ;;  %v2331_v0 = vmul.f32 %v4166_v25, %v2325_v29  ;;  %v2332_v22 = vmul.f32 %v11348_v39, %v2325_v29  ;;  %v2333_v16 = vmul.f32 %v4167_v40, %v2325_v29  ;;  %v4172_v25 = vld [vmem:[%s4698_s12 + $0x9a] sm:$0x3f] }
 0x1e5   : > { %v2334_v38 = vmul.f32 %v11349_v18, %v2325_v29  ;;  %v2335_v44 = vmul.f32 %v4168_v10, %v2325_v29  ;;  %v2336_v34 = vmul.f32 %v11350_v58, %v2325_v29  ;;  %v2337_v14 = vmul.f32 %v4169_v42, %v2325_v29  ;;  %v11354_v10 = vld [vmem:[#allocation14_spill] sm:$0xff]  ;;  %v11355_v39 = vld [vmem:[#allocation20_spill] sm:$0xff] }
 0x1e6   : > { %v2338_v17 = vmul.f32 %v11351_v23, %v2325_v29  ;;  %v2339_v45 = vmul.f32 %v4170_v46, %v2325_v29  ;;  %v2340_v60 = vmul.f32 %v11352_v28, %v2325_v29  ;;  %v2341_v51 = vmul.f32 %v4171_v8, %v2325_v29  ;;  %v4173_v18 = vld [vmem:[%s4698_s12 + $0xaa] sm:$0x3f]  ;;  %v11356_v46 = vld [vmem:[#allocation29_spill] sm:$0xff] }
 0x1e7   : > { %v2342_v56 = vmul.f32 %v11353_v33, %v2325_v29  ;;  %v2343_v40 = vmul.f32 %v4172_v25, %v2325_v29  ;;  %v2344_v58 = vmul.f32 %v11354_v10, %v2325_v29  ;;  %v2345_v42 = vmul.f32 %v4173_v18, %v2325_v29  ;;  %v4175_v28 = vld [vmem:[%s4698_s12 + $0xca] sm:$0x3f]  ;;  %v8374_v33 = vld [vmem:[%s4698_s12 + $0xe2] sm:$0xff] }
 0x1e8   : > { %v2346_v23 = vmul.f32 %v11355_v39, %v2325_v29  ;;  %v2347_v43 = vmul.f32 %v4174_v50, %v2325_v29  ;;  %v2348_v62 = vmul.f32 %v11356_v46, %v2325_v29  ;;  %v2349_v5 = vmul.f32 %v4175_v28, %v2325_v29  ;;  %11358 = vst [vmem:[#allocation16_spill] sm:$0xff] %v8374_v33  ;;  %v4193_v46 = vld [vmem:[%s4698_s12 + $0xf8] sm:$0x3f] }
 0x1e9   : > { %v2350_v8 = vmul.f32 %v11357_v27, %v2325_v29  ;;  %v2351_v24 = vmul.f32 %v4176_v2, %v2325_v29  ;;  %v2352_v25 = vmul.f32 %v8374_v33, %v2325_v29  ;;  %v2353_v10 = vmul.f32 %v4178_v41, %v2325_v29  ;;  %v4192_v33 = vld [vmem:[%s4698_s12 + $0xf0] sm:$0xff] }
 0x1ea   : > { %v8379_v18 = vadd.f32 %v2326_v47, %v8254_v30  ;;  %v8382_v39 = vadd.f32 %v2327_v31, %v8257_v53  ;;  %v8385_v50 = vadd.f32 %v2328_v11, %v8260_v37  ;;  %v8388_v28 = vadd.f32 %v2329_v1, %v8263_v36  ;;  %v11360_v41 = vld [vmem:[#allocation30_spill] sm:$0xff]  ;;  %v11361_v47 = vld [vmem:[#allocation27_spill] sm:$0xff] }
 0x1eb   : > { %v8391_v2 = vadd.f32 %v2330_v3, %v8266_v48  ;;  %v8394_v27 = vadd.f32 %v2331_v0, %v8269_v63  ;;  %v8397_v29 = vadd.f32 %v2332_v22, %v8272_v21  ;;  %v8400_v30 = vadd.f32 %v2333_v16, %v8275_v32  ;;  %v4179_v31 = vld [vmem:[%s4698_s12 + $0x28] sm:$0x3f]  ;;  %v11365_v0 = vld [vmem:[#allocation24_spill] sm:$0xff] }
 0x1ec   : > { %v8403_v53 = vadd.f32 %v2334_v38, %v8278_v26  ;;  %v8406_v37 = vadd.f32 %v2335_v44, %v8281_v35  ;;  %v8409_v36 = vadd.f32 %v2336_v34, %v8284_v4  ;;  %v8412_v48 = vadd.f32 %v2337_v14, %v8287_v20  ;;  %v4181_v1 = vld [vmem:[%s4698_s12 + $0x48] sm:$0x3f]  ;;  %v4182_v16 = vld [vmem:[%s4698_s12 + $0x58] sm:$0x3f] }
 0x1ed   : > { %v8415_v63 = vadd.f32 %v2338_v17, %v8290_v15  ;;  %v8418_v21 = vadd.f32 %v2339_v45, %v8293_v7  ;;  %v8421_v32 = vadd.f32 %v2340_v60, %v8296_v52  ;;  %v8424_v26 = vadd.f32 %v2341_v51, %v8299_v61  ;;  %v11366_v44 = vld [vmem:[#allocation25_spill] sm:$0xff]  ;;  %v4184_v45 = vld [vmem:[%s4698_s12 + $0x78] sm:$0x3f] }
 0x1ee   : > { %v8427_v35 = vadd.f32 %v2342_v56, %v8302_v59  ;;  %v8430_v4 = vadd.f32 %v2343_v40, %v8305_v19  ;;  %v8433_v20 = vadd.f32 %v2344_v58, %v8308_v54  ;;  %v8436_v15 = vadd.f32 %v2345_v42, %v8311_v13  ;;  %v11359_v13 = vld [vmem:[#allocation59_spill] sm:$0xff]  ;;  %v4183_v34 = vld [vmem:[%s4698_s12 + $0x68] sm:$0x3f]  ;;  %v11369_v42 = vld [vmem:[#allocation36_spill] sm:$0xff] }
 0x1ef   : > { %v8439_v7 = vadd.f32 %v2346_v23, %v8314_v49  ;;  %v8442_v52 = vadd.f32 %v2347_v43, %v8317_v57  ;;  %v8445_v61 = vadd.f32 %v2348_v62, %v8320_v12  ;;  %v8448_v59 = vadd.f32 %v2349_v5, %v8324_v6  ;;  %v11362_v12 = vld [vmem:[#allocation21_spill] sm:$0xff]  ;;  %v11364_v43 = vld [vmem:[#allocation23_spill] sm:$0xff]  ;;  %v11367_v23 = vld [vmem:[#allocation60_spill] sm:$0xff] }
 0x1f0   : > { %v8451_v19 = vadd.f32 %v2350_v8, %v8327_v9  ;;  %v8454_v54 = vadd.f32 %v2351_v24, %v8330_v55  ;;  %v8457_v49 = vadd.f32 %v2352_v25, %v11359_v13  ;;  %v8460_v57 = vadd.f32 %v2353_v10, %v11360_v41  ;;  %v11363_v9 = vld [vmem:[#allocation22_spill] sm:$0xff]  ;;  %v4180_v55 = vld [vmem:[%s4698_s12 + $0x38] sm:$0x3f] }
 0x1f1   : > { %v2384_v62 = vmul.f32 %v11362_v12, %v11361_v47  ;;  %v2385_v6 = vmul.f32 %v4179_v31, %v11361_v47  ;;  %v2386_v5 = vmul.f32 %v11363_v9, %v11361_v47  ;;  %v2387_v24 = vmul.f32 %v4180_v55, %v11361_v47  ;;  %v11368_v51 = vld [vmem:[#allocation35_spill] sm:$0xff]  ;;  %v4185_v40 = vld [vmem:[%s4698_s12 + $0x88] sm:$0x3f] }
 0x1f2   : > { %v2388_v11 = vmul.f32 %v11364_v43, %v11361_v47  ;;  %v2389_v3 = vmul.f32 %v4181_v1, %v11361_v47  ;;  %v2390_v22 = vmul.f32 %v11365_v0, %v11361_v47  ;;  %v2391_v38 = vmul.f32 %v4182_v16, %v11361_v47  ;;  %v4186_v25 = vld [vmem:[%s4698_s12 + $0x98] sm:$0x3f]  ;;  %v11370_v41 = vld [vmem:[#allocation26_spill] sm:$0xff]  ;;  %v11371_v55 = vld [vmem:[#allocation13_spill] sm:$0xff] }
 0x1f3   : > { %v2392_v58 = vmul.f32 %v11366_v44, %v11361_v47  ;;  %v2393_v14 = vmul.f32 %v4183_v34, %v11361_v47  ;;  %v2394_v17 = vmul.f32 %v11367_v23, %v11361_v47  ;;  %v2395_v60 = vmul.f32 %v4184_v45, %v11361_v47  ;;  %v4187_v31 = vld [vmem:[%s4698_s12 + $0xa8] sm:$0x3f]  ;;  %v4188_v1 = vld [vmem:[%s4698_s12 + $0xb8] sm:$0x3f] }
 0x1f4   : > { %v2396_v56 = vmul.f32 %v11368_v51, %v11361_v47  ;;  %v2397_v10 = vmul.f32 %v4185_v40, %v11361_v47  ;;  %v2398_v8 = vmul.f32 %v11369_v42, %v11361_v47  ;;  %v2399_v13 = vmul.f32 %v4186_v25, %v11361_v47  ;;  %v11372_v16 = vld [vmem:[#allocation48_spill] sm:$0xff]  ;;  %v4189_v34 = vld [vmem:[%s4698_s12 + $0xc8] sm:$0x3f] }
 0x1f5   : > { %v2400_v12 = vmul.f32 %v11370_v41, %v11361_v47  ;;  %v2401_v9 = vmul.f32 %v4187_v31, %v11361_v47  ;;  %v2402_v43 = vmul.f32 %v11371_v55, %v11361_v47  ;;  %v2403_v0 = vmul.f32 %v4188_v1, %v11361_v47  ;;  %v11373_v45 = vld [vmem:[#allocation17_spill] sm:$0xff]  ;;  %v4190_v40 = vld [vmem:[%s4698_s12 + $0xd8] sm:$0x3f] }
 0x1f6   : > { %v2404_v44 = vmul.f32 %v11372_v16, %v11361_v47  ;;  %v2405_v23 = vmul.f32 %v4189_v34, %v11361_v47  ;;  %v2406_v51 = vmul.f32 %v11373_v45, %v11361_v47  ;;  %v2407_v42 = vmul.f32 %v4190_v40, %v11361_v47  ;;  %v11374_v25 = vld [vmem:[#allocation32_spill] sm:$0xff]  ;;  %v4191_v31 = vld [vmem:[%s4698_s12 + $0xe8] sm:$0x3f] }
 0x1f7   : > { %v2408_v41 = vmul.f32 %v11374_v25, %v11361_v47  ;;  %v2409_v55 = vmul.f32 %v4191_v31, %v11361_v47  ;;  %v2410_v1 = vmul.f32 %v4192_v33, %v11361_v47  ;;  %v2411_v16 = vmul.f32 %v4193_v46, %v11361_v47 }
 0x1f8   : > { %v8519_v34 = vadd.f32 %v2384_v62, %v8379_v18  ;;  %v8522_v45 = vadd.f32 %v2385_v6, %v8382_v39  ;;  %v8525_v40 = vadd.f32 %v2386_v5, %v8385_v50  ;;  %v8528_v25 = vadd.f32 %v2387_v24, %v8388_v28  ;;  %v4194_v62 = vld [vmem:[%s4698_s12 + $0x29] sm:$0x3f] }
 0x1f9   : > { %v8531_v31 = vadd.f32 %v2388_v11, %v8391_v2  ;;  %v8534_v33 = vadd.f32 %v2389_v3, %v8394_v27  ;;  %v8537_v46 = vadd.f32 %v2390_v22, %v8397_v29  ;;  %v8540_v18 = vadd.f32 %v2391_v38, %v8400_v30  ;;  %v11379_v3 = vld [vmem:[#allocation40_spill] sm:$0xff] }
 0x1fa   : > { %v8543_v39 = vadd.f32 %v2392_v58, %v8403_v53  ;;  %v8546_v50 = vadd.f32 %v2393_v14, %v8406_v37  ;;  %v8549_v28 = vadd.f32 %v2394_v17, %v8409_v36  ;;  %v8552_v2 = vadd.f32 %v2395_v60, %v8412_v48  ;;  %v4197_v38 = vld [vmem:[%s4698_s12 + $0x59] sm:$0x3f]  ;;  %v11380_v14 = vld [vmem:[#allocation41_spill] sm:$0xff] }
 0x1fb   : > { %v8555_v27 = vadd.f32 %v2396_v56, %v8415_v63  ;;  %v8558_v29 = vadd.f32 %v2397_v10, %v8418_v21  ;;  %v8561_v30 = vadd.f32 %v2398_v8, %v8421_v32  ;;  %v8564_v53 = vadd.f32 %v2399_v13, %v8424_v26  ;;  %v4198_v60 = vld [vmem:[%s4698_s12 + $0x69] sm:$0x3f]  ;;  %v4199_v13 = vld [vmem:[%s4698_s12 + $0x79] sm:$0x3f] }
 0x1fc   : > { %v8567_v37 = vadd.f32 %v2400_v12, %v8427_v35  ;;  %v8570_v36 = vadd.f32 %v2401_v9, %v8430_v4  ;;  %v8573_v48 = vadd.f32 %v2402_v43, %v8433_v20  ;;  %v8576_v63 = vadd.f32 %v2403_v0, %v8436_v15  ;;  %v11381_v10 = vld [vmem:[#allocation42_spill] sm:$0xff]  ;;  %v11382_v9 = vld [vmem:[#allocation43_spill] sm:$0xff] }
 0x1fd   : > { %v8579_v21 = vadd.f32 %v2404_v44, %v8439_v7  ;;  %v8582_v32 = vadd.f32 %v2405_v23, %v8442_v52  ;;  %v8585_v26 = vadd.f32 %v2406_v51, %v8445_v61  ;;  %v8588_v35 = vadd.f32 %v2407_v42, %v8448_v59  ;;  %v11375_v52 = vld [vmem:[#allocation19_spill] sm:$0xff]  ;;  %v11376_v61 = vld [vmem:[#allocation37_spill] sm:$0xff] }
 0x1fe   : > { %v8591_v4 = vadd.f32 %v2408_v41, %v8451_v19  ;;  %v8594_v20 = vadd.f32 %v2409_v55, %v8454_v54  ;;  %v8597_v15 = vadd.f32 %v2410_v1, %v8457_v49  ;;  %v8600_v7 = vadd.f32 %v2411_v16, %v8460_v57  ;;  %v11377_v19 = vld [vmem:[#allocation38_spill] sm:$0xff]  ;;  %v4195_v54 = vld [vmem:[%s4698_s12 + $0x39] sm:$0x3f] }
 0x1ff   : > { %v2442_v47 = vmul.f32 %v11376_v61, %v11375_v52  ;;  %v2443_v59 = vmul.f32 %v4194_v62, %v11375_v52  ;;  %v2444_v6 = vmul.f32 %v11377_v19, %v11375_v52  ;;  %v2445_v5 = vmul.f32 %v4195_v54, %v11375_v52  ;;  %v11378_v49 = vld [vmem:[#allocation39_spill] sm:$0xff]  ;;  %v4196_v57 = vld [vmem:[%s4698_s12 + $0x49] sm:$0x3f] }
 0x200   : > { %v2446_v24 = vmul.f32 %v11378_v49, %v11375_v52  ;;  %v2447_v11 = vmul.f32 %v4196_v57, %v11375_v52  ;;  %v2448_v22 = vmul.f32 %v11379_v3, %v11375_v52  ;;  %v2449_v58 = vmul.f32 %v4197_v38, %v11375_v52  ;;  %v4200_v0 = vld [vmem:[%s4698_s12 + $0x89] sm:$0x3f]  ;;  %v11383_v23 = vld [vmem:[#allocation31_spill] sm:$0xff]  ;;  %v11386_v57 = vld [vmem:[#allocation28_spill] sm:$0xff] }
 0x201   : > { %v2450_v17 = vmul.f32 %v11380_v14, %v11375_v52  ;;  %v2451_v56 = vmul.f32 %v4198_v60, %v11375_v52  ;;  %v2452_v8 = vmul.f32 %v11381_v10, %v11375_v52  ;;  %v2453_v12 = vmul.f32 %v4199_v13, %v11375_v52  ;;  %v4201_v42 = vld [vmem:[%s4698_s12 + $0x99] sm:$0x3f]  ;;  %v4202_v16 = vld [vmem:[%s4698_s12 + $0xa9] sm:$0x3f] }
 0x202   : > { %v2454_v43 = vmul.f32 %v11382_v9, %v11375_v52  ;;  %v2455_v44 = vmul.f32 %v4200_v0, %v11375_v52  ;;  %v2456_v51 = vmul.f32 %v11383_v23, %v11375_v52  ;;  %v2457_v41 = vmul.f32 %v4201_v42, %v11375_v52  ;;  %v11384_v55 = vld [vmem:[#allocation15_spill] sm:$0xff]  ;;  %v11385_v62 = vld [vmem:[#allocation45_spill] sm:$0xff]  ;;  %v11388_v0 = vld [vmem:[#allocation44_spill] sm:$0xff] }
 0x203   : > { %v2458_v1 = vmul.f32 %v11384_v55, %v11375_v52  ;;  %v2459_v61 = vmul.f32 %v4202_v16, %v11375_v52  ;;  %v2460_v19 = vmul.f32 %v11385_v62, %v11375_v52  ;;  %v4203_v54 = vld [vmem:[%s4698_s12 + $0xb9] sm:$0x3f]  ;;  %v2462_v3 = vmul.f32 %v11386_v57, %v11375_v52  ;;  %v4204_v38 = vld [vmem:[%s4698_s12 + $0xc9] sm:$0x3f]  ;;  %v4207_v16 = vld [vmem:[%s4698_s12 + $0xf1] sm:$0xff] }
 0x204   : > { %v2461_v49 = vmul.f32 %v4203_v54, %v11375_v52  ;;  %v2463_v14 = vmul.f32 %v4204_v38, %v11375_v52  ;;  %v11387_v60 = vld [vmem:[#allocation47_spill] sm:$0xff]  ;;  %v2466_v23 = vmul.f32 %v11388_v0, %v11375_v52  ;;  %v4206_v42 = vld [vmem:[%s4698_s12 + $0xe9] sm:$0x3f]  ;;  %v2468_v62 = vmul.f32 %v4207_v16, %v11375_v52 }
 0x205   : > { %v2464_v10 = vmul.f32 %v11387_v60, %v11375_v52  ;;  %v4205_v13 = vld [vmem:[%s4698_s12 + $0xd9] sm:$0x3f]  ;;  %v2467_v55 = vmul.f32 %v4206_v42, %v11375_v52  ;;  %v8659_v38 = vadd.f32 %v2442_v47, %v8519_v34  ;;  %v8662_v60 = vadd.f32 %v2443_v59, %v8522_v45  ;;  %v4209_v59 = vld [vmem:[%s4698_s12 + $0x2a] sm:$0x3f] }
 0x206   : > { %v2465_v9 = vmul.f32 %v4205_v13, %v11375_v52  ;;  %v4208_v54 = vld [vmem:[%s4698_s12 + $0xf9] sm:$0x3f]  ;;  %v8665_v13 = vadd.f32 %v2444_v6, %v8525_v40  ;;  %v8668_v0 = vadd.f32 %v2445_v5, %v8528_v25  ;;  %v8671_v42 = vadd.f32 %v2446_v24, %v8531_v31 }
 0x207   : > { %v2469_v57 = vmul.f32 %v4208_v54, %v11375_v52  ;;  %v8674_v16 = vadd.f32 %v2447_v11, %v8534_v33  ;;  %v8677_v52 = vadd.f32 %v2448_v22, %v8537_v46  ;;  %v8680_v34 = vadd.f32 %v2449_v58, %v8540_v18  ;;  %v4210_v5 = vld [vmem:[%s4698_s12 + $0x3a] sm:$0x3f]  ;;  %v4211_v11 = vld [vmem:[%s4698_s12 + $0x4a] sm:$0x3f]  ;;  %v11396_v22 = vld [vmem:[#allocation55_spill] sm:$0xff] }
 0x208   : > { %v8683_v45 = vadd.f32 %v2450_v17, %v8543_v39  ;;  %v8686_v40 = vadd.f32 %v2451_v56, %v8546_v50  ;;  %v8689_v25 = vadd.f32 %v2452_v8, %v8549_v28  ;;  %v8692_v31 = vadd.f32 %v2453_v12, %v8552_v2  ;;  %v4212_v17 = vld [vmem:[%s4698_s12 + $0x5a] sm:$0x3f] }
 0x209   : > { %v8695_v33 = vadd.f32 %v2454_v43, %v8555_v27  ;;  %v8698_v46 = vadd.f32 %v2455_v44, %v8558_v29  ;;  %v8701_v18 = vadd.f32 %v2456_v51, %v8561_v30  ;;  %v8704_v39 = vadd.f32 %v2457_v41, %v8564_v53  ;;  %v11397_v8 = vld [vmem:[#allocation56_spill] sm:$0xff]  ;;  %v4213_v43 = vld [vmem:[%s4698_s12 + $0x6a] sm:$0x3f]  ;;  %v11398_v51 = vld [vmem:[#allocation57_spill] sm:$0xff] }
 0x20a   : > { %v8707_v50 = vadd.f32 %v2458_v1, %v8567_v37  ;;  %v8710_v28 = vadd.f32 %v2459_v61, %v8570_v36  ;;  %v8713_v2 = vadd.f32 %v2460_v19, %v8573_v48  ;;  %v8716_v27 = vadd.f32 %v2461_v49, %v8576_v63  ;;  %v4214_v1 = vld [vmem:[%s4698_s12 + $0x7a] sm:$0x3f]  ;;  %v11399_v19 = vld [vmem:[#allocation58_spill] sm:$0xff] }
 0x20b   : > { %v8719_v29 = vadd.f32 %v2462_v3, %v8579_v21  ;;  %v8722_v30 = vadd.f32 %v2463_v14, %v8582_v32  ;;  %v8725_v53 = vadd.f32 %v2464_v10, %v8585_v26  ;;  %v8728_v37 = vadd.f32 %v2465_v9, %v8588_v35  ;;  %v11392_v32 = vld [vmem:[#allocation49_spill] sm:$0xff]  ;;  %v11393_v26 = vld [vmem:[#allocation52_spill] sm:$0xff]  ;;  %v4215_v3 = vld [vmem:[%s4698_s12 + $0x8a] sm:$0x3f] }
 0x20c   : > { %v8731_v36 = vadd.f32 %v2466_v23, %v8591_v4  ;;  %v8734_v48 = vadd.f32 %v2467_v55, %v8594_v20  ;;  %v8737_v63 = vadd.f32 %v2468_v62, %v8597_v15  ;;  %v8740_v21 = vadd.f32 %v2469_v57, %v8600_v7  ;;  %v11394_v4 = vld [vmem:[#allocation53_spill] sm:$0xff]  ;;  %v11395_v15 = vld [vmem:[#allocation54_spill] sm:$0xff]  ;;  %v4216_v23 = vld [vmem:[%s4698_s12 + $0x9a] sm:$0x3f] }
 0x20d   : > { %v2500_v47 = vmul.f32 %v11393_v26, %v11392_v32  ;;  %v2501_v35 = vmul.f32 %v4209_v59, %v11392_v32  ;;  %v2502_v6 = vmul.f32 %v11394_v4, %v11392_v32  ;;  %v2503_v20 = vmul.f32 %v4210_v5, %v11392_v32  ;;  %v11400_v10 = vld [vmem:[#allocation33_spill] sm:$0xff]  ;;  %v11401_v62 = vld [vmem:[#allocation14_spill] sm:$0xff]  ;;  %v11402_v59 = vld [vmem:[#allocation20_spill] sm:$0xff] }
 0x20e   : > { %11389 = vst [vmem:[#allocation34_spill] sm:$0xff] %v8734_v48  ;;  %11390 = vst [vmem:[#allocation51_spill] sm:$0xff] %v8737_v63  ;;  %v2504_v24 = vmul.f32 %v11395_v15, %v11392_v32  ;;  %v2505_v7 = vmul.f32 %v4211_v11, %v11392_v32  ;;  %v2506_v58 = vmul.f32 %v11396_v22, %v11392_v32  ;;  %v4217_v57 = vld [vmem:[%s4698_s12 + $0xaa] sm:$0x3f]  ;;  %v4218_v5 = vld [vmem:[%s4698_s12 + $0xba] sm:$0x3f] }
 0x20f   : > { %11391 = vst [vmem:[#allocation59_spill] sm:$0xff] %v8740_v21  ;;  %v2507_v56 = vmul.f32 %v4212_v17, %v11392_v32  ;;  %v2508_v12 = vmul.f32 %v11397_v8, %v11392_v32  ;;  %v2509_v44 = vmul.f32 %v4213_v43, %v11392_v32  ;;  %v2510_v41 = vmul.f32 %v11398_v51, %v11392_v32  ;;  %v11403_v11 = vld [vmem:[#allocation29_spill] sm:$0xff]  ;;  %v4219_v17 = vld [vmem:[%s4698_s12 + $0xca] sm:$0x3f] }
 0x210   : > { %v2511_v61 = vmul.f32 %v4214_v1, %v11392_v32  ;;  %v2512_v49 = vmul.f32 %v11399_v19, %v11392_v32  ;;  %v2513_v14 = vmul.f32 %v4215_v3, %v11392_v32  ;;  %v2514_v9 = vmul.f32 %v11400_v10, %v11392_v32  ;;  %v11404_v43 = vld [vmem:[#allocation18_spill] sm:$0xff]  ;;  %v4220_v1 = vld [vmem:[%s4698_s12 + $0xda] sm:$0x3f] }
 0x211   : > { %v2515_v55 = vmul.f32 %v4216_v23, %v11392_v32  ;;  %v2516_v54 = vmul.f32 %v11401_v62, %v11392_v32  ;;  %v2517_v26 = vmul.f32 %v4217_v57, %v11392_v32  ;;  %v2518_v4 = vmul.f32 %v11402_v59, %v11392_v32  ;;  %v11405_v3 = vld [vmem:[#allocation16_spill] sm:$0xff]  ;;  %v4221_v23 = vld [vmem:[%s4698_s12 + $0xea] sm:$0x3f]  ;;  %v4222_v57 = vld [vmem:[%s4698_s12 + $0xf2] sm:$0xff] }
 0x212   : > { %v2519_v15 = vmul.f32 %v4218_v5, %v11392_v32  ;;  %v2520_v22 = vmul.f32 %v11403_v11, %v11392_v32  ;;  %v2521_v8 = vmul.f32 %v4219_v17, %v11392_v32  ;;  %v2522_v51 = vmul.f32 %v11404_v43, %v11392_v32  ;;  %v4223_v5 = vld [vmem:[%s4698_s12 + $0xfa] sm:$0x3f] }
 0x213   : > { %v2523_v19 = vmul.f32 %v4220_v1, %v11392_v32  ;;  %v2524_v10 = vmul.f32 %v11405_v3, %v11392_v32  ;;  %v2525_v62 = vmul.f32 %v4221_v23, %v11392_v32  ;;  %v2526_v59 = vmul.f32 %v4222_v57, %v11392_v32 }
 0x214   : > { %v2527_v11 = vmul.f32 %v4223_v5, %v11392_v32  ;;  %v2528_v17 = vadd.f32 %v2500_v47, %v8659_v38  ;;  %v2529_v43 = vadd.f32 %v2501_v35, %v8662_v60  ;;  %v2530_v21 = vadd.f32 %v2502_v6, %v8665_v13 }
 0x215   : > { %v2531_v1 = vadd.f32 %v2503_v20, %v8668_v0  ;;  %v2532_v3 = vadd.f32 %v2504_v24, %v8671_v42  ;;  %v2533_v63 = vadd.f32 %v2505_v7, %v8674_v16  ;;  %v2534_v23 = vadd.f32 %v2506_v58, %v8677_v52  ;;  %v11407_v35 = vld [vmem:[#allocation51_spill] sm:$0xff]  ;;  %v3746_v58 = vld [vmem:[%s10557_s3 + $0x1c8] sm:$0x3f] }
 0x216   : > { %v2535_v57 = vadd.f32 %v2507_v56, %v8680_v34  ;;  %v2536_v48 = vadd.f32 %v2508_v12, %v8683_v45  ;;  %v2537_v32 = vadd.f32 %v2509_v44, %v8686_v40  ;;  %v2538_v38 = vadd.f32 %v2510_v41, %v8689_v25 }
 0x217   : > { %v2539_v60 = vadd.f32 %v2511_v61, %v8692_v31  ;;  %v2540_v13 = vadd.f32 %v2512_v49, %v8695_v33  ;;  %v2541_v0 = vadd.f32 %v2513_v14, %v8698_v46  ;;  %v2542_v42 = vadd.f32 %v2514_v9, %v8701_v18  ;;  %v3745_v61 = vld [vmem:[%s10557_s3 + $0x1c0] sm:$0xff] }
 0x218   : > { %v8816_v47 = vstv %s8766_s19  ;;  %v2543_v16 = vadd.f32 %v2515_v55, %v8704_v39  ;;  %v2544_v52 = vadd.f32 %v2516_v54, %v8707_v50  ;;  %v2545_v34 = vadd.f32 %v2517_v26, %v8710_v28  ;;  %v3747_v55 = vld [vmem:[%s10557_s3 + $0x1d0] sm:$0xff]  ;;  %v3748_v54 = vld [vmem:[%s10557_s3 + $0x1d8] sm:$0x3f]  ;;  %v3750_v26 = vld [vmem:[%s10557_s3 + $0x1e8] sm:$0x3f] }
 0x219   : > { %v2546_v45 = vadd.f32 %v2518_v4, %v8713_v2  ;;  %v2547_v40 = vadd.f32 %v2519_v15, %v8716_v27  ;;  %v2548_v25 = vadd.f32 %v2520_v22, %v8719_v29  ;;  %v8825_v31 = vadd.f32 %v2521_v8, %v8722_v30  ;;  %v11406_v29 = vld [vmem:[#allocation34_spill] sm:$0xff] }
 0x21a   : > { %v2558_v33 = vadd.f32 %v8816_v47, %v2528_v17  ;;  %v2559_v46 = vadd.f32 %v8816_v47, %v2529_v43  ;;  %v2560_v18 = vadd.f32 %v8816_v47, %v2530_v21  ;;  %v2561_v39 = vadd.f32 %v8816_v47, %v2531_v1  ;;  %v11408_v21 = vld [vmem:[#allocation59_spill] sm:$0xff]  ;;  %v3754_v17 = vld [vmem:[%s10557_s3 + $0x208] sm:$0x3f] }
 0x21b   : > { %v2563_v50 = vadd.f32 %v8816_v47, %v2533_v63  ;;  %v8833_v28 = vadd.f32 %v2522_v51, %v8725_v53  ;;  %v8836_v2 = vadd.f32 %v2523_v19, %v8728_v37  ;;  %v8839_v27 = vadd.f32 %v2524_v10, %v8731_v36 }
 0x21c   : > { %v8842_v30 = vadd.f32 %v2525_v62, %v11406_v29  ;;  %v8845_v6 = vadd.f32 %v2526_v59, %v11407_v35  ;;  %v8848_v20 = vadd.f32 %v2527_v11, %v11408_v21  ;;  %v2562_v63 = vadd.f32 %v8816_v47, %v2532_v3  ;;  %v3749_v62 = vld [vmem:[%s10557_s3 + $0x1e0] sm:$0xff]  ;;  %v3752_v59 = vld [vmem:[%s10557_s3 + $0x1f8] sm:$0x3f]  ;;  %v3751_v11 = vld [vmem:[%s10557_s3 + $0x1f0] sm:$0xff] }
 0x21d   : > { %v2565_v53 = vadd.f32 %v8816_v47, %v2535_v57  ;;  %v2564_v24 = vadd.f32 %v8816_v47, %v2534_v23  ;;  %v2566_v37 = vadd.f32 %v8816_v47, %v2536_v48  ;;  %v2567_v36 = vadd.f32 %v8816_v47, %v2537_v32 }
 0x21e   : > { %v2586_v7 = vmax.f32 %v2558_v33, 0.0  ;;  %v2587_v56 = vmax.f32 %v2559_v46, 0.0  ;;  %v2588_v12 = vmax.f32 %v2560_v18, 0.0  ;;  %v2589_v44 = vmax.f32 %v2561_v39, 0.0  ;;  %v3753_v46 = vld [vmem:[%s10557_s3 + $0x200] sm:$0xff] }
 0x21f   : > { %v2591_v41 = vmax.f32 %v2563_v50, 0.0  ;;  %v2568_v49 = vadd.f32 %v8816_v47, %v2538_v38  ;;  %v2569_v14 = vadd.f32 %v8816_v47, %v2539_v60  ;;  %v8864_v48 = vadd.f32 %v8816_v47, %v2540_v13 }
 0x220   : > { %v2571_v9 = vadd.f32 %v8816_v47, %v2541_v0  ;;  %v8877_v4 = vadd.f32 %v8816_v47, %v2542_v42  ;;  %v2573_v15 = vadd.f32 %v8816_v47, %v2543_v16  ;;  %v2590_v22 = vmax.f32 %v2562_v63, 0.0  ;;  %v3755_v63 = vld [vmem:[%s10557_s3 + $0x210] sm:$0xff] }
 0x221   : > { %v2593_v8 = vmax.f32 %v2565_v53, 0.0  ;;  %v8881_v51 = vadd.f32 %v8816_v47, %v2544_v52  ;;  %v2592_v19 = vmax.f32 %v2564_v24, 0.0  ;;  %v2595_v10 = vmax.f32 %v2567_v36, 0.0  ;;  %v3758_v53 = vld [vmem:[%s10557_s3 + $0x228] sm:$0x3f] }
 0x222   : > { %v2643_v5 = vmul.f32 %v3745_v61, %v2586_v7  ;;  %v2644_v43 = vmul.f32 %v3746_v58, %v2587_v56  ;;  %v2645_v1 = vmul.f32 %v3747_v55, %v2588_v12  ;;  %v2646_v3 = vmul.f32 %v3748_v54, %v2589_v44  ;;  %v3757_v44 = vld [vmem:[%s10557_s3 + $0x220] sm:$0xff] }
 0x223   : > { %v2648_v23 = vmul.f32 %v3750_v26, %v2591_v41  ;;  %v2575_v57 = vadd.f32 %v8816_v47, %v2545_v34  ;;  %v8897_v32 = vadd.f32 %v8816_v47, %v2546_v45  ;;  %v8900_v38 = vadd.f32 %v8816_v47, %v2547_v40  ;;  %v3756_v34 = vld [vmem:[%s10557_s3 + $0x218] sm:$0x3f]  ;;  %v3759_v26 = vld [vmem:[%s10557_s3 + $0x230] sm:$0xff] }
 0x224   : > { %v8903_v60 = vadd.f32 %v8816_v47, %v2548_v25  ;;  %v2594_v13 = vmax.f32 %v2566_v37, 0.0  ;;  %v2597_v0 = vmax.f32 %v2569_v14, 0.0  ;;  %v2647_v42 = vmul.f32 %v3749_v62, %v2590_v22  ;;  %v3760_v41 = vld [vmem:[%s10557_s3 + $0x238] sm:$0x3f] }
 0x225   : > { %v2650_v16 = vmul.f32 %v3752_v59, %v2593_v8  ;;  %v2596_v52 = vmax.f32 %v2568_v49, 0.0  ;;  %v2599_v33 = vmax.f32 %v2571_v9, 0.0  ;;  %v2649_v45 = vmul.f32 %v3751_v11, %v2592_v19  ;;  %v3764_v59 = vld [vmem:[%s10557_s3 + $0x258] sm:$0x3f]  ;;  %v3761_v11 = vld [vmem:[%s10557_s3 + $0x240] sm:$0xff] }
 0x226   : > { %v2652_v40 = vmul.f32 %v3754_v17, %v2595_v10  ;;  %v2671_v18 = vadd.f32 %v2645_v1, %v2643_v5  ;;  %v2684_v25 = vsel %vm1311_vm0, %v2644_v43, 0.0  ;;  %v2685_v39 = vsel %vm1311_vm0, %v2646_v3, 0.0 }
 0x227   : > { %v2687_v50 = vsel %vm1311_vm0, %v2648_v23, 0.0  ;;  %v8916_v29 = vadd.f32 %v8816_v47, %v8825_v31  ;;  %v2598_v35 = vmax.f32 %v8864_v48, 0.0  ;;  %v2601_v21 = vmax.f32 %v2573_v15, 0.0 }
 0x228   : > { %v2686_v24 = vadd.f32 %v2685_v39, %v2684_v25  ;;  %v2651_v37 = vmul.f32 %v3753_v46, %v2594_v13  ;;  %v2654_v36 = vmul.f32 %v3756_v34, %v2597_v0  ;;  %v2672_v7 = vadd.f32 %v2671_v18, %v2647_v42  ;;  %v3766_v13 = vld [vmem:[%s10557_s3 + $0x268] sm:$0x3f]  ;;  %v3772_v18 = vld [vmem:[%s10557_s3 + $0x298] sm:$0x3f] }
 0x229   : > { %v2689_v58 = vsel %vm1311_vm0, %v2650_v16, 0.0  ;;  %v8928_v31 = vadd.f32 %v8816_v47, %v8833_v28  ;;  %v2600_v56 = vmax.f32 %v8877_v4, 0.0  ;;  %v2603_v12 = vmax.f32 %v2575_v57, 0.0  ;;  %v3762_v4 = vld [vmem:[%s10557_s3 + $0x248] sm:$0x3f] }
 0x22a   : > { %v2688_v61 = vadd.f32 %v2687_v50, %v2686_v24  ;;  %v2653_v49 = vmul.f32 %v3755_v63, %v2596_v52  ;;  %v2656_v14 = vmul.f32 %v3758_v53, %v2599_v33  ;;  %v2673_v48 = vadd.f32 %v2672_v7, %v2649_v45  ;;  %v3768_v16 = vld [vmem:[%s10557_s3 + $0x278] sm:$0x3f]  ;;  %v3770_v52 = vld [vmem:[%s10557_s3 + $0x288] sm:$0x3f]  ;;  %v3769_v7 = vld [vmem:[%s10557_s3 + $0x280] sm:$0xff] }
 0x22b   : > { %v2691_v9 = vsel %vm1311_vm0, %v2652_v40, 0.0  ;;  %v2581_v28 = vadd.f32 %v8816_v47, %v8836_v2  ;;  %v8942_v55 = vadd.f32 %v8816_v47, %v8839_v27  ;;  %v2605_v54 = vmax.f32 %v8900_v38, 0.0  ;;  %v3763_v38 = vld [vmem:[%s10557_s3 + $0x250] sm:$0xff] }
 0x22c   : > { %v2690_v15 = vadd.f32 %v2689_v58, %v2688_v61  ;;  %v2655_v22 = vmul.f32 %v3757_v44, %v2598_v35  ;;  %v2658_v8 = vmul.f32 %v3760_v41, %v2601_v21  ;;  %v2674_v19 = vadd.f32 %v2673_v48, %v2651_v37  ;;  %v11409_v34 = vld [vmem:[#allocation50_spill] sm:$0xff] }
 0x22d   : > { %v2693_v2 = vsel %vm1311_vm0, %v2654_v36, 0.0  ;;  %v2583_v27 = vadd.f32 %v8816_v47, %v8842_v30  ;;  %v2585_v10 = vadd.f32 %v8816_v47, %v8848_v20  ;;  %v2602_v62 = vmax.f32 %v8881_v51, 0.0  ;;  %v3767_v36 = vld [vmem:[%s10557_s3 + $0x270] sm:$0xff] }
 0x22e   : > { %v2692_v5 = vadd.f32 %v2691_v9, %v2690_v15  ;;  %v2657_v17 = vmul.f32 %v3759_v26, %v2600_v56  ;;  %v2660_v43 = vmul.f32 %v3762_v4, %v2603_v12  ;;  %v2675_v1 = vadd.f32 %v2674_v19, %v2653_v49  ;;  %v3771_v58 = vld [vmem:[%s10557_s3 + $0x290] sm:$0xff] }
 0x22f   : > { %v2695_v3 = vsel %vm1311_vm0, %v2656_v14, 0.0  ;;  %v2584_v30 = vadd.f32 %v8816_v47, %v8845_v6  ;;  %v2604_v20 = vmax.f32 %v8897_v32, 0.0  ;;  %v2607_v51 = vmax.f32 %v8916_v29, 0.0  ;;  %v11410_v41 = vld [vmem:[#allocation46_spill] sm:$0xff] }
 0x230   : > { %v2694_v23 = vadd.f32 %v2693_v2, %v2692_v5  ;;  %v2609_v57 = vmax.f32 %v2581_v28, 0.0  ;;  %v2662_v0 = vmul.f32 %v3764_v59, %v2605_v54  ;;  %v2676_v42 = vadd.f32 %v2675_v1, %v2655_v22  ;;  %v4225_v5 = vld [vmem:[%s4698_s12 + $0x8] sm:$0x3f]  ;;  %v4227_v1 = vld [vmem:[%s4698_s12 + $0x18] sm:$0x3f] }
 0x231   : > { %v2697_v47 = vsel %vm1311_vm0, %v2658_v8, 0.0  ;;  %v2611_v6 = vmax.f32 %v2583_v27, 0.0  ;;  %v2613_v32 = vmax.f32 %v2585_v10, 0.0  ;;  %v2659_v33 = vmul.f32 %v3761_v11, %v2602_v62  ;;  %v4224_v10 = vld [vmem:[%s4698_s12] sm:$0xff] }
 0x232   : > { %v2696_v46 = vadd.f32 %v2695_v3, %v2694_v23  ;;  %v2027_v45 = vrot.slane %v11409_v34, 4  ;;  %v2606_v40 = vmax.f32 %v8903_v60, 0.0  ;;  %v2677_v25 = vadd.f32 %v2676_v42, %v2657_v17  ;;  %v3765_v60 = vld [vmem:[%s10557_s3 + $0x260] sm:$0xff]  ;;  %v9046_v17 = vld [vmem:[%s4698_s12 + $0x10] sm:$0xff] }
 0x233   : > { %v2699_v39 = vsel %vm1311_vm0, %v2660_v43, 0.0  ;;  %v2608_v50 = vmax.f32 %v8928_v31, 0.0  ;;  %v2610_v29 = vmax.f32 %v8942_v55, 0.0  ;;  %v2664_v35 = vmul.f32 %v3766_v13, %v2607_v51  ;;  %11415 = vst [vmem:[#allocation22_spill] sm:$0xff] %v9046_v17  ;;  %v4229_v51 = vld [vmem:[%s4698_s12 + $0x28] sm:$0x3f] }
 0x234   : > { %v2698_v21 = vadd.f32 %v2697_v47, %v2696_v46  ;;  %v2612_v63 = vmax.f32 %v2584_v30, 0.0  ;;  %v2661_v53 = vmul.f32 %v3763_v38, %v2604_v20  ;;  %v2666_v24 = vmul.f32 %v3768_v16, %v2609_v57  ;;  %v9057_v30 = vld [vmem:[%s4698_s12 + $0x20] sm:$0xff]  ;;  %v9068_v57 = vld [vmem:[%s4698_s12 + $0x30] sm:$0xff]  ;;  %v4231_v13 = vld [vmem:[%s4698_s12 + $0x38] sm:$0x3f] }
 0x235   : > { %v2701_v37 = vsel %vm1311_vm0, %v2662_v0, 0.0  ;;  %v2668_v31 = vmul.f32 %v3770_v52, %v2611_v6  ;;  %v2670_v56 = vmul.f32 %v3772_v18, %v2613_v32  ;;  %v2678_v12 = vadd.f32 %v2677_v25, %v2659_v33  ;;  %11416 = vst [vmem:[#allocation23_spill] sm:$0xff] %v9057_v30  ;;  %11417 = vst [vmem:[#allocation24_spill] sm:$0xff] %v9068_v57  ;;  %v9079_v42 = vld [vmem:[%s4698_s12 + $0x40] sm:$0xff]  ;;  %v4233_v6 = vld [vmem:[%s4698_s12 + $0x48] sm:$0x3f] }
 0x236   : > { %v2700_v44 = vadd.f32 %v2699_v39, %v2698_v21  ;;  %v11411_v61 = vrot.slane %v11410_v41, 4  ;;  %v9014_v14 = vadd.f32 %v2027_v45, %v11409_v34  ;;  %v9017_v48 = vstv %s8964_s27  ;;  %11418 = vst [vmem:[#allocation25_spill] sm:$0xff] %v9079_v42  ;;  %v9090_v16 = vld [vmem:[%s4698_s12 + $0x50] sm:$0xff]  ;;  %v4235_v33 = vld [vmem:[%s4698_s12 + $0x58] sm:$0x3f]  ;;  %v9101_v45 = vld [vmem:[%s4698_s12 + $0x60] sm:$0xff] }
 0x237   : > { %v9020_v9 = vstv %s8966_s13  ;;  %v2663_v28 = vmul.f32 %v3765_v60, %v2606_v40  ;;  %v2703_v54 = vsel %vm1311_vm0, %v2664_v35, 0.0  ;;  %v9024_v26 = vstv %s8972_s14  ;;  %11419 = vst [vmem:[#allocation60_spill] sm:$0xff] %v9090_v16  ;;  %11420 = vst [vmem:[#allocation35_spill] sm:$0xff] %v9101_v45  ;;  %v4237_v18 = vld [vmem:[%s4698_s12 + $0x68] sm:$0x3f]  ;;  %v9112_v39 = vld [vmem:[%s4698_s12 + $0x70] sm:$0xff] }
 0x238   : > { %v9011_v49 = vadd.f32 %v11411_v61, %v11410_v41  ;;  %11413 = vst [vmem:[#allocation27_spill] sm:$0xff] %v9014_v14  ;;  %v2702_v55 = vadd.f32 %v2701_v37, %v2700_v44  ;;  %11414 = vst [vmem:[#allocation21_spill] sm:$0xff] %v9024_v26  ;;  %v2665_v4 = vmul.f32 %v3767_v36, %v2608_v50  ;;  %v2705_v8 = vsel %vm1311_vm0, %v2666_v24, 0.0  ;;  %v4239_v35 = vld [vmem:[%s4698_s12 + $0x78] sm:$0x3f]  ;;  %v9134_v37 = vld [vmem:[%s4698_s12 + $0x90] sm:$0xff] }
 0x239   : > { %v9026_v15 = vmul.f32 %v3769_v7, %v2610_v29  ;;  %v9028_v22 = vmul.f32 %v3771_v58, %v2612_v63  ;;  %v2679_v19 = vadd.f32 %v2678_v12, %v2661_v53  ;;  %v9032_v2 = vsel %vm1311_vm0, %v2668_v31, 0.0  ;;  %11421 = vst [vmem:[#allocation36_spill] sm:$0xff] %v9112_v39  ;;  %v9123_v63 = vld [vmem:[%s4698_s12 + $0x80] sm:$0xff]  ;;  %v4241_v53 = vld [vmem:[%s4698_s12 + $0x88] sm:$0x3f]  ;;  %11423 = vst [vmem:[#allocation13_spill] sm:$0xff] %v9134_v37 }
 0x23a   : > { %11412 = vst [vmem:[#allocation30_spill] sm:$0xff] %v9011_v49  ;;  %v9035_v27 = vsel %vm1311_vm0, %v2670_v56, 0.0  ;;  %v9039_v62 = vmul.f32 %v4224_v10, %v9017_v48  ;;  %v2704_v59 = vadd.f32 %v2703_v54, %v2702_v55  ;;  %v9043_v11 = vmul.f32 %v4225_v5, %v9017_v48  ;;  %11422 = vst [vmem:[#allocation26_spill] sm:$0xff] %v9123_v63  ;;  %v4243_v7 = vld [vmem:[%s4698_s12 + $0x98] sm:$0x3f]  ;;  %v9145_v31 = vld [vmem:[%s4698_s12 + $0xa0] sm:$0xff] }
 0x23b   : > { %v9050_v43 = vmul.f32 %v9046_v17, %v9017_v48  ;;  %v9054_v3 = vmul.f32 %v4227_v1, %v9017_v48  ;;  %v9061_v20 = vmul.f32 %v9057_v30, %v9017_v48  ;;  %v9065_v23 = vmul.f32 %v4229_v51, %v9017_v48  ;;  %11424 = vst [vmem:[#allocation48_spill] sm:$0xff] %v9145_v31  ;;  %v4245_v12 = vld [vmem:[%s4698_s12 + $0xa8] sm:$0x3f]  ;;  %v9156_v41 = vld [vmem:[%s4698_s12 + $0xb0] sm:$0xff]  ;;  %v9167_v54 = vld [vmem:[%s4698_s12 + $0xc0] sm:$0xff]  ;;  %s9439_s27 = sld [smem:[#allocation4 + $0x1e]] }
 0x23c   : > { %v9072_v38 = vmul.f32 %v9068_v57, %v9017_v48  ;;  %v9076_v0 = vmul.f32 %v4231_v13, %v9017_v48  ;;  %v9083_v47 = vmul.f32 %v9079_v42, %v9017_v48  ;;  %v9087_v32 = vmul.f32 %v4233_v6, %v9017_v48  ;;  %11425 = vst [vmem:[#allocation17_spill] sm:$0xff] %v9156_v41  ;;  %v9178_v5 = vld [vmem:[%s4698_s12 + $0xd0] sm:$0xff]  ;;  %v4251_v51 = vld [vmem:[%s4698_s12 + $0xd8] sm:$0x3f]  ;;  %v4252_v6 = vld [vmem:[%s4698_s12 + $0x1] sm:$0xff]  ;;  %s9469_s13 = sld [smem:[#allocation4 + $0x1f]] }
 0x23d   : > { %v9094_v52 = vmul.f32 %v9090_v16, %v9017_v48  ;;  %v9098_v46 = vmul.f32 %v4235_v33, %v9017_v48  ;;  %v2680_v34 = vadd.f32 %v2679_v19, %v2663_v28  ;;  %v9105_v40 = vmul.f32 %v9101_v45, %v9017_v48  ;;  %v4247_v28 = vld [vmem:[%s4698_s12 + $0xb8] sm:$0x3f]  ;;  %11426 = vst [vmem:[#allocation32_spill] sm:$0xff] %v9167_v54  ;;  %v4249_v19 = vld [vmem:[%s4698_s12 + $0xc8] sm:$0x3f]  ;;  %s9471_s14 = sld [smem:[#allocation4 + $0x20]] }
 0x23e   : > { %v9109_v25 = vmul.f32 %v4237_v18, %v9017_v48  ;;  %v9116_v50 = vmul.f32 %v9112_v39, %v9017_v48  ;;  %v2706_v29 = vadd.f32 %v2705_v8, %v2704_v59  ;;  %v9120_v21 = vmul.f32 %v4239_v35, %v9017_v48  ;;  %11428 = vst [vmem:[#allocation37_spill] sm:$0xff] %v9178_v5  ;;  %v9194_v35 = vld [vmem:[%s4698_s12 + $0x11] sm:$0xff]  ;;  %v4261_v49 = vld [vmem:[%s4698_s12 + $0x49] sm:$0x3f]  ;;  %v4275_v57 = vld [vmem:[%s4698_s12 + $0xb9] sm:$0x3f] }
 0x23f   : > { %v9127_v60 = vmul.f32 %v9123_v63, %v9017_v48  ;;  %v9131_v24 = vmul.f32 %v4241_v53, %v9017_v48  ;;  %v9138_v36 = vmul.f32 %v9134_v37, %v9017_v48  ;;  %v9142_v58 = vmul.f32 %v4243_v7, %v9017_v48  ;;  %11431 = vst [vmem:[#allocation40_spill] sm:$0xff] %v9194_v35  ;;  %v4255_v7 = vld [vmem:[%s4698_s12 + $0x19] sm:$0x3f]  ;;  %v9245_v37 = vld [vmem:[%s4698_s12 + $0x81] sm:$0xff]  ;;  %v9252_v39 = vld [vmem:[%s4698_s12 + $0x91] sm:$0xff] }
 0x240   : > { %v9149_v56 = vmul.f32 %v9145_v31, %v9017_v48  ;;  %v9153_v44 = vmul.f32 %v4245_v12, %v9017_v48  ;;  %v9160_v61 = vmul.f32 %v9156_v41, %v9017_v48  ;;  %v9164_v55 = vmul.f32 %v4247_v28, %v9017_v48  ;;  %v9201_v12 = vld [vmem:[%s4698_s12 + $0x21] sm:$0xff]  ;;  %v9237_v31 = vld [vmem:[%s4698_s12 + $0x71] sm:$0xff]  ;;  %11438 = vst [vmem:[#allocation28_spill] sm:$0xff] %v9245_v37  ;;  %v4277_v17 = vld [vmem:[%s4698_s12 + $0xc9] sm:$0x3f] }
 0x241   : > { %v9171_v8 = vmul.f32 %v9167_v54, %v9017_v48  ;;  %v9175_v10 = vmul.f32 %v4249_v19, %v9017_v48  ;;  %v2681_v59 = vadd.f32 %v2680_v34, %v2665_v4  ;;  %v9182_v1 = vmul.f32 %v9178_v5, %v9017_v48  ;;  %v4253_v4 = vld [vmem:[%s4698_s12 + $0x9] sm:$0x3f]  ;;  %11432 = vst [vmem:[#allocation41_spill] sm:$0xff] %v9201_v12  ;;  %v9208_v19 = vld [vmem:[%s4698_s12 + $0x31] sm:$0xff]  ;;  %v9230_v54 = vld [vmem:[%s4698_s12 + $0x61] sm:$0xff] }
 0x242   : > { %v9186_v13 = vmul.f32 %v4251_v51, %v9017_v48  ;;  %v2780_v33 = vmul.f32 %v4252_v6, %v9020_v9  ;;  %v2708_v18 = vadd.f32 %v9032_v2, %v2706_v29  ;;  %v2781_v34 = vmul.f32 %v4253_v4, %v9020_v9  ;;  %v4257_v2 = vld [vmem:[%s4698_s12 + $0x29] sm:$0x3f]  ;;  %11433 = vst [vmem:[#allocation42_spill] sm:$0xff] %v9208_v19  ;;  %v4259_v6 = vld [vmem:[%s4698_s12 + $0x39] sm:$0x3f]  ;;  %v9266_v42 = vld [vmem:[%s4698_s12 + $0xb1] sm:$0xff] }
 0x243   : > { %11427 = vst [vmem:[#allocation19_spill] sm:$0xff] %v9175_v10  ;;  %11429 = vst [vmem:[#allocation38_spill] sm:$0xff] %v9182_v1  ;;  %v2782_v53 = vmul.f32 %v9194_v35, %v9020_v9  ;;  %v2783_v48 = vmul.f32 %v4255_v7, %v9020_v9  ;;  %v2784_v28 = vmul.f32 %v9201_v12, %v9020_v9  ;;  %v9215_v7 = vld [vmem:[%s4698_s12 + $0x41] sm:$0xff]  ;;  %v9222_v12 = vld [vmem:[%s4698_s12 + $0x51] sm:$0xff] }
 0x244   : > { %11430 = vst [vmem:[#allocation39_spill] sm:$0xff] %v9186_v13  ;;  %v2785_v29 = vmul.f32 %v4257_v2, %v9020_v9  ;;  %v2786_v51 = vmul.f32 %v9208_v19, %v9020_v9  ;;  %v2787_v4 = vmul.f32 %v4259_v6, %v9020_v9  ;;  %11434 = vst [vmem:[#allocation43_spill] sm:$0xff] %v9215_v7  ;;  %v4263_v35 = vld [vmem:[%s4698_s12 + $0x59] sm:$0x3f]  ;;  %v9273_v30 = vld [vmem:[%s4698_s12 + $0xc1] sm:$0xff] }
 0x245   : > { %v2788_v14 = vmul.f32 %v9215_v7, %v9020_v9  ;;  %v2789_v2 = vmul.f32 %v4261_v49, %v9020_v9  ;;  %11435 = vst [vmem:[#allocation31_spill] sm:$0xff] %v9222_v12  ;;  %v2790_v19 = vmul.f32 %v9222_v12, %v9020_v9  ;;  %v2791_v6 = vmul.f32 %v4263_v35, %v9020_v9  ;;  %v4265_v49 = vld [vmem:[%s4698_s12 + $0x69] sm:$0x3f]  ;;  %v9281_v13 = vld [vmem:[%s4698_s12 + $0xd1] sm:$0xff]  ;;  %v4279_v1 = vld [vmem:[%s4698_s12 + $0xd9] sm:$0x3f] }
 0x246   : > { %v2682_v5 = vadd.f32 %v2681_v59, %v9026_v15  ;;  %11436 = vst [vmem:[#allocation15_spill] sm:$0xff] %v9230_v54  ;;  %v2792_v7 = vmul.f32 %v9230_v54, %v9020_v9  ;;  %v2793_v41 = vmul.f32 %v4265_v49, %v9020_v9  ;;  %11437 = vst [vmem:[#allocation45_spill] sm:$0xff] %v9237_v31  ;;  %v4267_v15 = vld [vmem:[%s4698_s12 + $0x79] sm:$0x3f]  ;;  %v4269_v49 = vld [vmem:[%s4698_s12 + $0x89] sm:$0x3f] }
 0x247   : > { %v2794_v12 = vmul.f32 %v9237_v31, %v9020_v9  ;;  %v2710_v35 = vadd.f32 %v9035_v27, %v2708_v18  ;;  %v2795_v59 = vmul.f32 %v4267_v15, %v9020_v9  ;;  %v2796_v54 = vmul.f32 %v9245_v37, %v9020_v9  ;;  %11439 = vst [vmem:[#allocation47_spill] sm:$0xff] %v9252_v39  ;;  %v4271_v27 = vld [vmem:[%s4698_s12 + $0x99] sm:$0x3f]  ;;  %v9259_v15 = vld [vmem:[%s4698_s12 + $0xa1] sm:$0xff]  ;;  %v4273_v37 = vld [vmem:[%s4698_s12 + $0xa9] sm:$0x3f] }
 0x248   : > { %v2797_v63 = vmul.f32 %v4269_v49, %v9020_v9  ;;  %v2798_v31 = vmul.f32 %v9252_v39, %v9020_v9  ;;  %v2799_v18 = vmul.f32 %v4271_v27, %v9020_v9  ;;  %11440 = vst [vmem:[#allocation44_spill] sm:$0xff] %v9259_v15  ;;  %v2800_v45 = vmul.f32 %v9259_v15, %v9020_v9 }
 0x249   : > { %v2801_v16 = vmul.f32 %v4273_v37, %v9020_v9  ;;  %11441 = vst [vmem:[#allocation49_spill] sm:$0xff] %v9266_v42  ;;  %v2802_v49 = vmul.f32 %v9266_v42, %v9020_v9  ;;  %v2803_v39 = vmul.f32 %v4275_v57, %v9020_v9  ;;  %11442 = vst [vmem:[#allocation52_spill] sm:$0xff] %v9273_v30  ;;  %v2711_v10 = vsel %vm1311_vm0, %v2710_v35, 0.0  ;;  %v9414_v35 = vld [vmem:[%s4698_s12 + $0x62] sm:$0xff] }
 0x24a   : > { %v2804_v27 = vmul.f32 %v9273_v30, %v9020_v9  ;;  %v2805_v26 = vmul.f32 %v4277_v17, %v9020_v9  ;;  %v2683_v15 = vadd.f32 %v2682_v5, %v9028_v22  ;;  %11443 = vst [vmem:[#allocation53_spill] sm:$0xff] %v9281_v13  ;;  %v2806_v37 = vmul.f32 %v9281_v13, %v9020_v9 }
 0x24b   : > { %v2807_v42 = vmul.f32 %v4279_v1, %v9020_v9  ;;  %v9288_v57 = vadd.f32 %v2780_v33, %v9039_v62  ;;  %v9292_v30 = vadd.f32 %v2781_v34, %v9043_v11  ;;  %v9295_v17 = vadd.f32 %v2782_v53, %v9050_v43  ;;  %v4285_v1 = vld [vmem:[%s4698_s12 + $0x2a] sm:$0x3f]  ;;  %v9393_v34 = vld [vmem:[%s4698_s12 + $0x32] sm:$0xff]  ;;  %11454 = vst [vmem:[#allocation14_spill] sm:$0xff] %v9414_v35 }
 0x24c   : > { %v9298_v22 = vadd.f32 %v2783_v48, %v9054_v3  ;;  %v9301_v5 = vadd.f32 %v2784_v28, %v9061_v20  ;;  %v9304_v13 = vadd.f32 %v2785_v29, %v9065_v23  ;;  %v9307_v9 = vadd.f32 %v2786_v51, %v9072_v38  ;;  %11451 = vst [vmem:[#allocation57_spill] sm:$0xff] %v9393_v34  ;;  %v4287_v48 = vld [vmem:[%s4698_s12 + $0x3a] sm:$0x3f]  ;;  %v9400_v28 = vld [vmem:[%s4698_s12 + $0x42] sm:$0xff] }
 0x24d   : > { %v9310_v62 = vadd.f32 %v2787_v4, %v9076_v0  ;;  %v9313_v11 = vadd.f32 %v2788_v14, %v9083_v47  ;;  %v9316_v43 = vadd.f32 %v2789_v2, %v9087_v32  ;;  %v9319_v3 = vadd.f32 %v2790_v19, %v9094_v52  ;;  %11452 = vst [vmem:[#allocation58_spill] sm:$0xff] %v9400_v28  ;;  %v4289_v19 = vld [vmem:[%s4698_s12 + $0x4a] sm:$0x3f]  ;;  %v9407_v4 = vld [vmem:[%s4698_s12 + $0x52] sm:$0xff]  ;;  %v4291_v2 = vld [vmem:[%s4698_s12 + $0x5a] sm:$0x3f] }
 0x24e   : > { %v9322_v20 = vadd.f32 %v2791_v6, %v9098_v46  ;;  %v9324_v23 = vadd.f32 %v2711_v10, %v2683_v15  ;;  %v9327_v38 = vadd.f32 %v2792_v7, %v9105_v40  ;;  %v9330_v0 = vadd.f32 %v2793_v41, %v9109_v25  ;;  %11453 = vst [vmem:[#allocation33_spill] sm:$0xff] %v9407_v4 }
 0x24f   : > { %v9333_v14 = vadd.f32 %v2794_v12, %v9116_v50  ;;  %v9336_v47 = vadd.f32 %v2795_v59, %v9120_v21  ;;  %v9339_v32 = vadd.f32 %v2796_v54, %v9127_v60  ;;  %v9342_v52 = vadd.f32 %v2797_v63, %v9131_v24  ;;  %v11445_v24 = vld [vmem:[#allocation19_spill] sm:$0xff]  ;;  %v4283_v54 = vld [vmem:[%s4698_s12 + $0x1a] sm:$0x3f] }
 0x250   : > { %11444 = vst [vmem:[#allocation54_spill] sm:$0xff] %v9324_v23  ;;  %v9345_v46 = vadd.f32 %v2798_v31, %v9138_v36  ;;  %v9348_v40 = vadd.f32 %v2799_v18, %v9142_v58  ;;  %v9351_v25 = vadd.f32 %v2800_v45, %v9149_v56  ;;  %v9354_v50 = vadd.f32 %v2801_v16, %v9153_v44  ;;  %v11446_v45 = vld [vmem:[#allocation38_spill] sm:$0xff]  ;;  %v11447_v31 = vld [vmem:[#allocation39_spill] sm:$0xff]  ;;  %v4280_v56 = vld [vmem:[%s4698_s12 + $0x2] sm:$0xff] }
 0x251   : > { %v9357_v21 = vadd.f32 %v2802_v49, %v9160_v61  ;;  %v9360_v63 = vadd.f32 %v2803_v39, %v9164_v55  ;;  %v9363_v60 = vadd.f32 %v2804_v27, %v9171_v8  ;;  %v9366_v36 = vadd.f32 %v2805_v26, %v11445_v24  ;;  %v11448_v44 = vld [vmem:[#allocation21_spill] sm:$0xff]  ;;  %v4281_v39 = vld [vmem:[%s4698_s12 + $0xa] sm:$0x3f]  ;;  %v9379_v55 = vld [vmem:[%s4698_s12 + $0x12] sm:$0xff] }
 0x252   : > { %v9369_v58 = vadd.f32 %v2806_v37, %v11446_v45  ;;  %v9372_v16 = vadd.f32 %v2807_v42, %v11447_v31  ;;  %v2838_v41 = vmul.f32 %v4280_v56, %v11448_v44  ;;  %v2839_v61 = vmul.f32 %v4281_v39, %v11448_v44  ;;  %11449 = vst [vmem:[#allocation55_spill] sm:$0xff] %v9379_v55  ;;  %v9386_v42 = vld [vmem:[%s4698_s12 + $0x22] sm:$0xff]  ;;  %v4293_v18 = vld [vmem:[%s4698_s12 + $0x6a] sm:$0x3f]  ;;  %v9421_v49 = vld [vmem:[%s4698_s12 + $0x72] sm:$0xff] }
 0x253   : > { %v2840_v26 = vmul.f32 %v9379_v55, %v11448_v44  ;;  %v2841_v8 = vmul.f32 %v4283_v54, %v11448_v44  ;;  %11450 = vst [vmem:[#allocation56_spill] sm:$0xff] %v9386_v42  ;;  %v2842_v10 = vmul.f32 %v9386_v42, %v11448_v44  ;;  %v2843_v33 = vmul.f32 %v4285_v1, %v11448_v44  ;;  %v4295_v37 = vld [vmem:[%s4698_s12 + $0x7a] sm:$0x3f]  ;;  %v9428_v45 = vld [vmem:[%s4698_s12 + $0x82] sm:$0xff]  ;;  %v4297_v56 = vld [vmem:[%s4698_s12 + $0x8a] sm:$0x3f] }
 0x254   : > { %v2844_v53 = vmul.f32 %v9393_v34, %v11448_v44  ;;  %v2845_v12 = vmul.f32 %v4287_v48, %v11448_v44  ;;  %v2846_v29 = vmul.f32 %v9400_v28, %v11448_v44  ;;  %v2847_v51 = vmul.f32 %v4289_v19, %v11448_v44  ;;  %11455 = vst [vmem:[#allocation20_spill] sm:$0xff] %v9421_v49  ;;  %v9435_v54 = vld [vmem:[%s4698_s12 + $0x92] sm:$0xff]  ;;  %v4299_v48 = vld [vmem:[%s4698_s12 + $0x9a] sm:$0x3f] }
 0x255   : > { %v2848_v7 = vmul.f32 %v9407_v4, %v11448_v44  ;;  %v2849_v6 = vmul.f32 %v4291_v2, %v11448_v44  ;;  %v2850_v59 = vmul.f32 %v9414_v35, %v11448_v44  ;;  %v2851_v15 = vmul.f32 %v4293_v18, %v11448_v44  ;;  %11456 = vst [vmem:[#allocation29_spill] sm:$0xff] %v9428_v45  ;;  %v9444_v2 = vld [vmem:[%s4698_s12 + $0xa2] sm:$0xff]  ;;  %v9451_v23 = vld [vmem:[%s4698_s12 + $0xb2] sm:$0xff]  ;;  %v4305_v4 = vld [vmem:[%s4698_s12 + $0xca] sm:$0x3f] }
 0x256   : > { %v2852_v27 = vmul.f32 %v9421_v49, %v11448_v44  ;;  %v2853_v24 = vmul.f32 %v4295_v37, %v11448_v44  ;;  %v2854_v31 = vmul.f32 %v9428_v45, %v11448_v44  ;;  %v2855_v39 = vmul.f32 %v4297_v56, %v11448_v44  ;;  %11457 = vst [vmem:[#allocation18_spill] sm:$0xff] %v9435_v54  ;;  %v4301_v37 = vld [vmem:[%s4698_s12 + $0xaa] sm:$0x3f]  ;;  %v4303_v45 = vld [vmem:[%s4698_s12 + $0xba] sm:$0x3f]  ;;  %v9458_v35 = vld [vmem:[%s4698_s12 + $0xc2] sm:$0xff] }
 0x257   : > { %v2856_v1 = vmul.f32 %v9435_v54, %v11448_v44  ;;  %v2857_v19 = vmul.f32 %v4299_v48, %v11448_v44  ;;  %11458 = vst [vmem:[#allocation16_spill] sm:$0xff] %v9444_v2  ;;  %v2858_v18 = vmul.f32 %v9444_v2, %v11448_v44  ;;  %v2859_v56 = vmul.f32 %v4301_v37, %v11448_v44  ;;  %v9465_v2 = vld [vmem:[%s4698_s12 + $0xd2] sm:$0xff] }
 0x258   : > { %11459 = vst [vmem:[#allocation34_spill] sm:$0xff] %v9451_v23  ;;  %v2860_v54 = vmul.f32 %v9451_v23, %v11448_v44  ;;  %v2861_v49 = vmul.f32 %v4303_v45, %v11448_v44  ;;  %11460 = vst [vmem:[#allocation51_spill] sm:$0xff] %v9458_v35  ;;  %v2862_v48 = vmul.f32 %v9458_v35, %v11448_v44  ;;  %v4307_v23 = vld [vmem:[%s4698_s12 + $0xda] sm:$0x3f] }
 0x259   : > { %v2863_v28 = vmul.f32 %v4305_v4, %v11448_v44  ;;  %11461 = vst [vmem:[#allocation59_spill] sm:$0xff] %v9465_v2  ;;  %v2864_v37 = vmul.f32 %v9465_v2, %v11448_v44  ;;  %v2865_v45 = vmul.f32 %v4307_v23, %v11448_v44  ;;  %v9476_v34 = vadd.f32 %v2838_v41, %v9288_v57 }
 0x25a   : > { %v9479_v35 = vadd.f32 %v2839_v61, %v9292_v30  ;;  %v9482_v4 = vadd.f32 %v2840_v26, %v9295_v17  ;;  %v9485_v42 = vadd.f32 %v2841_v8, %v9298_v22  ;;  %v9488_v2 = vadd.f32 %v2842_v10, %v9301_v5  ;;  %v11467_v26 = vld [vmem:[#allocation23_spill] sm:$0xff] }
 0x25b   : > { %v9491_v55 = vadd.f32 %v2843_v33, %v9304_v13  ;;  %v9494_v23 = vadd.f32 %v2844_v53, %v9307_v9  ;;  %v9497_v57 = vadd.f32 %v2845_v12, %v9310_v62  ;;  %v9500_v30 = vadd.f32 %v2846_v29, %v9313_v11  ;;  %v11469_v12 = vld [vmem:[#allocation25_spill] sm:$0xff] }
 0x25c   : > { %v9503_v17 = vadd.f32 %v2847_v51, %v9316_v43  ;;  %v9506_v22 = vadd.f32 %v2848_v7, %v9319_v3  ;;  %v9509_v5 = vadd.f32 %v2849_v6, %v9322_v20  ;;  %v9512_v13 = vadd.f32 %v2850_v59, %v9327_v38  ;;  %v4311_v29 = vld [vmem:[%s4698_s12 + $0x48] sm:$0x3f]  ;;  %v11470_v7 = vld [vmem:[#allocation60_spill] sm:$0xff] }
 0x25d   : > { %v9515_v9 = vadd.f32 %v2851_v15, %v9330_v0  ;;  %v9518_v62 = vadd.f32 %v2852_v27, %v9333_v14  ;;  %v9521_v11 = vadd.f32 %v2853_v24, %v9336_v47  ;;  %v9524_v43 = vadd.f32 %v2854_v31, %v9339_v32  ;;  %v4312_v59 = vld [vmem:[%s4698_s12 + $0x58] sm:$0x3f]  ;;  %v4313_v24 = vld [vmem:[%s4698_s12 + $0x68] sm:$0x3f] }
 0x25e   : > { %v9527_v3 = vadd.f32 %v2855_v39, %v9342_v52  ;;  %v9530_v20 = vadd.f32 %v2856_v1, %v9345_v46  ;;  %v9533_v38 = vadd.f32 %v2857_v19, %v9348_v40  ;;  %v9536_v0 = vadd.f32 %v2858_v18, %v9351_v25  ;;  %v11472_v39 = vld [vmem:[#allocation36_spill] sm:$0xff]  ;;  %v11473_v18 = vld [vmem:[#allocation26_spill] sm:$0xff] }
 0x25f   : > { %v9539_v14 = vadd.f32 %v2859_v56, %v9354_v50  ;;  %v2895_v47 = vstv %s9439_s27  ;;  %v9543_v32 = vadd.f32 %v2860_v54, %v9357_v21  ;;  %v9546_v52 = vadd.f32 %v2861_v49, %v9360_v63  ;;  %v11466_v63 = vld [vmem:[#allocation22_spill] sm:$0xff]  ;;  %v11471_v49 = vld [vmem:[#allocation35_spill] sm:$0xff]  ;;  %s3811_s27 = sshll.u32 %s4557_s4, 4  ;;  %s4502_s4 = smov [#allocation9]  }
 0x260   : > { %v9549_v46 = vadd.f32 %v2862_v48, %v9363_v60  ;;  %v9552_v40 = vadd.f32 %v2863_v28, %v9366_v36  ;;  %v9555_v25 = vadd.f32 %v2864_v37, %v9369_v58  ;;  %v9558_v50 = vadd.f32 %v2865_v45, %v9372_v16  ;;  %v4308_v60 = vld [vmem:[%s4698_s12 + $0x18] sm:$0x3f]  ;;  %v4309_v36 = vld [vmem:[%s4698_s12 + $0x28] sm:$0x3f]  ;;  %s4432_s7 = sshll.u32 %s4502_s4, 4  ;;  %s4433_s7 = int_to_ptr.vmem [resolvable:$false] %s4432_s7 }
 0x261   : > { %v9561_v44 = vstv %s9469_s13  ;;  %v9564_v21 = vstv %s9471_s14  ;;  %v2896_v41 = vmul.f32 %v11466_v63, %v2895_v47  ;;  %v2897_v61 = vmul.f32 %v4308_v60, %v2895_v47  ;;  %v11468_v58 = vld [vmem:[#allocation24_spill] sm:$0xff]  ;;  %v4315_v48 = vld [vmem:[%s4698_s12 + $0x88] sm:$0x3f]  ;;  %s407_s13 = scalar_lea.vmem [#allocation9], %s4695_s10  ;;  %s4434_s26 = scalar_lea.vmem %s4433_s7, 32 }
 0x262   : > { %11462 = vst [vmem:[#allocation50_spill] sm:$0xff] %v9555_v25  ;;  %11463 = vst [vmem:[#allocation46_spill] sm:$0xff] %v9558_v50  ;;  %v2898_v8 = vmul.f32 %v11467_v26, %v2895_v47  ;;  %v2899_v10 = vmul.f32 %v4309_v36, %v2895_v47  ;;  %v2900_v33 = vmul.f32 %v11468_v58, %v2895_v47  ;;  %v4310_v16 = vld [vmem:[%s4698_s12 + $0x38] sm:$0x3f]  ;;  %v11474_v45 = vld [vmem:[#allocation13_spill] sm:$0xff]  ;;  %s3427_s14 = sshll.u32 %s407_s13, 4  ;;  %s10512_s14 = int_to_ptr.vmem [resolvable:$true] %s3427_s14 }
 0x263   : > { %11464 = vst [vmem:[#allocation19_spill] sm:$0xff] %v9561_v44  ;;  %11465 = vst [vmem:[#allocation38_spill] sm:$0xff] %v9564_v21  ;;  %v2901_v53 = vmul.f32 %v4310_v16, %v2895_v47  ;;  %v2902_v28 = vmul.f32 %v11469_v12, %v2895_v47  ;;  %v2903_v51 = vmul.f32 %v4311_v29, %v2895_v47  ;;  %v4314_v1 = vld [vmem:[%s4698_s12 + $0x78] sm:$0x3f]  ;;  %v11478_v21 = vld [vmem:[#allocation37_spill] sm:$0xff]  ;;  %p4435_p13 = scmp.lt.s32.totalorder %s10512_s14, %s4433_s7 }
 0x264   : > { %v2904_v6 = vmul.f32 %v11470_v7, %v2895_v47  ;;  %v2905_v15 = vmul.f32 %v4312_v59, %v2895_v47  ;;  %v2906_v27 = vmul.f32 %v11471_v49, %v2895_v47  ;;  %v2907_v31 = vmul.f32 %v4313_v24, %v2895_v47  ;;  %v4316_v60 = vld [vmem:[%s4698_s12 + $0x98] sm:$0x3f]  ;;  %v4317_v59 = vld [vmem:[%s4698_s12 + $0xa8] sm:$0x3f] }
 0x265   : > { %v2908_v54 = vmul.f32 %v11472_v39, %v2895_v47  ;;  %v2909_v19 = vmul.f32 %v4314_v1, %v2895_v47  ;;  %v2910_v56 = vmul.f32 %v11473_v18, %v2895_v47  ;;  %v2911_v37 = vmul.f32 %v4315_v48, %v2895_v47  ;;  %v11475_v16 = vld [vmem:[#allocation48_spill] sm:$0xff]  ;;  %v11476_v49 = vld [vmem:[#allocation17_spill] sm:$0xff] }
 0x266   : > { %v2912_v63 = vmul.f32 %v11474_v45, %v2895_v47  ;;  %v2913_v36 = vmul.f32 %v4316_v60, %v2895_v47  ;;  %v2914_v29 = vmul.f32 %v11475_v16, %v2895_v47  ;;  %v2915_v24 = vmul.f32 %v4317_v59, %v2895_v47  ;;  %v4318_v7 = vld [vmem:[%s4698_s12 + $0xb8] sm:$0x3f]  ;;  %v4319_v18 = vld [vmem:[%s4698_s12 + $0xc8] sm:$0x3f]  ;;  %v9593_v45 = vld [vmem:[%s4698_s12 + $0xe0] sm:$0xff] }
 0x267   : > { %v2916_v39 = vmul.f32 %v11476_v49, %v2895_v47  ;;  %v2917_v12 = vmul.f32 %v4318_v7, %v2895_v47  ;;  %v11477_v1 = vld [vmem:[#allocation32_spill] sm:$0xff]  ;;  %v2919_v26 = vmul.f32 %v4319_v18, %v2895_v47  ;;  %v2920_v48 = vmul.f32 %v11478_v21, %v2895_v47  ;;  %11479 = vst [vmem:[#allocation39_spill] sm:$0xff] %v9593_v45  ;;  %v4322_v25 = vld [vmem:[%s4698_s12 + $0xe8] sm:$0x3f] }
 0x268   : > { %v2918_v58 = vmul.f32 %v11477_v1, %v2895_v47  ;;  %v4320_v44 = vld [vmem:[%s4698_s12 + $0xd8] sm:$0x3f]  ;;  %v2922_v60 = vmul.f32 %v9593_v45, %v2895_v47  ;;  %v2923_v16 = vmul.f32 %v4322_v25, %v2895_v47  ;;  %v9598_v59 = vadd.f32 %v2896_v41, %v9476_v34  ;;  %v9734_v45 = vld [vmem:[%s4698_s12 + $0xe1] sm:$0xff] }
 0x269   : > { %v2921_v50 = vmul.f32 %v4320_v44, %v2895_v47  ;;  %v9601_v49 = vadd.f32 %v2897_v61, %v9479_v35  ;;  %v9604_v7 = vadd.f32 %v2898_v8, %v9482_v4  ;;  %v9607_v18 = vadd.f32 %v2899_v10, %v9485_v42  ;;  %v11481_v25 = vld [vmem:[#allocation46_spill] sm:$0xff]  ;;  %v4323_v8 = vld [vmem:[%s4698_s12 + $0x19] sm:$0x3f]  ;;  %11496 = vst [vmem:[#allocation21_spill] sm:$0xff] %v9734_v45 }
 0x26a   : > { %v9610_v44 = vadd.f32 %v2900_v33, %v9488_v2  ;;  %v9613_v21 = vadd.f32 %v2901_v53, %v9491_v55  ;;  %v9616_v47 = vadd.f32 %v2902_v28, %v9494_v23  ;;  %v9619_v34 = vadd.f32 %v2903_v51, %v9497_v57  ;;  %v11482_v41 = vld [vmem:[#allocation19_spill] sm:$0xff]  ;;  %v11485_v10 = vld [vmem:[#allocation42_spill] sm:$0xff] }
 0x26b   : > { %v9622_v35 = vadd.f32 %v2904_v6, %v9500_v30  ;;  %v9625_v4 = vadd.f32 %v2905_v15, %v9503_v17  ;;  %v9628_v42 = vadd.f32 %v2906_v27, %v9506_v22  ;;  %v9631_v2 = vadd.f32 %v2907_v31, %v9509_v5  ;;  %v4325_v33 = vld [vmem:[%s4698_s12 + $0x39] sm:$0x3f]  ;;  %v4326_v51 = vld [vmem:[%s4698_s12 + $0x49] sm:$0x3f] }
 0x26c   : > { %v9634_v55 = vadd.f32 %v2908_v54, %v9512_v13  ;;  %v9637_v23 = vadd.f32 %v2909_v19, %v9515_v9  ;;  %v9640_v57 = vadd.f32 %v2910_v56, %v9518_v62  ;;  %v9643_v30 = vadd.f32 %v2911_v37, %v9521_v11  ;;  %v11487_v15 = vld [vmem:[#allocation31_spill] sm:$0xff]  ;;  %v4328_v56 = vld [vmem:[%s4698_s12 + $0x69] sm:$0x3f] }
 0x26d   : > { %v9646_v17 = vadd.f32 %v2912_v63, %v9524_v43  ;;  %v9649_v22 = vadd.f32 %v2913_v36, %v9527_v3  ;;  %v9652_v5 = vadd.f32 %v2914_v29, %v9530_v20  ;;  %v9655_v13 = vadd.f32 %v2915_v24, %v9533_v38  ;;  %v11480_v38 = vld [vmem:[#allocation50_spill] sm:$0xff]  ;;  %v4327_v31 = vld [vmem:[%s4698_s12 + $0x59] sm:$0x3f]  ;;  %v11489_v63 = vld [vmem:[#allocation45_spill] sm:$0xff] }
 0x26e   : > { %v9658_v9 = vadd.f32 %v2916_v39, %v9536_v0  ;;  %v9661_v62 = vadd.f32 %v2917_v12, %v9539_v14  ;;  %v9664_v11 = vadd.f32 %v2918_v58, %v9543_v32  ;;  %v9667_v43 = vadd.f32 %v2919_v26, %v9546_v52  ;;  %v11483_v32 = vld [vmem:[#allocation40_spill] sm:$0xff]  ;;  %v11486_v12 = vld [vmem:[#allocation43_spill] sm:$0xff] }
 0x26f   : > { %v9670_v3 = vadd.f32 %v2920_v48, %v9549_v46  ;;  %v9673_v20 = vadd.f32 %v2921_v50, %v9552_v40  ;;  %v9676_v0 = vadd.f32 %v2922_v60, %v11480_v38  ;;  %v9679_v14 = vadd.f32 %v2923_v16, %v11481_v25  ;;  %v11484_v46 = vld [vmem:[#allocation41_spill] sm:$0xff]  ;;  %v11488_v54 = vld [vmem:[#allocation15_spill] sm:$0xff]  ;;  %v11490_v24 = vld [vmem:[#allocation28_spill] sm:$0xff] }
 0x270   : > { %v2954_v61 = vmul.f32 %v11483_v32, %v11482_v41  ;;  %v2955_v52 = vmul.f32 %v4323_v8, %v11482_v41  ;;  %v2956_v26 = vmul.f32 %v11484_v46, %v11482_v41  ;;  %v4324_v40 = vld [vmem:[%s4698_s12 + $0x29] sm:$0x3f]  ;;  %v2958_v58 = vmul.f32 %v11485_v10, %v11482_v41  ;;  %v4329_v16 = vld [vmem:[%s4698_s12 + $0x79] sm:$0x3f] }
 0x271   : > { %v2957_v50 = vmul.f32 %v4324_v40, %v11482_v41  ;;  %v2959_v53 = vmul.f32 %v4325_v33, %v11482_v41  ;;  %v2960_v28 = vmul.f32 %v11486_v12, %v11482_v41  ;;  %v2961_v6 = vmul.f32 %v4326_v51, %v11482_v41  ;;  %v4330_v60 = vld [vmem:[%s4698_s12 + $0x89] sm:$0x3f]  ;;  %v11491_v25 = vld [vmem:[#allocation47_spill] sm:$0xff]  ;;  %v11492_v33 = vld [vmem:[#allocation44_spill] sm:$0xff] }
 0x272   : > { %v2962_v27 = vmul.f32 %v11487_v15, %v11482_v41  ;;  %v2963_v39 = vmul.f32 %v4327_v31, %v11482_v41  ;;  %v2964_v19 = vmul.f32 %v11488_v54, %v11482_v41  ;;  %v2965_v37 = vmul.f32 %v4328_v56, %v11482_v41  ;;  %v4331_v8 = vld [vmem:[%s4698_s12 + $0x99] sm:$0x3f]  ;;  %v4332_v31 = vld [vmem:[%s4698_s12 + $0xa9] sm:$0x3f] }
 0x273   : > { %v2966_v36 = vmul.f32 %v11489_v63, %v11482_v41  ;;  %v2967_v29 = vmul.f32 %v4329_v16, %v11482_v41  ;;  %v2968_v48 = vmul.f32 %v11490_v24, %v11482_v41  ;;  %v2969_v38 = vmul.f32 %v4330_v60, %v11482_v41  ;;  %v11493_v16 = vld [vmem:[#allocation49_spill] sm:$0xff]  ;;  %v4333_v63 = vld [vmem:[%s4698_s12 + $0xb9] sm:$0x3f] }
 0x274   : > { %v2970_v32 = vmul.f32 %v11491_v25, %v11482_v41  ;;  %v2971_v40 = vmul.f32 %v4331_v8, %v11482_v41  ;;  %v2972_v51 = vmul.f32 %v11492_v33, %v11482_v41  ;;  %v2973_v56 = vmul.f32 %v4332_v31, %v11482_v41  ;;  %v11494_v54 = vld [vmem:[#allocation52_spill] sm:$0xff]  ;;  %v4334_v25 = vld [vmem:[%s4698_s12 + $0xc9] sm:$0x3f] }
 0x275   : > { %v2974_v24 = vmul.f32 %v11493_v16, %v11482_v41  ;;  %v2975_v60 = vmul.f32 %v4333_v63, %v11482_v41  ;;  %v2976_v15 = vmul.f32 %v11494_v54, %v11482_v41  ;;  %v2977_v12 = vmul.f32 %v4334_v25, %v11482_v41  ;;  %v11495_v8 = vld [vmem:[#allocation53_spill] sm:$0xff]  ;;  %v4335_v46 = vld [vmem:[%s4698_s12 + $0xd9] sm:$0x3f] }
 0x276   : > { %v2978_v10 = vmul.f32 %v11495_v8, %v11482_v41  ;;  %v2979_v33 = vmul.f32 %v4335_v46, %v11482_v41  ;;  %v2980_v31 = vmul.f32 %v9734_v45, %v11482_v41  ;;  %v4337_v16 = vld [vmem:[%s4698_s12 + $0xe9] sm:$0x3f]  ;;  %v9741_v1 = vadd.f32 %v2954_v61, %v9598_v59 }
 0x277   : > { %v2981_v63 = vmul.f32 %v4337_v16, %v11482_v41  ;;  %v9744_v54 = vadd.f32 %v2955_v52, %v9601_v49  ;;  %v9747_v25 = vadd.f32 %v2956_v26, %v9604_v7  ;;  %v9750_v8 = vadd.f32 %v2957_v50, %v9607_v18  ;;  %v4338_v52 = vld [vmem:[%s4698_s12 + $0x1a] sm:$0x3f] }
 0x278   : > { %v9753_v46 = vadd.f32 %v2958_v58, %v9610_v44  ;;  %v9756_v45 = vadd.f32 %v2959_v53, %v9613_v21  ;;  %v9759_v41 = vadd.f32 %v2960_v28, %v9616_v47  ;;  %v9762_v59 = vadd.f32 %v2961_v6, %v9619_v34  ;;  %v11501_v53 = vld [vmem:[#allocation58_spill] sm:$0xff] }
 0x279   : > { %v9765_v49 = vadd.f32 %v2962_v27, %v9622_v35  ;;  %v9768_v7 = vadd.f32 %v2963_v39, %v9625_v4  ;;  %v9771_v18 = vadd.f32 %v2964_v19, %v9628_v42  ;;  %v9774_v44 = vadd.f32 %v2965_v37, %v9631_v2  ;;  %v4341_v28 = vld [vmem:[%s4698_s12 + $0x4a] sm:$0x3f]  ;;  %v4342_v39 = vld [vmem:[%s4698_s12 + $0x5a] sm:$0x3f] }
 0x27a   : > { %v9777_v21 = vadd.f32 %v2966_v36, %v9634_v55  ;;  %v9780_v47 = vadd.f32 %v2967_v29, %v9637_v23  ;;  %v9783_v34 = vadd.f32 %v2968_v48, %v9640_v57  ;;  %v9786_v35 = vadd.f32 %v2969_v38, %v9643_v30  ;;  %v11503_v37 = vld [vmem:[#allocation14_spill] sm:$0xff]  ;;  %v11504_v48 = vld [vmem:[#allocation20_spill] sm:$0xff] }
 0x27b   : > { %v9789_v4 = vadd.f32 %v2970_v32, %v9646_v17  ;;  %v9792_v42 = vadd.f32 %v2971_v40, %v9649_v22  ;;  %v9795_v2 = vadd.f32 %v2972_v51, %v9652_v5  ;;  %v9798_v55 = vadd.f32 %v2973_v56, %v9655_v13  ;;  %v4343_v29 = vld [vmem:[%s4698_s12 + $0x6a] sm:$0x3f]  ;;  %v4344_v32 = vld [vmem:[%s4698_s12 + $0x7a] sm:$0x3f] }
 0x27c   : > { %v9801_v23 = vadd.f32 %v2974_v24, %v9658_v9  ;;  %v9804_v57 = vadd.f32 %v2975_v60, %v9661_v62  ;;  %v9807_v30 = vadd.f32 %v2976_v15, %v9664_v11  ;;  %v9810_v17 = vadd.f32 %v2977_v12, %v9667_v43  ;;  %v11497_v62 = vld [vmem:[#allocation38_spill] sm:$0xff]  ;;  %v11498_v11 = vld [vmem:[#allocation55_spill] sm:$0xff]  ;;  %v11502_v15 = vld [vmem:[#allocation33_spill] sm:$0xff] }
 0x27d   : > { %v9813_v22 = vadd.f32 %v2978_v10, %v9670_v3  ;;  %v9816_v5 = vadd.f32 %v2979_v33, %v9673_v20  ;;  %v9819_v13 = vadd.f32 %v2980_v31, %v9676_v0  ;;  %v9822_v9 = vadd.f32 %v2981_v63, %v9679_v14  ;;  %v11499_v3 = vld [vmem:[#allocation56_spill] sm:$0xff]  ;;  %v4339_v20 = vld [vmem:[%s4698_s12 + $0x2a] sm:$0x3f]  ;;  %v11500_v0 = vld [vmem:[#allocation57_spill] sm:$0xff] }
 0x27e   : > { %v3012_v61 = vmul.f32 %v11498_v11, %v11497_v62  ;;  %v3013_v43 = vmul.f32 %v4338_v52, %v11497_v62  ;;  %v3014_v26 = vmul.f32 %v11499_v3, %v11497_v62  ;;  %v3015_v50 = vmul.f32 %v4339_v20, %v11497_v62  ;;  %v4340_v14 = vld [vmem:[%s4698_s12 + $0x3a] sm:$0x3f]  ;;  %v11505_v33 = vld [vmem:[#allocation29_spill] sm:$0xff]  ;;  %v4345_v56 = vld [vmem:[%s4698_s12 + $0x8a] sm:$0x3f] }
 0x27f   : > { %v3016_v10 = vmul.f32 %v11500_v0, %v11497_v62  ;;  %v3017_v58 = vmul.f32 %v4340_v14, %v11497_v62  ;;  %v3018_v12 = vmul.f32 %v11501_v53, %v11497_v62  ;;  %v3019_v6 = vmul.f32 %v4341_v28, %v11497_v62  ;;  %v11506_v60 = vld [vmem:[#allocation18_spill] sm:$0xff]  ;;  %v4346_v63 = vld [vmem:[%s4698_s12 + $0x9a] sm:$0x3f]  ;;  %v9881_v53 = vld [vmem:[%s4698_s12 + $0xe2] sm:$0xff] }
 0x280   : > { %v3020_v27 = vmul.f32 %v11502_v15, %v11497_v62  ;;  %v3021_v19 = vmul.f32 %v4342_v39, %v11497_v62  ;;  %v3022_v36 = vmul.f32 %v11503_v37, %v11497_v62  ;;  %v3023_v24 = vmul.f32 %v4343_v29, %v11497_v62  ;;  %v11507_v52 = vld [vmem:[#allocation16_spill] sm:$0xff]  ;;  %v4347_v14 = vld [vmem:[%s4698_s12 + $0xaa] sm:$0x3f]  ;;  %11511 = vst [vmem:[#allocation22_spill] sm:$0xff] %v9881_v53 }
 0x281   : > { %v3024_v38 = vmul.f32 %v11504_v48, %v11497_v62  ;;  %v3025_v40 = vmul.f32 %v4344_v32, %v11497_v62  ;;  %v3026_v51 = vmul.f32 %v11505_v33, %v11497_v62  ;;  %v3027_v16 = vmul.f32 %v4345_v56, %v11497_v62  ;;  %v11508_v39 = vld [vmem:[#allocation34_spill] sm:$0xff]  ;;  %v4348_v32 = vld [vmem:[%s4698_s12 + $0xba] sm:$0x3f] }
 0x282   : > { %v3028_v31 = vmul.f32 %v11506_v60, %v11497_v62  ;;  %v3029_v11 = vmul.f32 %v4346_v63, %v11497_v62  ;;  %v3030_v20 = vmul.f32 %v11507_v52, %v11497_v62  ;;  %v3031_v28 = vmul.f32 %v4347_v14, %v11497_v62  ;;  %v11509_v60 = vld [vmem:[#allocation51_spill] sm:$0xff]  ;;  %v4349_v48 = vld [vmem:[%s4698_s12 + $0xca] sm:$0x3f]  ;;  %v4350_v14 = vld [vmem:[%s4698_s12 + $0xda] sm:$0x3f] }
 0x283   : > { %v3032_v29 = vmul.f32 %v11508_v39, %v11497_v62  ;;  %v3033_v56 = vmul.f32 %v4348_v32, %v11497_v62  ;;  %v3034_v33 = vmul.f32 %v11509_v60, %v11497_v62  ;;  %v3035_v63 = vmul.f32 %v4349_v48, %v11497_v62  ;;  %v11510_v52 = vld [vmem:[#allocation59_spill] sm:$0xff]  ;;  %v4352_v32 = vld [vmem:[%s4698_s12 + $0xea] sm:$0x3f] }
 0x284   : > { %v3036_v37 = vmul.f32 %v11510_v52, %v11497_v62  ;;  %v3037_v15 = vmul.f32 %v4350_v14, %v11497_v62  ;;  %v3038_v39 = vmul.f32 %v9881_v53, %v11497_v62  ;;  %v3039_v0 = vmul.f32 %v4352_v32, %v11497_v62 }
 0x285   : > { %v9892_v48 = vadd.f32 %v3012_v61, %v9741_v1  ;;  %v9895_v52 = vadd.f32 %v3013_v43, %v9744_v54  ;;  %v9898_v14 = vadd.f32 %v3014_v26, %v9747_v25  ;;  %v9901_v60 = vadd.f32 %v3015_v50, %v9750_v8  ;;  %v11518_v43 = vld [vmem:[#allocation23_spill] sm:$0xff]  ;;  %v4353_v26 = vld [vmem:[%s4698_s12 + $0x28] sm:$0x3f]  ;;  %v11519_v50 = vld [vmem:[#allocation24_spill] sm:$0xff] }
 0x286   : > { %v9904_v53 = vadd.f32 %v3016_v10, %v9753_v46  ;;  %v9907_v62 = vadd.f32 %v3017_v58, %v9756_v45  ;;  %v9910_v32 = vadd.f32 %v3018_v12, %v9759_v41  ;;  %v9913_v1 = vadd.f32 %v3019_v6, %v9762_v59  ;;  %v11520_v12 = vld [vmem:[#allocation25_spill] sm:$0xff] }
 0x287   : > { %v9916_v54 = vadd.f32 %v3020_v27, %v9765_v49  ;;  %v9919_v25 = vadd.f32 %v3021_v19, %v9768_v7  ;;  %v9922_v8 = vadd.f32 %v3022_v36, %v9771_v18  ;;  %v9925_v46 = vadd.f32 %v3023_v24, %v9774_v44  ;;  %v4356_v19 = vld [vmem:[%s4698_s12 + $0x58] sm:$0x3f] }
 0x288   : > { %v9928_v45 = vadd.f32 %v3024_v38, %v9777_v21  ;;  %v9931_v41 = vadd.f32 %v3025_v40, %v9780_v47  ;;  %v9934_v59 = vadd.f32 %v3026_v51, %v9783_v34  ;;  %v9937_v49 = vadd.f32 %v3027_v16, %v9786_v35  ;;  %v11522_v36 = vld [vmem:[#allocation35_spill] sm:$0xff]  ;;  %v4357_v38 = vld [vmem:[%s4698_s12 + $0x68] sm:$0x3f] }
 0x289   : > { %v9940_v7 = vadd.f32 %v3028_v31, %v9789_v4  ;;  %v9943_v18 = vadd.f32 %v3029_v11, %v9792_v42  ;;  %v9946_v44 = vadd.f32 %v3030_v20, %v9795_v2  ;;  %v9949_v21 = vadd.f32 %v3031_v28, %v9798_v55  ;;  %v4358_v16 = vld [vmem:[%s4698_s12 + $0x78] sm:$0x3f]  ;;  %v11524_v11 = vld [vmem:[#allocation26_spill] sm:$0xff] }
 0x28a   : > { %v9952_v47 = vadd.f32 %v3032_v29, %v9801_v23  ;;  %v9955_v34 = vadd.f32 %v3033_v56, %v9804_v57  ;;  %v9958_v35 = vadd.f32 %v3034_v33, %v9807_v30  ;;  %v3069_v4 = vstv %s9864_s8  ;;  %v11523_v33 = vld [vmem:[#allocation36_spill] sm:$0xff]  ;;  %v4359_v28 = vld [vmem:[%s4698_s12 + $0x88] sm:$0x3f] }
 0x28b   : > { %v9962_v42 = vadd.f32 %v3035_v63, %v9810_v17  ;;  %v9965_v2 = vadd.f32 %v3036_v37, %v9813_v22  ;;  %v9968_v55 = vadd.f32 %v3037_v15, %v9816_v5  ;;  %v9971_v23 = vadd.f32 %v3038_v39, %v9819_v13  ;;  %v4354_v13 = vld [vmem:[%s4698_s12 + $0x38] sm:$0x3f]  ;;  %v11525_v29 = vld [vmem:[#allocation13_spill] sm:$0xff] }
 0x28c   : > { %v9974_v57 = vadd.f32 %v3039_v0, %v9822_v9  ;;  %v9977_v30 = vstv %s9874_s9  ;;  %v9980_v61 = vstv %s9887_s29  ;;  %v9983_v17 = vstv %s9889_s11  ;;  %v4355_v0 = vld [vmem:[%s4698_s12 + $0x48] sm:$0x3f]  ;;  %v11521_v15 = vld [vmem:[#allocation60_spill] sm:$0xff]  ;;  %s10510_s29 = scalar_lea.hbm %s10559_s5, %s3811_s27  ;;  %s3415_s11 = scalar_lea.sflag [#allocation5], %s4695_s10 }
 0x28d   : > { %11512 = vst [vmem:[#allocation50_spill] sm:$0xff] %v9968_v55  ;;  %11513 = vst [vmem:[#allocation46_spill] sm:$0xff] %v9971_v23  ;;  %v3070_v22 = vmul.f32 %v11518_v43, %v3069_v4  ;;  %v3071_v5 = vmul.f32 %v4353_v26, %v3069_v4  ;;  %v3072_v10 = vmul.f32 %v11519_v50, %v3069_v4  ;;  %v4360_v63 = vld [vmem:[%s4698_s12 + $0x98] sm:$0x3f] }
 0x28e   : > { %11514 = vst [vmem:[#allocation19_spill] sm:$0xff] %v9974_v57  ;;  %11515 = vst [vmem:[#allocation40_spill] sm:$0xff] %v9977_v30  ;;  %v3073_v58 = vmul.f32 %v4354_v13, %v3069_v4  ;;  %v3074_v9 = vmul.f32 %v11520_v12, %v3069_v4  ;;  %v3075_v6 = vmul.f32 %v4355_v0, %v3069_v4  ;;  %v11526_v26 = vld [vmem:[#allocation48_spill] sm:$0xff]  ;;  %v4361_v13 = vld [vmem:[%s4698_s12 + $0xa8] sm:$0x3f] }
 0x28f   : > { %11516 = vst [vmem:[#allocation38_spill] sm:$0xff] %v9980_v61  ;;  %11517 = vst [vmem:[#allocation55_spill] sm:$0xff] %v9983_v17  ;;  %v3076_v27 = vmul.f32 %v11521_v15, %v3069_v4  ;;  %v3077_v37 = vmul.f32 %v4356_v19, %v3069_v4  ;;  %v3078_v24 = vmul.f32 %v11522_v36, %v3069_v4  ;;  %v11527_v0 = vld [vmem:[#allocation17_spill] sm:$0xff]  ;;  %v4362_v19 = vld [vmem:[%s4698_s12 + $0xb8] sm:$0x3f] }
 0x290   : > { %v3079_v40 = vmul.f32 %v4357_v38, %v3069_v4  ;;  %v3080_v51 = vmul.f32 %v11523_v33, %v3069_v4  ;;  %v3081_v31 = vmul.f32 %v4358_v16, %v3069_v4  ;;  %v3082_v20 = vmul.f32 %v11524_v11, %v3069_v4  ;;  %v11528_v38 = vld [vmem:[#allocation32_spill] sm:$0xff]  ;;  %v4363_v16 = vld [vmem:[%s4698_s12 + $0xc8] sm:$0x3f]  ;;  %v11530_v61 = vld [vmem:[#allocation39_spill] sm:$0xff] }
 0x291   : > { %v3083_v39 = vmul.f32 %v4359_v28, %v3069_v4  ;;  %v3084_v56 = vmul.f32 %v11525_v29, %v3069_v4  ;;  %v3085_v43 = vmul.f32 %v4360_v63, %v3069_v4  ;;  %v3086_v50 = vmul.f32 %v11526_v26, %v3069_v4  ;;  %v11529_v28 = vld [vmem:[#allocation37_spill] sm:$0xff]  ;;  %v4364_v29 = vld [vmem:[%s4698_s12 + $0xd8] sm:$0x3f]  ;;  %v4366_v26 = vld [vmem:[%s4698_s12 + $0xf0] sm:$0xff] }
 0x292   : > { %v3087_v12 = vmul.f32 %v4361_v13, %v3069_v4  ;;  %v3088_v15 = vmul.f32 %v11527_v0, %v3069_v4  ;;  %v3089_v36 = vmul.f32 %v4362_v19, %v3069_v4  ;;  %v3090_v33 = vmul.f32 %v11528_v38, %v3069_v4  ;;  %v4365_v30 = vld [vmem:[%s4698_s12 + $0xe8] sm:$0x3f]  ;;  %v4367_v55 = vld [vmem:[%s4698_s12 + $0xf8] sm:$0x3f] }
 0x293   : > { %v3091_v11 = vmul.f32 %v4363_v16, %v3069_v4  ;;  %v3092_v17 = vmul.f32 %v11529_v28, %v3069_v4  ;;  %v3093_v3 = vmul.f32 %v4364_v29, %v3069_v4  ;;  %v3094_v63 = vmul.f32 %v11530_v61, %v3069_v4  ;;  %v11542_v29 = vld [vmem:[#allocation47_spill] sm:$0xff] }
 0x294   : > { %v3095_v57 = vmul.f32 %v4365_v30, %v3069_v4  ;;  %v3096_v23 = vmul.f32 %v4366_v26, %v3069_v4  ;;  %v3097_v13 = vmul.f32 %v4367_v55, %v3069_v4  ;;  %v10014_v0 = vadd.f32 %v3070_v22, %v9892_v48  ;;  %v11532_v55 = vld [vmem:[#allocation46_spill] sm:$0xff]  ;;  %v4375_v26 = vld [vmem:[%s4698_s12 + $0x99] sm:$0x3f] }
 0x295   : > { %v10017_v19 = vadd.f32 %v3071_v5, %v9895_v52  ;;  %v10020_v38 = vadd.f32 %v3072_v10, %v9898_v14  ;;  %v10023_v16 = vadd.f32 %v3073_v58, %v9901_v60  ;;  %v10026_v61 = vadd.f32 %v3074_v9, %v9904_v53  ;;  %v11533_v22 = vld [vmem:[#allocation19_spill] sm:$0xff]  ;;  %v11534_v5 = vld [vmem:[#allocation40_spill] sm:$0xff]  ;;  %v4368_v10 = vld [vmem:[%s4698_s12 + $0x29] sm:$0x3f] }
 0x296   : > { %v10029_v30 = vadd.f32 %v3075_v6, %v9907_v62  ;;  %v10032_v4 = vadd.f32 %v3076_v27, %v9910_v32  ;;  %v10035_v48 = vadd.f32 %v3077_v37, %v9913_v1  ;;  %v10038_v52 = vadd.f32 %v3078_v24, %v9916_v54  ;;  %v4370_v6 = vld [vmem:[%s4698_s12 + $0x49] sm:$0x3f]  ;;  %v11538_v37 = vld [vmem:[#allocation31_spill] sm:$0xff] }
 0x297   : > { %v10041_v14 = vadd.f32 %v3079_v40, %v9919_v25  ;;  %v10044_v60 = vadd.f32 %v3080_v51, %v9922_v8  ;;  %v10047_v53 = vadd.f32 %v3081_v31, %v9925_v46  ;;  %v10050_v62 = vadd.f32 %v3082_v20, %v9928_v45  ;;  %v4371_v40 = vld [vmem:[%s4698_s12 + $0x59] sm:$0x3f] }
 0x298   : > { %v10053_v32 = vadd.f32 %v3083_v39, %v9931_v41  ;;  %v10056_v1 = vadd.f32 %v3084_v56, %v9934_v59  ;;  %v10059_v54 = vadd.f32 %v3085_v43, %v9937_v49  ;;  %v10062_v25 = vadd.f32 %v3086_v50, %v9940_v7  ;;  %v11539_v31 = vld [vmem:[#allocation15_spill] sm:$0xff]  ;;  %v4372_v39 = vld [vmem:[%s4698_s12 + $0x69] sm:$0x3f] }
 0x299   : > { %v10065_v8 = vadd.f32 %v3087_v12, %v9943_v18  ;;  %v10068_v46 = vadd.f32 %v3088_v15, %v9946_v44  ;;  %v10071_v45 = vadd.f32 %v3089_v36, %v9949_v21  ;;  %v10074_v41 = vadd.f32 %v3090_v33, %v9952_v47  ;;  %v11531_v44 = vld [vmem:[#allocation50_spill] sm:$0xff]  ;;  %v11540_v43 = vld [vmem:[#allocation45_spill] sm:$0xff]  ;;  %v4373_v12 = vld [vmem:[%s4698_s12 + $0x79] sm:$0x3f] }
 0x29a   : > { %v10077_v59 = vadd.f32 %v3091_v11, %v9955_v34  ;;  %v10080_v49 = vadd.f32 %v3092_v17, %v9958_v35  ;;  %v10083_v7 = vadd.f32 %v3093_v3, %v9962_v42  ;;  %v10086_v18 = vadd.f32 %v3094_v63, %v9965_v2  ;;  %v11535_v35 = vld [vmem:[#allocation41_spill] sm:$0xff]  ;;  %v11536_v42 = vld [vmem:[#allocation42_spill] sm:$0xff]  ;;  %v11541_v36 = vld [vmem:[#allocation28_spill] sm:$0xff] }
 0x29b   : > { %v10089_v21 = vadd.f32 %v3095_v57, %v11531_v44  ;;  %v10092_v47 = vadd.f32 %v3096_v23, %v11532_v55  ;;  %v10095_v34 = vadd.f32 %v3097_v13, %v11533_v22  ;;  %v3128_v17 = vmul.f32 %v11535_v35, %v11534_v5  ;;  %v4369_v57 = vld [vmem:[%s4698_s12 + $0x39] sm:$0x3f]  ;;  %v4374_v11 = vld [vmem:[%s4698_s12 + $0x89] sm:$0x3f] }
 0x29c   : > { %v3129_v3 = vmul.f32 %v4368_v10, %v11534_v5  ;;  %v3130_v2 = vmul.f32 %v11536_v42, %v11534_v5  ;;  %v3131_v58 = vmul.f32 %v4369_v57, %v11534_v5  ;;  %v11537_v23 = vld [vmem:[#allocation43_spill] sm:$0xff]  ;;  %v3133_v27 = vmul.f32 %v4370_v6, %v11534_v5  ;;  %v11543_v44 = vld [vmem:[#allocation44_spill] sm:$0xff]  ;;  %v4376_v22 = vld [vmem:[%s4698_s12 + $0xa9] sm:$0x3f] }
 0x29d   : > { %v3132_v9 = vmul.f32 %v11537_v23, %v11534_v5  ;;  %v3134_v24 = vmul.f32 %v11538_v37, %v11534_v5  ;;  %v3135_v51 = vmul.f32 %v4371_v40, %v11534_v5  ;;  %v3136_v20 = vmul.f32 %v11539_v31, %v11534_v5  ;;  %v11544_v10 = vld [vmem:[#allocation49_spill] sm:$0xff]  ;;  %v4377_v57 = vld [vmem:[%s4698_s12 + $0xb9] sm:$0x3f] }
 0x29e   : > { %v3137_v56 = vmul.f32 %v4372_v39, %v11534_v5  ;;  %v3138_v50 = vmul.f32 %v11540_v43, %v11534_v5  ;;  %v3139_v15 = vmul.f32 %v4373_v12, %v11534_v5  ;;  %v3140_v33 = vmul.f32 %v11541_v36, %v11534_v5  ;;  %v11545_v6 = vld [vmem:[#allocation52_spill] sm:$0xff]  ;;  %v4378_v40 = vld [vmem:[%s4698_s12 + $0xc9] sm:$0x3f] }
 0x29f   : > { %v3141_v28 = vmul.f32 %v4374_v11, %v11534_v5  ;;  %v3142_v63 = vmul.f32 %v11542_v29, %v11534_v5  ;;  %v3143_v13 = vmul.f32 %v4375_v26, %v11534_v5  ;;  %v3144_v55 = vmul.f32 %v11543_v44, %v11534_v5  ;;  %v11546_v39 = vld [vmem:[#allocation53_spill] sm:$0xff]  ;;  %v4379_v12 = vld [vmem:[%s4698_s12 + $0xd9] sm:$0x3f] }
 0x2a0   : > { %v3145_v35 = vmul.f32 %v4376_v22, %v11534_v5  ;;  %v3146_v42 = vmul.f32 %v11544_v10, %v11534_v5  ;;  %v3147_v23 = vmul.f32 %v4377_v57, %v11534_v5  ;;  %v3148_v37 = vmul.f32 %v11545_v6, %v11534_v5  ;;  %v11547_v11 = vld [vmem:[#allocation21_spill] sm:$0xff]  ;;  %v4381_v22 = vld [vmem:[%s4698_s12 + $0xf1] sm:$0xff]  ;;  %v4382_v57 = vld [vmem:[%s4698_s12 + $0xf9] sm:$0x3f] }
 0x2a1   : > { %v3149_v31 = vmul.f32 %v4378_v40, %v11534_v5  ;;  %v3150_v43 = vmul.f32 %v11546_v39, %v11534_v5  ;;  %v3151_v36 = vmul.f32 %v4379_v12, %v11534_v5  ;;  %v3152_v29 = vmul.f32 %v11547_v11, %v11534_v5  ;;  %v4380_v26 = vld [vmem:[%s4698_s12 + $0xe9] sm:$0x3f] }
 0x2a2   : > { %v3153_v44 = vmul.f32 %v4380_v26, %v11534_v5  ;;  %v3154_v10 = vmul.f32 %v4381_v22, %v11534_v5  ;;  %v3155_v6 = vmul.f32 %v4382_v57, %v11534_v5  ;;  %v10154_v40 = vadd.f32 %v3128_v17, %v10014_v0 }
 0x2a3   : > { %v10157_v39 = vadd.f32 %v3129_v3, %v10017_v19  ;;  %v10160_v12 = vadd.f32 %v3130_v2, %v10020_v38  ;;  %v10163_v11 = vadd.f32 %v3131_v58, %v10023_v16  ;;  %v10166_v26 = vadd.f32 %v3132_v9, %v10026_v61  ;;  %v4383_v3 = vld [vmem:[%s4698_s12 + $0x2a] sm:$0x3f] }
 0x2a4   : > { %v10169_v22 = vadd.f32 %v3133_v27, %v10029_v30  ;;  %v10172_v5 = vadd.f32 %v3134_v24, %v10032_v4  ;;  %v10175_v0 = vadd.f32 %v3135_v51, %v10035_v48  ;;  %v10178_v19 = vadd.f32 %v3136_v20, %v10038_v52  ;;  %v11555_v24 = vld [vmem:[#allocation33_spill] sm:$0xff]  ;;  %v4386_v20 = vld [vmem:[%s4698_s12 + $0x5a] sm:$0x3f] }
 0x2a5   : > { %v10181_v38 = vadd.f32 %v3137_v56, %v10041_v14  ;;  %v10184_v16 = vadd.f32 %v3138_v50, %v10044_v60  ;;  %v10187_v61 = vadd.f32 %v3139_v15, %v10047_v53  ;;  %v10190_v30 = vadd.f32 %v3140_v33, %v10050_v62  ;;  %v11556_v50 = vld [vmem:[#allocation14_spill] sm:$0xff] }
 0x2a6   : > { %v10193_v4 = vadd.f32 %v3141_v28, %v10053_v32  ;;  %v10196_v48 = vadd.f32 %v3142_v63, %v10056_v1  ;;  %v10199_v52 = vadd.f32 %v3143_v13, %v10059_v54  ;;  %v10202_v14 = vadd.f32 %v3144_v55, %v10062_v25  ;;  %v4387_v33 = vld [vmem:[%s4698_s12 + $0x6a] sm:$0x3f]  ;;  %v11557_v63 = vld [vmem:[#allocation20_spill] sm:$0xff] }
 0x2a7   : > { %v10205_v60 = vadd.f32 %v3145_v35, %v10065_v8  ;;  %v10208_v53 = vadd.f32 %v3146_v42, %v10068_v46  ;;  %v10211_v62 = vadd.f32 %v3147_v23, %v10071_v45  ;;  %v10214_v32 = vadd.f32 %v3148_v37, %v10074_v41  ;;  %v4388_v55 = vld [vmem:[%s4698_s12 + $0x7a] sm:$0x3f]  ;;  %v11558_v42 = vld [vmem:[#allocation29_spill] sm:$0xff]  ;;  %v4389_v37 = vld [vmem:[%s4698_s12 + $0x8a] sm:$0x3f] }
 0x2a8   : > { %v10217_v1 = vadd.f32 %v3149_v31, %v10077_v59  ;;  %v10220_v54 = vadd.f32 %v3150_v43, %v10080_v49  ;;  %v10223_v25 = vadd.f32 %v3151_v36, %v10083_v7  ;;  %v10226_v8 = vadd.f32 %v3152_v29, %v10086_v18  ;;  %v11551_v59 = vld [vmem:[#allocation38_spill] sm:$0xff]  ;;  %v11552_v49 = vld [vmem:[#allocation56_spill] sm:$0xff]  ;;  %v11553_v18 = vld [vmem:[#allocation57_spill] sm:$0xff] }
 0x2a9   : > { %v10229_v46 = vadd.f32 %v3153_v44, %v10089_v21  ;;  %v10232_v45 = vadd.f32 %v3154_v10, %v10092_v47  ;;  %v10235_v41 = vadd.f32 %v3155_v6, %v10095_v34  ;;  %v3186_v17 = vmul.f32 %v11552_v49, %v11551_v59  ;;  %v4384_v21 = vld [vmem:[%s4698_s12 + $0x3a] sm:$0x3f]  ;;  %v11554_v47 = vld [vmem:[#allocation58_spill] sm:$0xff] }
 0x2aa   : > { %v3187_v7 = vmul.f32 %v4383_v3, %v11551_v59  ;;  %v3188_v2 = vmul.f32 %v11553_v18, %v11551_v59  ;;  %v3189_v58 = vmul.f32 %v4384_v21, %v11551_v59  ;;  %v3190_v9 = vmul.f32 %v11554_v47, %v11551_v59  ;;  %v4385_v34 = vld [vmem:[%s4698_s12 + $0x4a] sm:$0x3f]  ;;  %v4390_v29 = vld [vmem:[%s4698_s12 + $0x9a] sm:$0x3f] }
 0x2ab   : > { %11548 = vst [vmem:[#allocation23_spill] sm:$0xff] %v10229_v46  ;;  %11549 = vst [vmem:[#allocation24_spill] sm:$0xff] %v10232_v45  ;;  %v3191_v27 = vmul.f32 %v4385_v34, %v11551_v59  ;;  %v3192_v51 = vmul.f32 %v11555_v24, %v11551_v59  ;;  %v3193_v56 = vmul.f32 %v4386_v20, %v11551_v59  ;;  %v11559_v43 = vld [vmem:[#allocation18_spill] sm:$0xff]  ;;  %v11560_v10 = vld [vmem:[#allocation16_spill] sm:$0xff] }
 0x2ac   : > { %11550 = vst [vmem:[#allocation25_spill] sm:$0xff] %v10235_v41  ;;  %v3194_v15 = vmul.f32 %v11556_v50, %v11551_v59  ;;  %v3195_v28 = vmul.f32 %v4387_v33, %v11551_v59  ;;  %v3196_v13 = vmul.f32 %v11557_v63, %v11551_v59  ;;  %v3197_v35 = vmul.f32 %v4388_v55, %v11551_v59  ;;  %v4391_v6 = vld [vmem:[%s4698_s12 + $0xaa] sm:$0x3f]  ;;  %v4392_v21 = vld [vmem:[%s4698_s12 + $0xba] sm:$0x3f]  ;;  %v11562_v34 = vld [vmem:[#allocation51_spill] sm:$0xff] }
 0x2ad   : > { %v3198_v23 = vmul.f32 %v11558_v42, %v11551_v59  ;;  %v3199_v31 = vmul.f32 %v4389_v37, %v11551_v59  ;;  %v3200_v36 = vmul.f32 %v11559_v43, %v11551_v59  ;;  %v3201_v44 = vmul.f32 %v4390_v29, %v11551_v59  ;;  %v11561_v3 = vld [vmem:[#allocation34_spill] sm:$0xff]  ;;  %v11563_v33 = vld [vmem:[#allocation59_spill] sm:$0xff]  ;;  %v4394_v55 = vld [vmem:[%s4698_s12 + $0xda] sm:$0x3f] }
 0x2ae   : > { %v3202_v57 = vmul.f32 %v11560_v10, %v11551_v59  ;;  %v3203_v49 = vmul.f32 %v4391_v6, %v11551_v59  ;;  %v3204_v18 = vmul.f32 %v11561_v3, %v11551_v59  ;;  %v3205_v47 = vmul.f32 %v4392_v21, %v11551_v59  ;;  %v4393_v20 = vld [vmem:[%s4698_s12 + $0xca] sm:$0x3f]  ;;  %v4396_v6 = vld [vmem:[%s4698_s12 + $0xf2] sm:$0xff]  ;;  %v4397_v21 = vld [vmem:[%s4698_s12 + $0xfa] sm:$0x3f] }
 0x2af   : > { %v3206_v24 = vmul.f32 %v11562_v34, %v11551_v59  ;;  %v3207_v50 = vmul.f32 %v4393_v20, %v11551_v59  ;;  %v3208_v63 = vmul.f32 %v11563_v33, %v11551_v59  ;;  %v3209_v42 = vmul.f32 %v4394_v55, %v11551_v59  ;;  %v11564_v37 = vld [vmem:[#allocation22_spill] sm:$0xff] }
 0x2b0   : > { %v3210_v43 = vmul.f32 %v11564_v37, %v11551_v59  ;;  %v4395_v29 = vld [vmem:[%s4698_s12 + $0xea] sm:$0x3f]  ;;  %v3212_v3 = vmul.f32 %v4396_v6, %v11551_v59  ;;  %v3213_v34 = vmul.f32 %v4397_v21, %v11551_v59  ;;  %v3214_v20 = vadd.f32 %v3186_v17, %v10154_v40  ;;  %v3790_v21 = vld [vmem:[%s10557_s3 + $0x2d8] sm:$0x3f]  ;;  %s4428_s12 = scalar_lea.vmem %s10512_s14, 16 }
 0x2b1   : > { %v3211_v10 = vmul.f32 %v4395_v29, %v11551_v59  ;;  %v3215_v41 = vadd.f32 %v3187_v7, %v10157_v39  ;;  %v3216_v33 = vadd.f32 %v3188_v2, %v10160_v12  ;;  %v3217_v55 = vadd.f32 %v3189_v58, %v10163_v11  ;;  %p4429_p2 = scmp.ne.s32.totalorder %s10512_s14, %s4428_s12  ;;  %p4436_p1 = scmp.lt.s32.totalorder %s4434_s26, %s4428_s12 }
 0x2b2   : > { %v3218_v45 = vadd.f32 %v3190_v9, %v10166_v26  ;;  %v3219_v37 = vadd.f32 %v3191_v27, %v10169_v22  ;;  %v3220_v29 = vadd.f32 %v3192_v51, %v10172_v5  ;;  %v3221_v46 = vadd.f32 %v3193_v56, %v10175_v0 }
 0x2b3   : > { %v3222_v6 = vadd.f32 %v3194_v15, %v10178_v19  ;;  %v3223_v59 = vadd.f32 %v3195_v28, %v10181_v38  ;;  %v3224_v40 = vadd.f32 %v3196_v13, %v10184_v16  ;;  %v3225_v39 = vadd.f32 %v3197_v35, %v10187_v61  ;;  %v11568_v2 = vld [vmem:[#allocation25_spill] sm:$0xff]  ;;  %p4430_p8 = pnand %p4429_p2, %p11572_p7  ;;  %p4437_p3 = por %p4436_p1, %p4435_p13 }
 0x2b4   : > { %v3226_v12 = vadd.f32 %v3198_v23, %v10190_v30  ;;  %v3227_v11 = vadd.f32 %v3199_v31, %v10193_v4  ;;  %v3228_v26 = vadd.f32 %v3200_v36, %v10196_v48  ;;  %v3229_v22 = vadd.f32 %v3201_v44, %v10199_v52  ;;  %v11565_v4 = vld [vmem:[#allocation55_spill] sm:$0xff]  ;;  %v3784_v15 = vld [vmem:[%s10557_s3 + $0x2a8] sm:$0x3f] }
 0x2b5   : > { %v3230_v5 = vadd.f32 %v3202_v57, %v10202_v14  ;;  %v3231_v0 = vadd.f32 %v3203_v49, %v10205_v60  ;;  %v3232_v19 = vadd.f32 %v3204_v18, %v10208_v53  ;;  %v3233_v38 = vadd.f32 %v3205_v47, %v10211_v62  ;;  %v3785_v57 = vld [vmem:[%s10557_s3 + $0x2b0] sm:$0xff]  ;;  %v3786_v49 = vld [vmem:[%s10557_s3 + $0x2b8] sm:$0x3f]  ;;  %v3788_v18 = vld [vmem:[%s10557_s3 + $0x2c8] sm:$0x3f]  ;;  %p4431_p9 = pneg %p4430_p8 }
 0x2b6   : > { %v3234_v16 = vadd.f32 %v3206_v24, %v10214_v32  ;;  %v3235_v61 = vadd.f32 %v3207_v50, %v10217_v1  ;;  %v10316_v30 = vadd.f32 %v3208_v63, %v10220_v54  ;;  %v3244_v17 = vadd.f32 %v11565_v4, %v3214_v20  ;;  %v11566_v32 = vld [vmem:[#allocation23_spill] sm:$0xff]  ;;  %v11567_v54 = vld [vmem:[#allocation24_spill] sm:$0xff] }
 0x2b7   : > { %v3245_v48 = vadd.f32 %v11565_v4, %v3215_v41  ;;  %v3246_v52 = vadd.f32 %v11565_v4, %v3216_v33  ;;  %v3247_v14 = vadd.f32 %v11565_v4, %v3217_v55  ;;  %v3249_v60 = vadd.f32 %v11565_v4, %v3219_v37  ;;  %v3789_v20 = vld [vmem:[%s10557_s3 + $0x2d0] sm:$0xff]  ;;  %v3792_v33 = vld [vmem:[%s10557_s3 + $0x2e8] sm:$0x3f]  ;;  %p4438_p4 = pnand %p4437_p3, %p4431_p9 }
 0x2b8   : > { %v10324_v53 = vadd.f32 %v3209_v42, %v10223_v25  ;;  %v10327_v62 = vadd.f32 %v3210_v43, %v10226_v8  ;;  %v10330_v1 = vadd.f32 %v3211_v10, %v11566_v32  ;;  %v10333_v7 = vadd.f32 %v3212_v3, %v11567_v54  ;;  %v3787_v3 = vld [vmem:[%s10557_s3 + $0x2c0] sm:$0xff] }
 0x2b9   : > { %v10336_v41 = vadd.f32 %v3213_v34, %v11568_v2  ;;  %v3248_v58 = vadd.f32 %v11565_v4, %v3218_v45  ;;  %v3250_v9 = vadd.f32 %v11565_v4, %v3220_v29  ;;  %v3251_v27 = vadd.f32 %v11565_v4, %v3221_v46  ;;  %v3783_v46 = vld [vmem:[%s10557_s3 + $0x2a0] sm:$0xff] }
 0x2ba   : > { %v3252_v25 = vadd.f32 %v11565_v4, %v3222_v6  ;;  %v3253_v8 = vadd.f32 %v11565_v4, %v3223_v59  ;;  %v10344_v51 = vadd.f32 %v11565_v4, %v3224_v40  ;;  %v3272_v56 = vmax.f32 %v3244_v17, 0.0 }
 0x2bb   : > { %v3273_v28 = vmax.f32 %v3245_v48, 0.0  ;;  %v3274_v13 = vmax.f32 %v3246_v52, 0.0  ;;  %v3275_v35 = vmax.f32 %v3247_v14, 0.0  ;;  %v3277_v45 = vmax.f32 %v3249_v60, 0.0 }
 0x2bc   : > { %v3255_v23 = vadd.f32 %v11565_v4, %v3225_v39  ;;  %v10354_v31 = vadd.f32 %v11565_v4, %v3226_v12  ;;  %v3257_v36 = vadd.f32 %v11565_v4, %v3227_v11  ;;  %v10358_v44 = vadd.f32 %v11565_v4, %v3228_v26 }
 0x2bd   : > { %v3259_v47 = vadd.f32 %v11565_v4, %v3229_v22  ;;  %v10371_v24 = vadd.f32 %v11565_v4, %v3230_v5  ;;  %v3276_v50 = vmax.f32 %v3248_v58, 0.0  ;;  %v3279_v63 = vmax.f32 %v3251_v27, 0.0  ;;  %v3793_v58 = vld [vmem:[%s10557_s3 + $0x2f0] sm:$0xff] }
 0x2be   : > { %v10374_v42 = vadd.f32 %v11565_v4, %v3231_v0  ;;  %v3278_v43 = vmax.f32 %v3250_v9, 0.0  ;;  %v3281_v10 = vmax.f32 %v3253_v8, 0.0  ;;  %v3329_v34 = vmul.f32 %v3783_v46, %v3272_v56  ;;  %v3796_v9 = vld [vmem:[%s10557_s3 + $0x308] sm:$0x3f] }
 0x2bf   : > { %v3330_v55 = vmul.f32 %v3784_v15, %v3273_v28  ;;  %v3331_v37 = vmul.f32 %v3785_v57, %v3274_v13  ;;  %v3332_v29 = vmul.f32 %v3786_v49, %v3275_v35  ;;  %v3334_v6 = vmul.f32 %v3788_v18, %v3277_v45  ;;  %v3795_v13 = vld [vmem:[%s10557_s3 + $0x300] sm:$0xff]  ;;  %v3798_v35 = vld [vmem:[%s10557_s3 + $0x318] sm:$0x3f]  ;;  %v3797_v49 = vld [vmem:[%s10557_s3 + $0x310] sm:$0xff] }
 0x2c0   : > { %v10389_v59 = vadd.f32 %v11565_v4, %v3232_v19  ;;  %v10392_v40 = vadd.f32 %v11565_v4, %v3233_v38  ;;  %v10395_v39 = vadd.f32 %v11565_v4, %v3234_v16  ;;  %v10398_v12 = vadd.f32 %v11565_v4, %v3235_v61  ;;  %v3791_v19 = vld [vmem:[%s10557_s3 + $0x2e0] sm:$0xff]  ;;  %v3794_v38 = vld [vmem:[%s10557_s3 + $0x2f8] sm:$0x3f]  ;;  %v3800_v18 = vld [vmem:[%s10557_s3 + $0x328] sm:$0x3f] }
 0x2c1   : > { %v3280_v11 = vmax.f32 %v3252_v25, 0.0  ;;  %v3283_v26 = vmax.f32 %v3255_v23, 0.0  ;;  %v3333_v22 = vmul.f32 %v3787_v3, %v3276_v50  ;;  %v3336_v5 = vmul.f32 %v3790_v21, %v3279_v63  ;;  %v3799_v3 = vld [vmem:[%s10557_s3 + $0x320] sm:$0xff]  ;;  %v3802_v21 = vld [vmem:[%s10557_s3 + $0x338] sm:$0x3f] }
 0x2c2   : > { %v3282_v0 = vmax.f32 %v10344_v51, 0.0  ;;  %v3285_v17 = vmax.f32 %v3257_v36, 0.0  ;;  %v3335_v16 = vmul.f32 %v3789_v20, %v3278_v43  ;;  %v3338_v48 = vmul.f32 %v3792_v33, %v3281_v10 }
 0x2c3   : > { %v3357_v52 = vadd.f32 %v3331_v37, %v3329_v34  ;;  %v3370_v61 = vsel %vm1311_vm0, %v3330_v55, 0.0  ;;  %v3371_v14 = vsel %vm1311_vm0, %v3332_v29, 0.0  ;;  %v3373_v60 = vsel %vm1311_vm0, %v3334_v6, 0.0 }
 0x2c4   : > { %v10412_v32 = vadd.f32 %v11565_v4, %v10316_v30  ;;  %v3284_v54 = vmax.f32 %v10354_v31, 0.0  ;;  %v3287_v2 = vmax.f32 %v3259_v47, 0.0  ;;  %v3372_v27 = vadd.f32 %v3371_v14, %v3370_v61  ;;  %v11569_v14 = vld [vmem:[#allocation54_spill] sm:$0xff] }
 0x2c5   : > { %v3337_v25 = vmul.f32 %v3791_v19, %v3280_v11  ;;  %v3340_v8 = vmul.f32 %v3794_v38, %v3283_v26  ;;  %v3358_v51 = vadd.f32 %v3357_v52, %v3333_v22  ;;  %v3375_v56 = vsel %vm1311_vm0, %v3336_v5, 0.0  ;;  %v3806_v19 = vld [vmem:[%s10557_s3 + $0x358] sm:$0x3f] }
 0x2c6   : > { %v3267_v30 = vadd.f32 %v11565_v4, %v10324_v53  ;;  %v3286_v15 = vmax.f32 %v10358_v44, 0.0  ;;  %v3289_v28 = vmax.f32 %v10374_v42, 0.0  ;;  %v3374_v45 = vadd.f32 %v3373_v60, %v3372_v27 }
 0x2c7   : > { %v3339_v46 = vmul.f32 %v3793_v58, %v3282_v0  ;;  %v3342_v23 = vmul.f32 %v3796_v9, %v3285_v17  ;;  %v3359_v31 = vadd.f32 %v3358_v51, %v3335_v16  ;;  %v3377_v36 = vsel %vm1311_vm0, %v3338_v48, 0.0  ;;  %v3803_v17 = vld [vmem:[%s10557_s3 + $0x340] sm:$0xff] }
 0x2c8   : > { %v10435_v53 = vadd.f32 %v11565_v4, %v10327_v62  ;;  %v3288_v44 = vmax.f32 %v10371_v24, 0.0  ;;  %v3291_v57 = vmax.f32 %v10392_v40, 0.0  ;;  %v3376_v47 = vadd.f32 %v3375_v56, %v3374_v45  ;;  %v3804_v40 = vld [vmem:[%s10557_s3 + $0x348] sm:$0x3f]  ;;  %v3807_v51 = vld [vmem:[%s10557_s3 + $0x360] sm:$0xff] }
 0x2c9   : > { %v3341_v50 = vmul.f32 %v3795_v13, %v3284_v54  ;;  %v3344_v63 = vmul.f32 %v3798_v35, %v3287_v2  ;;  %v3360_v42 = vadd.f32 %v3359_v31, %v3337_v25  ;;  %v3379_v43 = vsel %vm1311_vm0, %v3340_v8, 0.0  ;;  %v3808_v54 = vld [vmem:[%s10557_s3 + $0x368] sm:$0x3f]  ;;  %v3810_v56 = vld [vmem:[%s10557_s3 + $0x378] sm:$0x3f] }
 0x2ca   : > { %v3269_v62 = vadd.f32 %v11565_v4, %v10330_v1  ;;  %v3290_v24 = vmax.f32 %v10389_v59, 0.0  ;;  %v3293_v10 = vmax.f32 %v10398_v12, 0.0  ;;  %v3378_v34 = vadd.f32 %v3377_v36, %v3376_v47  ;;  %v3801_v59 = vld [vmem:[%s10557_s3 + $0x330] sm:$0xff] }
 0x2cb   : > { %v3343_v20 = vmul.f32 %v3797_v49, %v3286_v15  ;;  %v3346_v33 = vmul.f32 %v3800_v18, %v3289_v28  ;;  %v3361_v55 = vadd.f32 %v3360_v42, %v3339_v46  ;;  %v3381_v37 = vsel %vm1311_vm0, %v3342_v23, 0.0  ;;  %v11570_v45 = vld [vmem:[#allocation30_spill] sm:$0xff]  ;;  %v11571_v23 = vld [vmem:[#allocation27_spill] sm:$0xff] }
 0x2cc   : > { %v3271_v1 = vadd.f32 %v11565_v4, %v10336_v41  ;;  %v3292_v29 = vmax.f32 %v10395_v39, 0.0  ;;  %v3295_v6 = vmax.f32 %v3267_v30, 0.0  ;;  %v3380_v12 = vadd.f32 %v3379_v43, %v3378_v34 }
 0x2cd   : > { %v3345_v11 = vmul.f32 %v3799_v3, %v3288_v44  ;;  %v3348_v26 = vmul.f32 %v3802_v21, %v3291_v57  ;;  %v3362_v22 = vadd.f32 %v3361_v55, %v3341_v50  ;;  %v3383_v5 = vsel %vm1311_vm0, %v3344_v63, 0.0 }
 0x2ce   : > { %v3270_v41 = vadd.f32 %v11565_v4, %v10333_v7  ;;  %v3294_v39 = vmax.f32 %v10412_v32, 0.0  ;;  %v3297_v0 = vmax.f32 %v3269_v62, 0.0  ;;  %v3382_v38 = vadd.f32 %v3381_v37, %v3380_v12  ;;  %v3805_v32 = vld [vmem:[%s10557_s3 + $0x350] sm:$0xff] }
 0x2cf   : > { %v3347_v16 = vmul.f32 %v3801_v59, %v3290_v24  ;;  %v3350_v48 = vmul.f32 %v3804_v40, %v3293_v10  ;;  %v3363_v52 = vadd.f32 %v3362_v22, %v3343_v20  ;;  %v3385_v61 = vsel %vm1311_vm0, %v3346_v33, 0.0 }
 0x2d0   : > { %v2713_v60 = vrot.slane %v11569_v14, 4  ;;  %v3296_v4 = vmax.f32 %v10435_v53, 0.0  ;;  %v3299_v7 = vmax.f32 %v3271_v1, 0.0  ;;  %v3384_v2 = vadd.f32 %v3383_v5, %v3382_v38  ;;  %v3809_v53 = vld [vmem:[%s10557_s3 + $0x370] sm:$0xff] }
 0x2d1   : > { %v3349_v58 = vmul.f32 %v3803_v17, %v3292_v29  ;;  %v3352_v9 = vmul.f32 %v3806_v19, %v3295_v6  ;;  %v3364_v27 = vadd.f32 %v3363_v52, %v3345_v11  ;;  %v3387_v25 = vsel %vm1311_vm0, %v3348_v26, 0.0 }
 0x2d2   : > { %v3298_v8 = vmax.f32 %v3270_v41, 0.0  ;;  %v3386_v30 = vadd.f32 %v3385_v61, %v3384_v2  ;;  %v3351_v15 = vmul.f32 %v3805_v32, %v3294_v39  ;;  %v3354_v28 = vmul.f32 %v3808_v54, %v3297_v0 }
 0x2d3   : > { %v3365_v13 = vadd.f32 %v3364_v27, %v3347_v16  ;;  %v3389_v35 = vsel %vm1311_vm0, %v3350_v48, 0.0  ;;  %v1343_v46 = vrot.slane %v11570_v45, 2  ;;  %v2029_v31 = vrot.slane %v11571_v23, 2 }
 0x2d4   : > { %v2714_v36 = vadd.f32 %v2713_v60, %v11569_v14  ;;  %v3388_v44 = vadd.f32 %v3387_v25, %v3386_v30  ;;  %v3353_v57 = vmul.f32 %v3807_v51, %v3296_v4  ;;  %v3356_v49 = vmul.f32 %v3810_v56, %v3299_v7 }
 0x2d5   : > { %v3366_v18 = vadd.f32 %v3365_v13, %v3349_v58  ;;  %v3391_v47 = vsel %vm1311_vm0, %v3352_v9, 0.0  ;;  %v3355_v63 = vmul.f32 %v3809_v53, %v3298_v8  ;;  %v3393_v43 = vsel %vm1311_vm0, %v3354_v28, 0.0 }
 0x2d6   : > { %v3390_v50 = vadd.f32 %v3389_v35, %v3388_v44  ;;  %v1344_v62 = vadd.f32 %v1343_v46, %v11570_v45  ;;  %v2030_v10 = vadd.f32 %v2029_v31, %v11571_v23  ;;  %v2715_v3 = vrot.slane %v2714_v36, 2 }
 0x2d7   : > { %v3367_v42 = vadd.f32 %v3366_v18, %v3351_v15  ;;  %v3395_v34 = vsel %vm1311_vm0, %v3356_v49, 0.0  ;;  %v3407_v16 = vstv %s3406_s15 }
 0x2d8   : > { %v3392_v24 = vadd.f32 %v3391_v47, %v3390_v50  ;;  %v1345_v37 = vrot.slane %v1344_v62, 1  ;;  %v2031_v1 = vrot.slane %v2030_v10, 1  ;;  %v2716_v29 = vadd.f32 %v2715_v3, %v2714_v36 }
 0x2d9   : > { %v3368_v21 = vadd.f32 %v3367_v42, %v3353_v57 }
 0x2da   : > { %v3394_v20 = vadd.f32 %v3393_v43, %v3392_v24  ;;  %v1346_v40 = vadd.f32 %v1345_v37, %v1344_v62  ;;  %v2032_v12 = vadd.f32 %v2031_v1, %v2030_v10  ;;  %v2717_v11 = vrot.slane %v2716_v29, 1 }
 0x2db   : > { %v3369_v33 = vadd.f32 %v3368_v21, %v3355_v63 }
 0x2dc   : > { %v3396_v55 = vadd.f32 %v3395_v34, %v3394_v20  ;;  %v2033_v5 = vadd.f32 %v2032_v12, %v1346_v40  ;;  %v2718_v41 = vadd.f32 %v2717_v11, %v2716_v29 }
 0x2de   : > { %v3397_v6 = vsel %vm1311_vm0, %v3396_v55, 0.0  ;;  %v2719_v17 = vadd.f32 %v2718_v41, %v2033_v5 }
 0x2df   : > { %v3398_v59 = vadd.f32 %v3397_v6, %v3369_v33 }
 0x2e1   : > { %v3399_v26 = vrot.slane %v3398_v59, 4 }
 0x2e3   : > { %v3400_v22 = vadd.f32 %v3399_v26, %v3398_v59 }
 0x2e5   : > { %v3401_v39 = vrot.slane %v3400_v22, 2 }
 0x2e7   : > { %v3402_v0 = vadd.f32 %v3401_v39, %v3400_v22 }
 0x2e9   : > { %v3403_v19 = vrot.slane %v3402_v0, 1 }
 0x2eb   : > { %v3404_v38 = vadd.f32 %v3403_v19, %v3402_v0 }
 0x2ed   : > { %v3405_v48 = vadd.f32 %v3404_v38, %v2719_v17 }
 0x2ef   : > { %v3408_v52 = vadd.f32 %v3407_v16, %v3405_v48 }
 0x2f1   : > { %v3409_v61 = vmul.f32 0.5, %v3408_v52 }
 0x2f3   : > { %3874 = vtanh.f32 %v3409_v61 }
 0x2fd   : > { %v3875_v14 = vpop.eup %3874 }
 0x2fe   : > { %v3411_v60 = vadd.f32 1.0, %v3875_v14 }
 0x300   : > { %v3412_v4 = vmul.f32 0.5, %v3411_v60 }
 0x302   : > { %3413 = vst [vmem:[%s407_s13] sm:$0x1] %v3412_v4 }
 0x303   : > { %4441 = shalt.err (!%p4438_p4)
}
 0x304   : > { %s4442_s10 = scalar_lea.hbm %s10510_s29, 16  ;;  %s4446_s18 = scalar_lea.hbm %s10559_s5, 32 }
 0x305   : > { %p4443_p5 = scmp.ne.s32.totalorder %s10510_s29, %s4442_s10  ;;  %p4447_p12 = scmp.lt.u32.totalorder %s10510_s29, %s10559_s5 }
 0x306   : > { %p4448_p0 = scmp.lt.u32.totalorder %s4446_s18, %s4442_s10  ;;  %p4450_p8 = scmp.lt.u32.totalorder %s4442_s10, %s10510_s29 }
 0x307   : > { %p4444_p6 = pnand %p4443_p5, %p11572_p7 }
 0x308   : > { %p4449_p2 = por %p4448_p0, %p4447_p12 }
 0x309   : > { %p4445_p11 = pneg %p4444_p6 }
 0x30a   : > { %p4451_p9 = por %p4450_p8, %p4449_p2 }
 0x30c   : > { %p4452_p13 = pnand %p4451_p9, %p4445_p11 }
 0x30e   : > { %4455 = shalt.err (!%p4452_p13)
}
 0x30f   : > { %3822 = dma.vmem_to_hbm [thread:$0]  (%p11572_p7), %s10512_s14, 16, %s10510_s29, %s3415_s11  }
 0x310 PF: > { %s3439_s15 = sand.u32 1, %s4486_s20   ;;  %p11573_p1 = scmp.ne.s32.totalorder %s10902_s6, 0 }
 0x311   : > { %s3440_s27 = scalar_lea.sflag [#allocation5], %s3439_s15 }
 0x312   : > { %p3832_p3 = pnand %p3514_p10, %p11573_p1 }
 0x314   : > { %4481 = dma.done.wait (!%p3832_p3), %s3440_s27, 16  }
 0x315   : > { %4483 = vsyncadd (!%p3832_p3), %s3440_s27, 4294967280  ;;  %p18_p4 = scmp.ge.s32.totalorder %s4561_s25, 4   ;;  %s11574_s20 = smov %s4490_s21 }
 0x316   : > { %s11575_s21 = smov %s4494_s22  ;;  %s11576_s22 = smov %s4573_s28 }
 0x317   : > { %s11577_s23 = smov %s4561_s25  ;;  %20 = sbr.rel (!%p18_p4) target bundleno = 7 (0x7), region = 132 }
 0x31e   :  { %3444 = vsyncpa [#allocation5], 1 }
 0x31f   :  { %3446 = vsyncpa [#allocation5 + $0x1], 1 }
 0x320   :  { %3447 = vsyncpa [#allocation6], 1 }
 0x321   :  { %3449 = vsyncpa [#allocation6 + $0x1], 1 }
 0x322   :  { %3450 = vsyncpa [#allocation8], 1 }

</bundles_post_ra>
